<compile_context>
chip_gen: v7x
topology: tpu7x:2x2x1
jax: 0.10.0
libtpu: 0.0.40
codegen_flags: <defaults>
</compile_context>

<pallas_src>
import functools
import math

import jax
import jax.numpy as jnp
from jax.experimental import pallas as pl
from jax.experimental.pallas import tpu as pltpu

EPS = 1e-5          # torch BatchNorm1d default eps
KERNEL_SIZE = 3     # arc_kernel
DILATION = 3        # arc_dilation_resnet1d


# ----------------------------------------------------------------------------
# In-kernel helpers (channel-first: activations are (C, L) tiles, L on lanes)
# ----------------------------------------------------------------------------
def _shift_lanes(x, off, lane_idx):
    """y[:, l] = x[:, l + off], zero outside [0, L). `off` is a static int."""
    if off == 0:
        return x
    L = x.shape[1]
    rolled = pltpu.roll(x, shift=(-off) % L, axis=1)          # XLU, lane rotate
    valid = jnp.logical_and(lane_idx + off >= 0, lane_idx + off < L)
    return jnp.where(valid, rolled, 0.0)


def _conv1d_cf(x, w, b, K, dilation):
    """Channel-first conv, padding='same'. x:(Cin,L) w:(Cout,K*Cin) b:(Cout,1)."""
    C, L = x.shape
    pad = dilation * (K - 1) // 2
    lane_idx = jax.lax.broadcasted_iota(jnp.int32, (C, L), 1)
    cols = [_shift_lanes(x, k * dilation - pad, lane_idx) for k in range(K)]
    im2col = jnp.concatenate(cols, axis=0)                     # (K*Cin, L)
    return jnp.dot(w, im2col, preferred_element_type=jnp.float32) + b


def _resblock_cf(x, bn1, w1, b1, bn2, w2, b2, K, dilation):
    """x + Conv1x1(ReLU(BN(Conv_dilated(ReLU(BN(x)))))).  x:(F,L).

    bn* are (C, 2) tensors: column 0 = folded scale, column 1 = folded shift
    (eval-mode BatchNorm with running statistics)."""
    h = jnp.maximum(x * bn1[:, 0:1] + bn1[:, 1:2], 0.0)
    h = _conv1d_cf(h, w1, b1, K, dilation)
    h = jnp.maximum(h * bn2[:, 0:1] + bn2[:, 1:2], 0.0)
    out = jnp.dot(w2, h, preferred_element_type=jnp.float32) + b2
    return x + out


# ----------------------------------------------------------------------------
# Kernels
# ----------------------------------------------------------------------------
def _stage_kernel(x_ref, wa, ba,
                  r1bn1, r1w1, r1b1, r1bn2, r1w2, r1b2,
                  r2bn1, r2w1, r2b1, r2bn2, r2w2, r2b2,
                  wb, bb, o_ref, *, K, dilation):
    """Fused conv -> resblock -> resblock -> conv on one batch element (C, L)."""
    x = x_ref[...]
    h = _conv1d_cf(x, wa[...], ba[...], K, 1)
    h = _resblock_cf(h, r1bn1[...], r1w1[...], r1b1[...],
                     r1bn2[...], r1w2[...], r1b2[...], K, dilation)
    h = _resblock_cf(h, r2bn1[...], r2w1[...], r2b1[...],
                     r2bn2[...], r2w2[...], r2b2[...], K, dilation)
    h = _conv1d_cf(h, wb[...], bb[...], K, 1)
    o_ref[...] = h.astype(o_ref.dtype)


def _latent_kernel(h_ref, w1_ref, b1_ref, w2_ref, b2_ref, z_ref, r_ref):
    """Fused to_latent + from_latent over the whole batch (batch folded into M).

    Weights are bf16 (DMA-bound stage); accumulation is f32 on the MXU."""
    h = h_ref[...].astype(jnp.bfloat16)                        # (B, rank*L)
    z = jnp.dot(h, w1_ref[...], preferred_element_type=jnp.float32) + b1_ref[...]
    z = jnp.maximum(z, 0.0)                                    # (B, latent)
    z_ref[...] = z.astype(z_ref.dtype)
    r = jnp.dot(z.astype(jnp.bfloat16), w2_ref[...],
                preferred_element_type=jnp.float32) + b2_ref[...]
    r_ref[...] = jnp.maximum(r, 0.0).astype(r_ref.dtype)       # (B, rank*L)


# ----------------------------------------------------------------------------
# Pallas-call wrappers
# ----------------------------------------------------------------------------
def conv_res_res_conv(x, stage, *, K=KERNEL_SIZE, dilation=DILATION):
    """x: [B, Cin, L] (NCL).  stage: dict of kernel-layout params.  -> [B, Cout, L]."""
    B, Cin, L = x.shape
    Cout = stage["wb"].shape[0]
    weights = [
        stage["wa"], stage["ba"],
        stage["r1"]["bn1"], stage["r1"]["w1"], stage["r1"]["b1"],
        stage["r1"]["bn2"], stage["r1"]["w2"], stage["r1"]["b2"],
        stage["r2"]["bn1"], stage["r2"]["w1"], stage["r2"]["b1"],
        stage["r2"]["bn2"], stage["r2"]["w2"], stage["r2"]["b2"],
        stage["wb"], stage["bb"],
    ]
    kern = functools.partial(_stage_kernel, K=K, dilation=dilation)
    in_specs = [pl.BlockSpec((None, Cin, L), lambda i: (i, 0, 0))]
    in_specs += [pl.BlockSpec(w.shape, lambda i: (0, 0)) for w in weights]
    return pl.pallas_call(
        kern,
        out_shape=jax.ShapeDtypeStruct((B, Cout, L), jnp.float32),
        grid=(B,),
        in_specs=in_specs,
        out_specs=pl.BlockSpec((None, Cout, L), lambda i: (i, 0, 0)),
        compiler_params=pltpu.CompilerParams(dimension_semantics=("parallel",)),
    )(x, *weights)


def latent(h_flat, p):
    """h_flat: [B, rank*L] -> (z: [B, latent], r_flat: [B, rank*L])."""
    B, D = h_flat.shape
    latent_dim = p["to_lat_w"].shape[1]
    return pl.pallas_call(
        _latent_kernel,
        out_shape=(jax.ShapeDtypeStruct((B, latent_dim), jnp.float32),
                   jax.ShapeDtypeStruct((B, D), jnp.float32)),
    )(h_flat, p["to_lat_w"], p["to_lat_b"], p["from_lat_w"], p["from_lat_b"])


# ----------------------------------------------------------------------------
# Parameters (deterministic, synthetic), converted to kernel layout
# ----------------------------------------------------------------------------
def init_params(key, embedding_dim=4, filters=32, kernel=3,
                bottleneck=0.5, latent_dim=32, rank=64, L=128):
    nb = math.floor(bottleneck * filters)
    keys = iter(jax.random.split(key, 64))

    def rnd(shape, scale=0.05):
        return scale * jax.random.normal(next(keys), shape, dtype=jnp.float32)

    def conv_w(cout, cin, k):
        # Generated in PyTorch Conv1d layout (Cout, Cin, K); stored as (Cout, K*Cin)
        # matching the im2col row order [tap-major, channel-minor].
        w = rnd((cout, cin, k))
        return jnp.transpose(w, (0, 2, 1)).reshape(cout, k * cin)

    def bn(c):
        # Freshly-built torch BatchNorm1d in .eval(): gamma=1, beta=0, mean=0, var=1.
        gamma = jnp.ones((c,), jnp.float32)
        beta = jnp.zeros((c,), jnp.float32)
        mean = jnp.zeros((c,), jnp.float32)
        var = jnp.ones((c,), jnp.float32)
        scale = gamma * jax.lax.rsqrt(var + EPS)
        shift = beta - mean * scale
        return jnp.stack([scale, shift], axis=1)           # (c, 2)

    def res_params():
        return dict(
            bn1=bn(filters), w1=conv_w(nb, filters, kernel), b1=rnd((nb, 1)),
            bn2=bn(nb), w2=conv_w(filters, nb, 1), b2=rnd((filters, 1)),
        )

    p = {}
    # encoder: Conv1d -> Res -> Res -> Conv1d
    p["enc"] = dict(
        wa=conv_w(filters, embedding_dim, kernel), ba=rnd((filters, 1)),
        r1=res_params(), r2=res_params(),
        wb=conv_w(rank, filters, kernel), bb=rnd((rank, 1)),
    )
    # to_latent / from_latent (PyTorch Linear weight is (Dout, Din); store W^T, bf16)
    w_to = rnd((latent_dim, rank * L), 0.01)
    p["to_lat_w"] = jnp.transpose(w_to).astype(jnp.bfloat16)       # (rank*L, latent)
    p["to_lat_b"] = rnd((1, latent_dim))
    w_from = rnd((rank * L, latent_dim), 0.01)
    p["from_lat_w"] = jnp.transpose(w_from).astype(jnp.bfloat16)   # (latent, rank*L)
    p["from_lat_b"] = rnd((1, rank * L))
    # decoder: ConvTranspose1d (stride=1, pad=1) == Conv1d with flipped/swapped weight
    wt = rnd((rank, filters, kernel))                              # torch (Cin, Cout, K)
    dec_wa = jnp.transpose(jnp.flip(wt, axis=2), (1, 2, 0)).reshape(filters, kernel * rank)
    p["dec"] = dict(
        wa=dec_wa, ba=rnd((filters, 1)),
        r1=res_params(), r2=res_params(),
        wb=conv_w(embedding_dim, filters, kernel), bb=rnd((embedding_dim, 1)),
    )
    return p


# ----------------------------------------------------------------------------
# Forward pass (matches Seq2Seq.forward: returns (x_rec, z))
# ----------------------------------------------------------------------------
def seq2seq_forward(x_ncl, params):
    B, Cemb, L = x_ncl.shape

    # encode (input is already channel-first NCL — no transpose needed)
    h = conv_res_res_conv(x_ncl, params["enc"])                 # [B, rank, L]

    # to_latent: Flatten(1) on [B, rank, L] is channel-major == row-major reshape (free)
    h_flat = h.reshape(B, -1)                                   # [B, rank*L]
    z, r_flat = latent(h_flat, params)                          # [B, latent], [B, rank*L]

    # from_latent output .view(B, -1, L) is the inverse free reshape
    r = r_flat.reshape(B, -1, L)                                # [B, rank, L]

    # decode (output lands directly in NCL layout)
    x_rec = conv_res_res_conv(r, params["dec"])                 # [B, emb, L]
    return x_rec, z


if __name__ == "__main__":
    key = jax.random.PRNGKey(0)
    pkey, xkey = jax.random.split(key)

    # L is fixed to 128 by the architecture (Linear(128*64, latent_dim)).
    B, C, L = 2, 4, 128
    params = init_params(pkey, embedding_dim=C, L=L)
    x = jax.random.normal(xkey, (B, C, L), dtype=jnp.float32)

    x_rec, z = jax.jit(seq2seq_forward)(x, params)
    jax.block_until_ready((x_rec, z))

    assert x_rec.shape == (B, C, L), x_rec.shape
    assert z.shape == (B, 32), z.shape
    assert jnp.all(jnp.isfinite(x_rec)) and jnp.all(jnp.isfinite(z))
    print("KERNEL_OK")
</pallas_src>

<mosaic_0001>
module attributes {stable_mosaic.version = 11 : i64} {
  func.func @_stage_kernel(%arg0: i32, %arg1: memref<1x4x128xf32, #tpu.memory_space<vmem>>, %arg2: memref<32x12xf32, #tpu.memory_space<vmem>>, %arg3: memref<32x1xf32, #tpu.memory_space<vmem>>, %arg4: memref<32x2xf32, #tpu.memory_space<vmem>>, %arg5: memref<16x96xf32, #tpu.memory_space<vmem>>, %arg6: memref<16x1xf32, #tpu.memory_space<vmem>>, %arg7: memref<16x2xf32, #tpu.memory_space<vmem>>, %arg8: memref<32x16xf32, #tpu.memory_space<vmem>>, %arg9: memref<32x1xf32, #tpu.memory_space<vmem>>, %arg10: memref<32x2xf32, #tpu.memory_space<vmem>>, %arg11: memref<16x96xf32, #tpu.memory_space<vmem>>, %arg12: memref<16x1xf32, #tpu.memory_space<vmem>>, %arg13: memref<16x2xf32, #tpu.memory_space<vmem>>, %arg14: memref<32x16xf32, #tpu.memory_space<vmem>>, %arg15: memref<32x1xf32, #tpu.memory_space<vmem>>, %arg16: memref<64x96xf32, #tpu.memory_space<vmem>>, %arg17: memref<64x1xf32, #tpu.memory_space<vmem>>, %arg18: memref<1x64x128xf32, #tpu.memory_space<vmem>>) attributes {dimension_semantics = [#tpu.dimension_semantics<parallel>], iteration_bounds = array<i64: 2>, scalar_prefetch = 0 : i64, scratch_operands = 0 : i64, tpu.core_type = #tpu.core_type<tc>, window_params = [{transform_indices = @transform_0, window_bounds = array<i64: 1, 4, 128>}, {pipeline_mode = #tpu.pipeline_mode<synchronous>, transform_indices = @transform_1, window_bounds = array<i64: 32, 12>}, {pipeline_mode = #tpu.pipeline_mode<synchronous>, transform_indices = @transform_2, window_bounds = array<i64: 32, 1>}, {pipeline_mode = #tpu.pipeline_mode<synchronous>, transform_indices = @transform_3, window_bounds = array<i64: 32, 2>}, {pipeline_mode = #tpu.pipeline_mode<synchronous>, transform_indices = @transform_4, window_bounds = array<i64: 16, 96>}, {pipeline_mode = #tpu.pipeline_mode<synchronous>, transform_indices = @transform_5, window_bounds = array<i64: 16, 1>}, {pipeline_mode = #tpu.pipeline_mode<synchronous>, transform_indices = @transform_6, window_bounds = array<i64: 16, 2>}, {pipeline_mode = #tpu.pipeline_mode<synchronous>, transform_indices = @transform_7, window_bounds = array<i64: 32, 16>}, {pipeline_mode = #tpu.pipeline_mode<synchronous>, transform_indices = @transform_8, window_bounds = array<i64: 32, 1>}, {pipeline_mode = #tpu.pipeline_mode<synchronous>, transform_indices = @transform_9, window_bounds = array<i64: 32, 2>}, {pipeline_mode = #tpu.pipeline_mode<synchronous>, transform_indices = @transform_10, window_bounds = array<i64: 16, 96>}, {pipeline_mode = #tpu.pipeline_mode<synchronous>, transform_indices = @transform_11, window_bounds = array<i64: 16, 1>}, {pipeline_mode = #tpu.pipeline_mode<synchronous>, transform_indices = @transform_12, window_bounds = array<i64: 16, 2>}, {pipeline_mode = #tpu.pipeline_mode<synchronous>, transform_indices = @transform_13, window_bounds = array<i64: 32, 16>}, {pipeline_mode = #tpu.pipeline_mode<synchronous>, transform_indices = @transform_14, window_bounds = array<i64: 32, 1>}, {pipeline_mode = #tpu.pipeline_mode<synchronous>, transform_indices = @transform_15, window_bounds = array<i64: 64, 96>}, {pipeline_mode = #tpu.pipeline_mode<synchronous>, transform_indices = @transform_16, window_bounds = array<i64: 64, 1>}, {transform_indices = @transform_17, window_bounds = array<i64: 1, 64, 128>}]} {
    %c0 = arith.constant 0 : index
    %c0_0 = arith.constant 0 : index
    %c0_1 = arith.constant 0 : index
    %0 = vector.load %arg1[%c0, %c0_0, %c0_1] : memref<1x4x128xf32, #tpu.memory_space<vmem>>, vector<1x4x128xf32>
    %1 = vector.shape_cast %0 : vector<1x4x128xf32> to vector<4x128xf32>
    %c0_2 = arith.constant 0 : index
    %c0_3 = arith.constant 0 : index
    %2 = vector.load %arg2[%c0_2, %c0_3] : memref<32x12xf32, #tpu.memory_space<vmem>>, vector<32x12xf32>
    %c0_4 = arith.constant 0 : index
    %c0_5 = arith.constant 0 : index
    %3 = vector.load %arg3[%c0_4, %c0_5] : memref<32x1xf32, #tpu.memory_space<vmem>>, vector<32x1xf32>
    %4 = tpu.iota {dimensions = array<i32: 1>} : vector<4x128xi32>
    %c1_i32 = arith.constant 1 : i32
    %5 = tpu.dynamic_rotate %1 by %c1_i32 dim 1 : vector<4x128xf32>, i32 -> vector<4x128xf32>
    %c-1_i32 = arith.constant -1 : i32
    %6 = vector.broadcast %c-1_i32 : i32 to vector<4x128xi32>
    %7 = arith.addi %4, %6 : vector<4x128xi32>
    %c0_i32 = arith.constant 0 : i32
    %8 = vector.broadcast %c0_i32 : i32 to vector<4x128xi32>
    %9 = arith.cmpi sge, %7, %8 : vector<4x128xi32>
    %c-1_i32_6 = arith.constant -1 : i32
    %10 = vector.broadcast %c-1_i32_6 : i32 to vector<4x128xi32>
    %11 = arith.addi %4, %10 : vector<4x128xi32>
    %c128_i32 = arith.constant 128 : i32
    %12 = vector.broadcast %c128_i32 : i32 to vector<4x128xi32>
    %13 = arith.cmpi slt, %11, %12 : vector<4x128xi32>
    %14 = arith.andi %9, %13 : vector<4x128xi1>
    %cst = arith.constant 0.000000e+00 : f32
    %15 = vector.broadcast %cst : f32 to vector<4x128xf32>
    %16 = arith.select %14, %5, %15 : vector<4x128xi1>, vector<4x128xf32>
    %c127_i32 = arith.constant 127 : i32
    %17 = tpu.dynamic_rotate %1 by %c127_i32 dim 1 : vector<4x128xf32>, i32 -> vector<4x128xf32>
    %c1_i32_7 = arith.constant 1 : i32
    %18 = vector.broadcast %c1_i32_7 : i32 to vector<4x128xi32>
    %19 = arith.addi %4, %18 : vector<4x128xi32>
    %c0_i32_8 = arith.constant 0 : i32
    %20 = vector.broadcast %c0_i32_8 : i32 to vector<4x128xi32>
    %21 = arith.cmpi sge, %19, %20 : vector<4x128xi32>
    %c1_i32_9 = arith.constant 1 : i32
    %22 = vector.broadcast %c1_i32_9 : i32 to vector<4x128xi32>
    %23 = arith.addi %4, %22 : vector<4x128xi32>
    %c128_i32_10 = arith.constant 128 : i32
    %24 = vector.broadcast %c128_i32_10 : i32 to vector<4x128xi32>
    %25 = arith.cmpi slt, %23, %24 : vector<4x128xi32>
    %26 = arith.andi %21, %25 : vector<4x128xi1>
    %cst_11 = arith.constant 0.000000e+00 : f32
    %27 = vector.broadcast %cst_11 : f32 to vector<4x128xf32>
    %28 = arith.select %26, %17, %27 : vector<4x128xi1>, vector<4x128xf32>
    %29 = tpu.concatenate %16, %1, %28 in 0 : vector<4x128xf32>, vector<4x128xf32>, vector<4x128xf32> -> vector<12x128xf32>
    %cst_12 = arith.constant dense<0.000000e+00> : vector<32x128xf32>
    %30 = tpu.matmul %2, %29, %cst_12 {dimension_numbers = #tpu.dot_dimension_numbers<[1], [0], [0], [1], [0, 0, 1, 1], [], []>} : vector<32x12xf32>, vector<12x128xf32>, vector<32x128xf32> -> vector<32x128xf32>
    %31 = vector.broadcast %3 : vector<32x1xf32> to vector<32x128xf32>
    %32 = arith.addf %30, %31 : vector<32x128xf32>
    %c0_13 = arith.constant 0 : index
    %c0_14 = arith.constant 0 : index
    %33 = vector.load %arg4[%c0_13, %c0_14] : memref<32x2xf32, #tpu.memory_space<vmem>>, vector<32x2xf32>
    %c0_15 = arith.constant 0 : index
    %c0_16 = arith.constant 0 : index
    %34 = vector.load %arg5[%c0_15, %c0_16] : memref<16x96xf32, #tpu.memory_space<vmem>>, vector<16x96xf32>
    %c0_17 = arith.constant 0 : index
    %c0_18 = arith.constant 0 : index
    %35 = vector.load %arg6[%c0_17, %c0_18] : memref<16x1xf32, #tpu.memory_space<vmem>>, vector<16x1xf32>
    %c0_19 = arith.constant 0 : index
    %c0_20 = arith.constant 0 : index
    %36 = vector.load %arg7[%c0_19, %c0_20] : memref<16x2xf32, #tpu.memory_space<vmem>>, vector<16x2xf32>
    %c0_21 = arith.constant 0 : index
    %c0_22 = arith.constant 0 : index
    %37 = vector.load %arg8[%c0_21, %c0_22] : memref<32x16xf32, #tpu.memory_space<vmem>>, vector<32x16xf32>
    %c0_23 = arith.constant 0 : index
    %c0_24 = arith.constant 0 : index
    %38 = vector.load %arg9[%c0_23, %c0_24] : memref<32x1xf32, #tpu.memory_space<vmem>>, vector<32x1xf32>
    %39 = vector.extract_strided_slice %33 {offsets = [0, 0], sizes = [32, 1], strides = [1, 1]} : vector<32x2xf32> to vector<32x1xf32>
    %40 = vector.broadcast %39 : vector<32x1xf32> to vector<32x128xf32>
    %41 = arith.mulf %32, %40 : vector<32x128xf32>
    %42 = vector.extract_strided_slice %33 {offsets = [0, 1], sizes = [32, 1], strides = [1, 1]} : vector<32x2xf32> to vector<32x1xf32>
    %43 = vector.broadcast %42 : vector<32x1xf32> to vector<32x128xf32>
    %44 = arith.addf %41, %43 : vector<32x128xf32>
    %cst_25 = arith.constant 0.000000e+00 : f32
    %45 = vector.broadcast %cst_25 : f32 to vector<32x128xf32>
    %46 = arith.maximumf %44, %45 : vector<32x128xf32>
    %47 = tpu.iota {dimensions = array<i32: 1>} : vector<32x128xi32>
    %c3_i32 = arith.constant 3 : i32
    %48 = tpu.dynamic_rotate %46 by %c3_i32 dim 1 : vector<32x128xf32>, i32 -> vector<32x128xf32>
    %c-3_i32 = arith.constant -3 : i32
    %49 = vector.broadcast %c-3_i32 : i32 to vector<32x128xi32>
    %50 = arith.addi %47, %49 : vector<32x128xi32>
    %c0_i32_26 = arith.constant 0 : i32
    %51 = vector.broadcast %c0_i32_26 : i32 to vector<32x128xi32>
    %52 = arith.cmpi sge, %50, %51 : vector<32x128xi32>
    %c-3_i32_27 = arith.constant -3 : i32
    %53 = vector.broadcast %c-3_i32_27 : i32 to vector<32x128xi32>
    %54 = arith.addi %47, %53 : vector<32x128xi32>
    %c128_i32_28 = arith.constant 128 : i32
    %55 = vector.broadcast %c128_i32_28 : i32 to vector<32x128xi32>
    %56 = arith.cmpi slt, %54, %55 : vector<32x128xi32>
    %57 = arith.andi %52, %56 : vector<32x128xi1>
    %cst_29 = arith.constant 0.000000e+00 : f32
    %58 = vector.broadcast %cst_29 : f32 to vector<32x128xf32>
    %59 = arith.select %57, %48, %58 : vector<32x128xi1>, vector<32x128xf32>
    %c125_i32 = arith.constant 125 : i32
    %60 = tpu.dynamic_rotate %46 by %c125_i32 dim 1 : vector<32x128xf32>, i32 -> vector<32x128xf32>
    %c3_i32_30 = arith.constant 3 : i32
    %61 = vector.broadcast %c3_i32_30 : i32 to vector<32x128xi32>
    %62 = arith.addi %47, %61 : vector<32x128xi32>
    %c0_i32_31 = arith.constant 0 : i32
    %63 = vector.broadcast %c0_i32_31 : i32 to vector<32x128xi32>
    %64 = arith.cmpi sge, %62, %63 : vector<32x128xi32>
    %c3_i32_32 = arith.constant 3 : i32
    %65 = vector.broadcast %c3_i32_32 : i32 to vector<32x128xi32>
    %66 = arith.addi %47, %65 : vector<32x128xi32>
    %c128_i32_33 = arith.constant 128 : i32
    %67 = vector.broadcast %c128_i32_33 : i32 to vector<32x128xi32>
    %68 = arith.cmpi slt, %66, %67 : vector<32x128xi32>
    %69 = arith.andi %64, %68 : vector<32x128xi1>
    %cst_34 = arith.constant 0.000000e+00 : f32
    %70 = vector.broadcast %cst_34 : f32 to vector<32x128xf32>
    %71 = arith.select %69, %60, %70 : vector<32x128xi1>, vector<32x128xf32>
    %72 = tpu.concatenate %59, %46, %71 in 0 : vector<32x128xf32>, vector<32x128xf32>, vector<32x128xf32> -> vector<96x128xf32>
    %cst_35 = arith.constant dense<0.000000e+00> : vector<16x128xf32>
    %73 = tpu.matmul %34, %72, %cst_35 {dimension_numbers = #tpu.dot_dimension_numbers<[1], [0], [0], [1], [0, 0, 1, 1], [], []>} : vector<16x96xf32>, vector<96x128xf32>, vector<16x128xf32> -> vector<16x128xf32>
    %74 = vector.broadcast %35 : vector<16x1xf32> to vector<16x128xf32>
    %75 = arith.addf %73, %74 : vector<16x128xf32>
    %76 = vector.extract_strided_slice %36 {offsets = [0, 0], sizes = [16, 1], strides = [1, 1]} : vector<16x2xf32> to vector<16x1xf32>
    %77 = vector.broadcast %76 : vector<16x1xf32> to vector<16x128xf32>
    %78 = arith.mulf %75, %77 : vector<16x128xf32>
    %79 = vector.extract_strided_slice %36 {offsets = [0, 1], sizes = [16, 1], strides = [1, 1]} : vector<16x2xf32> to vector<16x1xf32>
    %80 = vector.broadcast %79 : vector<16x1xf32> to vector<16x128xf32>
    %81 = arith.addf %78, %80 : vector<16x128xf32>
    %cst_36 = arith.constant 0.000000e+00 : f32
    %82 = vector.broadcast %cst_36 : f32 to vector<16x128xf32>
    %83 = arith.maximumf %81, %82 : vector<16x128xf32>
    %cst_37 = arith.constant dense<0.000000e+00> : vector<32x128xf32>
    %84 = tpu.matmul %37, %83, %cst_37 {dimension_numbers = #tpu.dot_dimension_numbers<[1], [0], [0], [1], [0, 0, 1, 1], [], []>} : vector<32x16xf32>, vector<16x128xf32>, vector<32x128xf32> -> vector<32x128xf32>
    %85 = vector.broadcast %38 : vector<32x1xf32> to vector<32x128xf32>
    %86 = arith.addf %84, %85 : vector<32x128xf32>
    %87 = arith.addf %32, %86 : vector<32x128xf32>
    %c0_38 = arith.constant 0 : index
    %c0_39 = arith.constant 0 : index
    %88 = vector.load %arg10[%c0_38, %c0_39] : memref<32x2xf32, #tpu.memory_space<vmem>>, vector<32x2xf32>
    %c0_40 = arith.constant 0 : index
    %c0_41 = arith.constant 0 : index
    %89 = vector.load %arg11[%c0_40, %c0_41] : memref<16x96xf32, #tpu.memory_space<vmem>>, vector<16x96xf32>
    %c0_42 = arith.constant 0 : index
    %c0_43 = arith.constant 0 : index
    %90 = vector.load %arg12[%c0_42, %c0_43] : memref<16x1xf32, #tpu.memory_space<vmem>>, vector<16x1xf32>
    %c0_44 = arith.constant 0 : index
    %c0_45 = arith.constant 0 : index
    %91 = vector.load %arg13[%c0_44, %c0_45] : memref<16x2xf32, #tpu.memory_space<vmem>>, vector<16x2xf32>
    %c0_46 = arith.constant 0 : index
    %c0_47 = arith.constant 0 : index
    %92 = vector.load %arg14[%c0_46, %c0_47] : memref<32x16xf32, #tpu.memory_space<vmem>>, vector<32x16xf32>
    %c0_48 = arith.constant 0 : index
    %c0_49 = arith.constant 0 : index
    %93 = vector.load %arg15[%c0_48, %c0_49] : memref<32x1xf32, #tpu.memory_space<vmem>>, vector<32x1xf32>
    %94 = vector.extract_strided_slice %88 {offsets = [0, 0], sizes = [32, 1], strides = [1, 1]} : vector<32x2xf32> to vector<32x1xf32>
    %95 = vector.broadcast %94 : vector<32x1xf32> to vector<32x128xf32>
    %96 = arith.mulf %87, %95 : vector<32x128xf32>
    %97 = vector.extract_strided_slice %88 {offsets = [0, 1], sizes = [32, 1], strides = [1, 1]} : vector<32x2xf32> to vector<32x1xf32>
    %98 = vector.broadcast %97 : vector<32x1xf32> to vector<32x128xf32>
    %99 = arith.addf %96, %98 : vector<32x128xf32>
    %cst_50 = arith.constant 0.000000e+00 : f32
    %100 = vector.broadcast %cst_50 : f32 to vector<32x128xf32>
    %101 = arith.maximumf %99, %100 : vector<32x128xf32>
    %102 = tpu.iota {dimensions = array<i32: 1>} : vector<32x128xi32>
    %c3_i32_51 = arith.constant 3 : i32
    %103 = tpu.dynamic_rotate %101 by %c3_i32_51 dim 1 : vector<32x128xf32>, i32 -> vector<32x128xf32>
    %c-3_i32_52 = arith.constant -3 : i32
    %104 = vector.broadcast %c-3_i32_52 : i32 to vector<32x128xi32>
    %105 = arith.addi %102, %104 : vector<32x128xi32>
    %c0_i32_53 = arith.constant 0 : i32
    %106 = vector.broadcast %c0_i32_53 : i32 to vector<32x128xi32>
    %107 = arith.cmpi sge, %105, %106 : vector<32x128xi32>
    %c-3_i32_54 = arith.constant -3 : i32
    %108 = vector.broadcast %c-3_i32_54 : i32 to vector<32x128xi32>
    %109 = arith.addi %102, %108 : vector<32x128xi32>
    %c128_i32_55 = arith.constant 128 : i32
    %110 = vector.broadcast %c128_i32_55 : i32 to vector<32x128xi32>
    %111 = arith.cmpi slt, %109, %110 : vector<32x128xi32>
    %112 = arith.andi %107, %111 : vector<32x128xi1>
    %cst_56 = arith.constant 0.000000e+00 : f32
    %113 = vector.broadcast %cst_56 : f32 to vector<32x128xf32>
    %114 = arith.select %112, %103, %113 : vector<32x128xi1>, vector<32x128xf32>
    %c125_i32_57 = arith.constant 125 : i32
    %115 = tpu.dynamic_rotate %101 by %c125_i32_57 dim 1 : vector<32x128xf32>, i32 -> vector<32x128xf32>
    %c3_i32_58 = arith.constant 3 : i32
    %116 = vector.broadcast %c3_i32_58 : i32 to vector<32x128xi32>
    %117 = arith.addi %102, %116 : vector<32x128xi32>
    %c0_i32_59 = arith.constant 0 : i32
    %118 = vector.broadcast %c0_i32_59 : i32 to vector<32x128xi32>
    %119 = arith.cmpi sge, %117, %118 : vector<32x128xi32>
    %c3_i32_60 = arith.constant 3 : i32
    %120 = vector.broadcast %c3_i32_60 : i32 to vector<32x128xi32>
    %121 = arith.addi %102, %120 : vector<32x128xi32>
    %c128_i32_61 = arith.constant 128 : i32
    %122 = vector.broadcast %c128_i32_61 : i32 to vector<32x128xi32>
    %123 = arith.cmpi slt, %121, %122 : vector<32x128xi32>
    %124 = arith.andi %119, %123 : vector<32x128xi1>
    %cst_62 = arith.constant 0.000000e+00 : f32
    %125 = vector.broadcast %cst_62 : f32 to vector<32x128xf32>
    %126 = arith.select %124, %115, %125 : vector<32x128xi1>, vector<32x128xf32>
    %127 = tpu.concatenate %114, %101, %126 in 0 : vector<32x128xf32>, vector<32x128xf32>, vector<32x128xf32> -> vector<96x128xf32>
    %cst_63 = arith.constant dense<0.000000e+00> : vector<16x128xf32>
    %128 = tpu.matmul %89, %127, %cst_63 {dimension_numbers = #tpu.dot_dimension_numbers<[1], [0], [0], [1], [0, 0, 1, 1], [], []>} : vector<16x96xf32>, vector<96x128xf32>, vector<16x128xf32> -> vector<16x128xf32>
    %129 = vector.broadcast %90 : vector<16x1xf32> to vector<16x128xf32>
    %130 = arith.addf %128, %129 : vector<16x128xf32>
    %131 = vector.extract_strided_slice %91 {offsets = [0, 0], sizes = [16, 1], strides = [1, 1]} : vector<16x2xf32> to vector<16x1xf32>
    %132 = vector.broadcast %131 : vector<16x1xf32> to vector<16x128xf32>
    %133 = arith.mulf %130, %132 : vector<16x128xf32>
    %134 = vector.extract_strided_slice %91 {offsets = [0, 1], sizes = [16, 1], strides = [1, 1]} : vector<16x2xf32> to vector<16x1xf32>
    %135 = vector.broadcast %134 : vector<16x1xf32> to vector<16x128xf32>
    %136 = arith.addf %133, %135 : vector<16x128xf32>
    %cst_64 = arith.constant 0.000000e+00 : f32
    %137 = vector.broadcast %cst_64 : f32 to vector<16x128xf32>
    %138 = arith.maximumf %136, %137 : vector<16x128xf32>
    %cst_65 = arith.constant dense<0.000000e+00> : vector<32x128xf32>
    %139 = tpu.matmul %92, %138, %cst_65 {dimension_numbers = #tpu.dot_dimension_numbers<[1], [0], [0], [1], [0, 0, 1, 1], [], []>} : vector<32x16xf32>, vector<16x128xf32>, vector<32x128xf32> -> vector<32x128xf32>
    %140 = vector.broadcast %93 : vector<32x1xf32> to vector<32x128xf32>
    %141 = arith.addf %139, %140 : vector<32x128xf32>
    %142 = arith.addf %87, %141 : vector<32x128xf32>
    %c0_66 = arith.constant 0 : index
    %c0_67 = arith.constant 0 : index
    %143 = vector.load %arg16[%c0_66, %c0_67] : memref<64x96xf32, #tpu.memory_space<vmem>>, vector<64x96xf32>
    %c0_68 = arith.constant 0 : index
    %c0_69 = arith.constant 0 : index
    %144 = vector.load %arg17[%c0_68, %c0_69] : memref<64x1xf32, #tpu.memory_space<vmem>>, vector<64x1xf32>
    %145 = tpu.iota {dimensions = array<i32: 1>} : vector<32x128xi32>
    %c1_i32_70 = arith.constant 1 : i32
    %146 = tpu.dynamic_rotate %142 by %c1_i32_70 dim 1 : vector<32x128xf32>, i32 -> vector<32x128xf32>
    %c-1_i32_71 = arith.constant -1 : i32
    %147 = vector.broadcast %c-1_i32_71 : i32 to vector<32x128xi32>
    %148 = arith.addi %145, %147 : vector<32x128xi32>
    %c0_i32_72 = arith.constant 0 : i32
    %149 = vector.broadcast %c0_i32_72 : i32 to vector<32x128xi32>
    %150 = arith.cmpi sge, %148, %149 : vector<32x128xi32>
    %c-1_i32_73 = arith.constant -1 : i32
    %151 = vector.broadcast %c-1_i32_73 : i32 to vector<32x128xi32>
    %152 = arith.addi %145, %151 : vector<32x128xi32>
    %c128_i32_74 = arith.constant 128 : i32
    %153 = vector.broadcast %c128_i32_74 : i32 to vector<32x128xi32>
    %154 = arith.cmpi slt, %152, %153 : vector<32x128xi32>
    %155 = arith.andi %150, %154 : vector<32x128xi1>
    %cst_75 = arith.constant 0.000000e+00 : f32
    %156 = vector.broadcast %cst_75 : f32 to vector<32x128xf32>
    %157 = arith.select %155, %146, %156 : vector<32x128xi1>, vector<32x128xf32>
    %c127_i32_76 = arith.constant 127 : i32
    %158 = tpu.dynamic_rotate %142 by %c127_i32_76 dim 1 : vector<32x128xf32>, i32 -> vector<32x128xf32>
    %c1_i32_77 = arith.constant 1 : i32
    %159 = vector.broadcast %c1_i32_77 : i32 to vector<32x128xi32>
    %160 = arith.addi %145, %159 : vector<32x128xi32>
    %c0_i32_78 = arith.constant 0 : i32
    %161 = vector.broadcast %c0_i32_78 : i32 to vector<32x128xi32>
    %162 = arith.cmpi sge, %160, %161 : vector<32x128xi32>
    %c1_i32_79 = arith.constant 1 : i32
    %163 = vector.broadcast %c1_i32_79 : i32 to vector<32x128xi32>
    %164 = arith.addi %145, %163 : vector<32x128xi32>
    %c128_i32_80 = arith.constant 128 : i32
    %165 = vector.broadcast %c128_i32_80 : i32 to vector<32x128xi32>
    %166 = arith.cmpi slt, %164, %165 : vector<32x128xi32>
    %167 = arith.andi %162, %166 : vector<32x128xi1>
    %cst_81 = arith.constant 0.000000e+00 : f32
    %168 = vector.broadcast %cst_81 : f32 to vector<32x128xf32>
    %169 = arith.select %167, %158, %168 : vector<32x128xi1>, vector<32x128xf32>
    %170 = tpu.concatenate %157, %142, %169 in 0 : vector<32x128xf32>, vector<32x128xf32>, vector<32x128xf32> -> vector<96x128xf32>
    %cst_82 = arith.constant dense<0.000000e+00> : vector<64x128xf32>
    %171 = tpu.matmul %143, %170, %cst_82 {dimension_numbers = #tpu.dot_dimension_numbers<[1], [0], [0], [1], [0, 0, 1, 1], [], []>} : vector<64x96xf32>, vector<96x128xf32>, vector<64x128xf32> -> vector<64x128xf32>
    %172 = vector.broadcast %144 : vector<64x1xf32> to vector<64x128xf32>
    %173 = arith.addf %171, %172 : vector<64x128xf32>
    %c0_83 = arith.constant 0 : index
    %c0_84 = arith.constant 0 : index
    %c0_85 = arith.constant 0 : index
    %174 = vector.load %arg18[%c0_83, %c0_84, %c0_85] : memref<1x64x128xf32, #tpu.memory_space<vmem>>, vector<1x64x128xf32>
    %175 = vector.shape_cast %174 : vector<1x64x128xf32> to vector<64x128xf32>
    %176 = vector.shape_cast %173 : vector<64x128xf32> to vector<1x64x128xf32>
    tpu.vector_store %arg18[%c0_83, %c0_84, %c0_85], %176 {strides = array<i32>} : memref<1x64x128xf32, #tpu.memory_space<vmem>>, vector<1x64x128xf32>,
    return
  }
  func.func @transform_0(%arg0: i32) -> (i32, i32, i32) {
    %c0_i32 = arith.constant 0 : i32
    %c0_i32_0 = arith.constant 0 : i32
    %c0_i32_1 = arith.constant 0 : i32
    return %arg0, %c0_i32, %c0_i32_0 : i32, i32, i32
  }
  func.func @transform_1(%arg0: i32) -> (i32, i32) {
    %c0_i32 = arith.constant 0 : i32
    %c0_i32_0 = arith.constant 0 : i32
    %c0_i32_1 = arith.constant 0 : i32
    return %c0_i32, %c0_i32_0 : i32, i32
  }
  func.func @transform_2(%arg0: i32) -> (i32, i32) {
    %c0_i32 = arith.constant 0 : i32
    %c0_i32_0 = arith.constant 0 : i32
    %c0_i32_1 = arith.constant 0 : i32
    return %c0_i32, %c0_i32_0 : i32, i32
  }
  func.func @transform_3(%arg0: i32) -> (i32, i32) {
    %c0_i32 = arith.constant 0 : i32
    %c0_i32_0 = arith.constant 0 : i32
    %c0_i32_1 = arith.constant 0 : i32
    return %c0_i32, %c0_i32_0 : i32, i32
  }
  func.func @transform_4(%arg0: i32) -> (i32, i32) {
    %c0_i32 = arith.constant 0 : i32
    %c0_i32_0 = arith.constant 0 : i32
    %c0_i32_1 = arith.constant 0 : i32
    return %c0_i32, %c0_i32_0 : i32, i32
  }
  func.func @transform_5(%arg0: i32) -> (i32, i32) {
    %c0_i32 = arith.constant 0 : i32
    %c0_i32_0 = arith.constant 0 : i32
    %c0_i32_1 = arith.constant 0 : i32
    return %c0_i32, %c0_i32_0 : i32, i32
  }
  func.func @transform_6(%arg0: i32) -> (i32, i32) {
    %c0_i32 = arith.constant 0 : i32
    %c0_i32_0 = arith.constant 0 : i32
    %c0_i32_1 = arith.constant 0 : i32
    return %c0_i32, %c0_i32_0 : i32, i32
  }
  func.func @transform_7(%arg0: i32) -> (i32, i32) {
    %c0_i32 = arith.constant 0 : i32
    %c0_i32_0 = arith.constant 0 : i32
    %c0_i32_1 = arith.constant 0 : i32
    return %c0_i32, %c0_i32_0 : i32, i32
  }
  func.func @transform_8(%arg0: i32) -> (i32, i32) {
    %c0_i32 = arith.constant 0 : i32
    %c0_i32_0 = arith.constant 0 : i32
    %c0_i32_1 = arith.constant 0 : i32
    return %c0_i32, %c0_i32_0 : i32, i32
  }
  func.func @transform_9(%arg0: i32) -> (i32, i32) {
    %c0_i32 = arith.constant 0 : i32
    %c0_i32_0 = arith.constant 0 : i32
    %c0_i32_1 = arith.constant 0 : i32
    return %c0_i32, %c0_i32_0 : i32, i32
  }
  func.func @transform_10(%arg0: i32) -> (i32, i32) {
    %c0_i32 = arith.constant 0 : i32
    %c0_i32_0 = arith.constant 0 : i32
    %c0_i32_1 = arith.constant 0 : i32
    return %c0_i32, %c0_i32_0 : i32, i32
  }
  func.func @transform_11(%arg0: i32) -> (i32, i32) {
    %c0_i32 = arith.constant 0 : i32
    %c0_i32_0 = arith.constant 0 : i32
    %c0_i32_1 = arith.constant 0 : i32
    return %c0_i32, %c0_i32_0 : i32, i32
  }
  func.func @transform_12(%arg0: i32) -> (i32, i32) {
    %c0_i32 = arith.constant 0 : i32
    %c0_i32_0 = arith.constant 0 : i32
    %c0_i32_1 = arith.constant 0 : i32
    return %c0_i32, %c0_i32_0 : i32, i32
  }
  func.func @transform_13(%arg0: i32) -> (i32, i32) {
    %c0_i32 = arith.constant 0 : i32
    %c0_i32_0 = arith.constant 0 : i32
    %c0_i32_1 = arith.constant 0 : i32
    return %c0_i32, %c0_i32_0 : i32, i32
  }
  func.func @transform_14(%arg0: i32) -> (i32, i32) {
    %c0_i32 = arith.constant 0 : i32
    %c0_i32_0 = arith.constant 0 : i32
    %c0_i32_1 = arith.constant 0 : i32
    return %c0_i32, %c0_i32_0 : i32, i32
  }
  func.func @transform_15(%arg0: i32) -> (i32, i32) {
    %c0_i32 = arith.constant 0 : i32
    %c0_i32_0 = arith.constant 0 : i32
    %c0_i32_1 = arith.constant 0 : i32
    return %c0_i32, %c0_i32_0 : i32, i32
  }
  func.func @transform_16(%arg0: i32) -> (i32, i32) {
    %c0_i32 = arith.constant 0 : i32
    %c0_i32_0 = arith.constant 0 : i32
    %c0_i32_1 = arith.constant 0 : i32
    return %c0_i32, %c0_i32_0 : i32, i32
  }
  func.func @transform_17(%arg0: i32) -> (i32, i32, i32) {
    %c0_i32 = arith.constant 0 : i32
    %c0_i32_0 = arith.constant 0 : i32
    %c0_i32_1 = arith.constant 0 : i32
    return %arg0, %c0_i32, %c0_i32_0 : i32, i32, i32
  }
}

module attributes {stable_mosaic.version = 11 : i64} {
  func.func @_latent_kernel(%arg0: memref<2x8192xf32, #tpu.memory_space<vmem>>, %arg1: memref<8192x32xbf16, #tpu.memory_space<vmem>>, %arg2: memref<1x32xf32, #tpu.memory_space<vmem>>, %arg3: memref<32x8192xbf16, #tpu.memory_space<vmem>>, %arg4: memref<1x8192xf32, #tpu.memory_space<vmem>>, %arg5: memref<2x32xf32, #tpu.memory_space<vmem>>, %arg6: memref<2x8192xf32, #tpu.memory_space<vmem>>) attributes {dimension_semantics = [], scalar_prefetch = 0 : i64, scratch_operands = 0 : i64, tpu.core_type = #tpu.core_type<tc>} {
    %c0 = arith.constant 0 : index
    %c0_0 = arith.constant 0 : index
    %0 = vector.load %arg0[%c0, %c0_0] : memref<2x8192xf32, #tpu.memory_space<vmem>>, vector<2x8192xf32>
    %1 = arith.truncf %0 : vector<2x8192xf32> to vector<2x8192xbf16>
    %c0_1 = arith.constant 0 : index
    %c0_2 = arith.constant 0 : index
    %2 = vector.load %arg1[%c0_1, %c0_2] : memref<8192x32xbf16, #tpu.memory_space<vmem>>, vector<8192x32xbf16>
    %cst = arith.constant dense<0.000000e+00> : vector<2x32xf32>
    %3 = tpu.matmul %1, %2, %cst {dimension_numbers = #tpu.dot_dimension_numbers<[1], [0], [0], [1], [0, 0, 1, 1], [], []>} : vector<2x8192xbf16>, vector<8192x32xbf16>, vector<2x32xf32> -> vector<2x32xf32>
    %c0_3 = arith.constant 0 : index
    %c0_4 = arith.constant 0 : index
    %4 = vector.load %arg2[%c0_3, %c0_4] : memref<1x32xf32, #tpu.memory_space<vmem>>, vector<1x32xf32>
    %5 = vector.broadcast %4 : vector<1x32xf32> to vector<2x32xf32>
    %6 = arith.addf %3, %5 : vector<2x32xf32>
    %cst_5 = arith.constant 0.000000e+00 : f32
    %7 = vector.broadcast %cst_5 : f32 to vector<2x32xf32>
    %8 = arith.maximumf %6, %7 : vector<2x32xf32>
    %c0_6 = arith.constant 0 : index
    %c0_7 = arith.constant 0 : index
    %9 = vector.load %arg5[%c0_6, %c0_7] : memref<2x32xf32, #tpu.memory_space<vmem>>, vector<2x32xf32>
    tpu.vector_store %arg5[%c0_6, %c0_7], %8 {strides = array<i32>} : memref<2x32xf32, #tpu.memory_space<vmem>>, vector<2x32xf32>,
    %10 = arith.truncf %8 : vector<2x32xf32> to vector<2x32xbf16>
    %c0_8 = arith.constant 0 : index
    %c0_9 = arith.constant 0 : index
    %11 = vector.load %arg3[%c0_8, %c0_9] : memref<32x8192xbf16, #tpu.memory_space<vmem>>, vector<32x8192xbf16>
    %cst_10 = arith.constant dense<0.000000e+00> : vector<2x8192xf32>
    %12 = tpu.matmul %10, %11, %cst_10 {dimension_numbers = #tpu.dot_dimension_numbers<[1], [0], [0], [1], [0, 0, 1, 1], [], []>} : vector<2x32xbf16>, vector<32x8192xbf16>, vector<2x8192xf32> -> vector<2x8192xf32>
    %c0_11 = arith.constant 0 : index
    %c0_12 = arith.constant 0 : index
    %13 = vector.load %arg4[%c0_11, %c0_12] : memref<1x8192xf32, #tpu.memory_space<vmem>>, vector<1x8192xf32>
    %14 = vector.broadcast %13 : vector<1x8192xf32> to vector<2x8192xf32>
    %15 = arith.addf %12, %14 : vector<2x8192xf32>
    %cst_13 = arith.constant 0.000000e+00 : f32
    %16 = vector.broadcast %cst_13 : f32 to vector<2x8192xf32>
    %17 = arith.maximumf %15, %16 : vector<2x8192xf32>
    %c0_14 = arith.constant 0 : index
    %c0_15 = arith.constant 0 : index
    %18 = vector.load %arg6[%c0_14, %c0_15] : memref<2x8192xf32, #tpu.memory_space<vmem>>, vector<2x8192xf32>
    tpu.vector_store %arg6[%c0_14, %c0_15], %17 {strides = array<i32>} : memref<2x8192xf32, #tpu.memory_space<vmem>>, vector<2x8192xf32>,
    return
  }
}

module attributes {stable_mosaic.version = 11 : i64} {
  func.func @_stage_kernel(%arg0: i32, %arg1: memref<1x64x128xf32, #tpu.memory_space<vmem>>, %arg2: memref<32x192xf32, #tpu.memory_space<vmem>>, %arg3: memref<32x1xf32, #tpu.memory_space<vmem>>, %arg4: memref<32x2xf32, #tpu.memory_space<vmem>>, %arg5: memref<16x96xf32, #tpu.memory_space<vmem>>, %arg6: memref<16x1xf32, #tpu.memory_space<vmem>>, %arg7: memref<16x2xf32, #tpu.memory_space<vmem>>, %arg8: memref<32x16xf32, #tpu.memory_space<vmem>>, %arg9: memref<32x1xf32, #tpu.memory_space<vmem>>, %arg10: memref<32x2xf32, #tpu.memory_space<vmem>>, %arg11: memref<16x96xf32, #tpu.memory_space<vmem>>, %arg12: memref<16x1xf32, #tpu.memory_space<vmem>>, %arg13: memref<16x2xf32, #tpu.memory_space<vmem>>, %arg14: memref<32x16xf32, #tpu.memory_space<vmem>>, %arg15: memref<32x1xf32, #tpu.memory_space<vmem>>, %arg16: memref<4x96xf32, #tpu.memory_space<vmem>>, %arg17: memref<4x1xf32, #tpu.memory_space<vmem>>, %arg18: memref<1x4x128xf32, #tpu.memory_space<vmem>>) attributes {dimension_semantics = [#tpu.dimension_semantics<parallel>], iteration_bounds = array<i64: 2>, scalar_prefetch = 0 : i64, scratch_operands = 0 : i64, tpu.core_type = #tpu.core_type<tc>, window_params = [{transform_indices = @transform_0, window_bounds = array<i64: 1, 64, 128>}, {pipeline_mode = #tpu.pipeline_mode<synchronous>, transform_indices = @transform_1, window_bounds = array<i64: 32, 192>}, {pipeline_mode = #tpu.pipeline_mode<synchronous>, transform_indices = @transform_2, window_bounds = array<i64: 32, 1>}, {pipeline_mode = #tpu.pipeline_mode<synchronous>, transform_indices = @transform_3, window_bounds = array<i64: 32, 2>}, {pipeline_mode = #tpu.pipeline_mode<synchronous>, transform_indices = @transform_4, window_bounds = array<i64: 16, 96>}, {pipeline_mode = #tpu.pipeline_mode<synchronous>, transform_indices = @transform_5, window_bounds = array<i64: 16, 1>}, {pipeline_mode = #tpu.pipeline_mode<synchronous>, transform_indices = @transform_6, window_bounds = array<i64: 16, 2>}, {pipeline_mode = #tpu.pipeline_mode<synchronous>, transform_indices = @transform_7, window_bounds = array<i64: 32, 16>}, {pipeline_mode = #tpu.pipeline_mode<synchronous>, transform_indices = @transform_8, window_bounds = array<i64: 32, 1>}, {pipeline_mode = #tpu.pipeline_mode<synchronous>, transform_indices = @transform_9, window_bounds = array<i64: 32, 2>}, {pipeline_mode = #tpu.pipeline_mode<synchronous>, transform_indices = @transform_10, window_bounds = array<i64: 16, 96>}, {pipeline_mode = #tpu.pipeline_mode<synchronous>, transform_indices = @transform_11, window_bounds = array<i64: 16, 1>}, {pipeline_mode = #tpu.pipeline_mode<synchronous>, transform_indices = @transform_12, window_bounds = array<i64: 16, 2>}, {pipeline_mode = #tpu.pipeline_mode<synchronous>, transform_indices = @transform_13, window_bounds = array<i64: 32, 16>}, {pipeline_mode = #tpu.pipeline_mode<synchronous>, transform_indices = @transform_14, window_bounds = array<i64: 32, 1>}, {pipeline_mode = #tpu.pipeline_mode<synchronous>, transform_indices = @transform_15, window_bounds = array<i64: 4, 96>}, {pipeline_mode = #tpu.pipeline_mode<synchronous>, transform_indices = @transform_16, window_bounds = array<i64: 4, 1>}, {transform_indices = @transform_17, window_bounds = array<i64: 1, 4, 128>}]} {
    %c0 = arith.constant 0 : index
    %c0_0 = arith.constant 0 : index
    %c0_1 = arith.constant 0 : index
    %0 = vector.load %arg1[%c0, %c0_0, %c0_1] : memref<1x64x128xf32, #tpu.memory_space<vmem>>, vector<1x64x128xf32>
    %1 = vector.shape_cast %0 : vector<1x64x128xf32> to vector<64x128xf32>
    %c0_2 = arith.constant 0 : index
    %c0_3 = arith.constant 0 : index
    %2 = vector.load %arg2[%c0_2, %c0_3] : memref<32x192xf32, #tpu.memory_space<vmem>>, vector<32x192xf32>
    %c0_4 = arith.constant 0 : index
    %c0_5 = arith.constant 0 : index
    %3 = vector.load %arg3[%c0_4, %c0_5] : memref<32x1xf32, #tpu.memory_space<vmem>>, vector<32x1xf32>
    %4 = tpu.iota {dimensions = array<i32: 1>} : vector<64x128xi32>
    %c1_i32 = arith.constant 1 : i32
    %5 = tpu.dynamic_rotate %1 by %c1_i32 dim 1 : vector<64x128xf32>, i32 -> vector<64x128xf32>
    %c-1_i32 = arith.constant -1 : i32
    %6 = vector.broadcast %c-1_i32 : i32 to vector<64x128xi32>
    %7 = arith.addi %4, %6 : vector<64x128xi32>
    %c0_i32 = arith.constant 0 : i32
    %8 = vector.broadcast %c0_i32 : i32 to vector<64x128xi32>
    %9 = arith.cmpi sge, %7, %8 : vector<64x128xi32>
    %c-1_i32_6 = arith.constant -1 : i32
    %10 = vector.broadcast %c-1_i32_6 : i32 to vector<64x128xi32>
    %11 = arith.addi %4, %10 : vector<64x128xi32>
    %c128_i32 = arith.constant 128 : i32
    %12 = vector.broadcast %c128_i32 : i32 to vector<64x128xi32>
    %13 = arith.cmpi slt, %11, %12 : vector<64x128xi32>
    %14 = arith.andi %9, %13 : vector<64x128xi1>
    %cst = arith.constant 0.000000e+00 : f32
    %15 = vector.broadcast %cst : f32 to vector<64x128xf32>
    %16 = arith.select %14, %5, %15 : vector<64x128xi1>, vector<64x128xf32>
    %c127_i32 = arith.constant 127 : i32
    %17 = tpu.dynamic_rotate %1 by %c127_i32 dim 1 : vector<64x128xf32>, i32 -> vector<64x128xf32>
    %c1_i32_7 = arith.constant 1 : i32
    %18 = vector.broadcast %c1_i32_7 : i32 to vector<64x128xi32>
    %19 = arith.addi %4, %18 : vector<64x128xi32>
    %c0_i32_8 = arith.constant 0 : i32
    %20 = vector.broadcast %c0_i32_8 : i32 to vector<64x128xi32>
    %21 = arith.cmpi sge, %19, %20 : vector<64x128xi32>
    %c1_i32_9 = arith.constant 1 : i32
    %22 = vector.broadcast %c1_i32_9 : i32 to vector<64x128xi32>
    %23 = arith.addi %4, %22 : vector<64x128xi32>
    %c128_i32_10 = arith.constant 128 : i32
    %24 = vector.broadcast %c128_i32_10 : i32 to vector<64x128xi32>
    %25 = arith.cmpi slt, %23, %24 : vector<64x128xi32>
    %26 = arith.andi %21, %25 : vector<64x128xi1>
    %cst_11 = arith.constant 0.000000e+00 : f32
    %27 = vector.broadcast %cst_11 : f32 to vector<64x128xf32>
    %28 = arith.select %26, %17, %27 : vector<64x128xi1>, vector<64x128xf32>
    %29 = tpu.concatenate %16, %1, %28 in 0 : vector<64x128xf32>, vector<64x128xf32>, vector<64x128xf32> -> vector<192x128xf32>
    %cst_12 = arith.constant dense<0.000000e+00> : vector<32x128xf32>
    %30 = tpu.matmul %2, %29, %cst_12 {dimension_numbers = #tpu.dot_dimension_numbers<[1], [0], [0], [1], [0, 0, 1, 1], [], []>} : vector<32x192xf32>, vector<192x128xf32>, vector<32x128xf32> -> vector<32x128xf32>
    %31 = vector.broadcast %3 : vector<32x1xf32> to vector<32x128xf32>
    %32 = arith.addf %30, %31 : vector<32x128xf32>
    %c0_13 = arith.constant 0 : index
    %c0_14 = arith.constant 0 : index
    %33 = vector.load %arg4[%c0_13, %c0_14] : memref<32x2xf32, #tpu.memory_space<vmem>>, vector<32x2xf32>
    %c0_15 = arith.constant 0 : index
    %c0_16 = arith.constant 0 : index
    %34 = vector.load %arg5[%c0_15, %c0_16] : memref<16x96xf32, #tpu.memory_space<vmem>>, vector<16x96xf32>
    %c0_17 = arith.constant 0 : index
    %c0_18 = arith.constant 0 : index
    %35 = vector.load %arg6[%c0_17, %c0_18] : memref<16x1xf32, #tpu.memory_space<vmem>>, vector<16x1xf32>
    %c0_19 = arith.constant 0 : index
    %c0_20 = arith.constant 0 : index
    %36 = vector.load %arg7[%c0_19, %c0_20] : memref<16x2xf32, #tpu.memory_space<vmem>>, vector<16x2xf32>
    %c0_21 = arith.constant 0 : index
    %c0_22 = arith.constant 0 : index
    %37 = vector.load %arg8[%c0_21, %c0_22] : memref<32x16xf32, #tpu.memory_space<vmem>>, vector<32x16xf32>
    %c0_23 = arith.constant 0 : index
    %c0_24 = arith.constant 0 : index
    %38 = vector.load %arg9[%c0_23, %c0_24] : memref<32x1xf32, #tpu.memory_space<vmem>>, vector<32x1xf32>
    %39 = vector.extract_strided_slice %33 {offsets = [0, 0], sizes = [32, 1], strides = [1, 1]} : vector<32x2xf32> to vector<32x1xf32>
    %40 = vector.broadcast %39 : vector<32x1xf32> to vector<32x128xf32>
    %41 = arith.mulf %32, %40 : vector<32x128xf32>
    %42 = vector.extract_strided_slice %33 {offsets = [0, 1], sizes = [32, 1], strides = [1, 1]} : vector<32x2xf32> to vector<32x1xf32>
    %43 = vector.broadcast %42 : vector<32x1xf32> to vector<32x128xf32>
    %44 = arith.addf %41, %43 : vector<32x128xf32>
    %cst_25 = arith.constant 0.000000e+00 : f32
    %45 = vector.broadcast %cst_25 : f32 to vector<32x128xf32>
    %46 = arith.maximumf %44, %45 : vector<32x128xf32>
    %47 = tpu.iota {dimensions = array<i32: 1>} : vector<32x128xi32>
    %c3_i32 = arith.constant 3 : i32
    %48 = tpu.dynamic_rotate %46 by %c3_i32 dim 1 : vector<32x128xf32>, i32 -> vector<32x128xf32>
    %c-3_i32 = arith.constant -3 : i32
    %49 = vector.broadcast %c-3_i32 : i32 to vector<32x128xi32>
    %50 = arith.addi %47, %49 : vector<32x128xi32>
    %c0_i32_26 = arith.constant 0 : i32
    %51 = vector.broadcast %c0_i32_26 : i32 to vector<32x128xi32>
    %52 = arith.cmpi sge, %50, %51 : vector<32x128xi32>
    %c-3_i32_27 = arith.constant -3 : i32
    %53 = vector.broadcast %c-3_i32_27 : i32 to vector<32x128xi32>
    %54 = arith.addi %47, %53 : vector<32x128xi32>
    %c128_i32_28 = arith.constant 128 : i32
    %55 = vector.broadcast %c128_i32_28 : i32 to vector<32x128xi32>
    %56 = arith.cmpi slt, %54, %55 : vector<32x128xi32>
    %57 = arith.andi %52, %56 : vector<32x128xi1>
    %cst_29 = arith.constant 0.000000e+00 : f32
    %58 = vector.broadcast %cst_29 : f32 to vector<32x128xf32>
    %59 = arith.select %57, %48, %58 : vector<32x128xi1>, vector<32x128xf32>
    %c125_i32 = arith.constant 125 : i32
    %60 = tpu.dynamic_rotate %46 by %c125_i32 dim 1 : vector<32x128xf32>, i32 -> vector<32x128xf32>
    %c3_i32_30 = arith.constant 3 : i32
    %61 = vector.broadcast %c3_i32_30 : i32 to vector<32x128xi32>
    %62 = arith.addi %47, %61 : vector<32x128xi32>
    %c0_i32_31 = arith.constant 0 : i32
    %63 = vector.broadcast %c0_i32_31 : i32 to vector<32x128xi32>
    %64 = arith.cmpi sge, %62, %63 : vector<32x128xi32>
    %c3_i32_32 = arith.constant 3 : i32
    %65 = vector.broadcast %c3_i32_32 : i32 to vector<32x128xi32>
    %66 = arith.addi %47, %65 : vector<32x128xi32>
    %c128_i32_33 = arith.constant 128 : i32
    %67 = vector.broadcast %c128_i32_33 : i32 to vector<32x128xi32>
    %68 = arith.cmpi slt, %66, %67 : vector<32x128xi32>
    %69 = arith.andi %64, %68 : vector<32x128xi1>
    %cst_34 = arith.constant 0.000000e+00 : f32
    %70 = vector.broadcast %cst_34 : f32 to vector<32x128xf32>
    %71 = arith.select %69, %60, %70 : vector<32x128xi1>, vector<32x128xf32>
    %72 = tpu.concatenate %59, %46, %71 in 0 : vector<32x128xf32>, vector<32x128xf32>, vector<32x128xf32> -> vector<96x128xf32>
    %cst_35 = arith.constant dense<0.000000e+00> : vector<16x128xf32>
    %73 = tpu.matmul %34, %72, %cst_35 {dimension_numbers = #tpu.dot_dimension_numbers<[1], [0], [0], [1], [0, 0, 1, 1], [], []>} : vector<16x96xf32>, vector<96x128xf32>, vector<16x128xf32> -> vector<16x128xf32>
    %74 = vector.broadcast %35 : vector<16x1xf32> to vector<16x128xf32>
    %75 = arith.addf %73, %74 : vector<16x128xf32>
    %76 = vector.extract_strided_slice %36 {offsets = [0, 0], sizes = [16, 1], strides = [1, 1]} : vector<16x2xf32> to vector<16x1xf32>
    %77 = vector.broadcast %76 : vector<16x1xf32> to vector<16x128xf32>
    %78 = arith.mulf %75, %77 : vector<16x128xf32>
    %79 = vector.extract_strided_slice %36 {offsets = [0, 1], sizes = [16, 1], strides = [1, 1]} : vector<16x2xf32> to vector<16x1xf32>
    %80 = vector.broadcast %79 : vector<16x1xf32> to vector<16x128xf32>
    %81 = arith.addf %78, %80 : vector<16x128xf32>
    %cst_36 = arith.constant 0.000000e+00 : f32
    %82 = vector.broadcast %cst_36 : f32 to vector<16x128xf32>
    %83 = arith.maximumf %81, %82 : vector<16x128xf32>
    %cst_37 = arith.constant dense<0.000000e+00> : vector<32x128xf32>
    %84 = tpu.matmul %37, %83, %cst_37 {dimension_numbers = #tpu.dot_dimension_numbers<[1], [0], [0], [1], [0, 0, 1, 1], [], []>} : vector<32x16xf32>, vector<16x128xf32>, vector<32x128xf32> -> vector<32x128xf32>
    %85 = vector.broadcast %38 : vector<32x1xf32> to vector<32x128xf32>
    %86 = arith.addf %84, %85 : vector<32x128xf32>
    %87 = arith.addf %32, %86 : vector<32x128xf32>
    %c0_38 = arith.constant 0 : index
    %c0_39 = arith.constant 0 : index
    %88 = vector.load %arg10[%c0_38, %c0_39] : memref<32x2xf32, #tpu.memory_space<vmem>>, vector<32x2xf32>
    %c0_40 = arith.constant 0 : index
    %c0_41 = arith.constant 0 : index
    %89 = vector.load %arg11[%c0_40, %c0_41] : memref<16x96xf32, #tpu.memory_space<vmem>>, vector<16x96xf32>
    %c0_42 = arith.constant 0 : index
    %c0_43 = arith.constant 0 : index
    %90 = vector.load %arg12[%c0_42, %c0_43] : memref<16x1xf32, #tpu.memory_space<vmem>>, vector<16x1xf32>
    %c0_44 = arith.constant 0 : index
    %c0_45 = arith.constant 0 : index
    %91 = vector.load %arg13[%c0_44, %c0_45] : memref<16x2xf32, #tpu.memory_space<vmem>>, vector<16x2xf32>
    %c0_46 = arith.constant 0 : index
    %c0_47 = arith.constant 0 : index
    %92 = vector.load %arg14[%c0_46, %c0_47] : memref<32x16xf32, #tpu.memory_space<vmem>>, vector<32x16xf32>
    %c0_48 = arith.constant 0 : index
    %c0_49 = arith.constant 0 : index
    %93 = vector.load %arg15[%c0_48, %c0_49] : memref<32x1xf32, #tpu.memory_space<vmem>>, vector<32x1xf32>
    %94 = vector.extract_strided_slice %88 {offsets = [0, 0], sizes = [32, 1], strides = [1, 1]} : vector<32x2xf32> to vector<32x1xf32>
    %95 = vector.broadcast %94 : vector<32x1xf32> to vector<32x128xf32>
    %96 = arith.mulf %87, %95 : vector<32x128xf32>
    %97 = vector.extract_strided_slice %88 {offsets = [0, 1], sizes = [32, 1], strides = [1, 1]} : vector<32x2xf32> to vector<32x1xf32>
    %98 = vector.broadcast %97 : vector<32x1xf32> to vector<32x128xf32>
    %99 = arith.addf %96, %98 : vector<32x128xf32>
    %cst_50 = arith.constant 0.000000e+00 : f32
    %100 = vector.broadcast %cst_50 : f32 to vector<32x128xf32>
    %101 = arith.maximumf %99, %100 : vector<32x128xf32>
    %102 = tpu.iota {dimensions = array<i32: 1>} : vector<32x128xi32>
    %c3_i32_51 = arith.constant 3 : i32
    %103 = tpu.dynamic_rotate %101 by %c3_i32_51 dim 1 : vector<32x128xf32>, i32 -> vector<32x128xf32>
    %c-3_i32_52 = arith.constant -3 : i32
    %104 = vector.broadcast %c-3_i32_52 : i32 to vector<32x128xi32>
    %105 = arith.addi %102, %104 : vector<32x128xi32>
    %c0_i32_53 = arith.constant 0 : i32
    %106 = vector.broadcast %c0_i32_53 : i32 to vector<32x128xi32>
    %107 = arith.cmpi sge, %105, %106 : vector<32x128xi32>
    %c-3_i32_54 = arith.constant -3 : i32
    %108 = vector.broadcast %c-3_i32_54 : i32 to vector<32x128xi32>
    %109 = arith.addi %102, %108 : vector<32x128xi32>
    %c128_i32_55 = arith.constant 128 : i32
    %110 = vector.broadcast %c128_i32_55 : i32 to vector<32x128xi32>
    %111 = arith.cmpi slt, %109, %110 : vector<32x128xi32>
    %112 = arith.andi %107, %111 : vector<32x128xi1>
    %cst_56 = arith.constant 0.000000e+00 : f32
    %113 = vector.broadcast %cst_56 : f32 to vector<32x128xf32>
    %114 = arith.select %112, %103, %113 : vector<32x128xi1>, vector<32x128xf32>
    %c125_i32_57 = arith.constant 125 : i32
    %115 = tpu.dynamic_rotate %101 by %c125_i32_57 dim 1 : vector<32x128xf32>, i32 -> vector<32x128xf32>
    %c3_i32_58 = arith.constant 3 : i32
    %116 = vector.broadcast %c3_i32_58 : i32 to vector<32x128xi32>
    %117 = arith.addi %102, %116 : vector<32x128xi32>
    %c0_i32_59 = arith.constant 0 : i32
    %118 = vector.broadcast %c0_i32_59 : i32 to vector<32x128xi32>
    %119 = arith.cmpi sge, %117, %118 : vector<32x128xi32>
    %c3_i32_60 = arith.constant 3 : i32
    %120 = vector.broadcast %c3_i32_60 : i32 to vector<32x128xi32>
    %121 = arith.addi %102, %120 : vector<32x128xi32>
    %c128_i32_61 = arith.constant 128 : i32
    %122 = vector.broadcast %c128_i32_61 : i32 to vector<32x128xi32>
    %123 = arith.cmpi slt, %121, %122 : vector<32x128xi32>
    %124 = arith.andi %119, %123 : vector<32x128xi1>
    %cst_62 = arith.constant 0.000000e+00 : f32
    %125 = vector.broadcast %cst_62 : f32 to vector<32x128xf32>
    %126 = arith.select %124, %115, %125 : vector<32x128xi1>, vector<32x128xf32>
    %127 = tpu.concatenate %114, %101, %126 in 0 : vector<32x128xf32>, vector<32x128xf32>, vector<32x128xf32> -> vector<96x128xf32>
    %cst_63 = arith.constant dense<0.000000e+00> : vector<16x128xf32>
    %128 = tpu.matmul %89, %127, %cst_63 {dimension_numbers = #tpu.dot_dimension_numbers<[1], [0], [0], [1], [0, 0, 1, 1], [], []>} : vector<16x96xf32>, vector<96x128xf32>, vector<16x128xf32> -> vector<16x128xf32>
    %129 = vector.broadcast %90 : vector<16x1xf32> to vector<16x128xf32>
    %130 = arith.addf %128, %129 : vector<16x128xf32>
    %131 = vector.extract_strided_slice %91 {offsets = [0, 0], sizes = [16, 1], strides = [1, 1]} : vector<16x2xf32> to vector<16x1xf32>
    %132 = vector.broadcast %131 : vector<16x1xf32> to vector<16x128xf32>
    %133 = arith.mulf %130, %132 : vector<16x128xf32>
    %134 = vector.extract_strided_slice %91 {offsets = [0, 1], sizes = [16, 1], strides = [1, 1]} : vector<16x2xf32> to vector<16x1xf32>
    %135 = vector.broadcast %134 : vector<16x1xf32> to vector<16x128xf32>
    %136 = arith.addf %133, %135 : vector<16x128xf32>
    %cst_64 = arith.constant 0.000000e+00 : f32
    %137 = vector.broadcast %cst_64 : f32 to vector<16x128xf32>
    %138 = arith.maximumf %136, %137 : vector<16x128xf32>
    %cst_65 = arith.constant dense<0.000000e+00> : vector<32x128xf32>
    %139 = tpu.matmul %92, %138, %cst_65 {dimension_numbers = #tpu.dot_dimension_numbers<[1], [0], [0], [1], [0, 0, 1, 1], [], []>} : vector<32x16xf32>, vector<16x128xf32>, vector<32x128xf32> -> vector<32x128xf32>
    %140 = vector.broadcast %93 : vector<32x1xf32> to vector<32x128xf32>
    %141 = arith.addf %139, %140 : vector<32x128xf32>
    %142 = arith.addf %87, %141 : vector<32x128xf32>
    %c0_66 = arith.constant 0 : index
    %c0_67 = arith.constant 0 : index
    %143 = vector.load %arg16[%c0_66, %c0_67] : memref<4x96xf32, #tpu.memory_space<vmem>>, vector<4x96xf32>
    %c0_68 = arith.constant 0 : index
    %c0_69 = arith.constant 0 : index
    %144 = vector.load %arg17[%c0_68, %c0_69] : memref<4x1xf32, #tpu.memory_space<vmem>>, vector<4x1xf32>
    %145 = tpu.iota {dimensions = array<i32: 1>} : vector<32x128xi32>
    %c1_i32_70 = arith.constant 1 : i32
    %146 = tpu.dynamic_rotate %142 by %c1_i32_70 dim 1 : vector<32x128xf32>, i32 -> vector<32x128xf32>
    %c-1_i32_71 = arith.constant -1 : i32
    %147 = vector.broadcast %c-1_i32_71 : i32 to vector<32x128xi32>
    %148 = arith.addi %145, %147 : vector<32x128xi32>
    %c0_i32_72 = arith.constant 0 : i32
    %149 = vector.broadcast %c0_i32_72 : i32 to vector<32x128xi32>
    %150 = arith.cmpi sge, %148, %149 : vector<32x128xi32>
    %c-1_i32_73 = arith.constant -1 : i32
    %151 = vector.broadcast %c-1_i32_73 : i32 to vector<32x128xi32>
    %152 = arith.addi %145, %151 : vector<32x128xi32>
    %c128_i32_74 = arith.constant 128 : i32
    %153 = vector.broadcast %c128_i32_74 : i32 to vector<32x128xi32>
    %154 = arith.cmpi slt, %152, %153 : vector<32x128xi32>
    %155 = arith.andi %150, %154 : vector<32x128xi1>
    %cst_75 = arith.constant 0.000000e+00 : f32
    %156 = vector.broadcast %cst_75 : f32 to vector<32x128xf32>
    %157 = arith.select %155, %146, %156 : vector<32x128xi1>, vector<32x128xf32>
    %c127_i32_76 = arith.constant 127 : i32
    %158 = tpu.dynamic_rotate %142 by %c127_i32_76 dim 1 : vector<32x128xf32>, i32 -> vector<32x128xf32>
    %c1_i32_77 = arith.constant 1 : i32
    %159 = vector.broadcast %c1_i32_77 : i32 to vector<32x128xi32>
    %160 = arith.addi %145, %159 : vector<32x128xi32>
    %c0_i32_78 = arith.constant 0 : i32
    %161 = vector.broadcast %c0_i32_78 : i32 to vector<32x128xi32>
    %162 = arith.cmpi sge, %160, %161 : vector<32x128xi32>
    %c1_i32_79 = arith.constant 1 : i32
    %163 = vector.broadcast %c1_i32_79 : i32 to vector<32x128xi32>
    %164 = arith.addi %145, %163 : vector<32x128xi32>
    %c128_i32_80 = arith.constant 128 : i32
    %165 = vector.broadcast %c128_i32_80 : i32 to vector<32x128xi32>
    %166 = arith.cmpi slt, %164, %165 : vector<32x128xi32>
    %167 = arith.andi %162, %166 : vector<32x128xi1>
    %cst_81 = arith.constant 0.000000e+00 : f32
    %168 = vector.broadcast %cst_81 : f32 to vector<32x128xf32>
    %169 = arith.select %167, %158, %168 : vector<32x128xi1>, vector<32x128xf32>
    %170 = tpu.concatenate %157, %142, %169 in 0 : vector<32x128xf32>, vector<32x128xf32>, vector<32x128xf32> -> vector<96x128xf32>
    %cst_82 = arith.constant dense<0.000000e+00> : vector<4x128xf32>
    %171 = tpu.matmul %143, %170, %cst_82 {dimension_numbers = #tpu.dot_dimension_numbers<[1], [0], [0], [1], [0, 0, 1, 1], [], []>} : vector<4x96xf32>, vector<96x128xf32>, vector<4x128xf32> -> vector<4x128xf32>
    %172 = vector.broadcast %144 : vector<4x1xf32> to vector<4x128xf32>
    %173 = arith.addf %171, %172 : vector<4x128xf32>
    %c0_83 = arith.constant 0 : index
    %c0_84 = arith.constant 0 : index
    %c0_85 = arith.constant 0 : index
    %174 = vector.load %arg18[%c0_83, %c0_84, %c0_85] : memref<1x4x128xf32, #tpu.memory_space<vmem>>, vector<1x4x128xf32>
    %175 = vector.shape_cast %174 : vector<1x4x128xf32> to vector<4x128xf32>
    %176 = vector.shape_cast %173 : vector<4x128xf32> to vector<1x4x128xf32>
    tpu.vector_store %arg18[%c0_83, %c0_84, %c0_85], %176 {strides = array<i32>} : memref<1x4x128xf32, #tpu.memory_space<vmem>>, vector<1x4x128xf32>,
    return
  }
  func.func @transform_0(%arg0: i32) -> (i32, i32, i32) {
    %c0_i32 = arith.constant 0 : i32
    %c0_i32_0 = arith.constant 0 : i32
    %c0_i32_1 = arith.constant 0 : i32
    return %arg0, %c0_i32, %c0_i32_0 : i32, i32, i32
  }
  func.func @transform_1(%arg0: i32) -> (i32, i32) {
    %c0_i32 = arith.constant 0 : i32
    %c0_i32_0 = arith.constant 0 : i32
    %c0_i32_1 = arith.constant 0 : i32
    return %c0_i32, %c0_i32_0 : i32, i32
  }
  func.func @transform_2(%arg0: i32) -> (i32, i32) {
    %c0_i32 = arith.constant 0 : i32
    %c0_i32_0 = arith.constant 0 : i32
    %c0_i32_1 = arith.constant 0 : i32
    return %c0_i32, %c0_i32_0 : i32, i32
  }
  func.func @transform_3(%arg0: i32) -> (i32, i32) {
    %c0_i32 = arith.constant 0 : i32
    %c0_i32_0 = arith.constant 0 : i32
    %c0_i32_1 = arith.constant 0 : i32
    return %c0_i32, %c0_i32_0 : i32, i32
  }
  func.func @transform_4(%arg0: i32) -> (i32, i32) {
    %c0_i32 = arith.constant 0 : i32
    %c0_i32_0 = arith.constant 0 : i32
    %c0_i32_1 = arith.constant 0 : i32
    return %c0_i32, %c0_i32_0 : i32, i32
  }
  func.func @transform_5(%arg0: i32) -> (i32, i32) {
    %c0_i32 = arith.constant 0 : i32
    %c0_i32_0 = arith.constant 0 : i32
    %c0_i32_1 = arith.constant 0 : i32
    return %c0_i32, %c0_i32_0 : i32, i32
  }
  func.func @transform_6(%arg0: i32) -> (i32, i32) {
    %c0_i32 = arith.constant 0 : i32
    %c0_i32_0 = arith.constant 0 : i32
    %c0_i32_1 = arith.constant 0 : i32
    return %c0_i32, %c0_i32_0 : i32, i32
  }
  func.func @transform_7(%arg0: i32) -> (i32, i32) {
    %c0_i32 = arith.constant 0 : i32
    %c0_i32_0 = arith.constant 0 : i32
    %c0_i32_1 = arith.constant 0 : i32
    return %c0_i32, %c0_i32_0 : i32, i32
  }
  func.func @transform_8(%arg0: i32) -> (i32, i32) {
    %c0_i32 = arith.constant 0 : i32
    %c0_i32_0 = arith.constant 0 : i32
    %c0_i32_1 = arith.constant 0 : i32
    return %c0_i32, %c0_i32_0 : i32, i32
  }
  func.func @transform_9(%arg0: i32) -> (i32, i32) {
    %c0_i32 = arith.constant 0 : i32
    %c0_i32_0 = arith.constant 0 : i32
    %c0_i32_1 = arith.constant 0 : i32
    return %c0_i32, %c0_i32_0 : i32, i32
  }
  func.func @transform_10(%arg0: i32) -> (i32, i32) {
    %c0_i32 = arith.constant 0 : i32
    %c0_i32_0 = arith.constant 0 : i32
    %c0_i32_1 = arith.constant 0 : i32
    return %c0_i32, %c0_i32_0 : i32, i32
  }
  func.func @transform_11(%arg0: i32) -> (i32, i32) {
    %c0_i32 = arith.constant 0 : i32
    %c0_i32_0 = arith.constant 0 : i32
    %c0_i32_1 = arith.constant 0 : i32
    return %c0_i32, %c0_i32_0 : i32, i32
  }
  func.func @transform_12(%arg0: i32) -> (i32, i32) {
    %c0_i32 = arith.constant 0 : i32
    %c0_i32_0 = arith.constant 0 : i32
    %c0_i32_1 = arith.constant 0 : i32
    return %c0_i32, %c0_i32_0 : i32, i32
  }
  func.func @transform_13(%arg0: i32) -> (i32, i32) {
    %c0_i32 = arith.constant 0 : i32
    %c0_i32_0 = arith.constant 0 : i32
    %c0_i32_1 = arith.constant 0 : i32
    return %c0_i32, %c0_i32_0 : i32, i32
  }
  func.func @transform_14(%arg0: i32) -> (i32, i32) {
    %c0_i32 = arith.constant 0 : i32
    %c0_i32_0 = arith.constant 0 : i32
    %c0_i32_1 = arith.constant 0 : i32
    return %c0_i32, %c0_i32_0 : i32, i32
  }
  func.func @transform_15(%arg0: i32) -> (i32, i32) {
    %c0_i32 = arith.constant 0 : i32
    %c0_i32_0 = arith.constant 0 : i32
    %c0_i32_1 = arith.constant 0 : i32
    return %c0_i32, %c0_i32_0 : i32, i32
  }
  func.func @transform_16(%arg0: i32) -> (i32, i32) {
    %c0_i32 = arith.constant 0 : i32
    %c0_i32_0 = arith.constant 0 : i32
    %c0_i32_1 = arith.constant 0 : i32
    return %c0_i32, %c0_i32_0 : i32, i32
  }
  func.func @transform_17(%arg0: i32) -> (i32, i32, i32) {
    %c0_i32 = arith.constant 0 : i32
    %c0_i32_0 = arith.constant 0 : i32
    %c0_i32_1 = arith.constant 0 : i32
    return %arg0, %c0_i32, %c0_i32_0 : i32, i32, i32
  }
}

</mosaic_0001>

<bundles_post_ra>
// kernel: seq2seq_forward.3
= control target key start
LH: loop header
LB: loop body
LE: loop exit
PB: predicated region body
PF: predicated region fallthrough
CT: control target
= control target key end

     0   :  { %s3032_s0 = inlined_call_operand.hbm [shape: f32[2,4,128], index: 0, kind: input, shape index: {}]   ;;  %s3033_s1 = inlined_call_operand.vmem [shape: f32[32,12], index: 1, kind: input, shape index: {}]   ;;  %s3034_s2 = inlined_call_operand.vmem [shape: f32[32,1], index: 2, kind: input, shape index: {}]   ;;  %s3035_s3 = inlined_call_operand.vmem [shape: f32[32,2], index: 3, kind: input, shape index: {}]   ;;  %s3036_s4 = inlined_call_operand.hbm [shape: f32[16,96], index: 4, kind: input, shape index: {}]   ;;  %s3037_s5 = inlined_call_operand.vmem [shape: f32[16,1], index: 5, kind: input, shape index: {}]   ;;  %s3038_s6 = inlined_call_operand.vmem [shape: f32[16,2], index: 6, kind: input, shape index: {}]   ;;  %s3039_s7 = inlined_call_operand.vmem [shape: f32[32,16], index: 7, kind: input, shape index: {}]   ;;  %s3040_s8 = inlined_call_operand.vmem [shape: f32[32,1], index: 8, kind: input, shape index: {}]   ;;  %s3041_s9 = inlined_call_operand.vmem [shape: f32[32,2], index: 9, kind: input, shape index: {}]   ;;  %s3042_s10 = inlined_call_operand.hbm [shape: f32[16,96], index: 10, kind: input, shape index: {}]   ;;  %s3043_s11 = inlined_call_operand.vmem [shape: f32[16,1], index: 11, kind: input, shape index: {}]   ;;  %s3044_s12 = inlined_call_operand.vmem [shape: f32[16,2], index: 12, kind: input, shape index: {}]   ;;  %s3045_s13 = inlined_call_operand.vmem [shape: f32[32,16], index: 13, kind: input, shape index: {}]   ;;  %s3046_s14 = inlined_call_operand.vmem [shape: f32[32,1], index: 14, kind: input, shape index: {}]   ;;  %s3047_s15 = inlined_call_operand.hbm [shape: f32[64,96], index: 15, kind: input, shape index: {}]   ;;  %s3048_s16 = inlined_call_operand.vmem [shape: f32[64,1], index: 16, kind: input, shape index: {}]   ;;  %s3049_s17 = inlined_call_operand.vmem [shape: f32[2,64,128], index: 17, kind: output, shape index: {}]  }
   0x1   :  { %3064 = sst [smem:[#allocation12_spill]] %s3032_s0 }
   0x2   :  { %3065 = sst [smem:[#allocation13_spill]] %s3033_s1 }
   0x3   :  { %3066 = sst [smem:[#allocation14_spill]] %s3041_s9 }
   0x4   :  { %3067 = sst [smem:[#allocation15_spill]] %s3043_s11 }
   0x5   :  { %3068 = sst [smem:[#allocation16_spill]] %s3044_s12 }
   0x6   :  { %3069 = sst [smem:[#allocation17_spill]] %s3045_s13 }
   0x7   :  { %3070 = sst [smem:[#allocation18_spill]] %s3046_s14 }
   0x8   :  { %3071 = sst [smem:[#allocation19_spill]] %s3048_s16 }
   0x9   :  { %3072 = sst [smem:[#allocation20_spill]] %s3049_s17 }
   0xa   :  { %22 = vsyncpa [#allocation3], 0 }
   0xb   :  { %24 = vsyncpa [#allocation3 + $0x1], 0 }
   0xc   :  { %25 = vsyncpa [#allocation5], 0 }
   0xd   :  { %26 = vsyncpa [#allocation8], 0  ;;  %s2521_s24 = smov 0   ;;  %s2523_s25 = smov 0  }
   0xe   :  { %s2525_s26 = smov 0   ;;  %s2527_s27 = smov 0  }
   0xf LB: > { %s2540_s28 = sadd.s32 4294967295, %s2416_s27   ;;  %p52_p0 = scmp.ne.s32.totalorder %s2408_s25, %s2404_s24  ;;  %s2416_s27 = sphi %s2527_s27, %s3103_s27   ;;  %s2412_s26 = sphi %s2525_s26, %s3102_s26   ;;  %s2408_s25 = sphi %s2523_s25, %s3101_s25   ;;  %s2404_s24 = sphi %s2521_s24, %s3100_s24  }
  0x10   : > { %p3054_p1 = scmp.eq.s32.totalorder %s2540_s28, 0  ;;  %p1737_p2 = scmp.ge.s32.totalorder %s2416_s27, 1 }
  0x11   : > { %p425_p3 = scmp.lt.s32.totalorder %s2416_s27, 3  ;;  %s2418_s30 = smov [#allocation4]  }
  0x12   : > { %p2548_p4 = por %p3054_p1, %p52_p0  ;;  %s446_s18 = sshll.u32 %s2418_s30, 4  ;;  %s2556_s18 = int_to_ptr.vmem [resolvable:$true] %s446_s18 }
  0x13   : > { %p2552_p5 = pnand %p1737_p2, %p425_p3  ;;  %s2419_s1 = smov [#allocation6]  }
  0x14   : > { %s3073_s29 = scalar_select %p2548_p4, 1, 0 }
  0x15   : > { %s3074_s0 = scalar_select %p2552_p5, 1, 0 }
  0x16   : > { %p2113_p6 = pneg %p2552_p5  ;;  %s474_s20 = sshll.u32 %s2419_s1, 4  ;;  %s2566_s20 = int_to_ptr.vmem [resolvable:$true] %s474_s20 }
  0x17   : > { %s2420_s21 = smov [#allocation7]   ;;  %s2260_s30 = scalar_lea.hbm %s3036_s4, 256 }
  0x18   : > { %p2562_p7 = pnand %p2113_p6, %p3054_p1  ;;  %s2568_s22 = sshll.u32 %s2420_s21, 4  ;;  %s500_s22 = int_to_ptr.vmem [resolvable:$true] %s2568_s22 }
  0x19   : > { %p2261_p8 = scmp.ne.s32.totalorder %s3036_s4, %s2260_s30  ;;  %p2267_p12 = scmp.lt.u32.totalorder %s2260_s30, %s3036_s4 }
  0x1a   : > { %p2578_p9 = pneg %p2562_p7 }
  0x1c   : > { %p2263_p10 = pnand %p2578_p9, %p2261_p8 }
  0x1e   : > { %p2264_p11 = pneg %p2263_p10 }
  0x20   : > { %p2269_p13 = pnand %p2267_p12, %p2264_p11 }
  0x22   : > { %2272 = shalt.err (!%p2269_p13)
}
  0x23   : > { %s2273_s16 = scalar_lea.vmem %s2556_s18, 256  ;;  %p2281_p6 = scmp.lt.s32.totalorder %s2556_s18, %s2556_s18 }
  0x24   : > { %p2274_p0 = scmp.ne.s32.totalorder %s2556_s18, %s2273_s16  ;;  %p2282_p1 = scmp.lt.s32.totalorder %s2273_s16, %s2273_s16 }
  0x26   : > { %p2276_p2 = pnand %p2274_p0, %p2578_p9  ;;  %p2283_p8 = por %p2282_p1, %p2281_p6 }
  0x28   : > { %p2277_p3 = pneg %p2276_p2 }
  0x2a   : > { %p2284_p10 = pnand %p2283_p8, %p2277_p3 }
  0x2c   : > { %2287 = shalt.err (!%p2284_p10)
}
  0x2d   : > { %s2421_s17 = smov 128   ;;  %s2422_s23 = smov 8  }
  0x2e   : > { %2116 = dma.hbm_to_vmem [thread:$0]  (!%p2562_p7), %s3036_s4, 256, %s2556_s18, [#allocation5], %s2421_s17, %s2421_s17, %s2422_s23  }
  0x2f   : > { %s2288_s16 = scalar_lea.hbm %s3042_s10, 256 }
  0x30   : > { %p2289_p1 = scmp.ne.s32.totalorder %s3042_s10, %s2288_s16  ;;  %p2295_p13 = scmp.lt.u32.totalorder %s2288_s16, %s3042_s10 }
  0x32   : > { %p2291_p11 = pnand %p2289_p1, %p2578_p9 }
  0x34   : > { %p2292_p12 = pneg %p2291_p11 }
  0x36   : > { %p2297_p0 = pnand %p2295_p13, %p2292_p12 }
  0x38   : > { %2300 = shalt.err (!%p2297_p0)
}
  0x39   : > { %s2301_s18 = scalar_lea.vmem %s2566_s20, 256  ;;  %p2309_p8 = scmp.lt.s32.totalorder %s2566_s20, %s2566_s20 }
  0x3a   : > { %p2302_p2 = scmp.ne.s32.totalorder %s2566_s20, %s2301_s18  ;;  %p2310_p10 = scmp.lt.s32.totalorder %s2301_s18, %s2301_s18 }
  0x3c   : > { %p2304_p3 = pnand %p2302_p2, %p2578_p9  ;;  %p2311_p1 = por %p2310_p10, %p2309_p8 }
  0x3e   : > { %p2305_p6 = pneg %p2304_p3 }
  0x40   : > { %p2312_p11 = pnand %p2311_p1, %p2305_p6 }
  0x42   : > { %2315 = shalt.err (!%p2312_p11)
}
  0x43   : > { %2119 = dma.hbm_to_vmem [thread:$0]  (!%p2562_p7), %s3042_s10, 256, %s2566_s20, [#allocation5], %s2421_s17, %s2421_s17, %s2422_s23  }
  0x44   : > { %s2316_s24 = scalar_lea.hbm %s3047_s15, 1024 }
  0x45   : > { %p2317_p12 = scmp.ne.s32.totalorder %s3047_s15, %s2316_s24  ;;  %p2323_p2 = scmp.lt.u32.totalorder %s2316_s24, %s3047_s15 }
  0x47   : > { %p2319_p13 = pnand %p2317_p12, %p2578_p9 }
  0x49   : > { %p2320_p0 = pneg %p2319_p13 }
  0x4b   : > { %p2325_p3 = pnand %p2323_p2, %p2320_p0 }
  0x4d   : > { %2328 = shalt.err (!%p2325_p3)
}
  0x4e   : > { %s2329_s18 = scalar_lea.vmem %s500_s22, 1024  ;;  %p2337_p1 = scmp.lt.s32.totalorder %s500_s22, %s500_s22 }
  0x4f   : > { %p2330_p6 = scmp.ne.s32.totalorder %s500_s22, %s2329_s18  ;;  %p2338_p11 = scmp.lt.s32.totalorder %s2329_s18, %s2329_s18 }
  0x51   : > { %p2332_p8 = pnand %p2330_p6, %p2578_p9  ;;  %p2339_p4 = por %p2338_p11, %p2337_p1 }
  0x53   : > { %p2333_p10 = pneg %p2332_p8 }
  0x55   : > { %p2340_p5 = pnand %p2339_p4, %p2333_p10 }
  0x57   : > { %2343 = shalt.err (!%p2340_p5)
}
  0x58   : > { %2122 = dma.hbm_to_vmem [thread:$0]  (!%p2562_p7), %s3047_s15, 1024, %s500_s22, [#allocation8], %s2421_s17, %s2421_s17, %s2422_s23  }
  0x59   : > { %s2651_s14 = sadd.s32 1, %s2416_s27   ;;  %s39_s11 = sadd.s32 1, %s2412_s26 }
  0x5a   : > { %s36_s19 = ssub.s32 %s2416_s27, %s2651_s14  ;;  %p46_p5 = scmp.ne.s32.totalorder %s2412_s26, %s2408_s25 }
  0x5b   : > { %p37_p4 = scmp.eq.s32.totalorder %s36_s19, 0  ;;  %p47_p9 = scmp.eq.s32.totalorder %s2416_s27, 0 }
  0x5c   : > { %p2130_p12 = scmp.lt.s32.totalorder %s2416_s27, 2  ;;  %s516_s13 = sand.u32 1, %s2412_s26  }
  0x5d   : > { %s2661_s12 = scalar_select %p37_p4, %s2412_s26, %s39_s11  }
  0x5e   : > { %p48_p13 = por %p47_p9, %p46_p5  ;;  %s1742_s24 = sshll.u32 %s516_s13, 2 }
  0x5f   : > { %s1743_s30 = sshll.u32 %s2416_s27, 6  ;;  %s3077_s16 = sld [smem:[#allocation12_spill]] }
  0x60   : > { %s520_s22 = scalar_lea.vmem [#allocation2], %s1742_s24  ;;  %p2672_p7 = pnand %p2130_p12, %p48_p13 }
  0x61   : > { %s527_s17 = sshll.u32 %s520_s22, 4  ;;  %s517_s27 = scalar_lea.sflag [#allocation3], %s516_s13  ;;  %s2670_s17 = int_to_ptr.vmem [resolvable:$true] %s527_s17 }
  0x62   : > { %p2346_p2 = pneg %p2672_p7 }
  0x65   : > { %s2668_s18 = scalar_lea.hbm %s3077_s16, %s1743_s30  ;;  %s2349_s11 = scalar_lea.hbm %s3077_s16, 128 }
  0x66   : > { %s2344_s20 = scalar_lea.hbm %s2668_s18, 64  ;;  %p2350_p8 = scmp.lt.u32.totalorder %s2668_s18, %s3077_s16 }
  0x67   : > { %p2345_p0 = scmp.ne.s32.totalorder %s2668_s18, %s2344_s20  ;;  %p2351_p10 = scmp.lt.u32.totalorder %s2349_s11, %s2344_s20 }
  0x68   : > { %p2353_p11 = scmp.lt.u32.totalorder %s2344_s20, %s2668_s18 }
  0x69   : > { %p2347_p3 = pnand %p2346_p2, %p2345_p0  ;;  %p2352_p1 = por %p2351_p10, %p2350_p8 }
  0x6b   : > { %p2348_p6 = pneg %p2347_p3  ;;  %p2354_p4 = por %p2353_p11, %p2352_p1 }
  0x6d   : > { %p2355_p5 = pnand %p2354_p4, %p2348_p6 }
  0x6f   : > { %2358 = shalt.err (!%p2355_p5)
}
  0x70   : > { %s2359_s13 = scalar_lea.vmem %s2670_s17, 64  ;;  %s2423_s1 = smov [#allocation2]  }
  0x71   : > { %p2360_p9 = scmp.ne.s32.totalorder %s2670_s17, %s2359_s13  ;;  %s2364_s21 = sshll.u32 %s2423_s1, 4  ;;  %s2365_s21 = int_to_ptr.vmem [resolvable:$false] %s2364_s21 }
  0x72   : > { %s2366_s22 = scalar_lea.vmem %s2365_s21, 128  ;;  %p2367_p0 = scmp.lt.s32.totalorder %s2670_s17, %s2365_s21 }
  0x73   : > { %p2362_p12 = pnand %p2360_p9, %p2346_p2  ;;  %p2368_p3 = scmp.lt.s32.totalorder %s2366_s22, %s2359_s13 }
  0x75   : > { %p2363_p13 = pneg %p2362_p12  ;;  %p2369_p8 = por %p2368_p3, %p2367_p0 }
  0x77   : > { %p2370_p10 = pnand %p2369_p8, %p2363_p13 }
  0x79   : > { %2373 = shalt.err (!%p2370_p10)
}
  0x7a   : > { %2126 = dma.hbm_to_vmem [thread:$0]  (!%p2672_p7), %s2668_s18, 64, %s2670_s17, %s517_s27  }
  0x7b   : > { %p3079_p6 = scmp.ne.s32.totalorder %s3074_s0, 0 }
  0x7c   : > { %s538_s20 = sand.u32 (!%p3079_p6), 1, %s2408_s25   ;;  %p3080_p2 = scmp.ne.s32.totalorder (!%p3079_p6), %s3073_s29, 0 }
  0x7d   : > { %536 = sbr.rel (%p3079_p6) target bundleno = 2044 (0x7fc), region = 88  ;;  %s1745_s9 = sshll.u32 (!%p3079_p6), %s538_s20, 2 }
  0x7e   : > { %s539_s19 = scalar_lea.sflag (!%p3079_p6), [#allocation3], %s538_s20  ;;  %s542_s11 = scalar_lea.vmem (!%p3079_p6), [#allocation2], %s1745_s9 }
  0x84   : > { %2391 = dma.done.wait (%p3080_p2), %s539_s19, 64  }
  0x85   : > { %2393 = vsyncadd (%p3080_p2), %s539_s19, 4294967232  ;;  %p3081_p1 = scmp.eq.s32.totalorder %s2540_s28, 0 }
  0x87   : > { %2395 = dma.done.wait (%p3081_p1), [#allocation5], 512   ;;  %p3082_p11 = pmov %p3081_p1 }
  0x88   : > { %p3083_p7 = pmov %p3081_p1 }
  0x89   : > { %2397 = vsyncadd (%p3082_p11), [#allocation5], 4294966784 }
  0x8a   : > { %2399 = dma.done.wait (%p3083_p7), [#allocation8], 1024   ;;  %p3084_p4 = pmov %p3081_p1 }
  0x8b   : > { %vm660_vm0 = vcmask 97280   ;;  %v610_v0 = vld [vmem:[%s542_s11] sm:$0xf]  ;;  %s3085_s17 = sld [smem:[#allocation13_spill]]  ;;  %s2424_s29 = smov 1   ;;  %v2425_v3 = vmov 0   ;;  %v619_v12 = vlaneseq }
  0x8c   : > { %2401 = vsyncadd (%p3084_p4), [#allocation8], 4294966272  ;;  %621 = vrot.lane.b32.xlu0 %v610_v0, %s2424_s29  ;;  %v615_v2 = vld [vmem:[%s3034_s2] sm:$0xff]  ;;  %2178 = vset.pattern.permute.xlu1 %v2425_v3  ;;  %s3061_s24 = smov 127   ;;  %v616_v4 = vld [vmem:[%s3034_s2 + $0x8] sm:$0xff]  ;;  %v2427_v9 = vmov 1  }
  0x8d   : > { %2179 = vset.pattern.permute.xlu0 %v2425_v3  ;;  %642 = vperm.xlu1 %2178, %v615_v2   ;;  %v761_v5 = vld [vmem:[%s3035_s3] sm:$0xff]  ;;  %v762_v6 = vld [vmem:[%s3035_s3 + $0x8] sm:$0xff]  ;;  %v618_v7 = vld [vmem:[%s3034_s2 + $0x18] sm:$0xff]  ;;  %v2754_v13 = vand.u32 127, %v619_v12  ;;  %v636_v17 = vrot.slane %v610_v0, 4  ;;  %vm638_vm3 = vcmask 1043456  }
  0x8e   : > { %v617_v8 = vld [vmem:[%s3034_s2 + $0x10] sm:$0xff]  ;;  %v764_v11 = vld [vmem:[%s3035_s3 + $0x18] sm:$0xff]  ;;  %vm2428_vm4 = vmmov 1   ;;  %s2429_s19 = smov 3   ;;  %s2430_s11 = smov 125   ;;  %v765_v62 = vld [vmem:[#allocation4] sm:$0xff] }
  0x8f   : > { %v763_v10 = vld [vmem:[%s3035_s3 + $0x10] sm:$0xff]  ;;  %v2757_v14 = vadd.s32 4294967295, %v2754_v13  ;;  %v2760_v15 = vadd.s32 1, %v2754_v13  ;;  %vm1990_vm5 = vmpackc.low %vm638_vm3, %vm2428_vm4  ;;  %vm869_vm6 = vcmask 785408   ;;  %v768_v63 = vld [vmem:[%s3037_s5 + $0x8] sm:$0xff]  ;;  %vm995_vm11 = vcmask 130048  }
  0x90   : > { %628 = vrot.lane.b32.xlu0 %v610_v0, %s3061_s24  ;;  %1903 = vmatprep.mubr.msk.f32.mxu0 %vm869_vm6, %v765_v62  ;;  %v767_v0 = vld [vmem:[%s3037_s5] sm:$0xff]  ;;  %v770_v2 = vld [vmem:[%s3038_s6 + $0x8] sm:$0xff]  ;;  %s3090_s21 = sld [smem:[#allocation14_spill]]  ;;  %s3091_s27 = sld [smem:[#allocation15_spill]] }
  0x91   : > { %v611_v1 = vld [vmem:[%s3085_s17] sm:$0xff]  ;;  %647 = vperm.xlu1 %2178, %v616_v4   ;;  %vm624_vm1 = vcmp.ge.s32.totalorder %v2757_v14, 0  ;;  %vm632_vm2 = vcmp.lt.s32.totalorder %v2760_v15, 128  ;;  %v612_v23 = vld [vmem:[%s3085_s17 + $0x8] sm:$0xff]  ;;  %v613_v24 = vld [vmem:[%s3085_s17 + $0x10] sm:$0xff]  ;;  %v835_v4 = vadd.s32 4294967293, %v2754_v13 }
  0x92   : > { %1873 = vmatprep.mubr.msk.f32.mxu1 %vm660_vm0, %v611_v1  ;;  %v614_v25 = vld [vmem:[%s3085_s17 + $0x18] sm:$0xff]  ;;  %v769_v1 = vld [vmem:[%s3038_s6] sm:$0xff]  ;;  %s3094_s23 = sld [smem:[#allocation17_spill]]  ;;  %s3095_s1 = sld [smem:[#allocation18_spill]]  ;;  %vm2068_vm12 = vmpackc.low %vm624_vm1, %vm624_vm1 }
  0x93   : > { %vm836_vm7 = vcmp.ge.s32.totalorder %v835_v4, 0  ;;  %s3096_s9 = smov 127   ;;  %s3097_s24 = sld [smem:[#allocation19_spill]]  ;;  %vm2088_vm13 = vmpackc.low %vm632_vm2, %vm632_vm2  ;;  %v1426_v15 = vld [vmem:[#allocation7 + $0x18] sm:$0xff] }
  0x94   : > { %781 = vperm.xlu0 %2179, %v761_v5   ;;  %vm2814_vm8 = vmpackc.low %vm836_vm7, %vm836_vm7  ;;  %p605_p5 = scmp.lt.s32.totalorder %s2540_s28, 1 }
  0x95   : > { %786 = vperm.xlu1 %2178, %v762_v6  }
  0x96   : > { %s3092_s30 = smov %s3091_s27  ;;  %s3105_s28 = smov (!%p605_p5, %s2540_s28), 1 }
  0x97   : > { %s1802_s20 = sshll.u32 %s3105_s28, 6 }
  0x98   : > { %657 = vperm.xlu0 %2179, %v618_v7  }
  0x99   : > { %652 = vperm.xlu1 %2178, %v617_v8   ;;  %v1102_v8 = vld [vmem:[#allocation6 + $0x8] sm:$0xff]  ;;  %s3098_s18 = smov %s3097_s24 }
  0x9c   : > { %2181 = vset.pattern.permute.xlu0 %v2427_v9 }
  0x9d   : > { %808 = vperm.xlu0 %2181, %v762_v6   ;;  %2180 = vset.pattern.permute.xlu1 %v2427_v9 }
  0x9e   : > { %804 = vperm.xlu1 %2180, %v761_v5  }
  0xa1   : > { %812 = vperm.xlu0 %2181, %v763_v10  }
  0xa2   : > { %2182 = vset.pattern.permute.xlu1 %v2425_v3 }
  0xa3   : > { %791 = vperm.xlu1 %2182, %v763_v10  }
  0xa5   : > { %2204 = vset.pattern.permute.xlu0 %v2425_v3 }
  0xa7   : > { %796 = vperm.xlu1 %2182, %v764_v11  }
  0xab   : > { %2183 = vset.pattern.permute.xlu1 %v2427_v9 }
  0xac   : > { %816 = vperm.xlu1 %2183, %v764_v11  }
  0xb0   : > { %2205 = vset.pattern.permute.xlu1 %v2425_v3 }
  0xfe   : > { %v622_v16 = vpop.permute.xlu0 %621 }
  0xff   : > { %v627_v18 = vsel %vm624_vm1, %v622_v16, 0.0 }
 0x100   : > { %v639_v21 = vsel %vm638_vm3, %v627_v18, %v636_v17  ;;  %v851_v18 = vadd.s32 3, %v2754_v13 }
 0x102   : > { %v629_v19 = vpop.permute.xlu0 %628  ;;  %vm853_vm9 = vcmp.lt.s32.totalorder %v851_v18, 128 }
 0x103   : > { %v634_v20 = vsel %vm632_vm2, %v629_v19, 0.0  ;;  %vm2827_vm10 = vmpackc.low %vm853_vm9, %vm853_vm9 }
 0x104   : > { %v1989_v22 = vpack.c.bf16 %v634_v20, %v639_v21 }
 0x106   : > { %1991 = vmatprep.subr.msk.bf16.mxu1 %vm1990_vm5, %v1989_v22 }
 0x107   : > { %1994 = vmatpush3.bf16.msk.msra.mxu1 %vm1990_vm5, %v1989_v22 }
 0x10a   : > { %1874 = vmatmul.mubr.msk.f32.vlgmr.msra.gmra.mrb[0].mxu1 %vm660_vm0, %v612_v23  ;;  %v1112_v23 = vld [vmem:[%s3095_s1 + $0x8] sm:$0xff] }
 0x10b   : > { %1876 = vmatprep.mubr.msk.f32.mxu1 %vm660_vm0, %v613_v24 }
 0x10c   : > { %v643_v26 = vpop.permute.xlu1 %642 }
 0x10e   : > { %1877 = vmatmul.mubr.msk.f32.gmra.mrb[2].mxu1 %vm660_vm0, %v614_v25 }
 0x110   : > { %v648_v27 = vpop.permute.xlu1 %647 }
 0x113   : > { %v782_v31 = vpop.permute.xlu0 %781 }
 0x114   : > { %v787_v28 = vpop.permute.xlu1 %786 }
 0x117   : > { %v658_v33 = vpop.permute.xlu0 %657 }
 0x118   : > { %v653_v29 = vpop.permute.xlu1 %652 }
 0x11c   : > { %v809_v39 = vpop.permute.xlu0 %808 }
 0x11d   : > { %v805_v30 = vpop.permute.xlu1 %804 }
 0x120   : > { %v813_v53 = vpop.permute.xlu0 %812 }
 0x122   : > { %v792_v32 = vpop.permute.xlu1 %791 }
 0x126   : > { %v797_v37 = vpop.permute.xlu1 %796 }
 0x12b   : > { %v817_v48 = vpop.permute.xlu1 %816 }
 0x1dd   : > { %v1875_v34 = vpop.f32.mrb[0].mxu1 }
 0x1de   : > { %v2780_v35 = vadd.f32 %v1875_v34, %v648_v27  ;;  %v742_v36 = vpop.f32.mrb[1].mxu1  ;;  %v766_v27 = vld [vmem:[#allocation4 + $0x8] sm:$0xff]  ;;  %v1097_v34 = vld [vmem:[%s3090_s21] sm:$0xff] }
 0x1df   : > { %v2782_v38 = vadd.f32 %v742_v36, %v643_v26  ;;  %v1099_v36 = vld [vmem:[%s3090_s21 + $0x10] sm:$0xff] }
 0x1e0   : > { %v800_v40 = vmul.f32 %v787_v28, %v2780_v35  ;;  %v771_v28 = vld [vmem:[%s3039_s7] sm:$0xff] }
 0x1e1   : > { %v799_v41 = vmul.f32 %v782_v31, %v2782_v38  ;;  %v1878_v42 = vpop.f32.mrb[2].mxu1  ;;  %v776_v31 = vld [vmem:[%s3040_s8 + $0x8] sm:$0xff] }
 0x1e2   : > { %v820_v43 = vadd.f32 %v809_v39, %v800_v40  ;;  %v2786_v44 = vadd.f32 %v1878_v42, %v658_v33  ;;  %v752_v45 = vpop.f32.mrb[3].mxu1  ;;  %v778_v33 = vld [vmem:[%s3040_s8 + $0x18] sm:$0xff] }
 0x1e3   : > { %v819_v46 = vadd.f32 %v805_v30, %v799_v41  ;;  %v2788_v47 = vadd.f32 %v752_v45, %v653_v29  ;;  %v775_v29 = vld [vmem:[%s3040_s8] sm:$0xff]  ;;  %v777_v30 = vld [vmem:[%s3040_s8 + $0x10] sm:$0xff] }
 0x1e4   : > { %v824_v49 = vmax.f32 %v820_v43, 0.0  ;;  %v802_v50 = vmul.f32 %v797_v37, %v2786_v44  ;;  %v1100_v37 = vld [vmem:[%s3090_s21 + $0x18] sm:$0xff] }
 0x1e5   : > { %v823_v51 = vmax.f32 %v819_v46, 0.0  ;;  %v801_v52 = vmul.f32 %v792_v32, %v2788_v47  ;;  %v1098_v32 = vld [vmem:[%s3090_s21 + $0x8] sm:$0xff] }
 0x1e6   : > { %v822_v54 = vadd.f32 %v817_v48, %v802_v50 }
 0x1e7   : > { %v821_v55 = vadd.f32 %v813_v53, %v801_v52  ;;  %v2184_v56 = vpack.i.bf16 %v824_v49, %v823_v51  ;;  %v2007_v57 = vpack.c.bf16 %v824_v49, %v823_v51 }
 0x1e8   : > { %v826_v58 = vmax.f32 %v822_v54, 0.0 }
 0x1e9   : > { %v825_v59 = vmax.f32 %v821_v55, 0.0  ;;  %2185 = vrot.lane.b32.xlu0 %v2184_v56, %s2429_s19 }
 0x1eb   : > { %v2189_v60 = vpack.i.bf16 %v826_v58, %v825_v59  ;;  %v2011_v61 = vpack.c.bf16 %v826_v58, %v825_v59  ;;  %v772_v58 = vld [vmem:[%s3039_s7 + $0x8] sm:$0xff]  ;;  %v773_v59 = vld [vmem:[%s3039_s7 + $0x10] sm:$0xff] }
 0x1ed   : > { %2190 = vrot.lane.b32.xlu1 %v2189_v60, %s2429_s19  ;;  %2195 = vrot.lane.b32.xlu0 %v2184_v56, %s2430_s11 }
 0x1f1   : > { %2200 = vrot.lane.b32.xlu1 %v2189_v60, %s2430_s11  ;;  %861 = vperm.xlu0 %2204, %v767_v0   ;;  %v774_v60 = vld [vmem:[%s3039_s7 + $0x18] sm:$0xff] }
 0x1f5   : > { %866 = vperm.xlu1 %2205, %v768_v63   ;;  %958 = vperm.xlu0 %2204, %v770_v2  }
 0x1f9   : > { %953 = vperm.xlu1 %2205, %v769_v1   ;;  %2207 = vset.pattern.permute.xlu0 %v2427_v9 }
 0x1fa   : > { %968 = vperm.xlu0 %2207, %v770_v2  }
 0x1fd   : > { %2206 = vset.pattern.permute.xlu1 %v2427_v9 }
 0x1fe   : > { %964 = vperm.xlu1 %2206, %v769_v1   ;;  %2209 = vset.pattern.permute.xlu0 %v2425_v3 }
 0x1ff   : > { %987 = vperm.xlu0 %2209, %v777_v30  }
 0x202   : > { %2208 = vset.pattern.permute.xlu1 %v2425_v3 }
 0x203   : > { %977 = vperm.xlu1 %2208, %v775_v29   ;;  %1122 = vperm.xlu0 %2209, %v1098_v32  }
 0x207   : > { %982 = vperm.xlu1 %2208, %v776_v31   ;;  %2211 = vset.pattern.permute.xlu0 %v2427_v9 }
 0x208   : > { %1144 = vperm.xlu0 %2211, %v1098_v32  }
 0x20b   : > { %992 = vperm.xlu1 %2208, %v778_v33  }
 0x20c   : > { %1148 = vperm.xlu0 %2211, %v1099_v36  }
 0x20f   : > { %1117 = vperm.xlu1 %2208, %v1097_v34  }
 0x210   : > { %2234 = vset.pattern.permute.xlu0 %v2425_v3 }
 0x213   : > { %2210 = vset.pattern.permute.xlu1 %v2427_v9 }
 0x214   : > { %1140 = vperm.xlu1 %2210, %v1097_v34  }
 0x218   : > { %2212 = vset.pattern.permute.xlu1 %v2425_v3 }
 0x219   : > { %1127 = vperm.xlu1 %2212, %v1099_v36  }
 0x21d   : > { %1132 = vperm.xlu1 %2212, %v1100_v37  }
 0x221   : > { %2213 = vset.pattern.permute.xlu1 %v2427_v9 }
 0x222   : > { %1152 = vperm.xlu1 %2213, %v1100_v37  }
 0x226   : > { %2235 = vset.pattern.permute.xlu1 %v2425_v3 }
 0x25b   : > { %v2186_v5 = vpop.permute.xlu0 %2185 }
 0x25c   : > { %v2188_v6 = vunpack.i.h.bf16 %v2186_v5  ;;  %v2187_v7 = vunpack.i.l.bf16 %v2186_v5 }
 0x25e   : > { %v1995_v10 = vpack.c.bf16 %v2188_v6, %v2187_v7 }
 0x25f   : > { %v2191_v11 = vpop.permute.xlu1 %2190  ;;  %v2196_v19 = vpop.permute.xlu0 %2195 }
 0x260   : > { %v2193_v12 = vunpack.i.h.bf16 %v2191_v11  ;;  %v2192_v16 = vunpack.i.l.bf16 %v2191_v11  ;;  %1997 = vmatprep.subr.msk.bf16.mxu0 %vm2814_vm8, %v1995_v10  ;;  %v2198_v20 = vunpack.i.h.bf16 %v2196_v19  ;;  %v2197_v21 = vunpack.i.l.bf16 %v2196_v19 }
 0x261   : > { %2000 = vmatpush3.bf16.msk.msra.mxu0 %vm2814_vm8, %v1995_v10 }
 0x262   : > { %v2001_v17 = vpack.c.bf16 %v2193_v12, %v2192_v16  ;;  %v2015_v24 = vpack.c.bf16 %v2198_v20, %v2197_v21 }
 0x263   : > { %v2201_v22 = vpop.permute.xlu1 %2200 }
 0x264   : > { %2003 = vmatprep.subr.msk.bf16.mxu0 %vm2814_vm8, %v2001_v17  ;;  %v2203_v25 = vunpack.i.h.bf16 %v2201_v22  ;;  %v2202_v26 = vunpack.i.l.bf16 %v2201_v22 }
 0x265   : > { %2006 = vmatpush3.bf16.msk.msra.mxu0 %vm2814_vm8, %v2001_v17 }
 0x266   : > { %2008 = vmatprep.subr.bf16.mxu0 %v2007_v57  ;;  %v2021_v13 = vpack.c.bf16 %v2203_v25, %v2202_v26 }
 0x269   : > { %2010 = vmatpush3.bf16.msra.mxu0 %v2007_v57 }
 0x26a   : > { %2012 = vmatprep.subr.bf16.mxu0 %v2011_v61 }
 0x26d   : > { %2014 = vmatpush3.bf16.msra.mxu0 %v2011_v61 }
 0x26e   : > { %2017 = vmatprep.subr.msk.bf16.mxu0 %vm2827_vm10, %v2015_v24 }
 0x270   : > { %v862_v39 = vpop.permute.xlu0 %861 }
 0x271   : > { %2020 = vmatpush3.bf16.msk.msra.mxu0 %vm2827_vm10, %v2015_v24 }
 0x272   : > { %2023 = vmatprep.subr.msk.bf16.mxu0 %vm2827_vm10, %v2021_v13 }
 0x274   : > { %v867_v40 = vpop.permute.xlu1 %866  ;;  %v959_v41 = vpop.permute.xlu0 %958 }
 0x275   : > { %2026 = vmatpush3.bf16.msk.msra.mxu0 %vm2827_vm10, %v2021_v13 }
 0x278   : > { %1904 = vmatmul.mubr.msk.f32.vlgmr.msra.gmra.mrb[0].mxu0 %vm869_vm6, %v766_v27  ;;  %v954_v42 = vpop.permute.xlu1 %953 }
 0x279   : > { %1910 = vmatprep.mubr.msk.f32.mxu0 %vm995_vm11, %v771_v28  ;;  %v969_v49 = vpop.permute.xlu0 %968 }
 0x27d   : > { %v965_v51 = vpop.permute.xlu1 %964 }
 0x27e   : > { %v988_v2 = vpop.permute.xlu0 %987 }
 0x282   : > { %v978_v61 = vpop.permute.xlu1 %977  ;;  %v1123_v5 = vpop.permute.xlu0 %1122 }
 0x286   : > { %v983_v62 = vpop.permute.xlu1 %982 }
 0x287   : > { %v1145_v19 = vpop.permute.xlu0 %1144 }
 0x28a   : > { %v993_v63 = vpop.permute.xlu1 %992 }
 0x28b   : > { %v1149_v32 = vpop.permute.xlu0 %1148 }
 0x28e   : > { %v1118_v0 = vpop.permute.xlu1 %1117 }
 0x293   : > { %v1141_v1 = vpop.permute.xlu1 %1140 }
 0x298   : > { %v1128_v4 = vpop.permute.xlu1 %1127 }
 0x29c   : > { %v1133_v17 = vpop.permute.xlu1 %1132 }
 0x34b   : > { %v1905_v43 = vpop.f32.mrb[0].mxu0 }
 0x34c   : > { %v948_v45 = vadd.f32 %v1905_v43, %v867_v40  ;;  %v942_v46 = vpop.f32.mrb[1].mxu0  ;;  %v1103_v43 = vld [vmem:[%s3092_s30] sm:$0xff] }
 0x34d   : > { %v943_v48 = vadd.f32 %v942_v46, %v862_v39 }
 0x34e   : > { %v962_v50 = vmul.f32 %v959_v41, %v948_v45 }
 0x34f   : > { %v961_v52 = vmul.f32 %v954_v42, %v943_v48  ;;  %v1104_v42 = vld [vmem:[%s3091_s27 + $0x8] sm:$0xff] }
 0x350   : > { %v972_v53 = vadd.f32 %v969_v49, %v962_v50 }
 0x351   : > { %v971_v54 = vadd.f32 %v965_v51, %v961_v52 }
 0x352   : > { %v974_v55 = vmax.f32 %v972_v53, 0.0 }
 0x353   : > { %v973_v56 = vmax.f32 %v971_v54, 0.0 }
 0x355   : > { %v2027_v57 = vpack.c.bf16 %v974_v55, %v973_v56 }
 0x357   : > { %2028 = vmatprep.subr.bf16.mxu0 %v2027_v57 }
 0x358   : > { %2030 = vmatpush3.bf16.msra.mxu0 %v2027_v57 }
 0x35b   : > { %1911 = vmatmul.mubr.msk.f32.vlgmr.msra.gmra.mrb[2].mxu0 %vm995_vm11, %v772_v58 }
 0x35c   : > { %1913 = vmatprep.mubr.msk.f32.mxu0 %vm995_vm11, %v773_v59 }
 0x35f   : > { %1914 = vmatmul.mubr.msk.f32.gmra.mrb[4].mxu0 %vm995_vm11, %v774_v60 }
 0x42e   : > { %v1912_v6 = vpop.f32.mrb[2].mxu0 }
 0x42f   : > { %v1080_v7 = vadd.f32 %v1912_v6, %v983_v62  ;;  %v1074_v10 = vpop.f32.mrb[3].mxu0  ;;  %v1107_v62 = vld [vmem:[%s3094_s23] sm:$0xff] }
 0x430   : > { %v1075_v11 = vadd.f32 %v1074_v10, %v978_v61  ;;  %1947 = vmatprep.mubr.msk.f32.mxu1 %vm995_vm11, %v1107_v62 }
 0x431   : > { %v2887_v12 = vadd.f32 %v1080_v7, %v2780_v35 }
 0x432   : > { %v2890_v16 = vadd.f32 %v1075_v11, %v2782_v38  ;;  %v1915_v18 = vpop.f32.mrb[4].mxu0  ;;  %v1153_v38 = vpop.permute.xlu1 %1152 }
 0x433   : > { %v1136_v20 = vmul.f32 %v1123_v5, %v2887_v12  ;;  %v1090_v21 = vadd.f32 %v1915_v18, %v993_v63  ;;  %v1084_v22 = vpop.f32.mrb[5].mxu0  ;;  %v1111_v63 = vld [vmem:[%s3095_s1] sm:$0xff] }
 0x434   : > { %v1135_v24 = vmul.f32 %v1118_v0, %v2890_v16  ;;  %v1085_v25 = vadd.f32 %v1084_v22, %v988_v2  ;;  %v1113_v0 = vld [vmem:[%s3095_s1 + $0x10] sm:$0xff] }
 0x435   : > { %v1156_v26 = vadd.f32 %v1145_v19, %v1136_v20  ;;  %v2895_v13 = vadd.f32 %v1090_v21, %v2786_v44 }
 0x436   : > { %v1155_v27 = vadd.f32 %v1141_v1, %v1135_v24  ;;  %v2898_v35 = vadd.f32 %v1085_v25, %v2788_v47  ;;  %v1101_v47 = vld [vmem:[#allocation6] sm:$0xff] }
 0x437   : > { %v1160_v28 = vmax.f32 %v1156_v26, 0.0  ;;  %v1138_v29 = vmul.f32 %v1133_v17, %v2895_v13  ;;  %1940 = vmatprep.mubr.msk.f32.mxu0 %vm869_vm6, %v1101_v47  ;;  %v1114_v1 = vld [vmem:[%s3095_s1 + $0x18] sm:$0xff] }
 0x438   : > { %v1159_v30 = vmax.f32 %v1155_v27, 0.0  ;;  %v1137_v31 = vmul.f32 %v1128_v4, %v2898_v35 }
 0x439   : > { %v1158_v33 = vadd.f32 %v1153_v38, %v1138_v29  ;;  %v1108_v38 = vld [vmem:[%s3094_s23 + $0x8] sm:$0xff]  ;;  %v1110_v29 = vld [vmem:[%s3094_s23 + $0x18] sm:$0xff] }
 0x43a   : > { %v1157_v34 = vadd.f32 %v1149_v32, %v1137_v31  ;;  %v2214_v36 = vpack.i.bf16 %v1160_v28, %v1159_v30  ;;  %v2043_v37 = vpack.c.bf16 %v1160_v28, %v1159_v30  ;;  %v1109_v28 = vld [vmem:[%s3094_s23 + $0x10] sm:$0xff] }
 0x43b   : > { %v1162_v39 = vmax.f32 %v1158_v33, 0.0 }
 0x43c   : > { %v1161_v40 = vmax.f32 %v1157_v34, 0.0  ;;  %2215 = vrot.lane.b32.xlu0 %v2214_v36, %s2429_s19 }
 0x43e   : > { %v2219_v44 = vpack.i.bf16 %v1162_v39, %v1161_v40  ;;  %v2047_v41 = vpack.c.bf16 %v1162_v39, %v1161_v40 }
 0x440   : > { %2220 = vrot.lane.b32.xlu1 %v2219_v44, %s2429_s19  ;;  %2225 = vrot.lane.b32.xlu0 %v2214_v36, %s2430_s11  ;;  %s3093_s19 = sld [smem:[#allocation16_spill]] }
 0x444   : > { %2230 = vrot.lane.b32.xlu1 %v2219_v44, %s2430_s11  ;;  %1189 = vperm.xlu0 %2234, %v1103_v43   ;;  %s3099_s11 = sld [smem:[#allocation20_spill]] }
 0x446   : > { %v1105_v45 = vld [vmem:[%s3093_s19] sm:$0xff]  ;;  %v1106_v46 = vld [vmem:[%s3093_s19 + $0x8] sm:$0xff] }
 0x448   : > { %1194 = vperm.xlu1 %2235, %v1104_v42   ;;  %1285 = vperm.xlu0 %2234, %v1106_v46  }
 0x44c   : > { %1280 = vperm.xlu1 %2235, %v1105_v45   ;;  %2237 = vset.pattern.permute.xlu0 %v2427_v9 }
 0x44d   : > { %1295 = vperm.xlu0 %2237, %v1106_v46  }
 0x450   : > { %2236 = vset.pattern.permute.xlu1 %v2427_v9 }
 0x451   : > { %1291 = vperm.xlu1 %2236, %v1105_v45   ;;  %2239 = vset.pattern.permute.xlu0 %v2425_v3 }
 0x452   : > { %1314 = vperm.xlu0 %2239, %v1113_v0  }
 0x455   : > { %2238 = vset.pattern.permute.xlu1 %v2425_v3 }
 0x456   : > { %1304 = vperm.xlu1 %2238, %v1111_v63  }
 0x45a   : > { %1309 = vperm.xlu1 %2238, %v1112_v23  }
 0x45e   : > { %1319 = vperm.xlu1 %2238, %v1114_v1  }
 0x4ae   : > { %v2216_v48 = vpop.permute.xlu0 %2215 }
 0x4af   : > { %v2218_v49 = vunpack.i.h.bf16 %v2216_v48  ;;  %v2217_v50 = vunpack.i.l.bf16 %v2216_v48 }
 0x4b1   : > { %v2031_v51 = vpack.c.bf16 %v2218_v49, %v2217_v50 }
 0x4b2   : > { %v2221_v52 = vpop.permute.xlu1 %2220  ;;  %v2226_v55 = vpop.permute.xlu0 %2225 }
 0x4b3   : > { %v2223_v53 = vunpack.i.h.bf16 %v2221_v52  ;;  %v2222_v54 = vunpack.i.l.bf16 %v2221_v52  ;;  %2033 = vmatprep.subr.msk.bf16.mxu0 %vm2814_vm8, %v2031_v51  ;;  %v2228_v3 = vunpack.i.h.bf16 %v2226_v55  ;;  %v2227_v56 = vunpack.i.l.bf16 %v2226_v55  ;;  %v1434_v52 = vld [vmem:[%s3098_s18 + $0x18] sm:$0xff] }
 0x4b4   : > { %2036 = vmatpush3.bf16.msk.msra.mxu0 %vm2814_vm8, %v2031_v51  ;;  %v1438_v55 = vld [vmem:[%s3098_s18 + $0x38] sm:$0xff] }
 0x4b5   : > { %v2037_v9 = vpack.c.bf16 %v2223_v53, %v2222_v54  ;;  %v2051_v58 = vpack.c.bf16 %v2228_v3, %v2227_v56  ;;  %v1435_v53 = vld [vmem:[%s3098_s18 + $0x20] sm:$0xff]  ;;  %v1436_v54 = vld [vmem:[%s3098_s18 + $0x28] sm:$0xff] }
 0x4b6   : > { %v2231_v57 = vpop.permute.xlu1 %2230 }
 0x4b7   : > { %2039 = vmatprep.subr.msk.bf16.mxu0 %vm2814_vm8, %v2037_v9  ;;  %v2233_v59 = vunpack.i.h.bf16 %v2231_v57  ;;  %v2232_v60 = vunpack.i.l.bf16 %v2231_v57 }
 0x4b8   : > { %2042 = vmatpush3.bf16.msk.msra.mxu0 %vm2814_vm8, %v2037_v9  ;;  %v1437_v9 = vld [vmem:[%s3098_s18 + $0x30] sm:$0xff] }
 0x4b9   : > { %2044 = vmatprep.subr.bf16.mxu0 %v2043_v37  ;;  %v2057_v61 = vpack.c.bf16 %v2233_v59, %v2232_v60 }
 0x4bc   : > { %2046 = vmatpush3.bf16.msra.mxu0 %v2043_v37 }
 0x4bd   : > { %2048 = vmatprep.subr.bf16.mxu0 %v2047_v41 }
 0x4c0   : > { %2050 = vmatpush3.bf16.msra.mxu0 %v2047_v41 }
 0x4c1   : > { %2053 = vmatprep.subr.msk.bf16.mxu0 %vm2827_vm10, %v2051_v58 }
 0x4c3   : > { %v1190_v2 = vpop.permute.xlu0 %1189 }
 0x4c4   : > { %2056 = vmatpush3.bf16.msk.msra.mxu0 %vm2827_vm10, %v2051_v58 }
 0x4c5   : > { %2059 = vmatprep.subr.msk.bf16.mxu0 %vm2827_vm10, %v2057_v61 }
 0x4c7   : > { %v1195_v4 = vpop.permute.xlu1 %1194  ;;  %v1286_v5 = vpop.permute.xlu0 %1285 }
 0x4c8   : > { %2062 = vmatpush3.bf16.msk.msra.mxu0 %vm2827_vm10, %v2057_v61 }
 0x4cb   : > { %1941 = vmatmul.mubr.msk.f32.vlgmr.msra.gmra.mrb[6].mxu0 %vm869_vm6, %v1102_v8  ;;  %v1281_v6 = vpop.permute.xlu1 %1280 }
 0x4cc   : > { %v1296_v18 = vpop.permute.xlu0 %1295 }
 0x4d0   : > { %v1292_v20 = vpop.permute.xlu1 %1291 }
 0x4d1   : > { %v1315_v39 = vpop.permute.xlu0 %1314 }
 0x4d5   : > { %v1305_v30 = vpop.permute.xlu1 %1304 }
 0x4d9   : > { %v1310_v31 = vpop.permute.xlu1 %1309 }
 0x4dd   : > { %v1320_v44 = vpop.permute.xlu1 %1319 }
 0x59e   : > { %v1942_v7 = vpop.f32.mrb[6].mxu0 }
 0x59f   : > { %v1275_v10 = vadd.f32 %v1942_v7, %v1195_v4  ;;  %v1269_v11 = vpop.f32.mrb[7].mxu0  ;;  %v1427_v7 = vld [vmem:[#allocation7 + $0x20] sm:$0xff] }
 0x5a0   : > { %v1270_v17 = vadd.f32 %v1269_v11, %v1190_v2  ;;  %v1429_v11 = vld [vmem:[#allocation7 + $0x30] sm:$0xff] }
 0x5a1   : > { %v1289_v19 = vmul.f32 %v1286_v5, %v1275_v10  ;;  %v1424_v5 = vld [vmem:[#allocation7 + $0x8] sm:$0xff] }
 0x5a2   : > { %v1288_v21 = vmul.f32 %v1281_v6, %v1270_v17  ;;  %v1425_v6 = vld [vmem:[#allocation7 + $0x10] sm:$0xff]  ;;  %v1428_v10 = vld [vmem:[#allocation7 + $0x28] sm:$0xff]  ;;  %v1430_v17 = vld [vmem:[#allocation7 + $0x38] sm:$0xff] }
 0x5a3   : > { %v1299_v22 = vadd.f32 %v1296_v18, %v1289_v19 }
 0x5a4   : > { %v1298_v24 = vadd.f32 %v1292_v20, %v1288_v21 }
 0x5a5   : > { %v1301_v25 = vmax.f32 %v1299_v22, 0.0 }
 0x5a6   : > { %v1300_v26 = vmax.f32 %v1298_v24, 0.0 }
 0x5a8   : > { %v2063_v27 = vpack.c.bf16 %v1301_v25, %v1300_v26 }
 0x5aa   : > { %2064 = vmatprep.subr.bf16.mxu1 %v2063_v27 }
 0x5ab   : > { %2066 = vmatpush3.bf16.msra.mxu1 %v2063_v27 }
 0x5ae   : > { %1948 = vmatmul.mubr.msk.f32.vlgmr.msra.gmra.mrb[4].mxu1 %vm995_vm11, %v1108_v38 }
 0x5af   : > { %1950 = vmatprep.mubr.msk.f32.mxu1 %vm995_vm11, %v1109_v28 }
 0x5b2   : > { %1951 = vmatmul.mubr.msk.f32.gmra.mrb[6].mxu1 %vm995_vm11, %v1110_v29 }
 0x681   : > { %v1949_v32 = vpop.f32.mrb[4].mxu1 }
 0x682   : > { %v1406_v33 = vadd.f32 %v1949_v32, %v1310_v31  ;;  %v1400_v34 = vpop.f32.mrb[5].mxu1 }
 0x683   : > { %v1401_v36 = vadd.f32 %v1400_v34, %v1305_v30 }
 0x684   : > { %v1420_v37 = vadd.f32 %v1406_v33, %v2887_v12  ;;  %v1431_v12 = vld [vmem:[%s3097_s24] sm:$0xff] }
 0x685   : > { %v1419_v40 = vadd.f32 %v1401_v36, %v2890_v16  ;;  %v1952_v41 = vpop.f32.mrb[6].mxu1  ;;  %v1432_v16 = vld [vmem:[%s3098_s18 + $0x8] sm:$0xff] }
 0x686   : > { %v1416_v47 = vadd.f32 %v1952_v41, %v1320_v44  ;;  %v1410_v42 = vpop.f32.mrb[7].mxu1 }
 0x687   : > { %v1411_v43 = vadd.f32 %v1410_v42, %v1315_v39  ;;  %v2240_v45 = vpack.i.bf16 %v1420_v37, %v1419_v40  ;;  %v2079_v46 = vpack.c.bf16 %v1420_v37, %v1419_v40 }
 0x688   : > { %v1422_v48 = vadd.f32 %v1416_v47, %v2895_v13  ;;  %v1433_v13 = vld [vmem:[%s3098_s18 + $0x10] sm:$0xff] }
 0x689   : > { %v1421_v49 = vadd.f32 %v1411_v43, %v2898_v35  ;;  %2241 = vrot.lane.b32.xlu1 %v2240_v45, %s2424_s29  ;;  %v1423_v35 = vld [vmem:[#allocation7] sm:$0xff] }
 0x68a   : > { %1977 = vmatprep.mubr.msk.f32.mxu1 %vm869_vm6, %v1423_v35 }
 0x68b   : > { %v2245_v50 = vpack.i.bf16 %v1422_v48, %v1421_v49  ;;  %v2083_v51 = vpack.c.bf16 %v1422_v48, %v1421_v49 }
 0x68d   : > { %2246 = vrot.lane.b32.xlu0 %v2245_v50, %s2424_s29  ;;  %2251 = vrot.lane.b32.xlu1 %v2240_v45, %s3096_s9 }
 0x691   : > { %2256 = vrot.lane.b32.xlu0 %v2245_v50, %s3096_s9  ;;  %1465 = vperm.xlu1 %2238, %v1431_v12   ;;  %s609_s9 = scalar_lea.vmem %s3099_s11, %s1802_s20 }
 0x695   : > { %1470 = vperm.xlu0 %2239, %v1432_v16   ;;  %1475 = vperm.xlu1 %2238, %v1433_v13  }
 0x699   : > { %1480 = vperm.xlu0 %2239, %v1434_v52   ;;  %1485 = vperm.xlu1 %2238, %v1435_v53  }
 0x69d   : > { %1490 = vperm.xlu0 %2239, %v1436_v54   ;;  %1495 = vperm.xlu1 %2238, %v1437_v9  }
 0x6a1   : > { %1500 = vperm.xlu0 %2239, %v1438_v55  }
 0x6fb   : > { %v2242_v3 = vpop.permute.xlu1 %2241 }
 0x6fc   : > { %v2244_v56 = vunpack.i.h.bf16 %v2242_v3  ;;  %v2243_v57 = vunpack.i.l.bf16 %v2242_v3 }
 0x6fe   : > { %v2067_v58 = vpack.c.bf16 %v2244_v56, %v2243_v57 }
 0x6ff   : > { %v2247_v59 = vpop.permute.xlu0 %2246  ;;  %v2252_v62 = vpop.permute.xlu1 %2251 }
 0x700   : > { %v2249_v60 = vunpack.i.h.bf16 %v2247_v59  ;;  %v2248_v61 = vunpack.i.l.bf16 %v2247_v59  ;;  %2069 = vmatprep.subr.msk.bf16.mxu1 %vm2068_vm12, %v2067_v58  ;;  %v2254_v63 = vunpack.i.h.bf16 %v2252_v62  ;;  %v2253_v0 = vunpack.i.l.bf16 %v2252_v62 }
 0x701   : > { %2072 = vmatpush3.bf16.msk.msra.mxu1 %vm2068_vm12, %v2067_v58 }
 0x702   : > { %v2073_v8 = vpack.c.bf16 %v2249_v60, %v2248_v61  ;;  %v2087_v14 = vpack.c.bf16 %v2254_v63, %v2253_v0 }
 0x703   : > { %v2257_v23 = vpop.permute.xlu0 %2256 }
 0x704   : > { %2075 = vmatprep.subr.msk.bf16.mxu1 %vm2068_vm12, %v2073_v8  ;;  %v2259_v1 = vunpack.i.h.bf16 %v2257_v23  ;;  %v2258_v2 = vunpack.i.l.bf16 %v2257_v23 }
 0x705   : > { %2078 = vmatpush3.bf16.msk.msra.mxu1 %vm2068_vm12, %v2073_v8 }
 0x706   : > { %2080 = vmatprep.subr.bf16.mxu1 %v2079_v46  ;;  %v2093_v4 = vpack.c.bf16 %v2259_v1, %v2258_v2 }
 0x709   : > { %2082 = vmatpush3.bf16.msra.mxu1 %v2079_v46 }
 0x70a   : > { %2084 = vmatprep.subr.bf16.mxu1 %v2083_v51 }
 0x70d   : > { %2086 = vmatpush3.bf16.msra.mxu1 %v2083_v51 }
 0x70e   : > { %2089 = vmatprep.subr.msk.bf16.mxu1 %vm2088_vm13, %v2087_v14 }
 0x710   : > { %v1466_v19 = vpop.permute.xlu1 %1465 }
 0x711   : > { %2092 = vmatpush3.bf16.msk.msra.mxu1 %vm2088_vm13, %v2087_v14 }
 0x712   : > { %2095 = vmatprep.subr.msk.bf16.mxu1 %vm2088_vm13, %v2093_v4 }
 0x714   : > { %v1471_v18 = vpop.permute.xlu0 %1470  ;;  %v1476_v22 = vpop.permute.xlu1 %1475 }
 0x715   : > { %2098 = vmatpush3.bf16.msk.msra.mxu1 %vm2088_vm13, %v2093_v4 }
 0x718   : > { %1978 = vmatmul.mubr.msk.f32.vlgmr.msra.gmra.mrb[8].mxu1 %vm869_vm6, %v1424_v5  ;;  %v1481_v20 = vpop.permute.xlu0 %1480  ;;  %v1486_v31 = vpop.permute.xlu1 %1485 }
 0x719   : > { %1980 = vmatprep.mubr.msk.f32.mxu1 %vm869_vm6, %v1425_v6 }
 0x71c   : > { %1981 = vmatmul.mubr.msk.f32.gmra.mrb[10].mxu1 %vm869_vm6, %v1426_v15  ;;  %v1491_v29 = vpop.permute.xlu0 %1490  ;;  %v1496_v40 = vpop.permute.xlu1 %1495 }
 0x71d   : > { %1983 = vmatprep.mubr.msk.f32.mxu1 %vm869_vm6, %v1427_v7 }
 0x720   : > { %1984 = vmatmul.mubr.msk.f32.gmra.mrb[12].mxu1 %vm869_vm6, %v1428_v10  ;;  %v1501_v37 = vpop.permute.xlu0 %1500 }
 0x721   : > { %1986 = vmatprep.mubr.msk.f32.mxu1 %vm869_vm6, %v1429_v11 }
 0x724   : > { %1987 = vmatmul.mubr.msk.f32.gmra.mrb[14].mxu1 %vm869_vm6, %v1430_v17 }
 0x7eb   : > { %v1979_v21 = vpop.f32.mrb[8].mxu1 }
 0x7ec   : > { %v1599_v24 = vadd.f32 %v1979_v21, %v1471_v18  ;;  %v1593_v25 = vpop.f32.mrb[9].mxu1 }
 0x7ed   : > { %v1594_v26 = vadd.f32 %v1593_v25, %v1466_v19 }
 0x7ee   : > { %1633 = vst [vmem:[%s609_s9 + $0x8] sm:$0xff] %v1599_v24 }
 0x7ef   : > { %1632 = vst [vmem:[%s609_s9] sm:$0xff] %v1594_v26  ;;  %v1982_v27 = vpop.f32.mrb[10].mxu1 }
 0x7f0   : > { %v1609_v38 = vadd.f32 %v1982_v27, %v1481_v20  ;;  %v1603_v28 = vpop.f32.mrb[11].mxu1 }
 0x7f1   : > { %v1604_v30 = vadd.f32 %v1603_v28, %v1476_v22 }
 0x7f2   : > { %1635 = vst [vmem:[%s609_s9 + $0x18] sm:$0xff] %v1609_v38 }
 0x7f3   : > { %1634 = vst [vmem:[%s609_s9 + $0x10] sm:$0xff] %v1604_v30  ;;  %v1985_v32 = vpop.f32.mrb[12].mxu1 }
 0x7f4   : > { %v1619_v33 = vadd.f32 %v1985_v32, %v1491_v29  ;;  %v1613_v34 = vpop.f32.mrb[13].mxu1 }
 0x7f5   : > { %v1614_v36 = vadd.f32 %v1613_v34, %v1486_v31 }
 0x7f6   : > { %1637 = vst [vmem:[%s609_s9 + $0x28] sm:$0xff] %v1619_v33 }
 0x7f7   : > { %1636 = vst [vmem:[%s609_s9 + $0x20] sm:$0xff] %v1614_v36  ;;  %v1988_v39 = vpop.f32.mrb[14].mxu1 }
 0x7f8   : > { %v1629_v44 = vadd.f32 %v1988_v39, %v1501_v37  ;;  %v1623_v41 = vpop.f32.mrb[15].mxu1 }
 0x7f9   : > { %v1624_v47 = vadd.f32 %v1623_v41, %v1496_v40 }
 0x7fa   : > { %1639 = vst [vmem:[%s609_s9 + $0x38] sm:$0xff] %v1629_v44 }
 0x7fb   : > { %1638 = vst [vmem:[%s609_s9 + $0x30] sm:$0xff] %v1624_v47 }
 0x7fc PF: > { %p29_p9 = scmp.ge.s32.totalorder %s2651_s14, 4   ;;  %s3100_s24 = smov %s2408_s25 }
 0x7fd   : > { %s3101_s25 = smov %s2412_s26  ;;  %s3102_s26 = smov %s2661_s12 }
 0x7fe   : > { %s3103_s27 = smov %s2651_s14  ;;  %31 = sbr.rel (!%p29_p9) target bundleno = 15 (0xf), region = 140 }
 0x805   :  { %1661 = vsyncpa [#allocation3], 1 }
 0x806   :  { %1663 = vsyncpa [#allocation3 + $0x1], 1 }
 0x807   :  { %1664 = vsyncpa [#allocation5], 1 }
 0x808   :  { %1665 = vsyncpa [#allocation8], 1 }

// kernel: seq2seq_forward.5
= control target key start
LH: loop header
LB: loop body
LE: loop exit
PB: predicated region body
PF: predicated region fallthrough
CT: control target
= control target key end

     0   :  { %s2759_s0 = inlined_call_operand.vmem [shape: f32[2,64,128], index: 0, kind: input, shape index: {}]   ;;  %s2760_s1 = inlined_call_operand.vmem [shape: f32[32,192], index: 1, kind: input, shape index: {}]   ;;  %s2761_s2 = inlined_call_operand.vmem [shape: f32[32,1], index: 2, kind: input, shape index: {}]   ;;  %s2762_s3 = inlined_call_operand.vmem [shape: f32[32,2], index: 3, kind: input, shape index: {}]   ;;  %s2763_s4 = inlined_call_operand.vmem [shape: f32[16,96], index: 4, kind: input, shape index: {}]   ;;  %s2764_s5 = inlined_call_operand.vmem [shape: f32[16,1], index: 5, kind: input, shape index: {}]   ;;  %s2765_s6 = inlined_call_operand.vmem [shape: f32[16,2], index: 6, kind: input, shape index: {}]   ;;  %s2766_s7 = inlined_call_operand.vmem [shape: f32[32,16], index: 7, kind: input, shape index: {}]   ;;  %s2767_s8 = inlined_call_operand.vmem [shape: f32[32,1], index: 8, kind: input, shape index: {}]   ;;  %s2768_s9 = inlined_call_operand.vmem [shape: f32[32,2], index: 9, kind: input, shape index: {}]   ;;  %s2769_s10 = inlined_call_operand.vmem [shape: f32[16,96], index: 10, kind: input, shape index: {}]   ;;  %s2770_s11 = inlined_call_operand.vmem [shape: f32[16,1], index: 11, kind: input, shape index: {}]   ;;  %s2771_s12 = inlined_call_operand.vmem [shape: f32[16,2], index: 12, kind: input, shape index: {}]   ;;  %s2772_s13 = inlined_call_operand.vmem [shape: f32[32,16], index: 13, kind: input, shape index: {}]   ;;  %s2773_s14 = inlined_call_operand.vmem [shape: f32[32,1], index: 14, kind: input, shape index: {}]   ;;  %s2774_s15 = inlined_call_operand.vmem [shape: f32[4,96], index: 15, kind: input, shape index: {}]   ;;  %s2775_s16 = inlined_call_operand.vmem [shape: f32[4,1], index: 16, kind: input, shape index: {}]   ;;  %s2776_s17 = inlined_call_operand.hbm [shape: f32[2,4,128], index: 17, kind: output, shape index: {}]  }
   0x1   :  { %2791 = sst [smem:[#allocation10_spill]] %s2759_s0 }
   0x2   :  { %2792 = sst [smem:[#allocation11_spill]] %s2760_s1 }
   0x3   :  { %2793 = sst [smem:[#allocation12_spill]] %s2761_s2 }
   0x4   :  { %22 = vsyncpa [#allocation3], 0 }
   0x5   :  { %24 = vsyncpa [#allocation3 + $0x1], 0  ;;  %s2278_s24 = smov 0   ;;  %s2280_s25 = smov 0  }
   0x6   :  { %s2282_s26 = smov 0   ;;  %s2284_s27 = smov 0  }
   0x7 LB: > { %2794 = sst [smem:[#allocation5_spill]] %s2164_s24  ;;  %s2299_s28 = sadd.s32 4294967295, %s2176_s27   ;;  %s2176_s27 = sphi %s2284_s27, %s2818_s27   ;;  %s2172_s26 = sphi %s2282_s26, %s2820_s26   ;;  %s2168_s25 = sphi %s2280_s25, %s2822_s25   ;;  %s2164_s24 = sphi %s2278_s24, %s2821_s24  }
   0x8   : > { %2795 = sst [smem:[#allocation6_spill]] %s2172_s26  ;;  %s1583_s29 = sadd.s32 4294967294, %s2176_s27  }
   0x9   : > { %s2303_s0 = sadd.s32 1, %s2176_s27   ;;  %s399_s30 = sadd.s32 1, %s2172_s26 }
   0xa   : > { %2796 = sst [smem:[#allocation7_spill]] %s2303_s0  ;;  %s396_s18 = ssub.s32 %s2176_s27, %s2303_s0 }
   0xb   : > { %p409_p0 = scmp.ne.s32.totalorder %s2172_s26, %s2168_s25  ;;  %p397_p1 = scmp.eq.s32.totalorder %s396_s18, 0 }
   0xc   : > { %p410_p2 = scmp.eq.s32.totalorder %s2299_s28, 1  ;;  %p415_p3 = scmp.ne.s32.totalorder %s2168_s25, %s2164_s24 }
   0xd   : > { %p416_p4 = scmp.eq.s32.totalorder %s1583_s29, 1  ;;  %p1586_p7 = scmp.ge.s32.totalorder %s2176_s27, 1 }
   0xe   : > { %s2314_s19 = scalar_select %p397_p1, %s2172_s26, %s399_s30  }
   0xf   : > { %p2316_p5 = por %p410_p2, %p409_p0  ;;  %p2320_p6 = por %p416_p4, %p415_p3 }
  0x10   : > { %2797 = sst [smem:[#allocation8_spill]] %s2314_s19  ;;  %p490_p8 = scmp.lt.s32.totalorder %s2176_s27, 3 }
  0x11   : > { %s2799_s20 = scalar_select %p2320_p6, 1, 0 }
  0x12   : > { %p491_p9 = pnand %p1586_p7, %p490_p8 }
  0x13   : > { %2800 = sst [smem:[#allocation9_spill]] %s2799_s20  ;;  %p542_p10 = scmp.lt.s32.totalorder (!%p491_p9), %s2299_s28, 1  ;;  %v2178_v0 = vmov (!%p491_p9), 0.0|0.0   ;;  %vm645_vm0 = vcmask (!%p491_p9), 523264   ;;  %v2181_v19 = vmov (!%p491_p9), 0   ;;  %v743_v21 = vld [vmem:[%s2762_s3] sm:$0xff] (!%p491_p9)  ;;  %v567_v28 = vlaneseq (!%p491_p9) }
  0x14   : > { %494 = sbr.rel (%p491_p9) target bundleno = 1984 (0x7c0), region = 88  ;;  %1806 = vmatprep.subr.bf16.mxu0 (!%p491_p9), %v2178_v0  ;;  %s2801_s30 = sld [smem:[#allocation10_spill]] (!%p491_p9)  ;;  %2033 = vset.pattern.permute.xlu1 (!%p491_p9), %v2181_v19  ;;  %v744_v22 = vld [vmem:[%s2762_s3 + $0x8] sm:$0xff] (!%p491_p9)  ;;  %v2182_v25 = vmov (!%p491_p9), 1   ;;  %v745_v26 = vld [vmem:[%s2762_s3 + $0x10] sm:$0xff] (!%p491_p9)  ;;  %v746_v27 = vld [vmem:[%s2762_s3 + $0x18] sm:$0xff] (!%p491_p9) }
  0x15   : > { %s2803_s2 = sld [smem:[#allocation12_spill]] (!%p491_p9)  ;;  %2032 = vset.pattern.permute.xlu0 (!%p491_p9), %v2181_v19  ;;  %v2408_v29 = vand.u32 (!%p491_p9), 127, %v567_v28  ;;  %vm851_vm5 = vcmask (!%p491_p9), 785408   ;;  %vm977_vm10 = vcmask (!%p491_p9), 130048   ;;  %s2812_s23 = smov (!%p491_p9), 3   ;;  %vm2185_vm11 = vmmov (!%p491_p9), 0  }
  0x16   : > { %s2813_s29 = smov (!%p491_p9), 125   ;;  %s539_s19 = sand.u32 (!%p491_p9), 1, %s2168_s25  }
  0x17   : > { %v585_v30 = vadd.s32 (!%p491_p9), 4294967295, %v2408_v29  ;;  %v613_v49 = vadd.s32 (!%p491_p9), 1, %v2408_v29  ;;  %s1587_s24 = sshll.u32 (!%p491_p9), %s539_s19, 2  ;;  %s1648_s20 = sshll.u32 (!%p491_p9), %s2299_s28, 6 }
  0x18   : > { %s2717_s26 = scalar_lea.hbm (!%p491_p9), %s2776_s17, %s1648_s20 }
  0x19   : > { %vm586_vm1 = vcmp.ge.s32.totalorder (!%p491_p9), %v585_v30, 0  ;;  %vm615_vm3 = vcmp.lt.s32.totalorder (!%p491_p9), %v613_v49, 128 }
  0x1a   : > { %vm2411_vm2 = vmpackc.low (!%p491_p9), %vm586_vm1, %vm586_vm1 }
  0x1b   : > { %s543_s21 = scalar_select %p542_p10, %s2299_s28, 1  ;;  %v564_v18 = vld [vmem:[%s2803_s2 + $0x8] sm:$0xff]  ;;  %v563_v20 = vld [vmem:[%s2803_s2] sm:$0xff]  ;;  %v565_v23 = vld [vmem:[%s2803_s2 + $0x10] sm:$0xff] }
  0x1c   : > { %v566_v24 = vld [vmem:[%s2803_s2 + $0x18] sm:$0xff]  ;;  %vm2444_vm4 = vmpackc.low %vm615_vm3, %vm615_vm3  ;;  %s2187_s28 = smov [#allocation2]  }
  0x1d   : > { %s1651_s22 = sshll.u32 %s543_s21, 6  ;;  %s2778_s21 = smov 1  }
  0x1e   : > { %s546_s18 = scalar_lea.vmem %s2801_s30, %s1651_s22  ;;  %s2780_s22 = smov 127  }
  0x1f   : > { %v2332_v1 = vld [vmem:[%s546_s18] sm:$0xff]  ;;  %v2334_v2 = vld [vmem:[%s546_s18 + $0x8] sm:$0xff]  ;;  %v2336_v3 = vld [vmem:[%s546_s18 + $0x10] sm:$0xff]  ;;  %s2802_s30 = sld [smem:[#allocation11_spill]] }
  0x20   : > { %v1992_v4 = vpack.i.bf16 %v2334_v2, %v2332_v1  ;;  %v2340_v5 = vld [vmem:[%s546_s18 + $0x18] sm:$0xff]  ;;  %v2342_v6 = vld [vmem:[%s546_s18 + $0x20] sm:$0xff]  ;;  %v2344_v7 = vld [vmem:[%s546_s18 + $0x28] sm:$0xff]  ;;  %v1823_v13 = vpack.c.bf16 %v2334_v2, %v2332_v1 }
  0x21   : > { %v2002_v8 = vpack.i.bf16 %v2344_v7, %v2342_v6  ;;  %v2348_v9 = vld [vmem:[%s546_s18 + $0x30] sm:$0xff]  ;;  %v2350_v10 = vld [vmem:[%s546_s18 + $0x38] sm:$0xff]  ;;  %v1997_v11 = vpack.i.bf16 %v2340_v5, %v2336_v3  ;;  %v1826_v14 = vpack.c.bf16 %v2340_v5, %v2336_v3  ;;  %v1829_v15 = vpack.c.bf16 %v2344_v7, %v2342_v6  ;;  %s2787_s18 = smov 125  }
  0x22   : > { %1993 = vrot.lane.b32.xlu0 %v1992_v4, %s2778_s21  ;;  %v2007_v12 = vpack.i.bf16 %v2350_v10, %v2348_v9  ;;  %v1832_v16 = vpack.c.bf16 %v2350_v10, %v2348_v9 }
  0x23   : > { %2003 = vrot.lane.b32.xlu1 %v2002_v8, %s2778_s21 }
  0x25   : > { %v556_v17 = vld [vmem:[%s2802_s30 + $0x8] sm:$0xff]  ;;  %v555_v3 = vld [vmem:[%s2802_s30] sm:$0xff]  ;;  %v557_v5 = vld [vmem:[%s2802_s30 + $0x10] sm:$0xff] }
  0x26   : > { %1998 = vrot.lane.b32.xlu0 %v1997_v11, %s2778_s21  ;;  %1606 = vmatprep.mubr.msk.f32.mxu0 %vm645_vm0, %v556_v17  ;;  %v560_v6 = vld [vmem:[%s2802_s30 + $0x28] sm:$0xff]  ;;  %v559_v7 = vld [vmem:[%s2802_s30 + $0x20] sm:$0xff]  ;;  %v561_v9 = vld [vmem:[%s2802_s30 + $0x30] sm:$0xff] }
  0x27   : > { %2008 = vrot.lane.b32.xlu1 %v2007_v12, %s2778_s21  ;;  %s2789_s21 = smov 3  }
  0x2a   : > { %2013 = vrot.lane.b32.xlu0 %v1992_v4, %s2780_s22  ;;  %v558_v4 = vld [vmem:[%s2802_s30 + $0x18] sm:$0xff] }
  0x2b   : > { %2018 = vrot.lane.b32.xlu1 %v1997_v11, %s2780_s22 }
  0x2e   : > { %2023 = vrot.lane.b32.xlu0 %v2002_v8, %s2780_s22  ;;  %v562_v8 = vld [vmem:[%s2802_s30 + $0x38] sm:$0xff] }
  0x2f   : > { %2028 = vrot.lane.b32.xlu1 %v2007_v12, %s2780_s22  ;;  %s541_s22 = scalar_lea.vmem [#allocation2], %s1587_s24  ;;  %s2118_s24 = sshll.u32 %s2187_s28, 4  ;;  %s2119_s24 = int_to_ptr.vmem [resolvable:$false] %s2118_s24 }
  0x30   : > { %s2120_s2 = scalar_lea.vmem %s2119_s24, 128 }
  0x32   : > { %627 = vperm.xlu0 %2032, %v563_v20  }
  0x33   : > { %632 = vperm.xlu1 %2033, %v564_v18  }
  0x36   : > { %768 = vperm.xlu0 %2032, %v744_v22  }
  0x37   : > { %763 = vperm.xlu1 %2033, %v743_v21  }
  0x3a   : > { %642 = vperm.xlu0 %2032, %v566_v24  }
  0x3b   : > { %637 = vperm.xlu1 %2033, %v565_v23  }
  0x3e   : > { %2035 = vset.pattern.permute.xlu0 %v2182_v25 }
  0x3f   : > { %2034 = vset.pattern.permute.xlu1 %v2182_v25  ;;  %790 = vperm.xlu0 %2035, %v744_v22  }
  0x40   : > { %786 = vperm.xlu1 %2034, %v743_v21  }
  0x43   : > { %794 = vperm.xlu0 %2035, %v745_v26  }
  0x44   : > { %2036 = vset.pattern.permute.xlu1 %v2181_v19 }
  0x45   : > { %773 = vperm.xlu1 %2036, %v745_v26  }
  0x47   : > { %2058 = vset.pattern.permute.xlu0 %v2181_v19 }
  0x49   : > { %778 = vperm.xlu1 %2036, %v746_v27  }
  0x4d   : > { %2037 = vset.pattern.permute.xlu1 %v2182_v25 }
  0x4e   : > { %798 = vperm.xlu1 %2037, %v746_v27  }
  0x52   : > { %2059 = vset.pattern.permute.xlu1 %v2181_v19 }
  0x94   : > { %v1994_v31 = vpop.permute.xlu0 %1993 }
  0x95   : > { %v1996_v32 = vunpack.i.h.bf16 %v1994_v31  ;;  %v1995_v33 = vunpack.i.l.bf16 %v1994_v31  ;;  %v2004_v34 = vpop.permute.xlu1 %2003 }
  0x96   : > { %v2006_v40 = vunpack.i.h.bf16 %v2004_v34  ;;  %v2005_v41 = vunpack.i.l.bf16 %v2004_v34 }
  0x97   : > { %v1807_v36 = vpack.c.bf16 %v1996_v32, %v1995_v33 }
  0x98   : > { %v1999_v37 = vpop.permute.xlu0 %1998  ;;  %v1815_v44 = vpack.c.bf16 %v2006_v40, %v2005_v41 }
  0x99   : > { %v2001_v38 = vunpack.i.h.bf16 %v1999_v37  ;;  %v2000_v39 = vunpack.i.l.bf16 %v1999_v37  ;;  %1809 = vmatpush1.bf16.msk.msra.mxu0 %vm2411_vm2, %v1807_v36  ;;  %v2009_v42 = vpop.permute.xlu1 %2008 }
  0x9a   : > { %1810 = vmatprep.subr.bf16.mxu0 %v2178_v0  ;;  %v2011_v45 = vunpack.i.h.bf16 %v2009_v42  ;;  %v2010_v46 = vunpack.i.l.bf16 %v2009_v42 }
  0x9b   : > { %v1811_v43 = vpack.c.bf16 %v2001_v38, %v2000_v39 }
  0x9c   : > { %v1819_v47 = vpack.c.bf16 %v2011_v45, %v2010_v46  ;;  %v2014_v48 = vpop.permute.xlu0 %2013 }
  0x9d   : > { %1813 = vmatpush1.bf16.msk.msra.mxu0 %vm2411_vm2, %v1811_v43  ;;  %v2016_v50 = vunpack.i.h.bf16 %v2014_v48  ;;  %v2015_v51 = vunpack.i.l.bf16 %v2014_v48  ;;  %v2019_v52 = vpop.permute.xlu1 %2018 }
  0x9e   : > { %1814 = vmatprep.subr.bf16.mxu0 %v2178_v0  ;;  %v2021_v54 = vunpack.i.h.bf16 %v2019_v52  ;;  %v2020_v55 = vunpack.i.l.bf16 %v2019_v52 }
  0x9f   : > { %v1835_v53 = vpack.c.bf16 %v2016_v50, %v2015_v51 }
  0xa0   : > { %v2024_v57 = vpop.permute.xlu0 %2023  ;;  %v1839_v58 = vpack.c.bf16 %v2021_v54, %v2020_v55  ;;  %v747_v54 = vld [vmem:[%s2763_s4] sm:$0xff]  ;;  %v750_v55 = vld [vmem:[%s2764_s5 + $0x8] sm:$0xff] }
  0xa1   : > { %1817 = vmatpush1.bf16.msk.msra.mxu0 %vm2411_vm2, %v1815_v44  ;;  %v2026_v59 = vunpack.i.h.bf16 %v2024_v57  ;;  %v2025_v60 = vunpack.i.l.bf16 %v2024_v57  ;;  %v2029_v61 = vpop.permute.xlu1 %2028  ;;  %1729 = vmatprep.mubr.msk.f32.mxu1 %vm851_vm5, %v747_v54  ;;  %v749_v57 = vld [vmem:[%s2764_s5] sm:$0xff] }
  0xa2   : > { %1818 = vmatprep.subr.bf16.mxu0 %v2178_v0  ;;  %v2031_v63 = vunpack.i.h.bf16 %v2029_v61  ;;  %v2030_v1 = vunpack.i.l.bf16 %v2029_v61 }
  0xa3   : > { %v1843_v62 = vpack.c.bf16 %v2026_v59, %v2025_v60  ;;  %v752_v59 = vld [vmem:[%s2765_s6 + $0x8] sm:$0xff]  ;;  %v817_v60 = vadd.s32 4294967293, %v2408_v29 }
  0xa4   : > { %v1847_v2 = vpack.c.bf16 %v2031_v63, %v2030_v1  ;;  %v1084_v1 = vld [vmem:[%s2769_s10 + $0x8] sm:$0xff] }
  0xa5   : > { %1821 = vmatpush1.bf16.msk.msra.mxu0 %vm2411_vm2, %v1819_v47  ;;  %vm818_vm6 = vcmp.ge.s32.totalorder %v817_v60, 0 }
  0xa6   : > { %1822 = vmatprep.subr.bf16.mxu0 %v2178_v0  ;;  %vm2521_vm7 = vmpackc.low %vm818_vm6, %vm818_vm6 }
  0xa9   : > { %1824 = vmatpush1.bf16.msra.mxu0 %v1823_v13 }
  0xaa   : > { %1825 = vmatprep.subr.bf16.mxu0 %v2178_v0 }
  0xad   : > { %1827 = vmatpush1.bf16.msra.mxu0 %v1826_v14 }
  0xae   : > { %1828 = vmatprep.subr.bf16.mxu0 %v2178_v0 }
  0xb1   : > { %1830 = vmatpush1.bf16.msra.mxu0 %v1829_v15  ;;  %v628_v12 = vpop.permute.xlu0 %627 }
  0xb2   : > { %1831 = vmatprep.subr.bf16.mxu0 %v2178_v0  ;;  %v633_v10 = vpop.permute.xlu1 %632 }
  0xb5   : > { %1833 = vmatpush1.bf16.msra.mxu0 %v1832_v16  ;;  %v769_v14 = vpop.permute.xlu0 %768 }
  0xb6   : > { %1834 = vmatprep.subr.bf16.mxu0 %v2178_v0  ;;  %v764_v11 = vpop.permute.xlu1 %763 }
  0xb9   : > { %1837 = vmatpush1.bf16.msk.msra.mxu0 %vm2444_vm4, %v1835_v53  ;;  %v643_v20 = vpop.permute.xlu0 %642 }
  0xba   : > { %1838 = vmatprep.subr.bf16.mxu0 %v2178_v0  ;;  %v638_v13 = vpop.permute.xlu1 %637 }
  0xbd   : > { %1841 = vmatpush1.bf16.msk.msra.mxu0 %vm2444_vm4, %v1839_v58  ;;  %v751_v58 = vld [vmem:[%s2765_s6] sm:$0xff] }
  0xbe   : > { %1842 = vmatprep.subr.bf16.mxu0 %v2178_v0  ;;  %v791_v27 = vpop.permute.xlu0 %790 }
  0xbf   : > { %v787_v15 = vpop.permute.xlu1 %786 }
  0xc1   : > { %1845 = vmatpush1.bf16.msk.msra.mxu0 %vm2444_vm4, %v1843_v62 }
  0xc2   : > { %1846 = vmatprep.subr.bf16.mxu0 %v2178_v0  ;;  %v795_v40 = vpop.permute.xlu0 %794 }
  0xc4   : > { %v774_v22 = vpop.permute.xlu1 %773 }
  0xc5   : > { %1849 = vmatpush1.bf16.msk.msra.mxu0 %vm2444_vm4, %v1847_v2 }
  0xc6   : > { %1922 = vmatprep.subr.bf16.mxu0 %v2178_v0 }
  0xc8   : > { %723 = vmatmul.mubr.f32.vlgmr.msra.gmra.mrb[0].mxu0 %v555_v3  ;;  %v779_v36 = vpop.permute.xlu1 %778 }
  0xc9   : > { %1607 = vmatprep.mubr.msk.f32.mxu0 %vm645_vm0, %v558_v4 }
  0xcc   : > { %728 = vmatmul.mubr.f32.gmra.mrb[2].mxu0 %v557_v5 }
  0xcd   : > { %1608 = vmatprep.mubr.msk.f32.mxu0 %vm645_vm0, %v560_v6  ;;  %v799_v45 = vpop.permute.xlu1 %798 }
  0xd0   : > { %733 = vmatmul.mubr.f32.gmra.mrb[4].mxu0 %v559_v7  ;;  %v833_v7 = vadd.s32 3, %v2408_v29 }
  0xd1   : > { %1609 = vmatprep.mubr.msk.f32.mxu0 %vm645_vm0, %v562_v8 }
  0xd2   : > { %vm835_vm8 = vcmp.lt.s32.totalorder %v833_v7, 128 }
  0xd3   : > { %vm2534_vm9 = vmpackc.low %vm835_vm8, %vm835_vm8 }
  0xd4   : > { %738 = vmatmul.mubr.f32.gmra.mrb[6].mxu0 %v561_v9 }
 0x19b   : > { %v724_v16 = vpop.f32.mrb[0].mxu0 }
 0x19c   : > { %v2484_v17 = vadd.f32 %v724_v16, %v628_v12  ;;  %v726_v18 = vpop.f32.mrb[1].mxu0  ;;  %v748_v16 = vld [vmem:[%s2763_s4 + $0x8] sm:$0xff]  ;;  %v1095_v12 = vld [vmem:[%s2773_s14 + $0x10] sm:$0xff] }
 0x19d   : > { %v753_v18 = vld [vmem:[%s2766_s7] sm:$0xff] }
 0x19e   : > { %v781_v21 = vmul.f32 %v764_v11, %v2484_v17 }
 0x19f   : > { %v729_v23 = vpop.f32.mrb[2].mxu0 }
 0x1a0   : > { %v2487_v24 = vadd.f32 %v729_v23, %v633_v10  ;;  %v731_v26 = vpop.f32.mrb[3].mxu0  ;;  %v801_v28 = vadd.f32 %v787_v15, %v781_v21  ;;  %v759_v21 = vld [vmem:[%s2767_s8 + $0x10] sm:$0xff]  ;;  %v1080_v23 = vld [vmem:[%s2768_s9 + $0x8] sm:$0xff] }
 0x1a1   : > { %v760_v26 = vld [vmem:[%s2767_s8 + $0x18] sm:$0xff] }
 0x1a2   : > { %v782_v30 = vmul.f32 %v769_v14, %v2487_v24  ;;  %v805_v37 = vmax.f32 %v801_v28, 0.0  ;;  %v1081_v28 = vld [vmem:[%s2768_s9 + $0x10] sm:$0xff] }
 0x1a3   : > { %v734_v31 = vpop.f32.mrb[4].mxu0 }
 0x1a4   : > { %v802_v32 = vadd.f32 %v791_v27, %v782_v30  ;;  %v2490_v33 = vadd.f32 %v734_v31, %v638_v13  ;;  %v736_v34 = vpop.f32.mrb[5].mxu0  ;;  %v1079_v27 = vld [vmem:[%s2768_s9] sm:$0xff]  ;;  %v1082_v30 = vld [vmem:[%s2768_s9 + $0x18] sm:$0xff] }
 0x1a6   : > { %v806_v38 = vmax.f32 %v802_v32, 0.0  ;;  %v783_v39 = vmul.f32 %v774_v22, %v2490_v33  ;;  %v758_v22 = vld [vmem:[%s2767_s8 + $0x8] sm:$0xff] }
 0x1a7   : > { %v739_v41 = vpop.f32.mrb[6].mxu0 }
 0x1a8   : > { %v2493_v42 = vadd.f32 %v739_v41, %v643_v20  ;;  %v741_v43 = vpop.f32.mrb[7].mxu0  ;;  %v2038_v44 = vpack.i.bf16 %v806_v38, %v805_v37  ;;  %v1862_v46 = vpack.c.bf16 %v806_v38, %v805_v37  ;;  %v803_v47 = vadd.f32 %v795_v40, %v783_v39  ;;  %v757_v20 = vld [vmem:[%s2767_s8] sm:$0xff] }
 0x1aa   : > { %2039 = vrot.lane.b32.xlu0 %v2038_v44, %s2789_s21  ;;  %v784_v48 = vmul.f32 %v779_v36, %v2493_v42  ;;  %v807_v50 = vmax.f32 %v803_v47, 0.0 }
 0x1ac   : > { %v804_v49 = vadd.f32 %v799_v45, %v784_v48 }
 0x1ae   : > { %v808_v51 = vmax.f32 %v804_v49, 0.0  ;;  %2049 = vrot.lane.b32.xlu0 %v2038_v44, %s2787_s18 }
 0x1b0   : > { %v2043_v52 = vpack.i.bf16 %v808_v51, %v807_v50  ;;  %v1866_v53 = vpack.c.bf16 %v808_v51, %v807_v50  ;;  %v754_v51 = vld [vmem:[%s2766_s7 + $0x8] sm:$0xff] }
 0x1b2   : > { %2044 = vrot.lane.b32.xlu1 %v2043_v52, %s2789_s21  ;;  %843 = vperm.xlu0 %2058, %v749_v57  }
 0x1b6   : > { %2054 = vrot.lane.b32.xlu1 %v2043_v52, %s2787_s18  ;;  %940 = vperm.xlu0 %2058, %v752_v59   ;;  %v755_v52 = vld [vmem:[%s2766_s7 + $0x10] sm:$0xff]  ;;  %s1511_s18 = scalar_lea.sflag [#allocation3], %s539_s19 }
 0x1ba   : > { %848 = vperm.xlu1 %2059, %v750_v55   ;;  %2061 = vset.pattern.permute.xlu0 %v2182_v25 }
 0x1bb   : > { %950 = vperm.xlu0 %2061, %v752_v59  }
 0x1be   : > { %935 = vperm.xlu1 %2059, %v751_v58  }
 0x1bf   : > { %2063 = vset.pattern.permute.xlu0 %v2181_v19 }
 0x1c0   : > { %969 = vperm.xlu0 %2063, %v759_v21  }
 0x1c2   : > { %2060 = vset.pattern.permute.xlu1 %v2182_v25 }
 0x1c3   : > { %946 = vperm.xlu1 %2060, %v751_v58  }
 0x1c4   : > { %1104 = vperm.xlu0 %2063, %v1080_v23  }
 0x1c7   : > { %2062 = vset.pattern.permute.xlu1 %v2181_v19 }
 0x1c8   : > { %959 = vperm.xlu1 %2062, %v757_v20   ;;  %2065 = vset.pattern.permute.xlu0 %v2182_v25 }
 0x1c9   : > { %1126 = vperm.xlu0 %2065, %v1080_v23  }
 0x1cc   : > { %964 = vperm.xlu1 %2062, %v758_v22  }
 0x1cd   : > { %1130 = vperm.xlu0 %2065, %v1081_v28  }
 0x1d0   : > { %974 = vperm.xlu1 %2062, %v760_v26  }
 0x1d1   : > { %2088 = vset.pattern.permute.xlu0 %v2181_v19 }
 0x1d4   : > { %1099 = vperm.xlu1 %2062, %v1079_v27  }
 0x1d8   : > { %2064 = vset.pattern.permute.xlu1 %v2182_v25 }
 0x1d9   : > { %1122 = vperm.xlu1 %2064, %v1079_v27  }
 0x1dd   : > { %2066 = vset.pattern.permute.xlu1 %v2181_v19 }
 0x1de   : > { %1109 = vperm.xlu1 %2066, %v1081_v28  }
 0x1e2   : > { %1114 = vperm.xlu1 %2066, %v1082_v30  }
 0x1e6   : > { %2067 = vset.pattern.permute.xlu1 %v2182_v25 }
 0x1e7   : > { %1134 = vperm.xlu1 %2067, %v1082_v30  }
 0x1eb   : > { %2089 = vset.pattern.permute.xlu1 %v2181_v19 }
 0x21c   : > { %v2040_v61 = vpop.permute.xlu0 %2039 }
 0x21d   : > { %v2042_v62 = vunpack.i.h.bf16 %v2040_v61  ;;  %v2041_v63 = vunpack.i.l.bf16 %v2040_v61 }
 0x21f   : > { %v1850_v2 = vpack.c.bf16 %v2042_v62, %v2041_v63 }
 0x220   : > { %v2050_v8 = vpop.permute.xlu0 %2049 }
 0x221   : > { %1852 = vmatprep.subr.msk.bf16.mxu1 %vm2521_vm7, %v1850_v2  ;;  %v2052_v9 = vunpack.i.h.bf16 %v2050_v8  ;;  %v2051_v10 = vunpack.i.l.bf16 %v2050_v8 }
 0x222   : > { %1855 = vmatpush3.bf16.msk.msra.mxu1 %vm2521_vm7, %v1850_v2 }
 0x223   : > { %v1870_v13 = vpack.c.bf16 %v2052_v9, %v2051_v10 }
 0x224   : > { %v2045_v3 = vpop.permute.xlu1 %2044 }
 0x225   : > { %v2047_v4 = vunpack.i.h.bf16 %v2045_v3  ;;  %v2046_v5 = vunpack.i.l.bf16 %v2045_v3 }
 0x227   : > { %v1856_v6 = vpack.c.bf16 %v2047_v4, %v2046_v5 }
 0x228   : > { %v2055_v11 = vpop.permute.xlu1 %2054 }
 0x229   : > { %1858 = vmatprep.subr.msk.bf16.mxu1 %vm2521_vm7, %v1856_v6  ;;  %v2057_v14 = vunpack.i.h.bf16 %v2055_v11  ;;  %v2056_v15 = vunpack.i.l.bf16 %v2055_v11 }
 0x22a   : > { %1861 = vmatpush3.bf16.msk.msra.mxu1 %vm2521_vm7, %v1856_v6 }
 0x22b   : > { %1863 = vmatprep.subr.bf16.mxu1 %v1862_v46  ;;  %v1876_v29 = vpack.c.bf16 %v2057_v14, %v2056_v15 }
 0x22e   : > { %1865 = vmatpush3.bf16.msra.mxu1 %v1862_v46 }
 0x22f   : > { %1867 = vmatprep.subr.bf16.mxu1 %v1866_v53 }
 0x231   : > { %v844_v31 = vpop.permute.xlu0 %843 }
 0x232   : > { %1869 = vmatpush3.bf16.msra.mxu1 %v1866_v53  ;;  %v756_v53 = vld [vmem:[%s2766_s7 + $0x18] sm:$0xff] }
 0x233   : > { %1872 = vmatprep.subr.msk.bf16.mxu1 %vm2534_vm9, %v1870_v13 }
 0x235   : > { %v941_v34 = vpop.permute.xlu0 %940 }
 0x236   : > { %1875 = vmatpush3.bf16.msk.msra.mxu1 %vm2534_vm9, %v1870_v13 }
 0x237   : > { %1878 = vmatprep.subr.msk.bf16.mxu1 %vm2534_vm9, %v1876_v29 }
 0x239   : > { %v849_v32 = vpop.permute.xlu1 %848 }
 0x23a   : > { %1881 = vmatpush3.bf16.msk.msra.mxu1 %vm2534_vm9, %v1876_v29  ;;  %v951_v41 = vpop.permute.xlu0 %950 }
 0x23d   : > { %1730 = vmatmul.mubr.msk.f32.vlgmr.msra.gmra.mrb[0].mxu1 %vm851_vm5, %v748_v16  ;;  %v936_v36 = vpop.permute.xlu1 %935 }
 0x23e   : > { %1736 = vmatprep.mubr.msk.f32.mxu1 %vm977_vm10, %v753_v18 }
 0x23f   : > { %v970_v60 = vpop.permute.xlu0 %969 }
 0x242   : > { %v947_v44 = vpop.permute.xlu1 %946 }
 0x243   : > { %v1105_v62 = vpop.permute.xlu0 %1104 }
 0x247   : > { %v960_v54 = vpop.permute.xlu1 %959 }
 0x248   : > { %v1127_v9 = vpop.permute.xlu0 %1126 }
 0x24b   : > { %v965_v55 = vpop.permute.xlu1 %964 }
 0x24c   : > { %v1131_v26 = vpop.permute.xlu0 %1130 }
 0x24f   : > { %v975_v57 = vpop.permute.xlu1 %974 }
 0x253   : > { %v1100_v58 = vpop.permute.xlu1 %1099 }
 0x258   : > { %v1123_v59 = vpop.permute.xlu1 %1122 }
 0x25d   : > { %v1110_v61 = vpop.permute.xlu1 %1109 }
 0x261   : > { %v1115_v7 = vpop.permute.xlu1 %1114 }
 0x310   : > { %v1731_v37 = vpop.f32.mrb[0].mxu1 }
 0x311   : > { %v930_v38 = vadd.f32 %v1731_v37, %v849_v32  ;;  %v924_v39 = vpop.f32.mrb[1].mxu1  ;;  %v1086_v37 = vld [vmem:[%s2770_s11 + $0x8] sm:$0xff] }
 0x312   : > { %v925_v40 = vadd.f32 %v924_v39, %v844_v31  ;;  %v1087_v39 = vld [vmem:[%s2771_s12] sm:$0xff] }
 0x313   : > { %v944_v43 = vmul.f32 %v941_v34, %v930_v38  ;;  %v1085_v38 = vld [vmem:[%s2770_s11] sm:$0xff] }
 0x314   : > { %v943_v45 = vmul.f32 %v936_v36, %v925_v40  ;;  %v1088_v40 = vld [vmem:[%s2771_s12 + $0x8] sm:$0xff] }
 0x315   : > { %v954_v46 = vadd.f32 %v951_v41, %v944_v43 }
 0x316   : > { %v953_v47 = vadd.f32 %v947_v44, %v943_v45 }
 0x317   : > { %v956_v48 = vmax.f32 %v954_v46, 0.0 }
 0x318   : > { %v955_v49 = vmax.f32 %v953_v47, 0.0 }
 0x31a   : > { %v1882_v50 = vpack.c.bf16 %v956_v48, %v955_v49 }
 0x31c   : > { %1883 = vmatprep.subr.bf16.mxu1 %v1882_v50 }
 0x31d   : > { %1885 = vmatpush3.bf16.msra.mxu1 %v1882_v50 }
 0x320   : > { %1737 = vmatmul.mubr.msk.f32.vlgmr.msra.gmra.mrb[2].mxu1 %vm977_vm10, %v754_v51 }
 0x321   : > { %1739 = vmatprep.mubr.msk.f32.mxu1 %vm977_vm10, %v755_v52 }
 0x324   : > { %1740 = vmatmul.mubr.msk.f32.gmra.mrb[4].mxu1 %vm977_vm10, %v756_v53 }
 0x3f3   : > { %v1738_v63 = vpop.f32.mrb[2].mxu1 }
 0x3f4   : > { %v1062_v2 = vadd.f32 %v1738_v63, %v965_v55  ;;  %v1056_v3 = vpop.f32.mrb[3].mxu1 }
 0x3f5   : > { %v1057_v4 = vadd.f32 %v1056_v3, %v960_v54 }
 0x3f6   : > { %v2597_v5 = vadd.f32 %v1062_v2, %v2487_v24 }
 0x3f7   : > { %v2600_v6 = vadd.f32 %v1057_v4, %v2484_v17  ;;  %v1741_v8 = vpop.f32.mrb[4].mxu1  ;;  %v1135_v17 = vpop.permute.xlu1 %1134 }
 0x3f8   : > { %v1118_v10 = vmul.f32 %v1105_v62, %v2597_v5  ;;  %v1072_v11 = vadd.f32 %v1741_v8, %v975_v57  ;;  %v1066_v13 = vpop.f32.mrb[5].mxu1  ;;  %v1089_v57 = vld [vmem:[%s2772_s13] sm:$0xff] }
 0x3f9   : > { %v1117_v14 = vmul.f32 %v1100_v58, %v2600_v6  ;;  %v1067_v15 = vadd.f32 %v1066_v13, %v970_v60  ;;  %v1093_v58 = vld [vmem:[%s2773_s14] sm:$0xff]  ;;  %v1096_v60 = vld [vmem:[%s2773_s14 + $0x18] sm:$0xff] }
 0x3fa   : > { %v1138_v29 = vadd.f32 %v1127_v9, %v1118_v10  ;;  %v2605_v16 = vadd.f32 %v1072_v11, %v2493_v42 }
 0x3fb   : > { %v1137_v18 = vadd.f32 %v1123_v59, %v1117_v14  ;;  %v2608_v24 = vadd.f32 %v1067_v15, %v2490_v33  ;;  %v1083_v33 = vld [vmem:[%s2769_s10] sm:$0xff]  ;;  %v1094_v59 = vld [vmem:[%s2773_s14 + $0x8] sm:$0xff] }
 0x3fc   : > { %v1142_v20 = vmax.f32 %v1138_v29, 0.0  ;;  %v1120_v21 = vmul.f32 %v1115_v7, %v2605_v16  ;;  %1766 = vmatprep.mubr.msk.f32.mxu1 %vm851_vm5, %v1083_v33 }
 0x3fd   : > { %v1141_v22 = vmax.f32 %v1137_v18, 0.0  ;;  %v1119_v23 = vmul.f32 %v1110_v61, %v2608_v24 }
 0x3fe   : > { %v1140_v27 = vadd.f32 %v1135_v17, %v1120_v21  ;;  %v1091_v21 = vld [vmem:[%s2772_s13 + $0x10] sm:$0xff] }
 0x3ff   : > { %v1139_v28 = vadd.f32 %v1131_v26, %v1119_v23  ;;  %v2068_v30 = vpack.i.bf16 %v1142_v20, %v1141_v22  ;;  %v1898_v31 = vpack.c.bf16 %v1142_v20, %v1141_v22  ;;  %v1090_v20 = vld [vmem:[%s2772_s13 + $0x8] sm:$0xff]  ;;  %v1092_v22 = vld [vmem:[%s2772_s13 + $0x18] sm:$0xff] }
 0x400   : > { %v1144_v32 = vmax.f32 %v1140_v27, 0.0 }
 0x401   : > { %v1143_v34 = vmax.f32 %v1139_v28, 0.0  ;;  %2069 = vrot.lane.b32.xlu0 %v2068_v30, %s2812_s23 }
 0x403   : > { %v2073_v42 = vpack.i.bf16 %v1144_v32, %v1143_v34  ;;  %v1902_v36 = vpack.c.bf16 %v1144_v32, %v1143_v34 }
 0x405   : > { %2074 = vrot.lane.b32.xlu1 %v2073_v42, %s2812_s23  ;;  %2079 = vrot.lane.b32.xlu0 %v2068_v30, %s2813_s29  ;;  %s2814_s23 = smov 1  }
 0x409   : > { %2084 = vrot.lane.b32.xlu1 %v2073_v42, %s2813_s29  ;;  %1171 = vperm.xlu0 %2088, %v1085_v38   ;;  %s2815_s29 = smov 127  }
 0x40d   : > { %1176 = vperm.xlu1 %2089, %v1086_v37   ;;  %1267 = vperm.xlu0 %2088, %v1088_v40  }
 0x411   : > { %1262 = vperm.xlu1 %2089, %v1087_v39   ;;  %2091 = vset.pattern.permute.xlu0 %v2182_v25 }
 0x412   : > { %1277 = vperm.xlu0 %2091, %v1088_v40  }
 0x415   : > { %2090 = vset.pattern.permute.xlu1 %v2182_v25 }
 0x416   : > { %1273 = vperm.xlu1 %2090, %v1087_v39   ;;  %2093 = vset.pattern.permute.xlu0 %v2181_v19 }
 0x417   : > { %1296 = vperm.xlu0 %2093, %v1095_v12  }
 0x41a   : > { %2092 = vset.pattern.permute.xlu1 %v2181_v19 }
 0x41b   : > { %1286 = vperm.xlu1 %2092, %v1093_v58   ;;  %v1405_v58 = vld [vmem:[%s2774_s15] sm:$0xf] }
 0x41f   : > { %1291 = vperm.xlu1 %2092, %v1094_v59  }
 0x423   : > { %1301 = vperm.xlu1 %2092, %v1096_v60  }
 0x473   : > { %v2070_v41 = vpop.permute.xlu0 %2069 }
 0x474   : > { %v2072_v43 = vunpack.i.h.bf16 %v2070_v41  ;;  %v2071_v44 = vunpack.i.l.bf16 %v2070_v41 }
 0x476   : > { %v1886_v45 = vpack.c.bf16 %v2072_v43, %v2071_v44 }
 0x477   : > { %v2075_v46 = vpop.permute.xlu1 %2074  ;;  %v2080_v49 = vpop.permute.xlu0 %2079 }
 0x478   : > { %v2077_v47 = vunpack.i.h.bf16 %v2075_v46  ;;  %v2076_v48 = vunpack.i.l.bf16 %v2075_v46  ;;  %1888 = vmatprep.subr.msk.bf16.mxu1 %vm2521_vm7, %v1886_v45  ;;  %v2082_v19 = vunpack.i.h.bf16 %v2080_v49  ;;  %v2081_v50 = vunpack.i.l.bf16 %v2080_v49 }
 0x479   : > { %1891 = vmatpush3.bf16.msk.msra.mxu1 %vm2521_vm7, %v1886_v45 }
 0x47a   : > { %v1892_v25 = vpack.c.bf16 %v2077_v47, %v2076_v48  ;;  %v1906_v52 = vpack.c.bf16 %v2082_v19, %v2081_v50 }
 0x47b   : > { %v2085_v51 = vpop.permute.xlu1 %2084 }
 0x47c   : > { %1894 = vmatprep.subr.msk.bf16.mxu1 %vm2521_vm7, %v1892_v25  ;;  %v2087_v53 = vunpack.i.h.bf16 %v2085_v51  ;;  %v2086_v54 = vunpack.i.l.bf16 %v2085_v51 }
 0x47d   : > { %1897 = vmatpush3.bf16.msk.msra.mxu1 %vm2521_vm7, %v1892_v25 }
 0x47e   : > { %1899 = vmatprep.subr.bf16.mxu1 %v1898_v31  ;;  %v1912_v55 = vpack.c.bf16 %v2087_v53, %v2086_v54 }
 0x481   : > { %1901 = vmatpush3.bf16.msra.mxu1 %v1898_v31 }
 0x482   : > { %1903 = vmatprep.subr.bf16.mxu1 %v1902_v36 }
 0x485   : > { %1905 = vmatpush3.bf16.msra.mxu1 %v1902_v36 }
 0x486   : > { %1908 = vmatprep.subr.msk.bf16.mxu1 %vm2534_vm9, %v1906_v52 }
 0x488   : > { %v1172_v61 = vpop.permute.xlu0 %1171 }
 0x489   : > { %1911 = vmatpush3.bf16.msk.msra.mxu1 %vm2534_vm9, %v1906_v52 }
 0x48a   : > { %1914 = vmatprep.subr.msk.bf16.mxu1 %vm2534_vm9, %v1912_v55 }
 0x48c   : > { %v1177_v62 = vpop.permute.xlu1 %1176  ;;  %v1268_v63 = vpop.permute.xlu0 %1267 }
 0x48d   : > { %1917 = vmatpush3.bf16.msk.msra.mxu1 %vm2534_vm9, %v1912_v55 }
 0x490   : > { %1767 = vmatmul.mubr.msk.f32.vlgmr.msra.gmra.mrb[6].mxu1 %vm851_vm5, %v1084_v1  ;;  %v1263_v2 = vpop.permute.xlu1 %1262 }
 0x491   : > { %1773 = vmatprep.mubr.msk.f32.mxu1 %vm977_vm10, %v1089_v57  ;;  %v1278_v9 = vpop.permute.xlu0 %1277 }
 0x495   : > { %v1274_v11 = vpop.permute.xlu1 %1273 }
 0x496   : > { %v1297_v34 = vpop.permute.xlu0 %1296 }
 0x49a   : > { %v1287_v23 = vpop.permute.xlu1 %1286 }
 0x49e   : > { %v1292_v26 = vpop.permute.xlu1 %1291 }
 0x4a2   : > { %v1302_v42 = vpop.permute.xlu1 %1301 }
 0x563   : > { %v1768_v3 = vpop.f32.mrb[6].mxu1 }
 0x564   : > { %v1257_v4 = vadd.f32 %v1768_v3, %v1177_v62  ;;  %v1251_v7 = vpop.f32.mrb[7].mxu1 }
 0x565   : > { %v1252_v8 = vadd.f32 %v1251_v7, %v1172_v61 }
 0x566   : > { %v1271_v10 = vmul.f32 %v1268_v63, %v1257_v4 }
 0x567   : > { %v1270_v13 = vmul.f32 %v1263_v2, %v1252_v8 }
 0x568   : > { %v1281_v14 = vadd.f32 %v1278_v9, %v1271_v10 }
 0x569   : > { %v1280_v15 = vadd.f32 %v1274_v11, %v1270_v13 }
 0x56a   : > { %v1283_v29 = vmax.f32 %v1281_v14, 0.0 }
 0x56b   : > { %v1282_v18 = vmax.f32 %v1280_v15, 0.0 }
 0x56d   : > { %v1918_v17 = vpack.c.bf16 %v1283_v29, %v1282_v18 }
 0x56f   : > { %1919 = vmatprep.subr.bf16.mxu1 %v1918_v17 }
 0x570   : > { %1921 = vmatpush3.bf16.msra.mxu1 %v1918_v17 }
 0x573   : > { %1774 = vmatmul.mubr.msk.f32.vlgmr.msra.gmra.mrb[8].mxu1 %vm977_vm10, %v1090_v20 }
 0x574   : > { %1776 = vmatprep.mubr.msk.f32.mxu1 %vm977_vm10, %v1091_v21 }
 0x577   : > { %1777 = vmatmul.mubr.msk.f32.gmra.mrb[10].mxu1 %vm977_vm10, %v1092_v22 }
 0x646   : > { %v1775_v27 = vpop.f32.mrb[8].mxu1 }
 0x647   : > { %v1388_v28 = vadd.f32 %v1775_v27, %v1292_v26  ;;  %v1382_v30 = vpop.f32.mrb[9].mxu1 }
 0x648   : > { %v1383_v31 = vadd.f32 %v1382_v30, %v1287_v23 }
 0x649   : > { %v1402_v32 = vadd.f32 %v1388_v28, %v2597_v5  ;;  %v1406_v5 = vld [vmem:[%s2775_s16] sm:$0xf] }
 0x64a   : > { %v1401_v36 = vadd.f32 %v1383_v31, %v2600_v6  ;;  %v1778_v33 = vpop.f32.mrb[10].mxu1  ;;  %v2186_v6 = vmov 0.0  }
 0x64b   : > { %v1398_v37 = vadd.f32 %v1778_v33, %v1302_v42  ;;  %v1392_v38 = vpop.f32.mrb[11].mxu1  ;;  %1803 = vmatprep.mubr.msk.f32.mxu0 %vm2185_vm11, %v2186_v6 }
 0x64c   : > { %v1931_v39 = vpack.c.bf16 %v1402_v32, %v1401_v36  ;;  %v1393_v40 = vadd.f32 %v1392_v38, %v1297_v34  ;;  %v2094_v41 = vpack.i.bf16 %v1402_v32, %v1401_v36 }
 0x64d   : > { %v1404_v43 = vadd.f32 %v1398_v37, %v2605_v16 }
 0x64e   : > { %v1403_v44 = vadd.f32 %v1393_v40, %v2608_v24  ;;  %2095 = vrot.lane.b32.xlu1 %v2094_v41, %s2814_s23 }
 0x650   : > { %v1934_v45 = vpack.c.bf16 %v1404_v43, %v1403_v44  ;;  %v2099_v46 = vpack.i.bf16 %v1404_v43, %v1403_v44 }
 0x652   : > { %2100 = vrot.lane.b32.xlu0 %v2099_v46, %s2814_s23  ;;  %2105 = vrot.lane.b32.xlu1 %v2094_v41, %s2815_s29  ;;  %s1524_s23 = sshll.u32 %s541_s22, 4  ;;  %s2719_s23 = int_to_ptr.vmem [resolvable:$true] %s1524_s23 }
 0x653   : > { %s2114_s0 = scalar_lea.vmem %s2719_s23, 64  ;;  %p2121_p0 = scmp.lt.s32.totalorder %s2719_s23, %s2119_s24 }
 0x654   : > { %p2115_p11 = scmp.ne.s32.totalorder %s2719_s23, %s2114_s0  ;;  %p2122_p1 = scmp.lt.s32.totalorder %s2120_s2, %s2114_s0 }
 0x656   : > { %2110 = vrot.lane.b32.xlu0 %v2099_v46, %s2815_s29  ;;  %1433 = vperm.xlu1 %2092, %v1406_v5   ;;  %p2116_p12 = pnand %p2115_p11, %p2316_p5  ;;  %p2123_p2 = por %p2122_p1, %p2121_p0 }
 0x658   : > { %p2117_p13 = pneg %p2116_p12 }
 0x65a   : > { %p2124_p3 = pnand %p2123_p2, %p2117_p13 }
 0x6c0   : > { %v2096_v16 = vpop.permute.xlu1 %2095 }
 0x6c1   : > { %v2098_v24 = vunpack.i.h.bf16 %v2096_v16  ;;  %v2097_v47 = vunpack.i.l.bf16 %v2096_v16 }
 0x6c3   : > { %v1923_v48 = vpack.c.bf16 %v2098_v24, %v2097_v47 }
 0x6c4   : > { %v2101_v25 = vpop.permute.xlu0 %2100  ;;  %v2106_v51 = vpop.permute.xlu1 %2105 }
 0x6c5   : > { %v2103_v49 = vunpack.i.h.bf16 %v2101_v25  ;;  %v2102_v19 = vunpack.i.l.bf16 %v2101_v25  ;;  %1925 = vmatpush3.bf16.msk.msra.mxu0 %vm2411_vm2, %v1923_v48  ;;  %v2108_v52 = vunpack.i.h.bf16 %v2106_v51  ;;  %v2107_v53 = vunpack.i.l.bf16 %v2106_v51 }
 0x6c6   : > { %1926 = vmatprep.subr.bf16.mxu0 %v2178_v0 }
 0x6c7   : > { %v1927_v50 = vpack.c.bf16 %v2103_v49, %v2102_v19  ;;  %v1937_v55 = vpack.c.bf16 %v2108_v52, %v2107_v53 }
 0x6c8   : > { %v2111_v54 = vpop.permute.xlu0 %2110 }
 0x6c9   : > { %1929 = vmatpush3.bf16.msk.msra.mxu0 %vm2411_vm2, %v1927_v50  ;;  %v2113_v1 = vunpack.i.h.bf16 %v2111_v54  ;;  %v2112_v57 = vunpack.i.l.bf16 %v2111_v54 }
 0x6ca   : > { %1930 = vmatprep.subr.bf16.mxu0 %v2178_v0 }
 0x6cb   : > { %v1941_v35 = vpack.c.bf16 %v2113_v1, %v2112_v57 }
 0x6cd   : > { %1932 = vmatpush3.bf16.msra.mxu0 %v1931_v39 }
 0x6ce   : > { %1933 = vmatprep.subr.bf16.mxu0 %v2178_v0 }
 0x6d1   : > { %1935 = vmatpush3.bf16.msra.mxu0 %v1934_v45 }
 0x6d2   : > { %1936 = vmatprep.subr.bf16.mxu0 %v2178_v0 }
 0x6d5   : > { %1939 = vmatpush3.bf16.msk.msra.mxu0 %vm2444_vm4, %v1937_v55  ;;  %v1434_v12 = vpop.permute.xlu1 %1433 }
 0x6d6   : > { %1940 = vmatprep.subr.bf16.mxu0 %v2178_v0 }
 0x6d9   : > { %1943 = vmatpush3.bf16.msk.msra.mxu0 %vm2444_vm4, %v1941_v35 }
 0x6dc   : > { %1804 = vmatmul.mubr.msk.f32.vlgmr.msra.gmra.mrb[8].mxu0 %vm851_vm5, %v1405_v58 }
 0x7af   : > { %v1505_v59 = vpop.f32.mrb[8].mxu0 }
 0x7b0   : > { %v1506_v60 = vadd.f32 %v1505_v59, %v1434_v12  ;;  %v1805_v0 = vpop.f32.mrb[9].mxu0 }
 0x7b2   : > { %1509 = vst [vmem:[%s541_s22] sm:$0xf] %v1506_v60 }
 0x7b3   : > { %2127 = shalt.err (!%p2124_p3)
}
 0x7b4   : > { %s2128_s19 = scalar_lea.hbm %s2717_s26, 64  ;;  %s2132_s29 = scalar_lea.hbm %s2776_s17, 128 }
 0x7b5   : > { %p2129_p4 = scmp.ne.s32.totalorder %s2717_s26, %s2128_s19  ;;  %p2133_p9 = scmp.lt.u32.totalorder %s2717_s26, %s2776_s17 }
 0x7b6   : > { %p2134_p10 = scmp.lt.u32.totalorder %s2132_s29, %s2128_s19  ;;  %p2136_p12 = scmp.lt.u32.totalorder %s2128_s19, %s2717_s26 }
 0x7b7   : > { %p2130_p7 = pnand %p2129_p4, %p2316_p5 }
 0x7b8   : > { %p2135_p11 = por %p2134_p10, %p2133_p9 }
 0x7b9   : > { %p2131_p8 = pneg %p2130_p7 }
 0x7ba   : > { %p2137_p13 = por %p2136_p12, %p2135_p11 }
 0x7bc   : > { %p2138_p0 = pnand %p2137_p13, %p2131_p8 }
 0x7be   : > { %2141 = shalt.err (!%p2138_p0)
}
 0x7bf   : > { %1944 = dma.vmem_to_hbm [thread:$0]  (%p2316_p5), %s2719_s23, 64, %s2717_s26, %s1511_s18  }
 0x7c0 PF: > { %s2816_s2 = sld [smem:[#allocation5_spill]]  ;;  %p1950_p1 = scmp.ge.s32.totalorder %s2176_s27, 2 }
 0x7c2   : > { %p1947_p2 = pnand %p1950_p1, %p2320_p6 }
 0x7c6   : > { %s1536_s24 = sand.u32 1, %s2816_s2  }
 0x7c7   : > { %s1537_s20 = scalar_lea.sflag [#allocation3], %s1536_s24 }
 0x7c8   : > { %2159 = dma.done.wait (!%p1947_p2), %s1537_s20, 64  }
 0x7c9   : > { %2161 = vsyncadd (!%p1947_p2), %s1537_s20, 4294967232  ;;  %s2818_s27 = sld [smem:[#allocation7_spill]]  ;;  %s2819_s19 = sld [smem:[#allocation6_spill]] }
 0x7ca   : > { %s2820_s26 = sld [smem:[#allocation8_spill]]  ;;  %s2821_s24 = smov %s2168_s25 }
 0x7cf   : > { %p27_p3 = scmp.ge.s32.totalorder %s2818_s27, 4   ;;  %s2822_s25 = smov %s2819_s19 }
 0x7d1   :  { %29 = sbr.rel (!%p27_p3) target bundleno = 7 (0x7), region = 123 }
 0x7d8   :  { %1542 = vsyncpa [#allocation3], 1 }
 0x7d9   :  { %1544 = vsyncpa [#allocation3 + $0x1], 1 }

// kernel: seq2seq_forward.4
= control target key start
LH: loop header
LB: loop body
LE: loop exit
PB: predicated region body
PF: predicated region fallthrough
CT: control target
= control target key end

     0   :  { %v60_v28 = vlaneseq  ;;  %v10645_v36 = vmov 1983009808   ;;  %s13039_s0 = inlined_call_operand.vmem [shape: f32[2,8192], index: 0, kind: input, shape index: {}]   ;;  %s13040_s1 = inlined_call_operand.vmem [shape: bf16[8192,32], index: 1, kind: input, shape index: {}]   ;;  %s13041_s2 = inlined_call_operand.vmem [shape: f32[1,32], index: 2, kind: input, shape index: {}]   ;;  %s13042_s3 = inlined_call_operand.vmem [shape: bf16[32,8192], index: 3, kind: input, shape index: {}]   ;;  %s13043_s4 = inlined_call_operand.vmem [shape: f32[1,8192], index: 4, kind: input, shape index: {}]   ;;  %s13044_s5 = inlined_call_operand.hbm [shape: f32[2,32], index: 5, kind: output, shape index: {0}]   ;;  %s13045_s6 = inlined_call_operand.vmem [shape: f32[2,8192], index: 6, kind: output, shape index: {1}]  }
   0x1   :  { %v10093_v0 = vld [vmem:[%s13040_s1 + $0x40] sm:$0xff]   ;;  %v10097_v4 = vld [vmem:[%s13040_s1 + $0x48] sm:$0xff]   ;;  %v10101_v8 = vld [vmem:[%s13040_s1 + $0x50] sm:$0xff]   ;;  %v58_v37 = vunpack.c.l.s4 %v10645_v36 }
   0x2   :  { %v10094_v1 = vld [vmem:[%s13040_s1 + $0xc0] sm:$0xff]   ;;  %9386 = vmatprep.subr.bf16.mxu0 %v10093_v0  ;;  %v10098_v5 = vld [vmem:[%s13040_s1 + $0xc8] sm:$0xff]   ;;  %v10102_v9 = vld [vmem:[%s13040_s1 + $0xd0] sm:$0xff]   ;;  %v10779_v33 = vshrl.u32 %v60_v28, 7 }
   0x3   :  { %v10095_v2 = vld [vmem:[%s13040_s1] sm:$0xff]   ;;  %9408 = vmatprep.subr.bf16.mxu1 %v10094_v1  ;;  %v10099_v6 = vld [vmem:[%s13040_s1 + $0x8] sm:$0xff]   ;;  %v10103_v10 = vld [vmem:[%s13040_s1 + $0x10] sm:$0xff]   ;;  %v59_v39 = vunpack.c.0.s8 %v58_v37 }
   0x4   :  { %v10096_v3 = vld [vmem:[%s13040_s1 + $0x80] sm:$0xff]   ;;  %9387 = vmatpush3.bf16.msra.mxu0 %v10095_v2  ;;  %v10100_v7 = vld [vmem:[%s13040_s1 + $0x88] sm:$0xff]   ;;  %v10104_v11 = vld [vmem:[%s13040_s1 + $0x90] sm:$0xff]  }
   0x5   :  { %9409 = vmatpush3.bf16.msra.mxu1 %v10096_v3  ;;  %9388 = vmatprep.subr.bf16.mxu0 %v10097_v4  ;;  %v10105_v12 = vld [vmem:[%s13040_s1 + $0x58] sm:$0xff]   ;;  %v10109_v16 = vld [vmem:[%s13040_s1 + $0x60] sm:$0xff]   ;;  %v10113_v20 = vld [vmem:[%s13040_s1 + $0x68] sm:$0xff]   ;;  %v10791_v41 = vsub.s32 %v59_v39, %v10779_v33 }
   0x6   :  { %9410 = vmatprep.subr.bf16.mxu1 %v10098_v5  ;;  %v10106_v13 = vld [vmem:[%s13040_s1 + $0xd8] sm:$0xff]   ;;  %v10110_v17 = vld [vmem:[%s13040_s1 + $0xe0] sm:$0xff]   ;;  %v10114_v21 = vld [vmem:[%s13040_s1 + $0xe8] sm:$0xff]  }
   0x7   :  { %v10107_v14 = vld [vmem:[%s13040_s1 + $0x18] sm:$0xff]   ;;  %v10111_v18 = vld [vmem:[%s13040_s1 + $0x20] sm:$0xff]   ;;  %v10115_v22 = vld [vmem:[%s13040_s1 + $0x28] sm:$0xff]  }
   0x8   :  { %9389 = vmatpush3.bf16.msra.mxu0 %v10099_v6  ;;  %v10108_v15 = vld [vmem:[%s13040_s1 + $0x98] sm:$0xff]   ;;  %v10112_v19 = vld [vmem:[%s13040_s1 + $0xa0] sm:$0xff]   ;;  %v10116_v23 = vld [vmem:[%s13040_s1 + $0xa8] sm:$0xff]  }
   0x9   :  { %9411 = vmatpush3.bf16.msra.mxu1 %v10100_v7  ;;  %9390 = vmatprep.subr.bf16.mxu0 %v10101_v8  ;;  %v10117_v24 = vld [vmem:[%s13040_s1 + $0x70] sm:$0xff]   ;;  %v10121_v29 = vld [vmem:[%s13040_s1 + $0x78] sm:$0xff]   ;;  %v24_v34 = vld [vmem:[%s13039_s0] sm:$0xff] }
   0xa   :  { %9412 = vmatprep.subr.bf16.mxu1 %v10102_v9  ;;  %v10118_v25 = vld [vmem:[%s13040_s1 + $0xf0] sm:$0xff]   ;;  %v10122_v30 = vld [vmem:[%s13040_s1 + $0xf8] sm:$0xff]   ;;  %v10126_v35 = vld [vmem:[%s13040_s1 + $0x140] sm:$0xff]   ;;  %v56_v40 = vcombine.high %v24_v34, %v24_v34  ;;  %v63_v42 = vrot.slane %v24_v34, %v10791_v41 }
   0xb   :  { %v10119_v26 = vld [vmem:[%s13040_s1 + $0x30] sm:$0xff]   ;;  %v10123_v31 = vld [vmem:[%s13040_s1 + $0x38] sm:$0xff]   ;;  %v10127_v38 = vld [vmem:[%s13040_s1 + $0x1c0] sm:$0xff]  }
   0xc   :  { %9391 = vmatpush3.bf16.msra.mxu0 %v10103_v10  ;;  %v10120_v27 = vld [vmem:[%s13040_s1 + $0xb0] sm:$0xff]   ;;  %v10124_v32 = vld [vmem:[%s13040_s1 + $0xb8] sm:$0xff]   ;;  %v70_v43 = vrot.slane %v56_v40, %v10791_v41  ;;  %v71_v44 = vcombine.high %v63_v42, %v63_v42  ;;  %v10128_v46 = vld [vmem:[%s13040_s1 + $0x100] sm:$0xff]   ;;  %v392_v47 = vpack.c.bf16 %v63_v42, %v63_v42 }
   0xd   :  { %9413 = vmatpush3.bf16.msra.mxu1 %v10104_v11  ;;  %9392 = vmatprep.subr.bf16.mxu0 %v10105_v12  ;;  %v10129_v49 = vld [vmem:[%s13040_s1 + $0x180] sm:$0xff]   ;;  %v10130_v52 = vld [vmem:[%s13040_s1 + $0x148] sm:$0xff]   ;;  %v10134_v56 = vld [vmem:[%s13040_s1 + $0x150] sm:$0xff]  }
   0xe   :  { %9414 = vmatprep.subr.bf16.mxu1 %v10106_v13  ;;  %v72_v45 = vcombine.high %v70_v43, %v70_v43  ;;  %v394_v48 = vpack.c.bf16 %v70_v43, %v70_v43  ;;  %v393_v50 = vpack.c.bf16 %v71_v44, %v71_v44  ;;  %v10131_v53 = vld [vmem:[%s13040_s1 + $0x1c8] sm:$0xff]   ;;  %v10135_v57 = vld [vmem:[%s13040_s1 + $0x1d0] sm:$0xff]   ;;  %v10138_v60 = vld [vmem:[%s13040_s1 + $0x158] sm:$0xff]  }
   0xf   :  { %v10132_v54 = vld [vmem:[%s13040_s1 + $0x108] sm:$0xff]   ;;  %v10136_v58 = vld [vmem:[%s13040_s1 + $0x110] sm:$0xff]   ;;  %v10139_v61 = vld [vmem:[%s13040_s1 + $0x1d8] sm:$0xff]  }
  0x10   :  { %9393 = vmatpush3.bf16.msra.mxu0 %v10107_v14  ;;  %v395_v51 = vpack.c.bf16 %v72_v45, %v72_v45  ;;  %4591 = vmatprep.mubr.bf16.mxu0 %v393_v50  ;;  %v10133_v55 = vld [vmem:[%s13040_s1 + $0x188] sm:$0xff]   ;;  %v10137_v59 = vld [vmem:[%s13040_s1 + $0x190] sm:$0xff]   ;;  %v10140_v62 = vld [vmem:[%s13040_s1 + $0x118] sm:$0xff]  }
  0x11   :  { %9415 = vmatpush3.bf16.msra.mxu1 %v10108_v15  ;;  %9394 = vmatprep.subr.bf16.mxu0 %v10109_v16  ;;  %v10141_v63 = vld [vmem:[%s13040_s1 + $0x198] sm:$0xff]   ;;  %v10142_v0 = vld [vmem:[%s13040_s1 + $0x160] sm:$0xff]   ;;  %v10146_v4 = vld [vmem:[%s13040_s1 + $0x168] sm:$0xff]  }
  0x12   :  { %9416 = vmatprep.subr.bf16.mxu1 %v10110_v17  ;;  %4631 = vmatprep.mubr.bf16.mxu1 %v395_v51  ;;  %v10143_v1 = vld [vmem:[%s13040_s1 + $0x1e0] sm:$0xff]   ;;  %v10147_v5 = vld [vmem:[%s13040_s1 + $0x1e8] sm:$0xff]   ;;  %v10150_v8 = vld [vmem:[%s13040_s1 + $0x170] sm:$0xff]  }
  0x13   :  { %v10144_v2 = vld [vmem:[%s13040_s1 + $0x120] sm:$0xff]   ;;  %v10148_v6 = vld [vmem:[%s13040_s1 + $0x128] sm:$0xff]   ;;  %v10151_v9 = vld [vmem:[%s13040_s1 + $0x1f0] sm:$0xff]  }
  0x14   :  { %9395 = vmatpush3.bf16.msra.mxu0 %v10111_v18  ;;  %v10145_v3 = vld [vmem:[%s13040_s1 + $0x1a0] sm:$0xff]   ;;  %v10149_v7 = vld [vmem:[%s13040_s1 + $0x1a8] sm:$0xff]   ;;  %v10152_v11 = vld [vmem:[%s13040_s1 + $0x130] sm:$0xff]  }
  0x15   :  { %9417 = vmatpush3.bf16.msra.mxu1 %v10112_v19  ;;  %9396 = vmatprep.subr.bf16.mxu0 %v10113_v20  ;;  %v25_v10 = vld [vmem:[%s13039_s0 + $0x8] sm:$0xff]  ;;  %v10153_v14 = vld [vmem:[%s13040_s1 + $0x1b0] sm:$0xff]   ;;  %v10154_v15 = vld [vmem:[%s13040_s1 + $0x178] sm:$0xff]  }
  0x16   :  { %9418 = vmatprep.subr.bf16.mxu1 %v10114_v21  ;;  %v80_v12 = vrot.slane %v25_v10, %v10791_v41  ;;  %v73_v13 = vcombine.high %v25_v10, %v25_v10  ;;  %v10155_v18 = vld [vmem:[%s13040_s1 + $0x1f8] sm:$0xff]   ;;  %v10166_v34 = vld [vmem:[%s13040_s1 + $0x288] sm:$0xff]   ;;  %v10168_v36 = vld [vmem:[%s13040_s1 + $0x2d0] sm:$0xff]  }
  0x17   :  { %v10156_v19 = vld [vmem:[%s13040_s1 + $0x138] sm:$0xff]   ;;  %v10169_v37 = vld [vmem:[%s13040_s1 + $0x210] sm:$0xff]   ;;  %v10175_v44 = vld [vmem:[%s13040_s1 + $0x260] sm:$0xff]  }
  0x18   :  { %9397 = vmatpush3.bf16.msra.mxu0 %v10115_v22  ;;  %v88_v16 = vcombine.high %v80_v12, %v80_v12  ;;  %v87_v17 = vrot.slane %v73_v13, %v10791_v41  ;;  %v10157_v22 = vld [vmem:[%s13040_s1 + $0x1b8] sm:$0xff]   ;;  %v10176_v45 = vld [vmem:[%s13040_s1 + $0x2e0] sm:$0xff]   ;;  %v10181_v50 = vld [vmem:[%s13040_s1 + $0x228] sm:$0xff]  }
  0x19   :  { %9419 = vmatpush3.bf16.msra.mxu1 %v10116_v23  ;;  %9398 = vmatprep.subr.bf16.mxu0 %v10117_v24  ;;  %v10159_v24 = vld [vmem:[%s13040_s1 + $0x240] sm:$0xff]   ;;  %v10171_v39 = vld [vmem:[%s13040_s1 + $0x258] sm:$0xff]   ;;  %v10182_v51 = vld [vmem:[%s13040_s1 + $0x2a8] sm:$0xff]  }
  0x1a   :  { %9420 = vmatprep.subr.bf16.mxu1 %v10118_v25  ;;  %v397_v20 = vpack.c.bf16 %v88_v16, %v88_v16  ;;  %v89_v21 = vcombine.high %v87_v17, %v87_v17  ;;  %v10160_v25 = vld [vmem:[%s13040_s1 + $0x2c0] sm:$0xff]   ;;  %v398_v28 = vpack.c.bf16 %v87_v17, %v87_v17  ;;  %v10172_v40 = vld [vmem:[%s13040_s1 + $0x2d8] sm:$0xff]   ;;  %v10196_v10 = vld [vmem:[%s13040_s1 + $0x348] sm:$0xff]  }
  0x1b   :  { %v10173_v42 = vld [vmem:[%s13040_s1 + $0x218] sm:$0xff]   ;;  %v10199_v13 = vld [vmem:[%s13040_s1 + $0x388] sm:$0xff]   ;;  %v10202_v16 = vld [vmem:[%s13040_s1 + $0x310] sm:$0xff]  }
  0x1c   :  { %9399 = vmatpush3.bf16.msra.mxu0 %v10119_v26  ;;  %v399_v23 = vpack.c.bf16 %v89_v21, %v89_v21  ;;  %v10161_v26 = vld [vmem:[%s13040_s1 + $0x200] sm:$0xff]   ;;  %v10174_v43 = vld [vmem:[%s13040_s1 + $0x298] sm:$0xff]   ;;  %v10203_v17 = vld [vmem:[%s13040_s1 + $0x390] sm:$0xff]  }
  0x1d   :  { %9421 = vmatpush3.bf16.msra.mxu1 %v10120_v27  ;;  %9400 = vmatprep.subr.bf16.mxu0 %v10121_v29  ;;  %v396_v27 = vpack.c.bf16 %v80_v12, %v80_v12  ;;  %v10162_v29 = vld [vmem:[%s13040_s1 + $0x280] sm:$0xff]   ;;  %v10198_v12 = vld [vmem:[%s13040_s1 + $0x308] sm:$0xff]   ;;  %v10207_v21 = vld [vmem:[%s13040_s1 + $0x398] sm:$0xff]  }
  0x1e   :  { %9422 = vmatprep.subr.bf16.mxu1 %v10122_v30  ;;  %v10163_v30 = vld [vmem:[%s13040_s1 + $0x248] sm:$0xff]  }
  0x20   :  { %9401 = vmatpush3.bf16.msra.mxu0 %v10123_v31  ;;  %v10164_v31 = vld [vmem:[%s13040_s1 + $0x2c8] sm:$0xff]  }
  0x21   :  { %9423 = vmatpush3.bf16.msra.mxu1 %v10124_v32  ;;  %9430 = vmatprep.subr.bf16.mxu0 %v10126_v35  ;;  %v10165_v32 = vld [vmem:[%s13040_s1 + $0x208] sm:$0xff]   ;;  %v10167_v35 = vld [vmem:[%s13040_s1 + $0x250] sm:$0xff]  }
  0x22   :  { %9452 = vmatprep.subr.bf16.mxu1 %v10127_v38  ;;  %v10170_v38 = vld [vmem:[%s13040_s1 + $0x290] sm:$0xff]  }
  0x23   :  { %4592 = vmatmul.mubr.bf16.vlgmr.msra.gmra.mrb[0].mxu0 %v392_v47  ;;  %v10178_v47 = vld [vmem:[%s13040_s1 + $0x2a0] sm:$0xff]  }
  0x24   :  { %4632 = vmatmul.mubr.bf16.vlgmr.msra.gmra.mrb[0].mxu1 %v394_v48  ;;  %9431 = vmatpush3.bf16.msra.mxu0 %v10128_v46  ;;  %v10177_v46 = vld [vmem:[%s13040_s1 + $0x220] sm:$0xff]   ;;  %v10179_v48 = vld [vmem:[%s13040_s1 + $0x268] sm:$0xff]  }
  0x25   :  { %9453 = vmatpush3.bf16.msra.mxu1 %v10129_v49  ;;  %9432 = vmatprep.subr.bf16.mxu0 %v10130_v52  ;;  %v10180_v49 = vld [vmem:[%s13040_s1 + $0x2e8] sm:$0xff]   ;;  %v10183_v52 = vld [vmem:[%s13040_s1 + $0x270] sm:$0xff]  }
  0x26   :  { %9454 = vmatprep.subr.bf16.mxu1 %v10131_v53  ;;  %4671 = vmatprep.mubr.bf16.mxu0 %v397_v20  ;;  %v10184_v53 = vld [vmem:[%s13040_s1 + $0x2f0] sm:$0xff]   ;;  %v10206_v20 = vld [vmem:[%s13040_s1 + $0x318] sm:$0xff]  }
  0x27   :  { %4711 = vmatprep.mubr.bf16.mxu1 %v399_v23  ;;  %v10209_v23 = vld [vmem:[%s13040_s1 + $0x3e0] sm:$0xff]  }
  0x28   :  { %9433 = vmatpush3.bf16.msra.mxu0 %v10132_v54  ;;  %v26_v54 = vld [vmem:[%s13039_s0 + $0x10] sm:$0xff] }
  0x29   :  { %9455 = vmatpush3.bf16.msra.mxu1 %v10133_v55  ;;  %9434 = vmatprep.subr.bf16.mxu0 %v10134_v56  ;;  %v10185_v55 = vld [vmem:[%s13040_s1 + $0x230] sm:$0xff]   ;;  %v97_v56 = vrot.slane %v26_v54, %v10791_v41 }
  0x2a   :  { %9456 = vmatprep.subr.bf16.mxu1 %v10135_v57  ;;  %v90_v57 = vcombine.high %v26_v54, %v26_v54  ;;  %v10229_v54 = vld [vmem:[%s13040_s1 + $0x448] sm:$0xff]  }
  0x2c   :  { %9435 = vmatpush3.bf16.msra.mxu0 %v10136_v58  ;;  %v10186_v58 = vld [vmem:[%s13040_s1 + $0x2b0] sm:$0xff]  }
  0x2d   :  { %9457 = vmatpush3.bf16.msra.mxu1 %v10137_v59  ;;  %9436 = vmatprep.subr.bf16.mxu0 %v10138_v60  ;;  %v10187_v59 = vld [vmem:[%s13040_s1 + $0x278] sm:$0xff]   ;;  %v105_v60 = vcombine.high %v97_v56, %v97_v56 }
  0x2e   :  { %9458 = vmatprep.subr.bf16.mxu1 %v10139_v61  ;;  %v104_v61 = vrot.slane %v90_v57, %v10791_v41  ;;  %v10232_v57 = vld [vmem:[%s13040_s1 + $0x488] sm:$0xff]  }
  0x30   :  { %9437 = vmatpush3.bf16.msra.mxu0 %v10140_v62  ;;  %v10188_v62 = vld [vmem:[%s13040_s1 + $0x2f8] sm:$0xff]  }
  0x31   :  { %9459 = vmatpush3.bf16.msra.mxu1 %v10141_v63  ;;  %9438 = vmatprep.subr.bf16.mxu0 %v10142_v0  ;;  %v10189_v63 = vld [vmem:[%s13040_s1 + $0x238] sm:$0xff]   ;;  %v401_v0 = vpack.c.bf16 %v105_v60, %v105_v60  ;;  %v10235_v60 = vld [vmem:[%s13040_s1 + $0x410] sm:$0xff]  }
  0x32   :  { %9460 = vmatprep.subr.bf16.mxu1 %v10143_v1  ;;  %v106_v1 = vcombine.high %v104_v61, %v104_v61 }
  0x34   :  { %9439 = vmatpush3.bf16.msra.mxu0 %v10144_v2  ;;  %v10190_v2 = vld [vmem:[%s13040_s1 + $0x2b8] sm:$0xff]  }
  0x35   :  { %9461 = vmatpush3.bf16.msra.mxu1 %v10145_v3  ;;  %9440 = vmatprep.subr.bf16.mxu0 %v10146_v4  ;;  %v403_v3 = vpack.c.bf16 %v106_v1, %v106_v1  ;;  %v10192_v4 = vld [vmem:[%s13040_s1 + $0x340] sm:$0xff]   ;;  %v10240_v1 = vld [vmem:[%s13040_s1 + $0x498] sm:$0xff]  }
  0x36   :  { %9462 = vmatprep.subr.bf16.mxu1 %v10147_v5  ;;  %v10193_v5 = vld [vmem:[%s13040_s1 + $0x3c0] sm:$0xff]  }
  0x38   :  { %9441 = vmatpush3.bf16.msra.mxu0 %v10148_v6  ;;  %v10194_v6 = vld [vmem:[%s13040_s1 + $0x300] sm:$0xff]  }
  0x39   :  { %9463 = vmatpush3.bf16.msra.mxu1 %v10149_v7  ;;  %9442 = vmatprep.subr.bf16.mxu0 %v10150_v8  ;;  %v400_v7 = vpack.c.bf16 %v97_v56, %v97_v56  ;;  %v402_v8 = vpack.c.bf16 %v104_v61, %v104_v61  ;;  %v10231_v56 = vld [vmem:[%s13040_s1 + $0x408] sm:$0xff]   ;;  %v10236_v61 = vld [vmem:[%s13040_s1 + $0x490] sm:$0xff]  }
  0x3a   :  { %9464 = vmatprep.subr.bf16.mxu1 %v10151_v9  ;;  %v10195_v9 = vld [vmem:[%s13040_s1 + $0x380] sm:$0xff]  }
  0x3c   :  { %9443 = vmatpush3.bf16.msra.mxu0 %v10152_v11  ;;  %v10197_v11 = vld [vmem:[%s13040_s1 + $0x3c8] sm:$0xff]  }
  0x3d   :  { %9465 = vmatpush3.bf16.msra.mxu1 %v10153_v14  ;;  %9444 = vmatprep.subr.bf16.mxu0 %v10154_v15  ;;  %v10200_v14 = vld [vmem:[%s13040_s1 + $0x350] sm:$0xff]  }
  0x3e   :  { %9466 = vmatprep.subr.bf16.mxu1 %v10155_v18  ;;  %v10201_v15 = vld [vmem:[%s13040_s1 + $0x3d0] sm:$0xff]   ;;  %v10204_v18 = vld [vmem:[%s13040_s1 + $0x358] sm:$0xff]  }
  0x40   :  { %9445 = vmatpush3.bf16.msra.mxu0 %v10156_v19  ;;  %v10205_v19 = vld [vmem:[%s13040_s1 + $0x3d8] sm:$0xff]  }
  0x41   :  { %9467 = vmatpush3.bf16.msra.mxu1 %v10157_v22  ;;  %9474 = vmatprep.subr.bf16.mxu0 %v10159_v24  ;;  %v10208_v22 = vld [vmem:[%s13040_s1 + $0x360] sm:$0xff]  }
  0x42   :  { %9496 = vmatprep.subr.bf16.mxu1 %v10160_v25  ;;  %v10210_v24 = vld [vmem:[%s13040_s1 + $0x320] sm:$0xff]  }
  0x43   :  { %4672 = vmatmul.mubr.bf16.vlgmr.msra.gmra.mrb[4].mxu0 %v396_v27  ;;  %v10211_v25 = vld [vmem:[%s13040_s1 + $0x3a0] sm:$0xff]   ;;  %v10213_v27 = vld [vmem:[%s13040_s1 + $0x3e8] sm:$0xff]  }
  0x44   :  { %4712 = vmatmul.mubr.bf16.vlgmr.msra.gmra.mrb[4].mxu1 %v398_v28  ;;  %9475 = vmatpush3.bf16.msra.mxu0 %v10161_v26  ;;  %v10212_v26 = vld [vmem:[%s13040_s1 + $0x368] sm:$0xff]  }
  0x45   :  { %9497 = vmatpush3.bf16.msra.mxu1 %v10162_v29  ;;  %9476 = vmatprep.subr.bf16.mxu0 %v10163_v30  ;;  %v10214_v28 = vld [vmem:[%s13040_s1 + $0x328] sm:$0xff]   ;;  %v10216_v30 = vld [vmem:[%s13040_s1 + $0x370] sm:$0xff]  }
  0x46   :  { %9498 = vmatprep.subr.bf16.mxu1 %v10164_v31  ;;  %4751 = vmatprep.mubr.bf16.mxu0 %v401_v0  ;;  %v10215_v29 = vld [vmem:[%s13040_s1 + $0x3a8] sm:$0xff]   ;;  %v10217_v31 = vld [vmem:[%s13040_s1 + $0x3f0] sm:$0xff]   ;;  %v10239_v0 = vld [vmem:[%s13040_s1 + $0x418] sm:$0xff]  }
  0x47   :  { %4791 = vmatprep.mubr.bf16.mxu1 %v403_v3  ;;  %v10242_v3 = vld [vmem:[%s13040_s1 + $0x4e0] sm:$0xff]  }
  0x48   :  { %9477 = vmatpush3.bf16.msra.mxu0 %v10165_v32  ;;  %v10218_v32 = vld [vmem:[%s13040_s1 + $0x330] sm:$0xff]  }
  0x49   :  { %9499 = vmatpush3.bf16.msra.mxu1 %v10166_v34  ;;  %9478 = vmatprep.subr.bf16.mxu0 %v10167_v35  ;;  %v27_v34 = vld [vmem:[%s13039_s0 + $0x18] sm:$0xff]  ;;  %v10219_v35 = vld [vmem:[%s13040_s1 + $0x3b0] sm:$0xff]  }
  0x4a   :  { %9500 = vmatprep.subr.bf16.mxu1 %v10168_v36  ;;  %v114_v36 = vrot.slane %v27_v34, %v10791_v41 }
  0x4c   :  { %9479 = vmatpush3.bf16.msra.mxu0 %v10169_v37  ;;  %v107_v37 = vcombine.high %v27_v34, %v27_v34  ;;  %v10263_v34 = vld [vmem:[%s13040_s1 + $0x5c8] sm:$0xff]  }
  0x4d   :  { %9501 = vmatpush3.bf16.msra.mxu1 %v10170_v38  ;;  %9480 = vmatprep.subr.bf16.mxu0 %v10171_v39  ;;  %v10220_v38 = vld [vmem:[%s13040_s1 + $0x378] sm:$0xff]  }
  0x4e   :  { %9502 = vmatprep.subr.bf16.mxu1 %v10172_v40  ;;  %v10221_v39 = vld [vmem:[%s13040_s1 + $0x3f8] sm:$0xff]   ;;  %v122_v40 = vcombine.high %v114_v36, %v114_v36 }
  0x50   :  { %9481 = vmatpush3.bf16.msra.mxu0 %v10173_v42  ;;  %v121_v42 = vrot.slane %v107_v37, %v10791_v41  ;;  %v10266_v37 = vld [vmem:[%s13040_s1 + $0x550] sm:$0xff]  }
  0x51   :  { %9503 = vmatpush3.bf16.msra.mxu1 %v10174_v43  ;;  %9482 = vmatprep.subr.bf16.mxu0 %v10175_v44  ;;  %v10222_v43 = vld [vmem:[%s13040_s1 + $0x338] sm:$0xff]  }
  0x52   :  { %9504 = vmatprep.subr.bf16.mxu1 %v10176_v45  ;;  %v10223_v44 = vld [vmem:[%s13040_s1 + $0x3b8] sm:$0xff]   ;;  %v405_v45 = vpack.c.bf16 %v122_v40, %v122_v40  ;;  %v10269_v40 = vld [vmem:[%s13040_s1 + $0x590] sm:$0xff]  }
  0x54   :  { %9483 = vmatpush3.bf16.msra.mxu0 %v10177_v46  ;;  %v123_v46 = vcombine.high %v121_v42, %v121_v42 }
  0x55   :  { %9505 = vmatpush3.bf16.msra.mxu1 %v10178_v47  ;;  %9484 = vmatprep.subr.bf16.mxu0 %v10179_v48  ;;  %v10225_v47 = vld [vmem:[%s13040_s1 + $0x440] sm:$0xff]  }
  0x56   :  { %9506 = vmatprep.subr.bf16.mxu1 %v10180_v49  ;;  %v407_v48 = vpack.c.bf16 %v123_v46, %v123_v46  ;;  %v10226_v49 = vld [vmem:[%s13040_s1 + $0x4c0] sm:$0xff]  }
  0x57   :  { %v10274_v46 = vld [vmem:[%s13040_s1 + $0x560] sm:$0xff]  }
  0x58   :  { %9485 = vmatpush3.bf16.msra.mxu0 %v10181_v50  ;;  %v10227_v50 = vld [vmem:[%s13040_s1 + $0x400] sm:$0xff]  }
  0x59   :  { %9507 = vmatpush3.bf16.msra.mxu1 %v10182_v51  ;;  %9486 = vmatprep.subr.bf16.mxu0 %v10183_v52  ;;  %v404_v51 = vpack.c.bf16 %v114_v36, %v114_v36  ;;  %v406_v52 = vpack.c.bf16 %v121_v42, %v121_v42  ;;  %v10265_v36 = vld [vmem:[%s13040_s1 + $0x588] sm:$0xff]   ;;  %v10270_v42 = vld [vmem:[%s13040_s1 + $0x558] sm:$0xff]  }
  0x5a   :  { %9508 = vmatprep.subr.bf16.mxu1 %v10184_v53  ;;  %v10228_v53 = vld [vmem:[%s13040_s1 + $0x480] sm:$0xff]  }
  0x5c   :  { %9487 = vmatpush3.bf16.msra.mxu0 %v10185_v55  ;;  %v10230_v55 = vld [vmem:[%s13040_s1 + $0x4c8] sm:$0xff]  }
  0x5d   :  { %9509 = vmatpush3.bf16.msra.mxu1 %v10186_v58  ;;  %9488 = vmatprep.subr.bf16.mxu0 %v10187_v59  ;;  %v10233_v58 = vld [vmem:[%s13040_s1 + $0x450] sm:$0xff]  }
  0x5e   :  { %9510 = vmatprep.subr.bf16.mxu1 %v10188_v62  ;;  %v10234_v59 = vld [vmem:[%s13040_s1 + $0x4d0] sm:$0xff]   ;;  %v10237_v62 = vld [vmem:[%s13040_s1 + $0x458] sm:$0xff]  }
  0x60   :  { %9489 = vmatpush3.bf16.msra.mxu0 %v10189_v63  ;;  %v10238_v63 = vld [vmem:[%s13040_s1 + $0x4d8] sm:$0xff]  }
  0x61   :  { %9511 = vmatpush3.bf16.msra.mxu1 %v10190_v2  ;;  %9518 = vmatprep.subr.bf16.mxu0 %v10192_v4  ;;  %v10241_v2 = vld [vmem:[%s13040_s1 + $0x460] sm:$0xff]  }
  0x62   :  { %9540 = vmatprep.subr.bf16.mxu1 %v10193_v5  ;;  %v10243_v4 = vld [vmem:[%s13040_s1 + $0x420] sm:$0xff]  }
  0x63   :  { %4752 = vmatmul.mubr.bf16.vlgmr.msra.gmra.mrb[8].mxu0 %v400_v7  ;;  %v10244_v5 = vld [vmem:[%s13040_s1 + $0x4a0] sm:$0xff]   ;;  %v10246_v7 = vld [vmem:[%s13040_s1 + $0x4e8] sm:$0xff]  }
  0x64   :  { %4792 = vmatmul.mubr.bf16.vlgmr.msra.gmra.mrb[8].mxu1 %v402_v8  ;;  %9519 = vmatpush3.bf16.msra.mxu0 %v10194_v6  ;;  %v10245_v6 = vld [vmem:[%s13040_s1 + $0x468] sm:$0xff]  }
  0x65   :  { %9541 = vmatpush3.bf16.msra.mxu1 %v10195_v9  ;;  %9520 = vmatprep.subr.bf16.mxu0 %v10196_v10  ;;  %v10247_v8 = vld [vmem:[%s13040_s1 + $0x428] sm:$0xff]   ;;  %v10249_v10 = vld [vmem:[%s13040_s1 + $0x470] sm:$0xff]  }
  0x66   :  { %9542 = vmatprep.subr.bf16.mxu1 %v10197_v11  ;;  %4831 = vmatprep.mubr.bf16.mxu0 %v405_v45  ;;  %v10248_v9 = vld [vmem:[%s13040_s1 + $0x4a8] sm:$0xff]   ;;  %v10250_v11 = vld [vmem:[%s13040_s1 + $0x4f0] sm:$0xff]   ;;  %v10273_v45 = vld [vmem:[%s13040_s1 + $0x598] sm:$0xff]  }
  0x67   :  { %4871 = vmatprep.mubr.bf16.mxu1 %v407_v48  ;;  %v10276_v48 = vld [vmem:[%s13040_s1 + $0x520] sm:$0xff]  }
  0x68   :  { %9521 = vmatpush3.bf16.msra.mxu0 %v10198_v12  ;;  %v10251_v12 = vld [vmem:[%s13040_s1 + $0x430] sm:$0xff]  }
  0x69   :  { %9543 = vmatpush3.bf16.msra.mxu1 %v10199_v13  ;;  %9522 = vmatprep.subr.bf16.mxu0 %v10200_v14  ;;  %v28_v13 = vld [vmem:[%s13039_s0 + $0x20] sm:$0xff]  ;;  %v10252_v14 = vld [vmem:[%s13040_s1 + $0x4b0] sm:$0xff]  }
  0x6a   :  { %9544 = vmatprep.subr.bf16.mxu1 %v10201_v15  ;;  %v131_v15 = vrot.slane %v28_v13, %v10791_v41 }
  0x6c   :  { %9523 = vmatpush3.bf16.msra.mxu0 %v10202_v16  ;;  %v124_v16 = vcombine.high %v28_v13, %v28_v13  ;;  %v10296_v13 = vld [vmem:[%s13040_s1 + $0x6c8] sm:$0xff]  }
  0x6d   :  { %9545 = vmatpush3.bf16.msra.mxu1 %v10203_v17  ;;  %9524 = vmatprep.subr.bf16.mxu0 %v10204_v18  ;;  %v10253_v17 = vld [vmem:[%s13040_s1 + $0x478] sm:$0xff]  }
  0x6e   :  { %9546 = vmatprep.subr.bf16.mxu1 %v10205_v19  ;;  %v10254_v18 = vld [vmem:[%s13040_s1 + $0x4f8] sm:$0xff]   ;;  %v139_v19 = vcombine.high %v131_v15, %v131_v15 }
  0x70   :  { %9525 = vmatpush3.bf16.msra.mxu0 %v10206_v20  ;;  %v138_v20 = vrot.slane %v124_v16, %v10791_v41  ;;  %v10299_v16 = vld [vmem:[%s13040_s1 + $0x650] sm:$0xff]  }
  0x71   :  { %9547 = vmatpush3.bf16.msra.mxu1 %v10207_v21  ;;  %9526 = vmatprep.subr.bf16.mxu0 %v10208_v22  ;;  %v10255_v21 = vld [vmem:[%s13040_s1 + $0x438] sm:$0xff]  }
  0x72   :  { %9548 = vmatprep.subr.bf16.mxu1 %v10209_v23  ;;  %v10256_v22 = vld [vmem:[%s13040_s1 + $0x4b8] sm:$0xff]   ;;  %v409_v23 = vpack.c.bf16 %v139_v19, %v139_v19  ;;  %v10302_v19 = vld [vmem:[%s13040_s1 + $0x690] sm:$0xff]  }
  0x74   :  { %9527 = vmatpush3.bf16.msra.mxu0 %v10210_v24  ;;  %v140_v24 = vcombine.high %v138_v20, %v138_v20 }
  0x75   :  { %9549 = vmatpush3.bf16.msra.mxu1 %v10211_v25  ;;  %9528 = vmatprep.subr.bf16.mxu0 %v10212_v26  ;;  %v10258_v25 = vld [vmem:[%s13040_s1 + $0x540] sm:$0xff]  }
  0x76   :  { %9550 = vmatprep.subr.bf16.mxu1 %v10213_v27  ;;  %v411_v26 = vpack.c.bf16 %v140_v24, %v140_v24  ;;  %v10259_v27 = vld [vmem:[%s13040_s1 + $0x5c0] sm:$0xff]  }
  0x77   :  { %v10307_v24 = vld [vmem:[%s13040_s1 + $0x660] sm:$0xff]  }
  0x78   :  { %9529 = vmatpush3.bf16.msra.mxu0 %v10214_v28  ;;  %v10260_v28 = vld [vmem:[%s13040_s1 + $0x500] sm:$0xff]  }
  0x79   :  { %9551 = vmatpush3.bf16.msra.mxu1 %v10215_v29  ;;  %9530 = vmatprep.subr.bf16.mxu0 %v10216_v30  ;;  %v408_v29 = vpack.c.bf16 %v131_v15, %v131_v15  ;;  %v410_v30 = vpack.c.bf16 %v138_v20, %v138_v20  ;;  %v10298_v15 = vld [vmem:[%s13040_s1 + $0x688] sm:$0xff]   ;;  %v10303_v20 = vld [vmem:[%s13040_s1 + $0x658] sm:$0xff]  }
  0x7a   :  { %9552 = vmatprep.subr.bf16.mxu1 %v10217_v31  ;;  %v10261_v31 = vld [vmem:[%s13040_s1 + $0x580] sm:$0xff]  }
  0x7c   :  { %9531 = vmatpush3.bf16.msra.mxu0 %v10218_v32  ;;  %v10262_v32 = vld [vmem:[%s13040_s1 + $0x548] sm:$0xff]  }
  0x7d   :  { %9553 = vmatpush3.bf16.msra.mxu1 %v10219_v35  ;;  %9532 = vmatprep.subr.bf16.mxu0 %v10220_v38  ;;  %v10264_v35 = vld [vmem:[%s13040_s1 + $0x508] sm:$0xff]   ;;  %v10267_v38 = vld [vmem:[%s13040_s1 + $0x5d0] sm:$0xff]  }
  0x7e   :  { %9554 = vmatprep.subr.bf16.mxu1 %v10221_v39  ;;  %v10268_v39 = vld [vmem:[%s13040_s1 + $0x510] sm:$0xff]  }
  0x80   :  { %9533 = vmatpush3.bf16.msra.mxu0 %v10222_v43  ;;  %v10271_v43 = vld [vmem:[%s13040_s1 + $0x5d8] sm:$0xff]  }
  0x81   :  { %9555 = vmatpush3.bf16.msra.mxu1 %v10223_v44  ;;  %9562 = vmatprep.subr.bf16.mxu0 %v10225_v47  ;;  %v10272_v44 = vld [vmem:[%s13040_s1 + $0x518] sm:$0xff]   ;;  %v10275_v47 = vld [vmem:[%s13040_s1 + $0x5e0] sm:$0xff]  }
  0x82   :  { %9584 = vmatprep.subr.bf16.mxu1 %v10226_v49  ;;  %v10277_v49 = vld [vmem:[%s13040_s1 + $0x5a0] sm:$0xff]  }
  0x83   :  { %4832 = vmatmul.mubr.bf16.vlgmr.msra.gmra.mrb[12].mxu0 %v404_v51  ;;  %v10279_v51 = vld [vmem:[%s13040_s1 + $0x5e8] sm:$0xff]  }
  0x84   :  { %4872 = vmatmul.mubr.bf16.vlgmr.msra.gmra.mrb[12].mxu1 %v406_v52  ;;  %9563 = vmatpush3.bf16.msra.mxu0 %v10227_v50  ;;  %v10278_v50 = vld [vmem:[%s13040_s1 + $0x568] sm:$0xff]  }
  0x85   :  { %9585 = vmatpush3.bf16.msra.mxu1 %v10228_v53  ;;  %9564 = vmatprep.subr.bf16.mxu0 %v10229_v54  ;;  %v10280_v52 = vld [vmem:[%s13040_s1 + $0x528] sm:$0xff]   ;;  %v10282_v54 = vld [vmem:[%s13040_s1 + $0x570] sm:$0xff]  }
  0x86   :  { %9586 = vmatprep.subr.bf16.mxu1 %v10230_v55  ;;  %4911 = vmatprep.mubr.bf16.mxu0 %v409_v23  ;;  %v10281_v53 = vld [vmem:[%s13040_s1 + $0x5a8] sm:$0xff]   ;;  %v10283_v55 = vld [vmem:[%s13040_s1 + $0x5f0] sm:$0xff]   ;;  %v10306_v23 = vld [vmem:[%s13040_s1 + $0x698] sm:$0xff]  }
  0x87   :  { %4951 = vmatprep.mubr.bf16.mxu1 %v411_v26  ;;  %v10309_v26 = vld [vmem:[%s13040_s1 + $0x620] sm:$0xff]  }
  0x88   :  { %9565 = vmatpush3.bf16.msra.mxu0 %v10231_v56  ;;  %v10284_v56 = vld [vmem:[%s13040_s1 + $0x530] sm:$0xff]  }
  0x89   :  { %9587 = vmatpush3.bf16.msra.mxu1 %v10232_v57  ;;  %9566 = vmatprep.subr.bf16.mxu0 %v10233_v58  ;;  %v29_v57 = vld [vmem:[%s13039_s0 + $0x28] sm:$0xff]  ;;  %v10285_v58 = vld [vmem:[%s13040_s1 + $0x5b0] sm:$0xff]  }
  0x8a   :  { %9588 = vmatprep.subr.bf16.mxu1 %v10234_v59  ;;  %v148_v59 = vrot.slane %v29_v57, %v10791_v41 }
  0x8c   :  { %9567 = vmatpush3.bf16.msra.mxu0 %v10235_v60  ;;  %v141_v60 = vcombine.high %v29_v57, %v29_v57  ;;  %v10329_v57 = vld [vmem:[%s13040_s1 + $0x7c8] sm:$0xff]  }
  0x8d   :  { %9589 = vmatpush3.bf16.msra.mxu1 %v10236_v61  ;;  %9568 = vmatprep.subr.bf16.mxu0 %v10237_v62  ;;  %v10286_v61 = vld [vmem:[%s13040_s1 + $0x578] sm:$0xff]  }
  0x8e   :  { %9590 = vmatprep.subr.bf16.mxu1 %v10238_v63  ;;  %v10287_v62 = vld [vmem:[%s13040_s1 + $0x5f8] sm:$0xff]   ;;  %v156_v63 = vcombine.high %v148_v59, %v148_v59 }
  0x90   :  { %9569 = vmatpush3.bf16.msra.mxu0 %v10239_v0  ;;  %v155_v0 = vrot.slane %v141_v60, %v10791_v41  ;;  %v10332_v60 = vld [vmem:[%s13040_s1 + $0x750] sm:$0xff]  }
  0x91   :  { %9591 = vmatpush3.bf16.msra.mxu1 %v10240_v1  ;;  %9570 = vmatprep.subr.bf16.mxu0 %v10241_v2  ;;  %v10288_v1 = vld [vmem:[%s13040_s1 + $0x538] sm:$0xff]  }
  0x92   :  { %9592 = vmatprep.subr.bf16.mxu1 %v10242_v3  ;;  %v10289_v2 = vld [vmem:[%s13040_s1 + $0x5b8] sm:$0xff]   ;;  %v413_v3 = vpack.c.bf16 %v156_v63, %v156_v63  ;;  %v10335_v63 = vld [vmem:[%s13040_s1 + $0x790] sm:$0xff]  }
  0x94   :  { %9571 = vmatpush3.bf16.msra.mxu0 %v10243_v4  ;;  %v157_v4 = vcombine.high %v155_v0, %v155_v0 }
  0x95   :  { %9593 = vmatpush3.bf16.msra.mxu1 %v10244_v5  ;;  %9572 = vmatprep.subr.bf16.mxu0 %v10245_v6  ;;  %v10291_v5 = vld [vmem:[%s13040_s1 + $0x640] sm:$0xff]  }
  0x96   :  { %9594 = vmatprep.subr.bf16.mxu1 %v10246_v7  ;;  %v415_v6 = vpack.c.bf16 %v157_v4, %v157_v4  ;;  %v10292_v7 = vld [vmem:[%s13040_s1 + $0x6c0] sm:$0xff]  }
  0x97   :  { %v10340_v4 = vld [vmem:[%s13040_s1 + $0x760] sm:$0xff]  }
  0x98   :  { %9573 = vmatpush3.bf16.msra.mxu0 %v10247_v8  ;;  %v10293_v8 = vld [vmem:[%s13040_s1 + $0x600] sm:$0xff]  }
  0x99   :  { %9595 = vmatpush3.bf16.msra.mxu1 %v10248_v9  ;;  %9574 = vmatprep.subr.bf16.mxu0 %v10249_v10  ;;  %v412_v9 = vpack.c.bf16 %v148_v59, %v148_v59  ;;  %v414_v10 = vpack.c.bf16 %v155_v0, %v155_v0  ;;  %v10331_v59 = vld [vmem:[%s13040_s1 + $0x788] sm:$0xff]   ;;  %v10336_v0 = vld [vmem:[%s13040_s1 + $0x758] sm:$0xff]  }
  0x9a   :  { %9596 = vmatprep.subr.bf16.mxu1 %v10250_v11  ;;  %v10294_v11 = vld [vmem:[%s13040_s1 + $0x680] sm:$0xff]  }
  0x9c   :  { %9575 = vmatpush3.bf16.msra.mxu0 %v10251_v12  ;;  %v10295_v12 = vld [vmem:[%s13040_s1 + $0x648] sm:$0xff]  }
  0x9d   :  { %9597 = vmatpush3.bf16.msra.mxu1 %v10252_v14  ;;  %9576 = vmatprep.subr.bf16.mxu0 %v10253_v17  ;;  %v10297_v14 = vld [vmem:[%s13040_s1 + $0x608] sm:$0xff]   ;;  %v10300_v17 = vld [vmem:[%s13040_s1 + $0x6d0] sm:$0xff]  }
  0x9e   :  { %9598 = vmatprep.subr.bf16.mxu1 %v10254_v18  ;;  %v10301_v18 = vld [vmem:[%s13040_s1 + $0x610] sm:$0xff]  }
  0xa0   :  { %9577 = vmatpush3.bf16.msra.mxu0 %v10255_v21  ;;  %v10304_v21 = vld [vmem:[%s13040_s1 + $0x6d8] sm:$0xff]  }
  0xa1   :  { %9599 = vmatpush3.bf16.msra.mxu1 %v10256_v22  ;;  %9606 = vmatprep.subr.bf16.mxu0 %v10258_v25  ;;  %v10305_v22 = vld [vmem:[%s13040_s1 + $0x618] sm:$0xff]   ;;  %v10308_v25 = vld [vmem:[%s13040_s1 + $0x6e0] sm:$0xff]  }
  0xa2   :  { %9628 = vmatprep.subr.bf16.mxu1 %v10259_v27  ;;  %v10310_v27 = vld [vmem:[%s13040_s1 + $0x6a0] sm:$0xff]  }
  0xa3   :  { %4912 = vmatmul.mubr.bf16.vlgmr.msra.gmra.mrb[16].mxu0 %v408_v29  ;;  %v10312_v29 = vld [vmem:[%s13040_s1 + $0x6e8] sm:$0xff]  }
  0xa4   :  { %4952 = vmatmul.mubr.bf16.vlgmr.msra.gmra.mrb[16].mxu1 %v410_v30  ;;  %9607 = vmatpush3.bf16.msra.mxu0 %v10260_v28  ;;  %v10311_v28 = vld [vmem:[%s13040_s1 + $0x668] sm:$0xff]  }
  0xa5   :  { %9629 = vmatpush3.bf16.msra.mxu1 %v10261_v31  ;;  %9608 = vmatprep.subr.bf16.mxu0 %v10262_v32  ;;  %v10313_v30 = vld [vmem:[%s13040_s1 + $0x628] sm:$0xff]   ;;  %v10315_v32 = vld [vmem:[%s13040_s1 + $0x670] sm:$0xff]  }
  0xa6   :  { %9630 = vmatprep.subr.bf16.mxu1 %v10263_v34  ;;  %4991 = vmatprep.mubr.bf16.mxu0 %v413_v3  ;;  %v10314_v31 = vld [vmem:[%s13040_s1 + $0x6a8] sm:$0xff]   ;;  %v10316_v34 = vld [vmem:[%s13040_s1 + $0x6f0] sm:$0xff]   ;;  %v10339_v3 = vld [vmem:[%s13040_s1 + $0x798] sm:$0xff]  }
  0xa7   :  { %5031 = vmatprep.mubr.bf16.mxu1 %v415_v6  ;;  %v10342_v6 = vld [vmem:[%s13040_s1 + $0x720] sm:$0xff]  }
  0xa8   :  { %9609 = vmatpush3.bf16.msra.mxu0 %v10264_v35  ;;  %v10317_v35 = vld [vmem:[%s13040_s1 + $0x630] sm:$0xff]  }
  0xa9   :  { %9631 = vmatpush3.bf16.msra.mxu1 %v10265_v36  ;;  %9610 = vmatprep.subr.bf16.mxu0 %v10266_v37  ;;  %v10318_v36 = vld [vmem:[%s13040_s1 + $0x6b0] sm:$0xff]  }
  0xaa   :  { %9632 = vmatprep.subr.bf16.mxu1 %v10267_v38  ;;  %v30_v37 = vld [vmem:[%s13039_s0 + $0x30] sm:$0xff]  ;;  %v10319_v38 = vld [vmem:[%s13040_s1 + $0x678] sm:$0xff]  }
  0xac   :  { %9611 = vmatpush3.bf16.msra.mxu0 %v10268_v39  ;;  %v165_v39 = vrot.slane %v30_v37, %v10791_v41 }
  0xad   :  { %9633 = vmatpush3.bf16.msra.mxu1 %v10269_v40  ;;  %9612 = vmatprep.subr.bf16.mxu0 %v10270_v42  ;;  %v158_v40 = vcombine.high %v30_v37, %v30_v37  ;;  %v10320_v42 = vld [vmem:[%s13040_s1 + $0x6f8] sm:$0xff]  }
  0xae   :  { %9634 = vmatprep.subr.bf16.mxu1 %v10271_v43  ;;  %v10321_v43 = vld [vmem:[%s13040_s1 + $0x638] sm:$0xff]  }
  0xb0   :  { %9613 = vmatpush3.bf16.msra.mxu0 %v10272_v44  ;;  %v173_v44 = vcombine.high %v165_v39, %v165_v39 }
  0xb1   :  { %9635 = vmatpush3.bf16.msra.mxu1 %v10273_v45  ;;  %9614 = vmatprep.subr.bf16.mxu0 %v10274_v46  ;;  %v172_v45 = vrot.slane %v158_v40, %v10791_v41  ;;  %v10322_v46 = vld [vmem:[%s13040_s1 + $0x6b8] sm:$0xff]  }
  0xb2   :  { %9636 = vmatprep.subr.bf16.mxu1 %v10275_v47  ;;  %v417_v47 = vpack.c.bf16 %v173_v44, %v173_v44  ;;  %v10359_v44 = vld [vmem:[%s13040_s1 + $0x800] sm:$0xff]  }
  0xb4   :  { %9615 = vmatpush3.bf16.msra.mxu0 %v10276_v48  ;;  %v174_v48 = vcombine.high %v172_v45, %v172_v45 }
  0xb5   :  { %9637 = vmatpush3.bf16.msra.mxu1 %v10277_v49  ;;  %9616 = vmatprep.subr.bf16.mxu0 %v10278_v50  ;;  %v10324_v49 = vld [vmem:[%s13040_s1 + $0x740] sm:$0xff]  }
  0xb6   :  { %9638 = vmatprep.subr.bf16.mxu1 %v10279_v51  ;;  %v10325_v50 = vld [vmem:[%s13040_s1 + $0x7c0] sm:$0xff]   ;;  %v419_v51 = vpack.c.bf16 %v174_v48, %v174_v48 }
  0xb7   :  { %v10360_v48 = vld [vmem:[%s13040_s1 + $0x880] sm:$0xff]  }
  0xb8   :  { %9617 = vmatpush3.bf16.msra.mxu0 %v10280_v52  ;;  %v10326_v52 = vld [vmem:[%s13040_s1 + $0x700] sm:$0xff]  }
  0xb9   :  { %9639 = vmatpush3.bf16.msra.mxu1 %v10281_v53  ;;  %9618 = vmatprep.subr.bf16.mxu0 %v10282_v54  ;;  %v416_v53 = vpack.c.bf16 %v165_v39, %v165_v39  ;;  %v418_v54 = vpack.c.bf16 %v172_v45, %v172_v45  ;;  %v10357_v39 = vld [vmem:[%s13040_s1 + $0x840] sm:$0xff]  }
  0xba   :  { %9640 = vmatprep.subr.bf16.mxu1 %v10283_v55  ;;  %v10327_v55 = vld [vmem:[%s13040_s1 + $0x780] sm:$0xff]  }
  0xbc   :  { %9619 = vmatpush3.bf16.msra.mxu0 %v10284_v56  ;;  %v10328_v56 = vld [vmem:[%s13040_s1 + $0x748] sm:$0xff]  }
  0xbd   :  { %9641 = vmatpush3.bf16.msra.mxu1 %v10285_v58  ;;  %9620 = vmatprep.subr.bf16.mxu0 %v10286_v61  ;;  %v10330_v58 = vld [vmem:[%s13040_s1 + $0x708] sm:$0xff]   ;;  %v10333_v61 = vld [vmem:[%s13040_s1 + $0x7d0] sm:$0xff]  }
  0xbe   :  { %9642 = vmatprep.subr.bf16.mxu1 %v10287_v62  ;;  %v10334_v62 = vld [vmem:[%s13040_s1 + $0x710] sm:$0xff]  }
  0xc0   :  { %9621 = vmatpush3.bf16.msra.mxu0 %v10288_v1  ;;  %v10337_v1 = vld [vmem:[%s13040_s1 + $0x7d8] sm:$0xff]  }
  0xc1   :  { %9643 = vmatpush3.bf16.msra.mxu1 %v10289_v2  ;;  %9650 = vmatprep.subr.bf16.mxu0 %v10291_v5  ;;  %v10338_v2 = vld [vmem:[%s13040_s1 + $0x718] sm:$0xff]   ;;  %v10341_v5 = vld [vmem:[%s13040_s1 + $0x7e0] sm:$0xff]  }
  0xc2   :  { %9672 = vmatprep.subr.bf16.mxu1 %v10292_v7  ;;  %v10343_v7 = vld [vmem:[%s13040_s1 + $0x7a0] sm:$0xff]  }
  0xc3   :  { %4992 = vmatmul.mubr.bf16.vlgmr.msra.gmra.mrb[20].mxu0 %v412_v9  ;;  %v10345_v9 = vld [vmem:[%s13040_s1 + $0x7e8] sm:$0xff]  }
  0xc4   :  { %5032 = vmatmul.mubr.bf16.vlgmr.msra.gmra.mrb[20].mxu1 %v414_v10  ;;  %9651 = vmatpush3.bf16.msra.mxu0 %v10293_v8  ;;  %v10344_v8 = vld [vmem:[%s13040_s1 + $0x768] sm:$0xff]  }
  0xc5   :  { %9673 = vmatpush3.bf16.msra.mxu1 %v10294_v11  ;;  %9652 = vmatprep.subr.bf16.mxu0 %v10295_v12  ;;  %v10346_v10 = vld [vmem:[%s13040_s1 + $0x728] sm:$0xff]   ;;  %v10348_v12 = vld [vmem:[%s13040_s1 + $0x770] sm:$0xff]  }
  0xc6   :  { %9674 = vmatprep.subr.bf16.mxu1 %v10296_v13  ;;  %5071 = vmatprep.mubr.bf16.mxu0 %v417_v47  ;;  %v10347_v11 = vld [vmem:[%s13040_s1 + $0x7a8] sm:$0xff]   ;;  %v8713_v13 = vld [vmem:[%s13041_s2] ss:$0 sm:$0xff] }
  0xc7   :  { %5111 = vmatprep.mubr.bf16.mxu1 %v419_v51  ;;  %v10363_v51 = vld [vmem:[%s13040_s1 + $0x808] sm:$0xff]  }
  0xc8   :  { %9653 = vmatpush3.bf16.msra.mxu0 %v10297_v14  ;;  %v10349_v14 = vld [vmem:[%s13040_s1 + $0x7f0] sm:$0xff]  }
  0xc9   :  { %9675 = vmatpush3.bf16.msra.mxu1 %v10298_v15  ;;  %9654 = vmatprep.subr.bf16.mxu0 %v10299_v16 }
  0xca   :  { %9676 = vmatprep.subr.bf16.mxu1 %v10300_v17  ;;  %v10350_v17 = vld [vmem:[%s13040_s1 + $0x730] sm:$0xff]  }
  0xcc   :  { %9655 = vmatpush3.bf16.msra.mxu0 %v10301_v18  ;;  %v10351_v18 = vld [vmem:[%s13040_s1 + $0x7b0] sm:$0xff]  }
  0xcd   :  { %9677 = vmatpush3.bf16.msra.mxu1 %v10302_v19  ;;  %9656 = vmatprep.subr.bf16.mxu0 %v10303_v20 }
  0xce   :  { %9678 = vmatprep.subr.bf16.mxu1 %v10304_v21  ;;  %v10352_v21 = vld [vmem:[%s13040_s1 + $0x778] sm:$0xff]  }
  0xd0   :  { %9657 = vmatpush3.bf16.msra.mxu0 %v10305_v22 }
  0xd1   :  { %9679 = vmatpush3.bf16.msra.mxu1 %v10306_v23  ;;  %9658 = vmatprep.subr.bf16.mxu0 %v10307_v24 }
  0xd2   :  { %9680 = vmatprep.subr.bf16.mxu1 %v10308_v25 }
  0xd4   :  { %9659 = vmatpush3.bf16.msra.mxu0 %v10309_v26  ;;  %v10353_v26 = vld [vmem:[%s13040_s1 + $0x7f8] sm:$0xff]  }
  0xd5   :  { %9681 = vmatpush3.bf16.msra.mxu1 %v10310_v27  ;;  %9660 = vmatprep.subr.bf16.mxu0 %v10311_v28  ;;  %v31_v27 = vld [vmem:[%s13039_s0 + $0x38] sm:$0xff] }
  0xd6   :  { %9682 = vmatprep.subr.bf16.mxu1 %v10312_v29 }
  0xd8   :  { %9661 = vmatpush3.bf16.msra.mxu0 %v10313_v30  ;;  %v182_v30 = vrot.slane %v31_v27, %v10791_v41 }
  0xd9   :  { %9683 = vmatpush3.bf16.msra.mxu1 %v10314_v31  ;;  %9662 = vmatprep.subr.bf16.mxu0 %v10315_v32  ;;  %v175_v31 = vcombine.high %v31_v27, %v31_v27 }
  0xda   :  { %9684 = vmatprep.subr.bf16.mxu1 %v10316_v34  ;;  %v10354_v34 = vld [vmem:[%s13040_s1 + $0x738] sm:$0xff]  }
  0xdb   :  { %v189_v37 = vrot.slane %v175_v31, %v10791_v41  ;;  %v10391_v31 = vld [vmem:[%s13040_s1 + $0x9c0] sm:$0xff]  }
  0xdc   :  { %9663 = vmatpush3.bf16.msra.mxu0 %v10317_v35  ;;  %v10355_v35 = vld [vmem:[%s13040_s1 + $0x7b8] sm:$0xff]  }
  0xdd   :  { %9685 = vmatpush3.bf16.msra.mxu1 %v10318_v36  ;;  %9664 = vmatprep.subr.bf16.mxu0 %v10319_v38  ;;  %v190_v36 = vcombine.high %v182_v30, %v182_v30  ;;  %v422_v47 = vpack.c.bf16 %v189_v37, %v189_v37 }
  0xde   :  { %9686 = vmatprep.subr.bf16.mxu1 %v10320_v42  ;;  %v191_v42 = vcombine.high %v189_v37, %v189_v37 }
  0xdf   :  { %v421_v40 = vpack.c.bf16 %v190_v36, %v190_v36 }
  0xe0   :  { %9665 = vmatpush3.bf16.msra.mxu0 %v10321_v43  ;;  %v10358_v43 = vld [vmem:[%s13040_s1 + $0x8c0] sm:$0xff]   ;;  %v423_v45 = vpack.c.bf16 %v191_v42, %v191_v42  ;;  %v10395_v42 = vld [vmem:[%s13040_s1 + $0x9c8] sm:$0xff]  }
  0xe1   :  { %9687 = vmatpush3.bf16.msra.mxu1 %v10322_v46  ;;  %9694 = vmatprep.subr.bf16.mxu0 %v10324_v49  ;;  %v420_v46 = vpack.c.bf16 %v182_v30, %v182_v30  ;;  %v10361_v49 = vld [vmem:[%s13040_s1 + $0x848] sm:$0xff]   ;;  %v10390_v30 = vld [vmem:[%s13040_s1 + $0x940] sm:$0xff]  }
  0xe2   :  { %9716 = vmatprep.subr.bf16.mxu1 %v10325_v50  ;;  %v10362_v50 = vld [vmem:[%s13040_s1 + $0x8c8] sm:$0xff]  }
  0xe3   :  { %5072 = vmatmul.mubr.bf16.vlgmr.msra.gmra.mrb[24].mxu0 %v416_v53  ;;  %v10365_v53 = vld [vmem:[%s13040_s1 + $0x850] sm:$0xff]  }
  0xe4   :  { %5112 = vmatmul.mubr.bf16.vlgmr.msra.gmra.mrb[24].mxu1 %v418_v54  ;;  %9695 = vmatpush3.bf16.msra.mxu0 %v10326_v52  ;;  %v10364_v52 = vld [vmem:[%s13040_s1 + $0x888] sm:$0xff]   ;;  %v10366_v54 = vld [vmem:[%s13040_s1 + $0x8d0] sm:$0xff]  }
  0xe5   :  { %9717 = vmatpush3.bf16.msra.mxu1 %v10327_v55  ;;  %9696 = vmatprep.subr.bf16.mxu0 %v10328_v56  ;;  %v10367_v55 = vld [vmem:[%s13040_s1 + $0x810] sm:$0xff]  }
  0xe6   :  { %9718 = vmatprep.subr.bf16.mxu1 %v10329_v57  ;;  %5151 = vmatprep.mubr.bf16.mxu0 %v421_v40  ;;  %v10368_v56 = vld [vmem:[%s13040_s1 + $0x890] sm:$0xff]   ;;  %v10369_v57 = vld [vmem:[%s13040_s1 + $0x858] sm:$0xff]   ;;  %v10394_v40 = vld [vmem:[%s13040_s1 + $0x948] sm:$0xff]  }
  0xe7   :  { %5191 = vmatprep.mubr.bf16.mxu1 %v423_v45  ;;  %v10398_v45 = vld [vmem:[%s13040_s1 + $0x950] sm:$0xff]  }
  0xe8   :  { %9697 = vmatpush3.bf16.msra.mxu0 %v10330_v58  ;;  %v10370_v58 = vld [vmem:[%s13040_s1 + $0x8d8] sm:$0xff]  }
  0xe9   :  { %9719 = vmatpush3.bf16.msra.mxu1 %v10331_v59  ;;  %9698 = vmatprep.subr.bf16.mxu0 %v10332_v60  ;;  %v10371_v59 = vld [vmem:[%s13040_s1 + $0x818] sm:$0xff]  }
  0xea   :  { %9720 = vmatprep.subr.bf16.mxu1 %v10333_v61  ;;  %v10372_v60 = vld [vmem:[%s13040_s1 + $0x898] sm:$0xff]   ;;  %v10373_v61 = vld [vmem:[%s13040_s1 + $0x860] sm:$0xff]  }
  0xec   :  { %9699 = vmatpush3.bf16.msra.mxu0 %v10334_v62  ;;  %v10374_v62 = vld [vmem:[%s13040_s1 + $0x8e0] sm:$0xff]  }
  0xed   :  { %9721 = vmatpush3.bf16.msra.mxu1 %v10335_v63  ;;  %9700 = vmatprep.subr.bf16.mxu0 %v10336_v0  ;;  %v10375_v63 = vld [vmem:[%s13040_s1 + $0x820] sm:$0xff]  }
  0xee   :  { %9722 = vmatprep.subr.bf16.mxu1 %v10337_v1  ;;  %v10376_v0 = vld [vmem:[%s13040_s1 + $0x8a0] sm:$0xff]   ;;  %v10377_v1 = vld [vmem:[%s13040_s1 + $0x868] sm:$0xff]  }
  0xf0   :  { %9701 = vmatpush3.bf16.msra.mxu0 %v10338_v2  ;;  %v10378_v2 = vld [vmem:[%s13040_s1 + $0x8e8] sm:$0xff]  }
  0xf1   :  { %9723 = vmatpush3.bf16.msra.mxu1 %v10339_v3  ;;  %9702 = vmatprep.subr.bf16.mxu0 %v10340_v4  ;;  %v10379_v3 = vld [vmem:[%s13040_s1 + $0x828] sm:$0xff]  }
  0xf2   :  { %9724 = vmatprep.subr.bf16.mxu1 %v10341_v5  ;;  %v10380_v4 = vld [vmem:[%s13040_s1 + $0x8a8] sm:$0xff]   ;;  %v10381_v5 = vld [vmem:[%s13040_s1 + $0x870] sm:$0xff]  }
  0xf4   :  { %9703 = vmatpush3.bf16.msra.mxu0 %v10342_v6  ;;  %v10382_v6 = vld [vmem:[%s13040_s1 + $0x8f0] sm:$0xff]  }
  0xf5   :  { %9725 = vmatpush3.bf16.msra.mxu1 %v10343_v7  ;;  %9704 = vmatprep.subr.bf16.mxu0 %v10344_v8 }
  0xf6   :  { %9726 = vmatprep.subr.bf16.mxu1 %v10345_v9  ;;  %v9402_v15 = vpop.f32.mrb[0].mxu0  ;;  %v10383_v9 = vld [vmem:[%s13040_s1 + $0x830] sm:$0xff]  }
  0xf7   :  { %v9424_v16 = vpop.f32.mrb[0].mxu1  ;;  %v9403_v19 = vpop.f32.mrb[1].mxu0 }
  0xf8   :  { %v9425_v20 = vpop.f32.mrb[1].mxu1  ;;  %v9404_v22 = vadd.f32 %v9403_v19, %v9402_v15  ;;  %v9405_v24 = vpop.f32.mrb[2].mxu0  ;;  %9705 = vmatpush3.bf16.msra.mxu0 %v10346_v10  ;;  %v10384_v10 = vld [vmem:[%s13040_s1 + $0x8b0] sm:$0xff]  }
  0xf9   :  { %v9426_v23 = vadd.f32 %v9425_v20, %v9424_v16  ;;  %v9427_v25 = vpop.f32.mrb[2].mxu1  ;;  %9727 = vmatpush3.bf16.msra.mxu1 %v10347_v11  ;;  %v9406_v28 = vpop.f32.mrb[3].mxu0  ;;  %9706 = vmatprep.subr.bf16.mxu0 %v10348_v12  ;;  %v10386_v20 = vld [vmem:[%s13040_s1 + $0x8f8] sm:$0xff]  }
  0xfa   :  { %v9428_v29 = vpop.f32.mrb[3].mxu1  ;;  %9728 = vmatprep.subr.bf16.mxu1 %v10349_v14  ;;  %v4594_v32 = vadd.f32 %v9404_v22, %v8713_v13  ;;  %v10385_v13 = vld [vmem:[%s13040_s1 + $0x878] sm:$0xff]  }
  0xfc   :  { %v11499_v38 = vadd.f32 %v9426_v23, %v4594_v32  ;;  %9707 = vmatpush3.bf16.msra.mxu0 %v10350_v17  ;;  %v10387_v23 = vld [vmem:[%s13040_s1 + $0x838] sm:$0xff]  }
  0xfd   :  { %9729 = vmatpush3.bf16.msra.mxu1 %v10351_v18  ;;  %9708 = vmatprep.subr.bf16.mxu0 %v10352_v21  ;;  %v32_v21 = vld [vmem:[%s13039_s0 + $0x40] sm:$0xff] }
  0xfe   :  { %9730 = vmatprep.subr.bf16.mxu1 %v10353_v26  ;;  %v199_v24 = vrot.slane %v32_v21, %v10791_v41  ;;  %v192_v25 = vcombine.high %v32_v21, %v32_v21  ;;  %v10388_v26 = vld [vmem:[%s13040_s1 + $0x8b8] sm:$0xff]  }
 0x100   :  { %9709 = vmatpush3.bf16.msra.mxu0 %v10354_v34  ;;  %v207_v28 = vcombine.high %v199_v24, %v199_v24  ;;  %v206_v29 = vrot.slane %v192_v25, %v10791_v41  ;;  %v424_v36 = vpack.c.bf16 %v199_v24, %v199_v24 }
 0x101   :  { %9731 = vmatpush3.bf16.msra.mxu1 %v10355_v35  ;;  %9738 = vmatprep.subr.bf16.mxu0 %v10357_v39  ;;  %v10392_v35 = vld [vmem:[%s13040_s1 + $0x900] sm:$0xff]  }
 0x102   :  { %9760 = vmatprep.subr.bf16.mxu1 %v10358_v43  ;;  %v425_v32 = vpack.c.bf16 %v207_v28, %v207_v28  ;;  %v208_v34 = vcombine.high %v206_v29, %v206_v29  ;;  %v426_v37 = vpack.c.bf16 %v206_v29, %v206_v29  ;;  %v10396_v43 = vld [vmem:[%s13040_s1 + $0x908] sm:$0xff]   ;;  %v10426_v29 = vld [vmem:[%s13040_s1 + $0xa80] sm:$0xff]  }
 0x103   :  { %5152 = vmatmul.mubr.bf16.vlgmr.msra.gmra.mrb[28].mxu0 %v420_v46  ;;  %v10399_v46 = vld [vmem:[%s13040_s1 + $0x9d0] sm:$0xff]  }
 0x104   :  { %5192 = vmatmul.mubr.bf16.vlgmr.msra.gmra.mrb[28].mxu1 %v422_v47  ;;  %9739 = vmatpush3.bf16.msra.mxu0 %v10359_v44  ;;  %v427_v39 = vpack.c.bf16 %v208_v34, %v208_v34  ;;  %v10397_v44 = vld [vmem:[%s13040_s1 + $0x988] sm:$0xff]   ;;  %v10400_v47 = vld [vmem:[%s13040_s1 + $0x910] sm:$0xff]  }
 0x105   :  { %9761 = vmatpush3.bf16.msra.mxu1 %v10360_v48  ;;  %9740 = vmatprep.subr.bf16.mxu0 %v10361_v49  ;;  %v10401_v48 = vld [vmem:[%s13040_s1 + $0x990] sm:$0xff]   ;;  %v10402_v49 = vld [vmem:[%s13040_s1 + $0x958] sm:$0xff]   ;;  %v10429_v34 = vld [vmem:[%s13040_s1 + $0xa08] sm:$0xff]  }
 0x106   :  { %9762 = vmatprep.subr.bf16.mxu1 %v10362_v50  ;;  %5231 = vmatprep.mubr.bf16.mxu0 %v425_v32  ;;  %v10403_v50 = vld [vmem:[%s13040_s1 + $0x9d8] sm:$0xff]   ;;  %v10428_v32 = vld [vmem:[%s13040_s1 + $0xac8] sm:$0xff]  }
 0x107   :  { %5271 = vmatprep.mubr.bf16.mxu1 %v427_v39  ;;  %v10434_v39 = vld [vmem:[%s13040_s1 + $0xa90] sm:$0xff]  }
 0x108   :  { %9741 = vmatpush3.bf16.msra.mxu0 %v10363_v51  ;;  %v10404_v51 = vld [vmem:[%s13040_s1 + $0x918] sm:$0xff]  }
 0x109   :  { %9763 = vmatpush3.bf16.msra.mxu1 %v10364_v52  ;;  %9742 = vmatprep.subr.bf16.mxu0 %v10365_v53  ;;  %v10405_v52 = vld [vmem:[%s13040_s1 + $0x998] sm:$0xff]   ;;  %v10406_v53 = vld [vmem:[%s13040_s1 + $0x960] sm:$0xff]  }
 0x10a   :  { %9764 = vmatprep.subr.bf16.mxu1 %v10366_v54  ;;  %v10407_v54 = vld [vmem:[%s13040_s1 + $0x9e0] sm:$0xff]  }
 0x10c   :  { %9743 = vmatpush3.bf16.msra.mxu0 %v10367_v55  ;;  %v10408_v55 = vld [vmem:[%s13040_s1 + $0x920] sm:$0xff]  }
 0x10d   :  { %9765 = vmatpush3.bf16.msra.mxu1 %v10368_v56  ;;  %9744 = vmatprep.subr.bf16.mxu0 %v10369_v57  ;;  %v10409_v56 = vld [vmem:[%s13040_s1 + $0x9a0] sm:$0xff]   ;;  %v10410_v57 = vld [vmem:[%s13040_s1 + $0x968] sm:$0xff]  }
 0x10e   :  { %9766 = vmatprep.subr.bf16.mxu1 %v10370_v58  ;;  %v10411_v58 = vld [vmem:[%s13040_s1 + $0x9e8] sm:$0xff]  }
 0x110   :  { %9745 = vmatpush3.bf16.msra.mxu0 %v10371_v59  ;;  %v10412_v59 = vld [vmem:[%s13040_s1 + $0x928] sm:$0xff]  }
 0x111   :  { %9767 = vmatpush3.bf16.msra.mxu1 %v10372_v60  ;;  %9746 = vmatprep.subr.bf16.mxu0 %v10373_v61  ;;  %v10413_v60 = vld [vmem:[%s13040_s1 + $0x9a8] sm:$0xff]   ;;  %v10414_v61 = vld [vmem:[%s13040_s1 + $0x970] sm:$0xff]  }
 0x112   :  { %9768 = vmatprep.subr.bf16.mxu1 %v10374_v62  ;;  %v10415_v62 = vld [vmem:[%s13040_s1 + $0x9f0] sm:$0xff]  }
 0x114   :  { %9747 = vmatpush3.bf16.msra.mxu0 %v10375_v63 }
 0x115   :  { %9769 = vmatpush3.bf16.msra.mxu1 %v10376_v0  ;;  %9748 = vmatprep.subr.bf16.mxu0 %v10377_v1  ;;  %v10416_v1 = vld [vmem:[%s13040_s1 + $0x930] sm:$0xff]  }
 0x116   :  { %9770 = vmatprep.subr.bf16.mxu1 %v10378_v2  ;;  %v9446_v7 = vpop.f32.mrb[4].mxu0  ;;  %v10417_v2 = vld [vmem:[%s13040_s1 + $0x9b0] sm:$0xff]  }
 0x117   :  { %v9468_v8 = vpop.f32.mrb[4].mxu1  ;;  %v9447_v11 = vpop.f32.mrb[5].mxu0 }
 0x118   :  { %v9469_v12 = vpop.f32.mrb[5].mxu1  ;;  %v9448_v14 = vadd.f32 %v9447_v11, %v9446_v7  ;;  %v9449_v16 = vpop.f32.mrb[6].mxu0  ;;  %9749 = vmatpush3.bf16.msra.mxu0 %v10379_v3  ;;  %v10418_v11 = vld [vmem:[%s13040_s1 + $0x978] sm:$0xff]  }
 0x119   :  { %v9470_v15 = vadd.f32 %v9469_v12, %v9468_v8  ;;  %v9471_v17 = vpop.f32.mrb[6].mxu1  ;;  %9771 = vmatpush3.bf16.msra.mxu1 %v10380_v4  ;;  %v9450_v18 = vpop.f32.mrb[7].mxu0  ;;  %9750 = vmatprep.subr.bf16.mxu0 %v10381_v5  ;;  %v10419_v12 = vld [vmem:[%s13040_s1 + $0x9f8] sm:$0xff]  }
 0x11a   :  { %v9472_v19 = vpop.f32.mrb[7].mxu1  ;;  %9772 = vmatprep.subr.bf16.mxu1 %v10382_v6  ;;  %v4674_v22 = vadd.f32 %v9448_v14, %v11499_v38  ;;  %v10393_v38 = vld [vmem:[%s13040_s1 + $0x980] sm:$0xff]   ;;  %v33_v14 = vld [vmem:[%s13039_s0 + $0x48] sm:$0xff] }
 0x11b   :  { %v216_v16 = vrot.slane %v33_v14, %v10791_v41  ;;  %v209_v17 = vcombine.high %v33_v14, %v33_v14  ;;  %v10421_v19 = vld [vmem:[%s13040_s1 + $0x9b8] sm:$0xff]  }
 0x11c   :  { %v11602_v27 = vadd.f32 %v9470_v15, %v4674_v22  ;;  %9751 = vmatpush3.bf16.msra.mxu0 %v10383_v9  ;;  %v10420_v15 = vld [vmem:[%s13040_s1 + $0x938] sm:$0xff]   ;;  %v10423_v22 = vld [vmem:[%s13040_s1 + $0xa40] sm:$0xff]  }
 0x11d   :  { %9773 = vmatpush3.bf16.msra.mxu1 %v10384_v10  ;;  %9752 = vmatprep.subr.bf16.mxu0 %v10385_v13  ;;  %v223_v21 = vrot.slane %v209_v17, %v10791_v41  ;;  %v10458_v17 = vld [vmem:[%s13040_s1 + $0xb00] sm:$0xff]  }
 0x11e   :  { %9774 = vmatprep.subr.bf16.mxu1 %v10386_v20  ;;  %v224_v20 = vcombine.high %v216_v16, %v216_v16 }
 0x11f   :  { %v225_v25 = vcombine.high %v223_v21, %v223_v21  ;;  %v430_v28 = vpack.c.bf16 %v223_v21, %v223_v21 }
 0x120   :  { %9753 = vmatpush3.bf16.msra.mxu0 %v10387_v23  ;;  %v10424_v23 = vld [vmem:[%s13040_s1 + $0xac0] sm:$0xff]   ;;  %v429_v24 = vpack.c.bf16 %v224_v20, %v224_v20 }
 0x121   :  { %9775 = vmatpush3.bf16.msra.mxu1 %v10388_v26  ;;  %9782 = vmatprep.subr.bf16.mxu0 %v10390_v30  ;;  %v428_v26 = vpack.c.bf16 %v216_v16, %v216_v16  ;;  %v431_v30 = vpack.c.bf16 %v225_v25, %v225_v25  ;;  %v10459_v20 = vld [vmem:[%s13040_s1 + $0xb80] sm:$0xff]   ;;  %v10462_v25 = vld [vmem:[%s13040_s1 + $0xb08] sm:$0xff]  }
 0x122   :  { %9804 = vmatprep.subr.bf16.mxu1 %v10391_v31  ;;  %v10427_v31 = vld [vmem:[%s13040_s1 + $0xa48] sm:$0xff]  }
 0x123   :  { %5232 = vmatmul.mubr.bf16.vlgmr.msra.gmra.mrb[32].mxu0 %v424_v36  ;;  %v10431_v36 = vld [vmem:[%s13040_s1 + $0xa50] sm:$0xff]  }
 0x124   :  { %5272 = vmatmul.mubr.bf16.vlgmr.msra.gmra.mrb[32].mxu1 %v426_v37  ;;  %9783 = vmatpush3.bf16.msra.mxu0 %v10392_v35  ;;  %v10430_v35 = vld [vmem:[%s13040_s1 + $0xa88] sm:$0xff]   ;;  %v10432_v37 = vld [vmem:[%s13040_s1 + $0xad0] sm:$0xff]  }
 0x125   :  { %9805 = vmatpush3.bf16.msra.mxu1 %v10393_v38  ;;  %9784 = vmatprep.subr.bf16.mxu0 %v10394_v40  ;;  %v10433_v38 = vld [vmem:[%s13040_s1 + $0xa10] sm:$0xff]   ;;  %v10435_v40 = vld [vmem:[%s13040_s1 + $0xa58] sm:$0xff]  }
 0x126   :  { %9806 = vmatprep.subr.bf16.mxu1 %v10395_v42  ;;  %5311 = vmatprep.mubr.bf16.mxu0 %v429_v24  ;;  %v10436_v42 = vld [vmem:[%s13040_s1 + $0xad8] sm:$0xff]   ;;  %v10461_v24 = vld [vmem:[%s13040_s1 + $0xbc8] sm:$0xff]  }
 0x127   :  { %5351 = vmatprep.mubr.bf16.mxu1 %v431_v30  ;;  %v10467_v30 = vld [vmem:[%s13040_s1 + $0xb90] sm:$0xff]  }
 0x128   :  { %9785 = vmatpush3.bf16.msra.mxu0 %v10396_v43  ;;  %v10437_v43 = vld [vmem:[%s13040_s1 + $0xa18] sm:$0xff]  }
 0x129   :  { %9807 = vmatpush3.bf16.msra.mxu1 %v10397_v44  ;;  %9786 = vmatprep.subr.bf16.mxu0 %v10398_v45  ;;  %v10438_v44 = vld [vmem:[%s13040_s1 + $0xa98] sm:$0xff]   ;;  %v10439_v45 = vld [vmem:[%s13040_s1 + $0xa60] sm:$0xff]  }
 0x12a   :  { %9808 = vmatprep.subr.bf16.mxu1 %v10399_v46  ;;  %v10440_v46 = vld [vmem:[%s13040_s1 + $0xae0] sm:$0xff]  }
 0x12c   :  { %9787 = vmatpush3.bf16.msra.mxu0 %v10400_v47  ;;  %v10441_v47 = vld [vmem:[%s13040_s1 + $0xa20] sm:$0xff]  }
 0x12d   :  { %9809 = vmatpush3.bf16.msra.mxu1 %v10401_v48  ;;  %9788 = vmatprep.subr.bf16.mxu0 %v10402_v49  ;;  %v10442_v48 = vld [vmem:[%s13040_s1 + $0xaa0] sm:$0xff]   ;;  %v10443_v49 = vld [vmem:[%s13040_s1 + $0xa68] sm:$0xff]  }
 0x12e   :  { %9810 = vmatprep.subr.bf16.mxu1 %v10403_v50  ;;  %v10444_v50 = vld [vmem:[%s13040_s1 + $0xae8] sm:$0xff]  }
 0x130   :  { %9789 = vmatpush3.bf16.msra.mxu0 %v10404_v51  ;;  %v10445_v51 = vld [vmem:[%s13040_s1 + $0xa28] sm:$0xff]  }
 0x131   :  { %9811 = vmatpush3.bf16.msra.mxu1 %v10405_v52  ;;  %9790 = vmatprep.subr.bf16.mxu0 %v10406_v53  ;;  %v10446_v52 = vld [vmem:[%s13040_s1 + $0xaa8] sm:$0xff]   ;;  %v10447_v53 = vld [vmem:[%s13040_s1 + $0xa70] sm:$0xff]  }
 0x132   :  { %9812 = vmatprep.subr.bf16.mxu1 %v10407_v54 }
 0x134   :  { %9791 = vmatpush3.bf16.msra.mxu0 %v10408_v55 }
 0x135   :  { %9813 = vmatpush3.bf16.msra.mxu1 %v10409_v56  ;;  %9792 = vmatprep.subr.bf16.mxu0 %v10410_v57  ;;  %v10448_v56 = vld [vmem:[%s13040_s1 + $0xaf0] sm:$0xff]  }
 0x136   :  { %9814 = vmatprep.subr.bf16.mxu1 %v10411_v58  ;;  %v9490_v63 = vpop.f32.mrb[8].mxu0  ;;  %v10449_v57 = vld [vmem:[%s13040_s1 + $0xa30] sm:$0xff]  }
 0x137   :  { %v9512_v0 = vpop.f32.mrb[8].mxu1  ;;  %v9491_v3 = vpop.f32.mrb[9].mxu0 }
 0x138   :  { %v9513_v4 = vpop.f32.mrb[9].mxu1  ;;  %v9492_v5 = vadd.f32 %v9491_v3, %v9490_v63  ;;  %v9493_v7 = vpop.f32.mrb[10].mxu0  ;;  %9793 = vmatpush3.bf16.msra.mxu0 %v10412_v59  ;;  %v10451_v3 = vld [vmem:[%s13040_s1 + $0xa78] sm:$0xff]  }
 0x139   :  { %v9514_v6 = vadd.f32 %v9513_v4, %v9512_v0  ;;  %v9515_v8 = vpop.f32.mrb[10].mxu1  ;;  %9815 = vmatpush3.bf16.msra.mxu1 %v10413_v60  ;;  %v9494_v9 = vpop.f32.mrb[11].mxu0  ;;  %9794 = vmatprep.subr.bf16.mxu0 %v10414_v61  ;;  %v10450_v60 = vld [vmem:[%s13040_s1 + $0xab0] sm:$0xff]   ;;  %v10452_v4 = vld [vmem:[%s13040_s1 + $0xaf8] sm:$0xff]  }
 0x13a   :  { %v9516_v10 = vpop.f32.mrb[11].mxu1  ;;  %9816 = vmatprep.subr.bf16.mxu1 %v10415_v62  ;;  %v4754_v13 = vadd.f32 %v9492_v5, %v11602_v27  ;;  %v10425_v27 = vld [vmem:[%s13040_s1 + $0xa00] sm:$0xff]   ;;  %v34_v7 = vld [vmem:[%s13039_s0 + $0x50] sm:$0xff]  ;;  %v10454_v9 = vld [vmem:[%s13040_s1 + $0xab8] sm:$0xff]  }
 0x13b   :  { %v233_v10 = vrot.slane %v34_v7, %v10791_v41 }
 0x13c   :  { %v11703_v18 = vadd.f32 %v9514_v6, %v4754_v13  ;;  %9795 = vmatpush3.bf16.msra.mxu0 %v10416_v1  ;;  %v10453_v6 = vld [vmem:[%s13040_s1 + $0xa38] sm:$0xff]  }
 0x13d   :  { %9817 = vmatpush3.bf16.msra.mxu1 %v10417_v2  ;;  %9796 = vmatprep.subr.bf16.mxu0 %v10418_v11  ;;  %v226_v11 = vcombine.high %v34_v7, %v34_v7  ;;  %v241_v13 = vcombine.high %v233_v10, %v233_v10  ;;  %v432_v16 = vpack.c.bf16 %v233_v10, %v233_v10  ;;  %v10490_v7 = vld [vmem:[%s13040_s1 + $0xcc0] sm:$0xff]  }
 0x13e   :  { %9818 = vmatprep.subr.bf16.mxu1 %v10419_v12  ;;  %v10456_v12 = vld [vmem:[%s13040_s1 + $0xb40] sm:$0xff]  }
 0x13f   :  { %v240_v14 = vrot.slane %v226_v11, %v10791_v41 }
 0x140   :  { %9797 = vmatpush3.bf16.msra.mxu0 %v10420_v15  ;;  %v10457_v15 = vld [vmem:[%s13040_s1 + $0xbc0] sm:$0xff]  }
 0x141   :  { %9819 = vmatpush3.bf16.msra.mxu1 %v10421_v19  ;;  %9826 = vmatprep.subr.bf16.mxu0 %v10423_v22  ;;  %v242_v19 = vcombine.high %v240_v14, %v240_v14  ;;  %v434_v21 = vpack.c.bf16 %v240_v14, %v240_v14  ;;  %v10460_v22 = vld [vmem:[%s13040_s1 + $0xb48] sm:$0xff]  }
 0x142   :  { %9848 = vmatprep.subr.bf16.mxu1 %v10424_v23  ;;  %v10493_v14 = vld [vmem:[%s13040_s1 + $0xc48] sm:$0xff]  }
 0x143   :  { %5312 = vmatmul.mubr.bf16.vlgmr.msra.gmra.mrb[36].mxu0 %v428_v26  ;;  %v435_v23 = vpack.c.bf16 %v242_v19, %v242_v19  ;;  %v10463_v26 = vld [vmem:[%s13040_s1 + $0xb88] sm:$0xff]   ;;  %v10497_v19 = vld [vmem:[%s13040_s1 + $0xc50] sm:$0xff]  }
 0x144   :  { %5352 = vmatmul.mubr.bf16.vlgmr.msra.gmra.mrb[36].mxu1 %v430_v28  ;;  %9827 = vmatpush3.bf16.msra.mxu0 %v10425_v27  ;;  %v10464_v27 = vld [vmem:[%s13040_s1 + $0xb50] sm:$0xff]  }
 0x145   :  { %9849 = vmatpush3.bf16.msra.mxu1 %v10426_v29  ;;  %9828 = vmatprep.subr.bf16.mxu0 %v10427_v31  ;;  %v10465_v28 = vld [vmem:[%s13040_s1 + $0xbd0] sm:$0xff]   ;;  %v10468_v31 = vld [vmem:[%s13040_s1 + $0xb58] sm:$0xff]  }
 0x146   :  { %9850 = vmatprep.subr.bf16.mxu1 %v10428_v32  ;;  %5431 = vmatprep.mubr.bf16.mxu1 %v435_v23  ;;  %v10466_v29 = vld [vmem:[%s13040_s1 + $0xb10] sm:$0xff]   ;;  %v10469_v32 = vld [vmem:[%s13040_s1 + $0xbd8] sm:$0xff]  }
 0x147   :  { %v10501_v23 = vld [vmem:[%s13040_s1 + $0xc58] sm:$0xff]  }
 0x148   :  { %9829 = vmatpush3.bf16.msra.mxu0 %v10429_v34  ;;  %v10470_v34 = vld [vmem:[%s13040_s1 + $0xb18] sm:$0xff]  }
 0x149   :  { %9851 = vmatpush3.bf16.msra.mxu1 %v10430_v35  ;;  %9830 = vmatprep.subr.bf16.mxu0 %v10431_v36  ;;  %v10471_v35 = vld [vmem:[%s13040_s1 + $0xb98] sm:$0xff]   ;;  %v10472_v36 = vld [vmem:[%s13040_s1 + $0xb60] sm:$0xff]  }
 0x14a   :  { %9852 = vmatprep.subr.bf16.mxu1 %v10432_v37  ;;  %v10473_v37 = vld [vmem:[%s13040_s1 + $0xbe0] sm:$0xff]  }
 0x14c   :  { %9831 = vmatpush3.bf16.msra.mxu0 %v10433_v38  ;;  %v10474_v38 = vld [vmem:[%s13040_s1 + $0xb20] sm:$0xff]  }
 0x14d   :  { %9853 = vmatpush3.bf16.msra.mxu1 %v10434_v39  ;;  %9832 = vmatprep.subr.bf16.mxu0 %v10435_v40  ;;  %v10475_v39 = vld [vmem:[%s13040_s1 + $0xba0] sm:$0xff]   ;;  %v10476_v40 = vld [vmem:[%s13040_s1 + $0xb68] sm:$0xff]  }
 0x14e   :  { %9854 = vmatprep.subr.bf16.mxu1 %v10436_v42  ;;  %v10477_v42 = vld [vmem:[%s13040_s1 + $0xbe8] sm:$0xff]  }
 0x150   :  { %9833 = vmatpush3.bf16.msra.mxu0 %v10437_v43  ;;  %v10478_v43 = vld [vmem:[%s13040_s1 + $0xb28] sm:$0xff]  }
 0x151   :  { %9855 = vmatpush3.bf16.msra.mxu1 %v10438_v44  ;;  %9834 = vmatprep.subr.bf16.mxu0 %v10439_v45  ;;  %v10479_v44 = vld [vmem:[%s13040_s1 + $0xba8] sm:$0xff]   ;;  %v10480_v45 = vld [vmem:[%s13040_s1 + $0xb70] sm:$0xff]  }
 0x152   :  { %9856 = vmatprep.subr.bf16.mxu1 %v10440_v46 }
 0x154   :  { %9835 = vmatpush3.bf16.msra.mxu0 %v10441_v47 }
 0x155   :  { %9857 = vmatpush3.bf16.msra.mxu1 %v10442_v48  ;;  %9836 = vmatprep.subr.bf16.mxu0 %v10443_v49  ;;  %v10481_v48 = vld [vmem:[%s13040_s1 + $0xbf0] sm:$0xff]  }
 0x156   :  { %v9534_v54 = vpop.f32.mrb[12].mxu0  ;;  %9858 = vmatprep.subr.bf16.mxu1 %v10444_v50  ;;  %v10482_v49 = vld [vmem:[%s13040_s1 + $0xb30] sm:$0xff]  }
 0x157   :  { %v9556_v55 = vpop.f32.mrb[12].mxu1  ;;  %v9535_v58 = vpop.f32.mrb[13].mxu0 }
 0x158   :  { %v9557_v59 = vpop.f32.mrb[13].mxu1  ;;  %v9536_v61 = vadd.f32 %v9535_v58, %v9534_v54  ;;  %v9537_v63 = vpop.f32.mrb[14].mxu0  ;;  %9837 = vmatpush3.bf16.msra.mxu0 %v10445_v51  ;;  %v10483_v58 = vld [vmem:[%s13040_s1 + $0xbb0] sm:$0xff]  }
 0x159   :  { %v9558_v62 = vadd.f32 %v9557_v59, %v9556_v55  ;;  %v9559_v0 = vpop.f32.mrb[14].mxu1  ;;  %9859 = vmatpush3.bf16.msra.mxu1 %v10446_v52  ;;  %v9538_v1 = vpop.f32.mrb[15].mxu0  ;;  %9838 = vmatprep.subr.bf16.mxu0 %v10447_v53  ;;  %v10484_v59 = vld [vmem:[%s13040_s1 + $0xb78] sm:$0xff]  }
 0x15a   :  { %v9560_v2 = vpop.f32.mrb[15].mxu1  ;;  %v4834_v5 = vadd.f32 %v9536_v61, %v11703_v18  ;;  %9860 = vmatprep.subr.bf16.mxu1 %v10448_v56  ;;  %v433_v18 = vpack.c.bf16 %v241_v13, %v241_v13  ;;  %v10485_v61 = vld [vmem:[%s13040_s1 + $0xbf8] sm:$0xff]  }
 0x15b   :  { %v10486_v63 = vld [vmem:[%s13040_s1 + $0xb38] sm:$0xff]  }
 0x15c   :  { %v11806_v8 = vadd.f32 %v9558_v62, %v4834_v5  ;;  %9839 = vmatpush3.bf16.msra.mxu0 %v10449_v57  ;;  %5391 = vmatprep.mubr.bf16.mxu0 %v433_v18  ;;  %v35_v0 = vld [vmem:[%s13039_s0 + $0x58] sm:$0xff]  ;;  %v10496_v18 = vld [vmem:[%s13040_s1 + $0xc88] sm:$0xff]  }
 0x15d   :  { %9861 = vmatpush3.bf16.msra.mxu1 %v10450_v60  ;;  %9840 = vmatprep.subr.bf16.mxu0 %v10451_v3  ;;  %v250_v1 = vrot.slane %v35_v0, %v10791_v41  ;;  %v243_v2 = vcombine.high %v35_v0, %v35_v0  ;;  %v10489_v3 = vld [vmem:[%s13040_s1 + $0xc40] sm:$0xff]  }
 0x15e   :  { %9862 = vmatprep.subr.bf16.mxu1 %v10452_v4  ;;  %v10487_v4 = vld [vmem:[%s13040_s1 + $0xbb8] sm:$0xff]  }
 0x15f   :  { %v258_v5 = vcombine.high %v250_v1, %v250_v1 }
 0x160   :  { %9841 = vmatpush3.bf16.msra.mxu0 %v10453_v6  ;;  %v257_v6 = vrot.slane %v243_v2, %v10791_v41 }
 0x161   :  { %9863 = vmatpush3.bf16.msra.mxu1 %v10454_v9  ;;  %9870 = vmatprep.subr.bf16.mxu0 %v10456_v12  ;;  %v10491_v9 = vld [vmem:[%s13040_s1 + $0xc00] sm:$0xff]   ;;  %v437_v10 = vpack.c.bf16 %v258_v5, %v258_v5 }
 0x162   :  { %9892 = vmatprep.subr.bf16.mxu1 %v10457_v15  ;;  %v259_v11 = vcombine.high %v257_v6, %v257_v6  ;;  %v10492_v12 = vld [vmem:[%s13040_s1 + $0xc80] sm:$0xff]   ;;  %v438_v13 = vpack.c.bf16 %v257_v6, %v257_v6  ;;  %v10526_v6 = vld [vmem:[%s13040_s1 + $0xd48] sm:$0xff]  }
 0x163   :  { %5392 = vmatmul.mubr.bf16.vlgmr.msra.gmra.mrb[40].mxu0 %v432_v16  ;;  %v10494_v16 = vld [vmem:[%s13040_s1 + $0xcc8] sm:$0xff]  }
 0x164   :  { %9871 = vmatpush3.bf16.msra.mxu0 %v10458_v17  ;;  %5432 = vmatmul.mubr.bf16.vlgmr.msra.gmra.mrb[40].mxu1 %v434_v21  ;;  %v439_v15 = vpack.c.bf16 %v259_v11, %v259_v11  ;;  %v10495_v17 = vld [vmem:[%s13040_s1 + $0xc08] sm:$0xff]   ;;  %v10499_v21 = vld [vmem:[%s13040_s1 + $0xc10] sm:$0xff]  }
 0x165   :  { %9872 = vmatprep.subr.bf16.mxu0 %v10460_v22  ;;  %9893 = vmatpush3.bf16.msra.mxu1 %v10459_v20  ;;  %v10498_v20 = vld [vmem:[%s13040_s1 + $0xcd0] sm:$0xff]  }
 0x166   :  { %9894 = vmatprep.subr.bf16.mxu1 %v10461_v24  ;;  %5471 = vmatprep.mubr.bf16.mxu0 %v437_v10  ;;  %v10500_v22 = vld [vmem:[%s13040_s1 + $0xc90] sm:$0xff]   ;;  %v10502_v24 = vld [vmem:[%s13040_s1 + $0xcd8] sm:$0xff]   ;;  %v10529_v10 = vld [vmem:[%s13040_s1 + $0xd88] sm:$0xff]  }
 0x167   :  { %5511 = vmatprep.mubr.bf16.mxu1 %v439_v15  ;;  %v10530_v11 = vld [vmem:[%s13040_s1 + $0xd50] sm:$0xff]   ;;  %v10534_v15 = vld [vmem:[%s13040_s1 + $0xd58] sm:$0xff]  }
 0x168   :  { %9873 = vmatpush3.bf16.msra.mxu0 %v10462_v25  ;;  %v10503_v25 = vld [vmem:[%s13040_s1 + $0xc18] sm:$0xff]  }
 0x169   :  { %9874 = vmatprep.subr.bf16.mxu0 %v10464_v27  ;;  %9895 = vmatpush3.bf16.msra.mxu1 %v10463_v26  ;;  %v10504_v26 = vld [vmem:[%s13040_s1 + $0xc98] sm:$0xff]   ;;  %v10505_v27 = vld [vmem:[%s13040_s1 + $0xc60] sm:$0xff]  }
 0x16a   :  { %9896 = vmatprep.subr.bf16.mxu1 %v10465_v28  ;;  %v10506_v28 = vld [vmem:[%s13040_s1 + $0xce0] sm:$0xff]  }
 0x16c   :  { %9875 = vmatpush3.bf16.msra.mxu0 %v10466_v29  ;;  %v10507_v29 = vld [vmem:[%s13040_s1 + $0xc20] sm:$0xff]  }
 0x16d   :  { %9876 = vmatprep.subr.bf16.mxu0 %v10468_v31  ;;  %9897 = vmatpush3.bf16.msra.mxu1 %v10467_v30  ;;  %v10508_v30 = vld [vmem:[%s13040_s1 + $0xca0] sm:$0xff]   ;;  %v10509_v31 = vld [vmem:[%s13040_s1 + $0xc68] sm:$0xff]  }
 0x16e   :  { %9898 = vmatprep.subr.bf16.mxu1 %v10469_v32  ;;  %v10510_v32 = vld [vmem:[%s13040_s1 + $0xce8] sm:$0xff]  }
 0x170   :  { %9877 = vmatpush3.bf16.msra.mxu0 %v10470_v34  ;;  %v10511_v34 = vld [vmem:[%s13040_s1 + $0xc28] sm:$0xff]  }
 0x171   :  { %9878 = vmatprep.subr.bf16.mxu0 %v10472_v36  ;;  %9899 = vmatpush3.bf16.msra.mxu1 %v10471_v35  ;;  %v10512_v35 = vld [vmem:[%s13040_s1 + $0xca8] sm:$0xff]  }
 0x172   :  { %9900 = vmatprep.subr.bf16.mxu1 %v10473_v37 }
 0x174   :  { %9879 = vmatpush3.bf16.msra.mxu0 %v10474_v38  ;;  %v10513_v38 = vld [vmem:[%s13040_s1 + $0xc70] sm:$0xff]  }
 0x175   :  { %9880 = vmatprep.subr.bf16.mxu0 %v10476_v40  ;;  %9901 = vmatpush3.bf16.msra.mxu1 %v10475_v39  ;;  %v10514_v39 = vld [vmem:[%s13040_s1 + $0xcf0] sm:$0xff]  }
 0x176   :  { %v9578_v46 = vpop.f32.mrb[16].mxu0  ;;  %9902 = vmatprep.subr.bf16.mxu1 %v10477_v42 }
 0x177   :  { %v9600_v47 = vpop.f32.mrb[16].mxu1  ;;  %v9579_v50 = vpop.f32.mrb[17].mxu0 }
 0x178   :  { %v9601_v51 = vpop.f32.mrb[17].mxu1  ;;  %v9580_v52 = vadd.f32 %v9579_v50, %v9578_v46  ;;  %v9581_v54 = vpop.f32.mrb[18].mxu0  ;;  %9881 = vmatpush3.bf16.msra.mxu0 %v10478_v43  ;;  %v10517_v50 = vld [vmem:[%s13040_s1 + $0xc78] sm:$0xff]  }
 0x179   :  { %v9602_v53 = vadd.f32 %v9601_v51, %v9600_v47  ;;  %v9603_v55 = vpop.f32.mrb[18].mxu1  ;;  %v9582_v56 = vpop.f32.mrb[19].mxu0  ;;  %9882 = vmatprep.subr.bf16.mxu0 %v10480_v45  ;;  %9903 = vmatpush3.bf16.msra.mxu1 %v10479_v44  ;;  %v10518_v54 = vld [vmem:[%s13040_s1 + $0xcf8] sm:$0xff]  }
 0x17a   :  { %v9604_v57 = vpop.f32.mrb[19].mxu1  ;;  %v4914_v60 = vadd.f32 %v9580_v52, %v11806_v8  ;;  %9904 = vmatprep.subr.bf16.mxu1 %v10481_v48  ;;  %v436_v8 = vpack.c.bf16 %v250_v1, %v250_v1  ;;  %v10516_v52 = vld [vmem:[%s13040_s1 + $0xcb0] sm:$0xff]   ;;  %v10519_v55 = vld [vmem:[%s13040_s1 + $0xc38] sm:$0xff]   ;;  %v36_v56 = vld [vmem:[%s13039_s0 + $0x60] sm:$0xff] }
 0x17b   :  { %v267_v57 = vrot.slane %v36_v56, %v10791_v41  ;;  %v10524_v1 = vld [vmem:[%s13040_s1 + $0xd00] sm:$0xff]  }
 0x17c   :  { %v11904_v62 = vadd.f32 %v9602_v53, %v4914_v60  ;;  %9883 = vmatpush3.bf16.msra.mxu0 %v10482_v49  ;;  %v10515_v49 = vld [vmem:[%s13040_s1 + $0xc30] sm:$0xff]   ;;  %v10520_v60 = vld [vmem:[%s13040_s1 + $0xcb8] sm:$0xff]  }
 0x17d   :  { %9884 = vmatprep.subr.bf16.mxu0 %v10484_v59  ;;  %9905 = vmatpush3.bf16.msra.mxu1 %v10483_v58  ;;  %v260_v58 = vcombine.high %v36_v56, %v36_v56  ;;  %v10522_v59 = vld [vmem:[%s13040_s1 + $0xd40] sm:$0xff]   ;;  %v440_v0 = vpack.c.bf16 %v267_v57, %v267_v57 }
 0x17e   :  { %9906 = vmatprep.subr.bf16.mxu1 %v10485_v61  ;;  %v275_v61 = vcombine.high %v267_v57, %v267_v57  ;;  %v10557_v57 = vld [vmem:[%s13040_s1 + $0xe00] sm:$0xff]  }
 0x180   :  { %9885 = vmatpush3.bf16.msra.mxu0 %v10486_v63  ;;  %v10523_v63 = vld [vmem:[%s13040_s1 + $0xdc0] sm:$0xff]   ;;  %v441_v2 = vpack.c.bf16 %v275_v61, %v275_v61 }
 0x181   :  { %9914 = vmatprep.subr.bf16.mxu0 %v10489_v3  ;;  %9907 = vmatpush3.bf16.msra.mxu1 %v10487_v4  ;;  %v10525_v4 = vld [vmem:[%s13040_s1 + $0xd80] sm:$0xff]  }
 0x182   :  { %9936 = vmatprep.subr.bf16.mxu1 %v10490_v7 }
 0x183   :  { %5472 = vmatmul.mubr.bf16.vlgmr.msra.gmra.mrb[44].mxu0 %v436_v8  ;;  %v10527_v8 = vld [vmem:[%s13040_s1 + $0xdc8] sm:$0xff]  }
 0x184   :  { %9915 = vmatpush3.bf16.msra.mxu0 %v10491_v9  ;;  %5512 = vmatmul.mubr.bf16.vlgmr.msra.gmra.mrb[44].mxu1 %v438_v13  ;;  %v10528_v9 = vld [vmem:[%s13040_s1 + $0xd08] sm:$0xff]   ;;  %v10532_v13 = vld [vmem:[%s13040_s1 + $0xd10] sm:$0xff]  }
 0x185   :  { %9916 = vmatprep.subr.bf16.mxu0 %v10493_v14  ;;  %9937 = vmatpush3.bf16.msra.mxu1 %v10492_v12  ;;  %v10531_v12 = vld [vmem:[%s13040_s1 + $0xdd0] sm:$0xff]  }
 0x186   :  { %9938 = vmatprep.subr.bf16.mxu1 %v10494_v16  ;;  %5551 = vmatprep.mubr.bf16.mxu0 %v441_v2  ;;  %v10533_v14 = vld [vmem:[%s13040_s1 + $0xd90] sm:$0xff]   ;;  %v10535_v16 = vld [vmem:[%s13040_s1 + $0xdd8] sm:$0xff]   ;;  %v10562_v2 = vld [vmem:[%s13040_s1 + $0xe88] sm:$0xff]  }
 0x188   :  { %9917 = vmatpush3.bf16.msra.mxu0 %v10495_v17  ;;  %v10536_v17 = vld [vmem:[%s13040_s1 + $0xd18] sm:$0xff]  }
 0x189   :  { %9918 = vmatprep.subr.bf16.mxu0 %v10497_v19  ;;  %9939 = vmatpush3.bf16.msra.mxu1 %v10496_v18  ;;  %v10537_v18 = vld [vmem:[%s13040_s1 + $0xd98] sm:$0xff]   ;;  %v10538_v19 = vld [vmem:[%s13040_s1 + $0xd60] sm:$0xff]  }
 0x18a   :  { %9940 = vmatprep.subr.bf16.mxu1 %v10498_v20  ;;  %v10539_v20 = vld [vmem:[%s13040_s1 + $0xde0] sm:$0xff]  }
 0x18c   :  { %9919 = vmatpush3.bf16.msra.mxu0 %v10499_v21  ;;  %v10540_v21 = vld [vmem:[%s13040_s1 + $0xd20] sm:$0xff]  }
 0x18d   :  { %9920 = vmatprep.subr.bf16.mxu0 %v10501_v23  ;;  %9941 = vmatpush3.bf16.msra.mxu1 %v10500_v22  ;;  %v10541_v22 = vld [vmem:[%s13040_s1 + $0xda0] sm:$0xff]   ;;  %v10542_v23 = vld [vmem:[%s13040_s1 + $0xd68] sm:$0xff]  }
 0x18e   :  { %9942 = vmatprep.subr.bf16.mxu1 %v10502_v24  ;;  %v10543_v24 = vld [vmem:[%s13040_s1 + $0xde8] sm:$0xff]  }
 0x190   :  { %9921 = vmatpush3.bf16.msra.mxu0 %v10503_v25  ;;  %v10544_v25 = vld [vmem:[%s13040_s1 + $0xd28] sm:$0xff]  }
 0x191   :  { %9922 = vmatprep.subr.bf16.mxu0 %v10505_v27  ;;  %9943 = vmatpush3.bf16.msra.mxu1 %v10504_v26 }
 0x192   :  { %9944 = vmatprep.subr.bf16.mxu1 %v10506_v28  ;;  %v10545_v28 = vld [vmem:[%s13040_s1 + $0xda8] sm:$0xff]  }
 0x194   :  { %9923 = vmatpush3.bf16.msra.mxu0 %v10507_v29  ;;  %v10546_v29 = vld [vmem:[%s13040_s1 + $0xd70] sm:$0xff]  }
 0x195   :  { %9924 = vmatprep.subr.bf16.mxu0 %v10509_v31  ;;  %9945 = vmatpush3.bf16.msra.mxu1 %v10508_v30 }
 0x196   :  { %v9622_v36 = vpop.f32.mrb[20].mxu0  ;;  %9946 = vmatprep.subr.bf16.mxu1 %v10510_v32 }
 0x197   :  { %v9644_v37 = vpop.f32.mrb[20].mxu1  ;;  %v9623_v40 = vpop.f32.mrb[21].mxu0 }
 0x198   :  { %v9645_v42 = vpop.f32.mrb[21].mxu1  ;;  %v9624_v43 = vadd.f32 %v9623_v40, %v9622_v36  ;;  %v9625_v45 = vpop.f32.mrb[22].mxu0  ;;  %9925 = vmatpush3.bf16.msra.mxu0 %v10511_v34  ;;  %v10548_v40 = vld [vmem:[%s13040_s1 + $0xd30] sm:$0xff]  }
 0x199   :  { %v9646_v44 = vadd.f32 %v9645_v42, %v9644_v37  ;;  %v9647_v46 = vpop.f32.mrb[22].mxu1  ;;  %v9626_v47 = vpop.f32.mrb[23].mxu0  ;;  %9926 = vmatprep.subr.bf16.mxu0 %v10513_v38  ;;  %9947 = vmatpush3.bf16.msra.mxu1 %v10512_v35  ;;  %v10549_v45 = vld [vmem:[%s13040_s1 + $0xdb0] sm:$0xff]  }
 0x19a   :  { %v9648_v48 = vpop.f32.mrb[23].mxu1  ;;  %v4994_v51 = vadd.f32 %v9624_v43, %v11904_v62  ;;  %9948 = vmatprep.subr.bf16.mxu1 %v10514_v39  ;;  %v274_v62 = vrot.slane %v260_v58, %v10791_v41  ;;  %v10547_v39 = vld [vmem:[%s13040_s1 + $0xdf0] sm:$0xff]   ;;  %v10550_v43 = vld [vmem:[%s13040_s1 + $0xd78] sm:$0xff]  }
 0x19b   :  { %v10551_v46 = vld [vmem:[%s13040_s1 + $0xdf8] sm:$0xff]   ;;  %v37_v48 = vld [vmem:[%s13039_s0 + $0x68] sm:$0xff] }
 0x19c   :  { %v12005_v53 = vadd.f32 %v9646_v44, %v4994_v51  ;;  %9927 = vmatpush3.bf16.msra.mxu0 %v10515_v49  ;;  %v276_v3 = vcombine.high %v274_v62, %v274_v62  ;;  %v442_v5 = vpack.c.bf16 %v274_v62, %v274_v62  ;;  %v10552_v47 = vld [vmem:[%s13040_s1 + $0xd38] sm:$0xff]   ;;  %v284_v49 = vrot.slane %v37_v48, %v10791_v41  ;;  %v10555_v51 = vld [vmem:[%s13040_s1 + $0xe40] sm:$0xff]   ;;  %v10559_v62 = vld [vmem:[%s13040_s1 + $0xe48] sm:$0xff]  }
 0x19d   :  { %9928 = vmatprep.subr.bf16.mxu0 %v10517_v50  ;;  %9949 = vmatpush3.bf16.msra.mxu1 %v10516_v52  ;;  %v277_v50 = vcombine.high %v37_v48, %v37_v48  ;;  %v10553_v52 = vld [vmem:[%s13040_s1 + $0xdb8] sm:$0xff]  }
 0x19e   :  { %9950 = vmatprep.subr.bf16.mxu1 %v10518_v54  ;;  %v443_v7 = vpack.c.bf16 %v276_v3, %v276_v3  ;;  %v444_v56 = vpack.c.bf16 %v284_v49, %v284_v49  ;;  %v10563_v3 = vld [vmem:[%s13040_s1 + $0xe50] sm:$0xff]  }
 0x19f   :  { %v291_v54 = vrot.slane %v277_v50, %v10791_v41 }
 0x1a0   :  { %9929 = vmatpush3.bf16.msra.mxu0 %v10519_v55  ;;  %5591 = vmatprep.mubr.bf16.mxu1 %v443_v7  ;;  %v10556_v55 = vld [vmem:[%s13040_s1 + $0xec0] sm:$0xff]   ;;  %v10567_v7 = vld [vmem:[%s13040_s1 + $0xe58] sm:$0xff]  }
 0x1a1   :  { %9958 = vmatprep.subr.bf16.mxu0 %v10522_v59  ;;  %9951 = vmatpush3.bf16.msra.mxu1 %v10520_v60  ;;  %v293_v59 = vcombine.high %v291_v54, %v291_v54  ;;  %v10558_v60 = vld [vmem:[%s13040_s1 + $0xe80] sm:$0xff]   ;;  %v446_v61 = vpack.c.bf16 %v291_v54, %v291_v54  ;;  %v10592_v54 = vld [vmem:[%s13040_s1 + $0xf48] sm:$0xff]  }
 0x1a2   :  { %9980 = vmatprep.subr.bf16.mxu1 %v10523_v63 }
 0x1a3   :  { %5552 = vmatmul.mubr.bf16.vlgmr.msra.gmra.mrb[48].mxu0 %v440_v0  ;;  %v447_v63 = vpack.c.bf16 %v293_v59, %v293_v59  ;;  %v10560_v0 = vld [vmem:[%s13040_s1 + $0xec8] sm:$0xff]   ;;  %v10596_v59 = vld [vmem:[%s13040_s1 + $0xf50] sm:$0xff]  }
 0x1a4   :  { %9959 = vmatpush3.bf16.msra.mxu0 %v10524_v1  ;;  %5592 = vmatmul.mubr.bf16.vlgmr.msra.gmra.mrb[48].mxu1 %v442_v5  ;;  %v10561_v1 = vld [vmem:[%s13040_s1 + $0xe08] sm:$0xff]   ;;  %v10565_v5 = vld [vmem:[%s13040_s1 + $0xe10] sm:$0xff]  }
 0x1a5   :  { %9960 = vmatprep.subr.bf16.mxu0 %v10526_v6  ;;  %9981 = vmatpush3.bf16.msra.mxu1 %v10525_v4  ;;  %v10564_v4 = vld [vmem:[%s13040_s1 + $0xed0] sm:$0xff]  }
 0x1a6   :  { %9982 = vmatprep.subr.bf16.mxu1 %v10527_v8  ;;  %5671 = vmatprep.mubr.bf16.mxu1 %v447_v63  ;;  %v10566_v6 = vld [vmem:[%s13040_s1 + $0xe90] sm:$0xff]   ;;  %v10568_v8 = vld [vmem:[%s13040_s1 + $0xed8] sm:$0xff]  }
 0x1a7   :  { %v10600_v63 = vld [vmem:[%s13040_s1 + $0xf58] sm:$0xff]  }
 0x1a8   :  { %9961 = vmatpush3.bf16.msra.mxu0 %v10528_v9  ;;  %v10569_v9 = vld [vmem:[%s13040_s1 + $0xe18] sm:$0xff]  }
 0x1a9   :  { %9962 = vmatprep.subr.bf16.mxu0 %v10530_v11  ;;  %9983 = vmatpush3.bf16.msra.mxu1 %v10529_v10  ;;  %v10570_v10 = vld [vmem:[%s13040_s1 + $0xe98] sm:$0xff]   ;;  %v10571_v11 = vld [vmem:[%s13040_s1 + $0xe60] sm:$0xff]  }
 0x1aa   :  { %9984 = vmatprep.subr.bf16.mxu1 %v10531_v12  ;;  %v10572_v12 = vld [vmem:[%s13040_s1 + $0xee0] sm:$0xff]  }
 0x1ac   :  { %9963 = vmatpush3.bf16.msra.mxu0 %v10532_v13  ;;  %v10573_v13 = vld [vmem:[%s13040_s1 + $0xe20] sm:$0xff]  }
 0x1ad   :  { %9964 = vmatprep.subr.bf16.mxu0 %v10534_v15  ;;  %9985 = vmatpush3.bf16.msra.mxu1 %v10533_v14  ;;  %v10574_v14 = vld [vmem:[%s13040_s1 + $0xea0] sm:$0xff]   ;;  %v10575_v15 = vld [vmem:[%s13040_s1 + $0xe68] sm:$0xff]  }
 0x1ae   :  { %9986 = vmatprep.subr.bf16.mxu1 %v10535_v16  ;;  %v10576_v16 = vld [vmem:[%s13040_s1 + $0xee8] sm:$0xff]  }
 0x1b0   :  { %9965 = vmatpush3.bf16.msra.mxu0 %v10536_v17 }
 0x1b1   :  { %9966 = vmatprep.subr.bf16.mxu0 %v10538_v19  ;;  %9987 = vmatpush3.bf16.msra.mxu1 %v10537_v18  ;;  %v10577_v19 = vld [vmem:[%s13040_s1 + $0xe28] sm:$0xff]  }
 0x1b2   :  { %9988 = vmatprep.subr.bf16.mxu1 %v10539_v20  ;;  %v10579_v20 = vld [vmem:[%s13040_s1 + $0xe70] sm:$0xff]  }
 0x1b4   :  { %9967 = vmatpush3.bf16.msra.mxu0 %v10540_v21 }
 0x1b5   :  { %9968 = vmatprep.subr.bf16.mxu0 %v10542_v23  ;;  %9989 = vmatpush3.bf16.msra.mxu1 %v10541_v22 }
 0x1b6   :  { %v9666_v26 = vpop.f32.mrb[24].mxu0  ;;  %9990 = vmatprep.subr.bf16.mxu1 %v10543_v24 }
 0x1b7   :  { %v9688_v27 = vpop.f32.mrb[24].mxu1  ;;  %v9667_v30 = vpop.f32.mrb[25].mxu0 }
 0x1b8   :  { %v9689_v31 = vpop.f32.mrb[25].mxu1  ;;  %v9668_v32 = vadd.f32 %v9667_v30, %v9666_v26  ;;  %v9669_v35 = vpop.f32.mrb[26].mxu0  ;;  %9969 = vmatpush3.bf16.msra.mxu0 %v10544_v25  ;;  %v10580_v30 = vld [vmem:[%s13040_s1 + $0xef0] sm:$0xff]  }
 0x1b9   :  { %v9690_v34 = vadd.f32 %v9689_v31, %v9688_v27  ;;  %v9691_v36 = vpop.f32.mrb[26].mxu1  ;;  %v9670_v37 = vpop.f32.mrb[27].mxu0  ;;  %9970 = vmatprep.subr.bf16.mxu0 %v10546_v29  ;;  %9991 = vmatpush3.bf16.msra.mxu1 %v10545_v28  ;;  %v10578_v27 = vld [vmem:[%s13040_s1 + $0xea8] sm:$0xff]   ;;  %v10583_v35 = vld [vmem:[%s13040_s1 + $0xe78] sm:$0xff]  }
 0x1ba   :  { %v9692_v38 = vpop.f32.mrb[27].mxu1  ;;  %v5074_v42 = vadd.f32 %v9668_v32, %v12005_v53  ;;  %9992 = vmatprep.subr.bf16.mxu1 %v10547_v39  ;;  %v292_v53 = vcombine.high %v284_v49, %v284_v49  ;;  %v10581_v32 = vld [vmem:[%s13040_s1 + $0xe30] sm:$0xff]   ;;  %v10584_v37 = vld [vmem:[%s13040_s1 + $0xef8] sm:$0xff]   ;;  %v10590_v49 = vld [vmem:[%s13040_s1 + $0xf00] sm:$0xff]  }
 0x1bb   :  { %v10582_v36 = vld [vmem:[%s13040_s1 + $0xeb0] sm:$0xff]   ;;  %v10585_v38 = vld [vmem:[%s13040_s1 + $0xe38] sm:$0xff]  }
 0x1bc   :  { %v12106_v44 = vadd.f32 %v9690_v34, %v5074_v42  ;;  %9971 = vmatpush3.bf16.msra.mxu0 %v10548_v40  ;;  %v445_v58 = vpack.c.bf16 %v292_v53, %v292_v53  ;;  %v38_v39 = vld [vmem:[%s13039_s0 + $0x70] sm:$0xff] }
 0x1bd   :  { %9972 = vmatprep.subr.bf16.mxu0 %v10550_v43  ;;  %9993 = vmatpush3.bf16.msra.mxu1 %v10549_v45  ;;  %v301_v40 = vrot.slane %v38_v39, %v10791_v41  ;;  %v294_v42 = vcombine.high %v38_v39, %v38_v39  ;;  %v10588_v43 = vld [vmem:[%s13040_s1 + $0xf40] sm:$0xff]  }
 0x1be   :  { %9994 = vmatprep.subr.bf16.mxu1 %v10551_v46  ;;  %5631 = vmatprep.mubr.bf16.mxu0 %v445_v58  ;;  %v10595_v58 = vld [vmem:[%s13040_s1 + $0xf88] sm:$0xff]  }
 0x1bf   :  { %v309_v45 = vcombine.high %v301_v40, %v301_v40  ;;  %v308_v46 = vrot.slane %v294_v42, %v10791_v41  ;;  %v448_v48 = vpack.c.bf16 %v301_v40, %v301_v40 }
 0x1c0   :  { %9973 = vmatpush3.bf16.msra.mxu0 %v10552_v47  ;;  %v10589_v47 = vld [vmem:[%s13040_s1 + $0xfc0] sm:$0xff]  }
 0x1c1   :  { %10002 = vmatprep.subr.bf16.mxu0 %v10555_v51  ;;  %9995 = vmatpush3.bf16.msra.mxu1 %v10553_v52  ;;  %v449_v50 = vpack.c.bf16 %v309_v45, %v309_v45  ;;  %v310_v51 = vcombine.high %v308_v46, %v308_v46  ;;  %v10591_v52 = vld [vmem:[%s13040_s1 + $0xf80] sm:$0xff]   ;;  %v450_v53 = vpack.c.bf16 %v308_v46, %v308_v46 }
 0x1c2   :  { %10024 = vmatprep.subr.bf16.mxu1 %v10556_v55 }
 0x1c3   :  { %5632 = vmatmul.mubr.bf16.vlgmr.msra.gmra.mrb[52].mxu0 %v444_v56  ;;  %v451_v55 = vpack.c.bf16 %v310_v51, %v310_v51  ;;  %v10593_v56 = vld [vmem:[%s13040_s1 + $0xfc8] sm:$0xff]  }
 0x1c4   :  { %10003 = vmatpush3.bf16.msra.mxu0 %v10557_v57  ;;  %5672 = vmatmul.mubr.bf16.vlgmr.msra.gmra.mrb[52].mxu1 %v446_v61  ;;  %v10594_v57 = vld [vmem:[%s13040_s1 + $0xf08] sm:$0xff]   ;;  %v10598_v61 = vld [vmem:[%s13040_s1 + $0xf10] sm:$0xff]  }
 0x1c5   :  { %10004 = vmatprep.subr.bf16.mxu0 %v10559_v62  ;;  %10025 = vmatpush3.bf16.msra.mxu1 %v10558_v60  ;;  %v10597_v60 = vld [vmem:[%s13040_s1 + $0xfd0] sm:$0xff]  }
 0x1c6   :  { %10026 = vmatprep.subr.bf16.mxu1 %v10560_v0  ;;  %5711 = vmatprep.mubr.bf16.mxu0 %v449_v50  ;;  %v10599_v62 = vld [vmem:[%s13040_s1 + $0xf90] sm:$0xff]   ;;  %v10601_v0 = vld [vmem:[%s13040_s1 + $0xfd8] sm:$0xff]  }
 0x1c7   :  { %5751 = vmatprep.mubr.bf16.mxu1 %v451_v55 }
 0x1c8   :  { %10005 = vmatpush3.bf16.msra.mxu0 %v10561_v1  ;;  %v10602_v1 = vld [vmem:[%s13040_s1 + $0xf18] sm:$0xff]  }
 0x1c9   :  { %10006 = vmatprep.subr.bf16.mxu0 %v10563_v3  ;;  %10027 = vmatpush3.bf16.msra.mxu1 %v10562_v2  ;;  %v10603_v2 = vld [vmem:[%s13040_s1 + $0xf98] sm:$0xff]   ;;  %v10604_v3 = vld [vmem:[%s13040_s1 + $0xf60] sm:$0xff]  }
 0x1ca   :  { %10028 = vmatprep.subr.bf16.mxu1 %v10564_v4  ;;  %v10605_v4 = vld [vmem:[%s13040_s1 + $0xfe0] sm:$0xff]  }
 0x1cc   :  { %10007 = vmatpush3.bf16.msra.mxu0 %v10565_v5  ;;  %v10606_v5 = vld [vmem:[%s13040_s1 + $0xf20] sm:$0xff]  }
 0x1cd   :  { %10008 = vmatprep.subr.bf16.mxu0 %v10567_v7  ;;  %10029 = vmatpush3.bf16.msra.mxu1 %v10566_v6  ;;  %v10607_v6 = vld [vmem:[%s13040_s1 + $0xfa0] sm:$0xff]   ;;  %v10608_v7 = vld [vmem:[%s13040_s1 + $0xf68] sm:$0xff]  }
 0x1ce   :  { %10030 = vmatprep.subr.bf16.mxu1 %v10568_v8 }
 0x1d0   :  { %10009 = vmatpush3.bf16.msra.mxu0 %v10569_v9 }
 0x1d1   :  { %10010 = vmatprep.subr.bf16.mxu0 %v10571_v11  ;;  %10031 = vmatpush3.bf16.msra.mxu1 %v10570_v10  ;;  %v10609_v10 = vld [vmem:[%s13040_s1 + $0xfe8] sm:$0xff]  }
 0x1d2   :  { %10032 = vmatprep.subr.bf16.mxu1 %v10572_v12  ;;  %v10610_v11 = vld [vmem:[%s13040_s1 + $0xf28] sm:$0xff]  }
 0x1d4   :  { %10011 = vmatpush3.bf16.msra.mxu0 %v10573_v13 }
 0x1d5   :  { %10012 = vmatprep.subr.bf16.mxu0 %v10575_v15  ;;  %10033 = vmatpush3.bf16.msra.mxu1 %v10574_v14 }
 0x1d6   :  { %v9710_v17 = vpop.f32.mrb[28].mxu0  ;;  %10034 = vmatprep.subr.bf16.mxu1 %v10576_v16 }
 0x1d7   :  { %v9732_v18 = vpop.f32.mrb[28].mxu1  ;;  %v9711_v21 = vpop.f32.mrb[29].mxu0 }
 0x1d8   :  { %v9733_v22 = vpop.f32.mrb[29].mxu1  ;;  %v9712_v23 = vadd.f32 %v9711_v21, %v9710_v17  ;;  %v9713_v25 = vpop.f32.mrb[30].mxu0  ;;  %10013 = vmatpush3.bf16.msra.mxu0 %v10577_v19  ;;  %v10612_v21 = vld [vmem:[%s13040_s1 + $0xf70] sm:$0xff]  }
 0x1d9   :  { %v9734_v24 = vadd.f32 %v9733_v22, %v9732_v18  ;;  %v9735_v26 = vpop.f32.mrb[30].mxu1  ;;  %v9714_v28 = vpop.f32.mrb[31].mxu0  ;;  %10014 = vmatprep.subr.bf16.mxu0 %v10579_v20  ;;  %10035 = vmatpush3.bf16.msra.mxu1 %v10578_v27  ;;  %v10611_v18 = vld [vmem:[%s13040_s1 + $0xfa8] sm:$0xff]   ;;  %v10614_v25 = vld [vmem:[%s13040_s1 + $0xf30] sm:$0xff]  }
 0x1da   :  { %v9736_v29 = vpop.f32.mrb[31].mxu1  ;;  %v5154_v31 = vadd.f32 %v9712_v23, %v12106_v44  ;;  %10036 = vmatprep.subr.bf16.mxu1 %v10580_v30  ;;  %v10586_v44 = vld [vmem:[%s13040_s1 + $0xeb8] sm:$0xff]   ;;  %v10613_v23 = vld [vmem:[%s13040_s1 + $0xff0] sm:$0xff]  }
 0x1db   :  { %v10616_v26 = vld [vmem:[%s13040_s1 + $0xf78] sm:$0xff]   ;;  %v10615_v27 = vld [vmem:[%s13040_s1 + $0xfb0] sm:$0xff]  }
 0x1dc   :  { %v12207_v34 = vadd.f32 %v9734_v24, %v5154_v31  ;;  %10015 = vmatpush3.bf16.msra.mxu0 %v10581_v32  ;;  %v10617_v28 = vld [vmem:[%s13040_s1 + $0xff8] sm:$0xff]  }
 0x1dd   :  { %10016 = vmatprep.subr.bf16.mxu0 %v10583_v35  ;;  %10037 = vmatpush3.bf16.msra.mxu1 %v10582_v36  ;;  %v10618_v29 = vld [vmem:[%s13040_s1 + $0xf38] sm:$0xff]  }
 0x1de   :  { %10038 = vmatprep.subr.bf16.mxu1 %v10584_v37  ;;  %v39_v30 = vld [vmem:[%s13039_s0 + $0x78] sm:$0xff] }
 0x1e0   :  { %10017 = vmatpush3.bf16.msra.mxu0 %v10585_v38 }
 0x1e1   :  { %10046 = vmatprep.subr.bf16.mxu0 %v10588_v43  ;;  %10039 = vmatpush3.bf16.msra.mxu1 %v10586_v44 }
 0x1e2   :  { %10068 = vmatprep.subr.bf16.mxu1 %v10589_v47 }
 0x1e3   :  { %5712 = vmatmul.mubr.bf16.vlgmr.msra.gmra.mrb[56].mxu0 %v448_v48 }
 0x1e4   :  { %10047 = vmatpush3.bf16.msra.mxu0 %v10590_v49  ;;  %5752 = vmatmul.mubr.bf16.vlgmr.msra.gmra.mrb[56].mxu1 %v450_v53 }
 0x1e5   :  { %10048 = vmatprep.subr.bf16.mxu0 %v10592_v54  ;;  %10069 = vmatpush3.bf16.msra.mxu1 %v10591_v52 }
 0x1e6   :  { %10070 = vmatprep.subr.bf16.mxu1 %v10593_v56 }
 0x1e8   :  { %10049 = vmatpush3.bf16.msra.mxu0 %v10594_v57 }
 0x1e9   :  { %10050 = vmatprep.subr.bf16.mxu0 %v10596_v59  ;;  %10071 = vmatpush3.bf16.msra.mxu1 %v10595_v58 }
 0x1ea   :  { %10072 = vmatprep.subr.bf16.mxu1 %v10597_v60 }
 0x1ec   :  { %10051 = vmatpush3.bf16.msra.mxu0 %v10598_v61 }
 0x1ed   :  { %10052 = vmatprep.subr.bf16.mxu0 %v10600_v63  ;;  %10073 = vmatpush3.bf16.msra.mxu1 %v10599_v62 }
 0x1ee   :  { %10074 = vmatprep.subr.bf16.mxu1 %v10601_v0 }
 0x1f0   :  { %10053 = vmatpush3.bf16.msra.mxu0 %v10602_v1 }
 0x1f1   :  { %10054 = vmatprep.subr.bf16.mxu0 %v10604_v3  ;;  %10075 = vmatpush3.bf16.msra.mxu1 %v10603_v2 }
 0x1f2   :  { %10076 = vmatprep.subr.bf16.mxu1 %v10605_v4 }
 0x1f4   :  { %10055 = vmatpush3.bf16.msra.mxu0 %v10606_v5 }
 0x1f5   :  { %10056 = vmatprep.subr.bf16.mxu0 %v10608_v7  ;;  %10077 = vmatpush3.bf16.msra.mxu1 %v10607_v6 }
 0x1f6   :  { %v9754_v8 = vpop.f32.mrb[32].mxu0  ;;  %10078 = vmatprep.subr.bf16.mxu1 %v10609_v10 }
 0x1f7   :  { %v9776_v9 = vpop.f32.mrb[32].mxu1  ;;  %v9755_v12 = vpop.f32.mrb[33].mxu0 }
 0x1f8   :  { %v9777_v13 = vpop.f32.mrb[33].mxu1  ;;  %v9756_v14 = vadd.f32 %v9755_v12, %v9754_v8  ;;  %v9757_v16 = vpop.f32.mrb[34].mxu0  ;;  %10057 = vmatpush3.bf16.msra.mxu0 %v10610_v11 }
 0x1f9   :  { %v9778_v15 = vadd.f32 %v9777_v13, %v9776_v9  ;;  %v9779_v17 = vpop.f32.mrb[34].mxu1  ;;  %v9758_v19 = vpop.f32.mrb[35].mxu0  ;;  %10058 = vmatprep.subr.bf16.mxu0 %v10612_v21  ;;  %10079 = vmatpush3.bf16.msra.mxu1 %v10611_v18 }
 0x1fa   :  { %v9780_v20 = vpop.f32.mrb[35].mxu1  ;;  %v5234_v22 = vadd.f32 %v9756_v14, %v12207_v34  ;;  %10080 = vmatprep.subr.bf16.mxu1 %v10613_v23 }
 0x1fc   :  { %v5274_v24 = vadd.f32 %v9778_v15, %v5234_v22  ;;  %10059 = vmatpush3.bf16.msra.mxu0 %v10614_v25 }
 0x1fd   :  { %12 = vsyncpa [#allocation3], 0  ;;  %10060 = vmatprep.subr.bf16.mxu0 %v10616_v26  ;;  %v318_v31 = vrot.slane %v39_v30, %v10791_v41  ;;  %v311_v32 = vcombine.high %v39_v30, %v39_v30  ;;  %10081 = vmatpush3.bf16.msra.mxu1 %v10615_v27  ;;  %v10619_v34 = vld [vmem:[%s13040_s1 + $0xfb8] sm:$0xff]   ;;  %v5843_v15 = vld [vmem:[%s13042_s3] sm:$0xff]  ;;  %vm5840_vm0 = vcmask 254976   ;;  %vm6947_vm1 = vcmask 261120  }
 0x1fe   :  { %10082 = vmatprep.subr.bf16.mxu1 %v10617_v28  ;;  %v5875_v16 = vld [vmem:[%s13042_s3 + $0x100] sm:$0xff]  ;;  %v5844_v17 = vld [vmem:[%s13042_s3 + $0x8] sm:$0xff]  ;;  %s10647_s13 = smov [#allocation2]  }
 0x1ff   :  { %v326_v35 = vcombine.high %v318_v31, %v318_v31  ;;  %v325_v36 = vrot.slane %v311_v32, %v10791_v41  ;;  %v452_v37 = vpack.c.bf16 %v318_v31, %v318_v31  ;;  %v9227_v18 = vcombine.high %v5843_v15, %v5875_v16  ;;  %v5876_v19 = vld [vmem:[%s13042_s3 + $0x108] sm:$0xff]  ;;  %v5907_v23 = vld [vmem:[%s13042_s3 + $0x200] sm:$0xff]  ;;  %v12358_v31 = vld [vmem:[%s13042_s3 + $0x10] sm:$0xff]  ;;  %s8701_s2 = sshll.u32 %s10647_s13, 4  ;;  %s8702_s2 = int_to_ptr.vmem [resolvable:$true] %s8701_s2 }
 0x200   :  { %10061 = vmatpush3.bf16.msra.mxu0 %v10618_v29  ;;  %v9226_v20 = vcombine.low %v5843_v15, %v5875_v16  ;;  %v9228_v21 = vcombine.low %v5844_v17, %v5876_v19  ;;  %v9229_v22 = vcombine.high %v5844_v17, %v5876_v19  ;;  %v5908_v25 = vld [vmem:[%s13042_s3 + $0x208] sm:$0xff]  ;;  %v12363_v32 = vld [vmem:[%s13042_s3 + $0x110] sm:$0xff]  ;;  %s10621_s14 = scalar_lea.vmem %s8702_s2, 32  ;;  %p10626_p1 = scmp.lt.s32.totalorder %s8702_s2, %s8702_s2 }
 0x201   :  { %v453_v38 = vpack.c.bf16 %v326_v35, %v326_v35  ;;  %v327_v39 = vcombine.high %v325_v36, %v325_v36  ;;  %10083 = vmatpush3.bf16.msra.mxu1 %v10619_v34  ;;  %v454_v40 = vpack.c.bf16 %v325_v36, %v325_v36  ;;  %6951 = vmatprep.subr.bf16.mxu0 %v9227_v18  ;;  %v5940_v27 = vld [vmem:[%s13042_s3 + $0x308] sm:$0xff]  ;;  %v12368_v34 = vld [vmem:[%s13042_s3 + $0x18] sm:$0xff]  ;;  %p10622_p0 = scmp.ne.s32.totalorder %s8702_s2, %s10621_s14  ;;  %p10627_p2 = scmp.lt.s32.totalorder %s10621_s14, %s10621_s14 }
 0x202   :  { %6992 = vmatprep.subr.bf16.mxu1 %v9229_v22  ;;  %v9292_v29 = vcombine.low %v5908_v25, %v5940_v27  ;;  %v9293_v30 = vcombine.high %v5908_v25, %v5940_v27  ;;  %v9230_v35 = vcombine.low %v12358_v31, %v12363_v32  ;;  %v9231_v36 = vcombine.high %v12358_v31, %v12363_v32  ;;  %v5941_v27 = vld [vmem:[%s13042_s3 + $0x310] sm:$0xff]  ;;  %v5943_v31 = vld [vmem:[%s13042_s3 + $0x320] sm:$0xff]  ;;  %v5912_v32 = vld [vmem:[%s13042_s3 + $0x228] sm:$0xff] }
 0x203   :  { %5791 = vmatprep.mubr.bf16.mxu0 %v453_v38  ;;  %v455_v42 = vpack.c.bf16 %v327_v39, %v327_v39  ;;  %v10646_v38 = vmov 0   ;;  %p10628_p3 = por %p10627_p2, %p10626_p1 }
 0x204   :  { %5792 = vmatmul.mubr.bf16.vlgmr.msra.gmra.mrb[60].mxu0 %v452_v37  ;;  %v12377_v37 = vld [vmem:[%s13042_s3 + $0x118] sm:$0xff] }
 0x205   :  { %5831 = vmatprep.mubr.bf16.mxu1 %v455_v42  ;;  %6952 = vmatpush1.bf16.msra.mxu0 %v9226_v20  ;;  %v9232_v39 = vcombine.low %v12368_v34, %v12377_v37  ;;  %p10629_p4 = pnand %p10628_p3, %p10622_p0 }
 0x206   :  { %5832 = vmatmul.mubr.bf16.vlgmr.msra.gmra.mrb[60].mxu1 %v454_v40  ;;  %6983 = vmatprep.mubr.bf16.mxu0 %v10646_v38  ;;  %v9233_v40 = vcombine.high %v12368_v34, %v12377_v37  ;;  %v5944_v34 = vld [vmem:[%s13042_s3 + $0x328] sm:$0xff] }
 0x207   :  { %6993 = vmatpush1.bf16.msra.mxu1 %v9228_v21  ;;  %7024 = vmatprep.mubr.bf16.mxu1 %v10646_v38 }
 0x208   :  { %6994 = vmatprep.subr.bf16.mxu1 %v9293_v30 }
 0x20b   :  { %6995 = vmatpush1.bf16.msra.mxu1 %v9292_v29  ;;  %v5942_v29 = vld [vmem:[%s13042_s3 + $0x318] sm:$0xff] }
 0x20c   :  { %7074 = vmatprep.subr.bf16.mxu1 %v9233_v40 }
 0x216   :  { %v9798_v43 = vpop.f32.mrb[36].mxu0 }
 0x217   :  { %v9820_v44 = vpop.f32.mrb[36].mxu1  ;;  %v9799_v45 = vpop.f32.mrb[37].mxu0 }
 0x218   :  { %v9800_v46 = vadd.f32 %v9799_v45, %v9798_v43  ;;  %v9821_v47 = vpop.f32.mrb[37].mxu1  ;;  %v9801_v48 = vpop.f32.mrb[38].mxu0 }
 0x219   :  { %v9822_v49 = vadd.f32 %v9821_v47, %v9820_v44  ;;  %v9823_v50 = vpop.f32.mrb[38].mxu1  ;;  %v9802_v51 = vpop.f32.mrb[39].mxu0 }
 0x21a   :  { %v5314_v52 = vadd.f32 %v9800_v46, %v5274_v24  ;;  %v9824_v53 = vpop.f32.mrb[39].mxu1  ;;  %v5939_v24 = vld [vmem:[%s13042_s3 + $0x300] sm:$0xff] }
 0x21b   :  { %v9291_v26 = vcombine.high %v5907_v23, %v5939_v24  ;;  %v9290_v28 = vcombine.low %v5907_v23, %v5939_v24 }
 0x21c   :  { %v5354_v54 = vadd.f32 %v9822_v49, %v5314_v52 }
 0x21d   :  { %6953 = vmatprep.subr.bf16.mxu0 %v9291_v26  ;;  %v5909_v26 = vld [vmem:[%s13042_s3 + $0x210] sm:$0xff] }
 0x21e   :  { %6954 = vmatpush1.bf16.msra.mxu0 %v9290_v28  ;;  %v5910_v28 = vld [vmem:[%s13042_s3 + $0x218] sm:$0xff]  ;;  %v9295_v40 = vcombine.high %v5909_v26, %v5941_v27 }
 0x21f   :  { %7033 = vmatprep.subr.bf16.mxu0 %v9231_v36 }
 0x236   :  { %v9842_v55 = vpop.f32.mrb[40].mxu0 }
 0x237   :  { %v9843_v56 = vpop.f32.mrb[41].mxu0  ;;  %v9864_v57 = vpop.f32.mrb[40].mxu1 }
 0x238   :  { %v9844_v58 = vadd.f32 %v9843_v56, %v9842_v55  ;;  %v9845_v59 = vpop.f32.mrb[42].mxu0  ;;  %v9865_v60 = vpop.f32.mrb[41].mxu1 }
 0x239   :  { %v9846_v61 = vpop.f32.mrb[43].mxu0  ;;  %v9866_v63 = vadd.f32 %v9865_v60, %v9864_v57  ;;  %v9867_v0 = vpop.f32.mrb[42].mxu1 }
 0x23a   :  { %v5394_v62 = vadd.f32 %v9844_v58, %v5354_v54  ;;  %v9868_v1 = vpop.f32.mrb[43].mxu1 }
 0x23c   :  { %v5434_v2 = vadd.f32 %v9866_v63, %v5394_v62 }
 0x256   :  { %v9886_v3 = vpop.f32.mrb[44].mxu0 }
 0x257   :  { %v9887_v4 = vpop.f32.mrb[45].mxu0  ;;  %v9908_v5 = vpop.f32.mrb[44].mxu1 }
 0x258   :  { %v9888_v6 = vadd.f32 %v9887_v4, %v9886_v3  ;;  %v9889_v7 = vpop.f32.mrb[46].mxu0  ;;  %v9909_v8 = vpop.f32.mrb[45].mxu1 }
 0x259   :  { %v9890_v9 = vpop.f32.mrb[47].mxu0  ;;  %v9910_v11 = vadd.f32 %v9909_v8, %v9908_v5  ;;  %v9911_v12 = vpop.f32.mrb[46].mxu1 }
 0x25a   :  { %v5474_v10 = vadd.f32 %v9888_v6, %v5434_v2  ;;  %v9912_v13 = vpop.f32.mrb[47].mxu1 }
 0x25c   :  { %v5514_v14 = vadd.f32 %v9910_v11, %v5474_v10 }
 0x276   :  { %v9930_v42 = vpop.f32.mrb[48].mxu0 }
 0x277   :  { %v9931_v43 = vpop.f32.mrb[49].mxu0  ;;  %v9952_v44 = vpop.f32.mrb[48].mxu1 }
 0x278   :  { %v9932_v45 = vadd.f32 %v9931_v43, %v9930_v42  ;;  %v9933_v46 = vpop.f32.mrb[50].mxu0  ;;  %v9953_v47 = vpop.f32.mrb[49].mxu1  ;;  %v9297_v42 = vcombine.high %v5910_v28, %v5942_v29  ;;  %v5847_v43 = vld [vmem:[%s13042_s3 + $0x20] sm:$0xff] }
 0x279   :  { %v9934_v48 = vpop.f32.mrb[51].mxu0  ;;  %v9954_v50 = vadd.f32 %v9953_v47, %v9952_v44  ;;  %v9955_v51 = vpop.f32.mrb[50].mxu1  ;;  %v5879_v44 = vld [vmem:[%s13042_s3 + $0x120] sm:$0xff]  ;;  %v5880_v46 = vld [vmem:[%s13042_s3 + $0x128] sm:$0xff]  ;;  %v9294_v47 = vcombine.low %v5909_v26, %v5941_v27 }
 0x27a   :  { %v5554_v49 = vadd.f32 %v9932_v45, %v5514_v14  ;;  %v9956_v52 = vpop.f32.mrb[51].mxu1  ;;  %v5848_v45 = vld [vmem:[%s13042_s3 + $0x28] sm:$0xff]  ;;  %v9296_v48 = vcombine.low %v5910_v28, %v5942_v29  ;;  %v5911_v51 = vld [vmem:[%s13042_s3 + $0x220] sm:$0xff]  ;;  %v5917_v29 = vld [vmem:[%s13042_s3 + $0x250] sm:$0xff] }
 0x27b   :  { %v9236_v37 = vcombine.low %v5848_v45, %v5880_v46  ;;  %v9301_v52 = vcombine.high %v5912_v32, %v5944_v34 }
 0x27c   :  { %v5594_v53 = vadd.f32 %v9954_v50, %v5554_v49  ;;  %v9235_v49 = vcombine.high %v5847_v43, %v5879_v44  ;;  %v9237_v50 = vcombine.high %v5848_v45, %v5880_v46 }
 0x296   :  { %v9974_v54 = vpop.f32.mrb[52].mxu0 }
 0x297   :  { %v9975_v55 = vpop.f32.mrb[53].mxu0  ;;  %v9996_v56 = vpop.f32.mrb[52].mxu1 }
 0x298   :  { %v9976_v57 = vadd.f32 %v9975_v55, %v9974_v54  ;;  %v9977_v58 = vpop.f32.mrb[54].mxu0  ;;  %v9997_v59 = vpop.f32.mrb[53].mxu1  ;;  %v5881_v54 = vld [vmem:[%s13042_s3 + $0x130] sm:$0xff]  ;;  %v5850_v55 = vld [vmem:[%s13042_s3 + $0x38] sm:$0xff] }
 0x299   :  { %v9978_v60 = vpop.f32.mrb[55].mxu0  ;;  %v9998_v62 = vadd.f32 %v9997_v59, %v9996_v56  ;;  %v9999_v63 = vpop.f32.mrb[54].mxu1  ;;  %v5882_v56 = vld [vmem:[%s13042_s3 + $0x138] sm:$0xff]  ;;  %v9300_v58 = vcombine.low %v5912_v32, %v5944_v34 }
 0x29a   :  { %v5634_v61 = vadd.f32 %v9976_v57, %v5594_v53  ;;  %v10000_v0 = vpop.f32.mrb[55].mxu1  ;;  %v5849_v53 = vld [vmem:[%s13042_s3 + $0x30] sm:$0xff]  ;;  %v9298_v57 = vcombine.low %v5911_v51, %v5943_v31  ;;  %v9241_v60 = vcombine.high %v5850_v55, %v5882_v56  ;;  %v5914_v63 = vld [vmem:[%s13042_s3 + $0x238] sm:$0xff] }
 0x29b   :  { %v9239_v59 = vcombine.high %v5849_v53, %v5881_v54  ;;  %v5946_v0 = vld [vmem:[%s13042_s3 + $0x338] sm:$0xff] }
 0x29c   :  { %v5674_v1 = vadd.f32 %v9998_v62, %v5634_v61  ;;  %v5913_v61 = vld [vmem:[%s13042_s3 + $0x230] sm:$0xff] }
 0x29d   :  { %v5945_v62 = vld [vmem:[%s13042_s3 + $0x330] sm:$0xff] }
 0x2b6   :  { %v10018_v2 = vpop.f32.mrb[56].mxu0 }
 0x2b7   :  { %v10019_v3 = vpop.f32.mrb[57].mxu0  ;;  %v10040_v4 = vpop.f32.mrb[56].mxu1 }
 0x2b8   :  { %v10020_v5 = vadd.f32 %v10019_v3, %v10018_v2  ;;  %v10021_v6 = vpop.f32.mrb[58].mxu0  ;;  %v10041_v7 = vpop.f32.mrb[57].mxu1  ;;  %v9240_v2 = vcombine.low %v5850_v55, %v5882_v56  ;;  %v9303_v3 = vcombine.high %v5913_v61, %v5945_v62 }
 0x2b9   :  { %v10022_v8 = vpop.f32.mrb[59].mxu0  ;;  %v10042_v10 = vadd.f32 %v10041_v7, %v10040_v4  ;;  %v10043_v11 = vpop.f32.mrb[58].mxu1  ;;  %v9305_v4 = vcombine.high %v5914_v63, %v5946_v0  ;;  %v5883_v6 = vld [vmem:[%s13042_s3 + $0x140] sm:$0xff]  ;;  %v5852_v7 = vld [vmem:[%s13042_s3 + $0x48] sm:$0xff] }
 0x2ba   :  { %v5714_v9 = vadd.f32 %v10020_v5, %v5674_v1  ;;  %v10044_v12 = vpop.f32.mrb[59].mxu1  ;;  %v9238_v1 = vcombine.low %v5849_v53, %v5881_v54  ;;  %v5851_v5 = vld [vmem:[%s13042_s3 + $0x40] sm:$0xff]  ;;  %v5884_v8 = vld [vmem:[%s13042_s3 + $0x148] sm:$0xff] }
 0x2bb   :  { %v9243_v11 = vcombine.high %v5851_v5, %v5883_v6  ;;  %v9245_v12 = vcombine.high %v5852_v7, %v5884_v8 }
 0x2bc   :  { %v5754_v13 = vadd.f32 %v10042_v10, %v5714_v9  ;;  %v9302_v9 = vcombine.low %v5913_v61, %v5945_v62  ;;  %v9304_v10 = vcombine.low %v5914_v63, %v5946_v0 }
 0x2d7   :  { %v10062_v14 = vpop.f32.mrb[60].mxu0 }
 0x2d8   :  { %v10063_v15 = vpop.f32.mrb[61].mxu0 }
 0x2d9   :  { %v10084_v16 = vpop.f32.mrb[60].mxu1  ;;  %v10064_v17 = vadd.f32 %v10063_v15, %v10062_v14  ;;  %v10065_v18 = vpop.f32.mrb[62].mxu0  ;;  %v5947_v14 = vld [vmem:[%s13042_s3 + $0x340] sm:$0xff]  ;;  %v5916_v15 = vld [vmem:[%s13042_s3 + $0x248] sm:$0xff] }
 0x2da   :  { %v10085_v19 = vpop.f32.mrb[61].mxu1  ;;  %v10066_v20 = vpop.f32.mrb[63].mxu0  ;;  %v9244_v18 = vcombine.low %v5852_v7, %v5884_v8 }
 0x2db   :  { %v5794_v21 = vadd.f32 %v10064_v17, %v5754_v13  ;;  %v10086_v22 = vadd.f32 %v10085_v19, %v10084_v16  ;;  %v10087_v23 = vpop.f32.mrb[62].mxu1  ;;  %v5915_v13 = vld [vmem:[%s13042_s3 + $0x240] sm:$0xff]  ;;  %v5948_v16 = vld [vmem:[%s13042_s3 + $0x348] sm:$0xff]  ;;  %v9242_v17 = vcombine.low %v5851_v5, %v5883_v6 }
 0x2dc   :  { %v10088_v24 = vpop.f32.mrb[63].mxu1  ;;  %v9307_v19 = vcombine.high %v5915_v13, %v5947_v14  ;;  %v9309_v20 = vcombine.high %v5916_v15, %v5948_v16  ;;  %v5854_v23 = vld [vmem:[%s13042_s3 + $0x58] sm:$0xff]  ;;  %v9308_v26 = vcombine.low %v5916_v15, %v5948_v16 }
 0x2dd   :  { %v5834_v25 = vadd.f32 %v10086_v22, %v5794_v21  ;;  %v5853_v21 = vld [vmem:[%s13042_s3 + $0x50] sm:$0xff]  ;;  %v5886_v24 = vld [vmem:[%s13042_s3 + $0x158] sm:$0xff] }
 0x2de   :  { %v5885_v22 = vld [vmem:[%s13042_s3 + $0x150] sm:$0xff]  ;;  %v9249_v28 = vcombine.high %v5854_v23, %v5886_v24 }
 0x2df   :  { %v5839_v30 = vmax.f32 %v5834_v25, 0.0  ;;  %v9306_v25 = vcombine.low %v5915_v13, %v5947_v14  ;;  %v9247_v27 = vcombine.high %v5853_v21, %v5885_v22 }
 0x2e1   :  { %v12397_v36 = vpack.c.bf16 %v5839_v30, %v5839_v30  ;;  %5841 = vst.msk [vmem:[#allocation2] sm:$0x3] %vm5840_vm0, %v5839_v30  ;;  %v5949_v30 = vld [vmem:[%s13042_s3 + $0x350] sm:$0xff] }
 0x2e2   :  { %v9311_v45 = vcombine.high %v5917_v29, %v5949_v30 }
 0x2e3   :  { %9354 = vmatmul.mubr.msk.bf16.vlgmr.msra.gmra.mrb[64].mxu0 %vm6947_vm1, %v12397_v36  ;;  %9355 = vmatmul.mubr.msk.bf16.vlgmr.msra.gmra.mrb[64].mxu1 %vm6947_vm1, %v12397_v36 }
 0x2e4   :  { %7034 = vmatpush1.bf16.msra.mxu0 %v9230_v35  ;;  %7075 = vmatpush1.bf16.msra.mxu1 %v9232_v39  ;;  %v9234_v35 = vcombine.low %v5847_v43, %v5879_v44  ;;  %v9299_v39 = vcombine.high %v5911_v51, %v5943_v31  ;;  %v9246_v43 = vcombine.low %v5853_v21, %v5885_v22 }
 0x2e5   :  { %7035 = vmatprep.subr.bf16.mxu0 %v9295_v40  ;;  %7076 = vmatprep.subr.bf16.mxu1 %v9297_v42  ;;  %v5918_v40 = vld [vmem:[%s13042_s3 + $0x258] sm:$0xff]  ;;  %v9248_v44 = vcombine.low %v5854_v23, %v5886_v24  ;;  %v9310_v51 = vcombine.low %v5917_v29, %v5949_v30 }
 0x2e6   :  { %7065 = vmatprep.mubr.bf16.mxu0 %v10646_v38  ;;  %7106 = vmatprep.mubr.bf16.mxu1 %v10646_v38  ;;  %v5950_v42 = vld [vmem:[%s13042_s3 + $0x358] sm:$0xff] }
 0x2e7   :  { %v9313_v46 = vcombine.high %v5918_v40, %v5950_v42  ;;  %v9312_v31 = vcombine.low %v5918_v40, %v5950_v42 }
 0x2e8   :  { %7036 = vmatpush1.bf16.msra.mxu0 %v9294_v47  ;;  %7077 = vmatpush1.bf16.msra.mxu1 %v9296_v48  ;;  %v5855_v47 = vld [vmem:[%s13042_s3 + $0x60] sm:$0xff] }
 0x2e9   :  { %7115 = vmatprep.subr.bf16.mxu0 %v9235_v49  ;;  %7156 = vmatprep.subr.bf16.mxu1 %v9237_v50  ;;  %v5887_v48 = vld [vmem:[%s13042_s3 + $0x160] sm:$0xff]  ;;  %v5856_v49 = vld [vmem:[%s13042_s3 + $0x68] sm:$0xff] }
 0x2ea   :  { %v5888_v50 = vld [vmem:[%s13042_s3 + $0x168] sm:$0xff]  ;;  %v9251_v32 = vcombine.high %v5855_v47, %v5887_v48  ;;  %v9250_v53 = vcombine.low %v5855_v47, %v5887_v48 }
 0x2eb   :  { %9356 = vmatmul.mubr.msk.bf16.vlgmr.msra.gmra.mrb[68].mxu0 %vm6947_vm1, %v12397_v36  ;;  %9357 = vmatmul.mubr.msk.bf16.vlgmr.msra.gmra.mrb[68].mxu1 %vm6947_vm1, %v12397_v36  ;;  %v9253_v34 = vcombine.high %v5856_v49, %v5888_v50  ;;  %v9252_v54 = vcombine.low %v5856_v49, %v5888_v50 }
 0x2ec   :  { %7116 = vmatpush1.bf16.msra.mxu0 %v9234_v35  ;;  %7157 = vmatpush1.bf16.msra.mxu1 %v9236_v37  ;;  %v5919_v35 = vld [vmem:[%s13042_s3 + $0x260] sm:$0xff] }
 0x2ed   :  { %7117 = vmatprep.subr.bf16.mxu0 %v9299_v39  ;;  %7158 = vmatprep.subr.bf16.mxu1 %v9301_v52  ;;  %v5951_v37 = vld [vmem:[%s13042_s3 + $0x360] sm:$0xff]  ;;  %v5920_v39 = vld [vmem:[%s13042_s3 + $0x268] sm:$0xff] }
 0x2ee   :  { %7147 = vmatprep.mubr.bf16.mxu0 %v10646_v38  ;;  %7188 = vmatprep.mubr.bf16.mxu1 %v10646_v38  ;;  %v5952_v52 = vld [vmem:[%s13042_s3 + $0x368] sm:$0xff]  ;;  %v9315_v55 = vcombine.high %v5919_v35, %v5951_v37  ;;  %v9314_v61 = vcombine.low %v5919_v35, %v5951_v37 }
 0x2ef   :  { %v9317_v56 = vcombine.high %v5920_v39, %v5952_v52  ;;  %v9316_v62 = vcombine.low %v5920_v39, %v5952_v52 }
 0x2f0   :  { %7118 = vmatpush1.bf16.msra.mxu0 %v9298_v57  ;;  %7159 = vmatpush1.bf16.msra.mxu1 %v9300_v58  ;;  %v5857_v57 = vld [vmem:[%s13042_s3 + $0x70] sm:$0xff] }
 0x2f1   :  { %7197 = vmatprep.subr.bf16.mxu0 %v9239_v59  ;;  %7238 = vmatprep.subr.bf16.mxu1 %v9241_v60  ;;  %v5889_v58 = vld [vmem:[%s13042_s3 + $0x170] sm:$0xff]  ;;  %v5858_v59 = vld [vmem:[%s13042_s3 + $0x78] sm:$0xff] }
 0x2f2   :  { %v5890_v60 = vld [vmem:[%s13042_s3 + $0x178] sm:$0xff]  ;;  %v9255_v63 = vcombine.high %v5857_v57, %v5889_v58  ;;  %v9254_v5 = vcombine.low %v5857_v57, %v5889_v58 }
 0x2f3   :  { %9358 = vmatmul.mubr.msk.bf16.vlgmr.msra.gmra.mrb[72].mxu0 %vm6947_vm1, %v12397_v36  ;;  %9359 = vmatmul.mubr.msk.bf16.vlgmr.msra.gmra.mrb[72].mxu1 %vm6947_vm1, %v12397_v36  ;;  %v9257_v0 = vcombine.high %v5858_v59, %v5890_v60  ;;  %v9256_v6 = vcombine.low %v5858_v59, %v5890_v60 }
 0x2f4   :  { %7198 = vmatpush1.bf16.msra.mxu0 %v9238_v1  ;;  %7239 = vmatpush1.bf16.msra.mxu1 %v9240_v2  ;;  %v5921_v1 = vld [vmem:[%s13042_s3 + $0x270] sm:$0xff] }
 0x2f5   :  { %7199 = vmatprep.subr.bf16.mxu0 %v9303_v3  ;;  %7240 = vmatprep.subr.bf16.mxu1 %v9305_v4  ;;  %v5953_v2 = vld [vmem:[%s13042_s3 + $0x370] sm:$0xff]  ;;  %v5922_v3 = vld [vmem:[%s13042_s3 + $0x278] sm:$0xff] }
 0x2f6   :  { %7229 = vmatprep.mubr.bf16.mxu0 %v10646_v38  ;;  %7270 = vmatprep.mubr.bf16.mxu1 %v10646_v38  ;;  %v5954_v4 = vld [vmem:[%s13042_s3 + $0x378] sm:$0xff]  ;;  %v9319_v7 = vcombine.high %v5921_v1, %v5953_v2  ;;  %v9318_v13 = vcombine.low %v5921_v1, %v5953_v2 }
 0x2f7   :  { %v9321_v8 = vcombine.high %v5922_v3, %v5954_v4  ;;  %v9320_v14 = vcombine.low %v5922_v3, %v5954_v4 }
 0x2f8   :  { %7200 = vmatpush1.bf16.msra.mxu0 %v9302_v9  ;;  %7241 = vmatpush1.bf16.msra.mxu1 %v9304_v10  ;;  %v5859_v9 = vld [vmem:[%s13042_s3 + $0x80] sm:$0xff] }
 0x2f9   :  { %7279 = vmatprep.subr.bf16.mxu0 %v9243_v11  ;;  %7320 = vmatprep.subr.bf16.mxu1 %v9245_v12  ;;  %v5891_v10 = vld [vmem:[%s13042_s3 + $0x180] sm:$0xff]  ;;  %v5860_v11 = vld [vmem:[%s13042_s3 + $0x88] sm:$0xff] }
 0x2fa   :  { %v5892_v12 = vld [vmem:[%s13042_s3 + $0x188] sm:$0xff]  ;;  %v9259_v15 = vcombine.high %v5859_v9, %v5891_v10  ;;  %v9258_v21 = vcombine.low %v5859_v9, %v5891_v10 }
 0x2fb   :  { %9360 = vmatmul.mubr.msk.bf16.vlgmr.msra.gmra.mrb[76].mxu0 %vm6947_vm1, %v12397_v36  ;;  %9361 = vmatmul.mubr.msk.bf16.vlgmr.msra.gmra.mrb[76].mxu1 %vm6947_vm1, %v12397_v36  ;;  %v9261_v16 = vcombine.high %v5860_v11, %v5892_v12  ;;  %v9260_v22 = vcombine.low %v5860_v11, %v5892_v12 }
 0x2fc   :  { %7280 = vmatpush1.bf16.msra.mxu0 %v9242_v17  ;;  %7321 = vmatpush1.bf16.msra.mxu1 %v9244_v18  ;;  %v5923_v17 = vld [vmem:[%s13042_s3 + $0x280] sm:$0xff] }
 0x2fd   :  { %7281 = vmatprep.subr.bf16.mxu0 %v9307_v19  ;;  %7322 = vmatprep.subr.bf16.mxu1 %v9309_v20  ;;  %v5955_v18 = vld [vmem:[%s13042_s3 + $0x380] sm:$0xff]  ;;  %v5924_v19 = vld [vmem:[%s13042_s3 + $0x288] sm:$0xff] }
 0x2fe   :  { %7311 = vmatprep.mubr.bf16.mxu0 %v10646_v38  ;;  %7352 = vmatprep.mubr.bf16.mxu1 %v10646_v38  ;;  %v5956_v20 = vld [vmem:[%s13042_s3 + $0x388] sm:$0xff]  ;;  %v9323_v23 = vcombine.high %v5923_v17, %v5955_v18  ;;  %v9322_v29 = vcombine.low %v5923_v17, %v5955_v18 }
 0x2ff   :  { %v9325_v24 = vcombine.high %v5924_v19, %v5956_v20  ;;  %v9324_v30 = vcombine.low %v5924_v19, %v5956_v20 }
 0x300   :  { %7282 = vmatpush1.bf16.msra.mxu0 %v9306_v25  ;;  %7323 = vmatpush1.bf16.msra.mxu1 %v9308_v26  ;;  %v5861_v25 = vld [vmem:[%s13042_s3 + $0x90] sm:$0xff] }
 0x301   :  { %7361 = vmatprep.subr.bf16.mxu0 %v9247_v27  ;;  %7402 = vmatprep.subr.bf16.mxu1 %v9249_v28  ;;  %v5893_v26 = vld [vmem:[%s13042_s3 + $0x190] sm:$0xff]  ;;  %v5862_v27 = vld [vmem:[%s13042_s3 + $0x98] sm:$0xff] }
 0x302   :  { %v5894_v28 = vld [vmem:[%s13042_s3 + $0x198] sm:$0xff]  ;;  %v9263_v40 = vcombine.high %v5861_v25, %v5893_v26  ;;  %v9262_v47 = vcombine.low %v5861_v25, %v5893_v26 }
 0x303   :  { %9362 = vmatmul.mubr.msk.bf16.vlgmr.msra.gmra.mrb[80].mxu0 %vm6947_vm1, %v12397_v36  ;;  %9363 = vmatmul.mubr.msk.bf16.vlgmr.msra.gmra.mrb[80].mxu1 %vm6947_vm1, %v12397_v36  ;;  %v9265_v42 = vcombine.high %v5862_v27, %v5894_v28  ;;  %v9264_v48 = vcombine.low %v5862_v27, %v5894_v28 }
 0x304   :  { %7362 = vmatpush1.bf16.msra.mxu0 %v9246_v43  ;;  %7403 = vmatpush1.bf16.msra.mxu1 %v9248_v44  ;;  %v5925_v43 = vld [vmem:[%s13042_s3 + $0x290] sm:$0xff] }
 0x305   :  { %7363 = vmatprep.subr.bf16.mxu0 %v9311_v45  ;;  %7404 = vmatprep.subr.bf16.mxu1 %v9313_v46  ;;  %v5957_v44 = vld [vmem:[%s13042_s3 + $0x390] sm:$0xff]  ;;  %v5926_v45 = vld [vmem:[%s13042_s3 + $0x298] sm:$0xff] }
 0x306   :  { %7393 = vmatprep.mubr.bf16.mxu0 %v10646_v38  ;;  %7434 = vmatprep.mubr.bf16.mxu1 %v10646_v38  ;;  %v5958_v46 = vld [vmem:[%s13042_s3 + $0x398] sm:$0xff]  ;;  %v9327_v49 = vcombine.high %v5925_v43, %v5957_v44  ;;  %v9326_v35 = vcombine.low %v5925_v43, %v5957_v44 }
 0x307   :  { %v9329_v50 = vcombine.high %v5926_v45, %v5958_v46  ;;  %v9328_v37 = vcombine.low %v5926_v45, %v5958_v46 }
 0x308   :  { %7364 = vmatpush1.bf16.msra.mxu0 %v9310_v51  ;;  %7405 = vmatpush1.bf16.msra.mxu1 %v9312_v31  ;;  %v5863_v51 = vld [vmem:[%s13042_s3 + $0xa0] sm:$0xff] }
 0x309   :  { %7443 = vmatprep.subr.bf16.mxu0 %v9251_v32  ;;  %7484 = vmatprep.subr.bf16.mxu1 %v9253_v34  ;;  %v5895_v31 = vld [vmem:[%s13042_s3 + $0x1a0] sm:$0xff]  ;;  %v5864_v32 = vld [vmem:[%s13042_s3 + $0xa8] sm:$0xff] }
 0x30a   :  { %v5896_v34 = vld [vmem:[%s13042_s3 + $0x1a8] sm:$0xff]  ;;  %v9267_v39 = vcombine.high %v5863_v51, %v5895_v31  ;;  %v9266_v57 = vcombine.low %v5863_v51, %v5895_v31 }
 0x30b   :  { %9364 = vmatmul.mubr.msk.bf16.vlgmr.msra.gmra.mrb[84].mxu0 %vm6947_vm1, %v12397_v36  ;;  %9365 = vmatmul.mubr.msk.bf16.vlgmr.msra.gmra.mrb[84].mxu1 %vm6947_vm1, %v12397_v36  ;;  %v9269_v52 = vcombine.high %v5864_v32, %v5896_v34  ;;  %v9268_v58 = vcombine.low %v5864_v32, %v5896_v34 }
 0x30c   :  { %7444 = vmatpush1.bf16.msra.mxu0 %v9250_v53  ;;  %7485 = vmatpush1.bf16.msra.mxu1 %v9252_v54  ;;  %v5927_v53 = vld [vmem:[%s13042_s3 + $0x2a0] sm:$0xff] }
 0x30d   :  { %7445 = vmatprep.subr.bf16.mxu0 %v9315_v55  ;;  %7486 = vmatprep.subr.bf16.mxu1 %v9317_v56  ;;  %v5959_v54 = vld [vmem:[%s13042_s3 + $0x3a0] sm:$0xff]  ;;  %v5928_v55 = vld [vmem:[%s13042_s3 + $0x2a8] sm:$0xff] }
 0x30e   :  { %7475 = vmatprep.mubr.bf16.mxu0 %v10646_v38  ;;  %7516 = vmatprep.mubr.bf16.mxu1 %v10646_v38  ;;  %v5960_v56 = vld [vmem:[%s13042_s3 + $0x3a8] sm:$0xff]  ;;  %v9331_v59 = vcombine.high %v5927_v53, %v5959_v54  ;;  %v9330_v1 = vcombine.low %v5927_v53, %v5959_v54 }
 0x30f   :  { %v9333_v60 = vcombine.high %v5928_v55, %v5960_v56  ;;  %v9332_v2 = vcombine.low %v5928_v55, %v5960_v56 }
 0x310   :  { %7446 = vmatpush1.bf16.msra.mxu0 %v9314_v61  ;;  %7487 = vmatpush1.bf16.msra.mxu1 %v9316_v62  ;;  %v5865_v61 = vld [vmem:[%s13042_s3 + $0xb0] sm:$0xff] }
 0x311   :  { %7525 = vmatprep.subr.bf16.mxu0 %v9255_v63  ;;  %7566 = vmatprep.subr.bf16.mxu1 %v9257_v0  ;;  %v5897_v62 = vld [vmem:[%s13042_s3 + $0x1b0] sm:$0xff]  ;;  %v5866_v63 = vld [vmem:[%s13042_s3 + $0xb8] sm:$0xff] }
 0x312   :  { %v5898_v0 = vld [vmem:[%s13042_s3 + $0x1b8] sm:$0xff]  ;;  %v9271_v3 = vcombine.high %v5865_v61, %v5897_v62  ;;  %v9270_v9 = vcombine.low %v5865_v61, %v5897_v62 }
 0x313   :  { %9366 = vmatmul.mubr.msk.bf16.vlgmr.msra.gmra.mrb[88].mxu0 %vm6947_vm1, %v12397_v36  ;;  %9367 = vmatmul.mubr.msk.bf16.vlgmr.msra.gmra.mrb[88].mxu1 %vm6947_vm1, %v12397_v36  ;;  %v9273_v4 = vcombine.high %v5866_v63, %v5898_v0  ;;  %v9272_v10 = vcombine.low %v5866_v63, %v5898_v0 }
 0x314   :  { %7526 = vmatpush1.bf16.msra.mxu0 %v9254_v5  ;;  %7567 = vmatpush1.bf16.msra.mxu1 %v9256_v6  ;;  %v5929_v5 = vld [vmem:[%s13042_s3 + $0x2b0] sm:$0xff] }
 0x315   :  { %7527 = vmatprep.subr.bf16.mxu0 %v9319_v7  ;;  %7568 = vmatprep.subr.bf16.mxu1 %v9321_v8  ;;  %v5961_v6 = vld [vmem:[%s13042_s3 + $0x3b0] sm:$0xff]  ;;  %v5930_v7 = vld [vmem:[%s13042_s3 + $0x2b8] sm:$0xff] }
 0x316   :  { %7557 = vmatprep.mubr.bf16.mxu0 %v10646_v38  ;;  %7598 = vmatprep.mubr.bf16.mxu1 %v10646_v38  ;;  %v5962_v8 = vld [vmem:[%s13042_s3 + $0x3b8] sm:$0xff]  ;;  %v9335_v11 = vcombine.high %v5929_v5, %v5961_v6  ;;  %v9334_v17 = vcombine.low %v5929_v5, %v5961_v6 }
 0x317   :  { %v9337_v12 = vcombine.high %v5930_v7, %v5962_v8  ;;  %v9336_v18 = vcombine.low %v5930_v7, %v5962_v8 }
 0x318   :  { %7528 = vmatpush1.bf16.msra.mxu0 %v9318_v13  ;;  %7569 = vmatpush1.bf16.msra.mxu1 %v9320_v14  ;;  %v5867_v13 = vld [vmem:[%s13042_s3 + $0xc0] sm:$0xff] }
 0x319   :  { %7607 = vmatprep.subr.bf16.mxu0 %v9259_v15  ;;  %7648 = vmatprep.subr.bf16.mxu1 %v9261_v16  ;;  %v5899_v14 = vld [vmem:[%s13042_s3 + $0x1c0] sm:$0xff]  ;;  %v5868_v15 = vld [vmem:[%s13042_s3 + $0xc8] sm:$0xff] }
 0x31a   :  { %v5900_v16 = vld [vmem:[%s13042_s3 + $0x1c8] sm:$0xff]  ;;  %v9275_v19 = vcombine.high %v5867_v13, %v5899_v14  ;;  %v9274_v25 = vcombine.low %v5867_v13, %v5899_v14 }
 0x31b   :  { %9368 = vmatmul.mubr.msk.bf16.vlgmr.msra.gmra.mrb[92].mxu0 %vm6947_vm1, %v12397_v36  ;;  %9369 = vmatmul.mubr.msk.bf16.vlgmr.msra.gmra.mrb[92].mxu1 %vm6947_vm1, %v12397_v36  ;;  %v9277_v20 = vcombine.high %v5868_v15, %v5900_v16  ;;  %v9276_v26 = vcombine.low %v5868_v15, %v5900_v16 }
 0x31c   :  { %7608 = vmatpush1.bf16.msra.mxu0 %v9258_v21  ;;  %7649 = vmatpush1.bf16.msra.mxu1 %v9260_v22  ;;  %v5931_v21 = vld [vmem:[%s13042_s3 + $0x2c0] sm:$0xff] }
 0x31d   :  { %7609 = vmatprep.subr.bf16.mxu0 %v9323_v23  ;;  %7650 = vmatprep.subr.bf16.mxu1 %v9325_v24  ;;  %v5963_v22 = vld [vmem:[%s13042_s3 + $0x3c0] sm:$0xff]  ;;  %v5932_v23 = vld [vmem:[%s13042_s3 + $0x2c8] sm:$0xff] }
 0x31e   :  { %7639 = vmatprep.mubr.bf16.mxu0 %v10646_v38  ;;  %7680 = vmatprep.mubr.bf16.mxu1 %v10646_v38  ;;  %v5964_v24 = vld [vmem:[%s13042_s3 + $0x3c8] sm:$0xff]  ;;  %v9339_v27 = vcombine.high %v5931_v21, %v5963_v22  ;;  %v9338_v43 = vcombine.low %v5931_v21, %v5963_v22  ;;  %v5971_v21 = vld [vmem:[%s13043_s4] sm:$0xff]  ;;  %v12848_v22 = vsub.s32 3, %v10779_v33 }
 0x31f   :  { %v9341_v28 = vcombine.high %v5932_v23, %v5964_v24  ;;  %v9340_v44 = vcombine.low %v5932_v23, %v5964_v24 }
 0x320   :  { %7610 = vmatpush1.bf16.msra.mxu0 %v9322_v29  ;;  %7651 = vmatpush1.bf16.msra.mxu1 %v9324_v30  ;;  %v5869_v29 = vld [vmem:[%s13042_s3 + $0xd0] sm:$0xff] }
 0x321   :  { %7689 = vmatprep.subr.bf16.mxu0 %v9263_v40  ;;  %7730 = vmatprep.subr.bf16.mxu1 %v9265_v42  ;;  %v5901_v30 = vld [vmem:[%s13042_s3 + $0x1d0] sm:$0xff]  ;;  %v5870_v40 = vld [vmem:[%s13042_s3 + $0xd8] sm:$0xff] }
 0x322   :  { %v5902_v42 = vld [vmem:[%s13042_s3 + $0x1d8] sm:$0xff]  ;;  %v9279_v45 = vcombine.high %v5869_v29, %v5901_v30  ;;  %v9278_v51 = vcombine.low %v5869_v29, %v5901_v30 }
 0x323   :  { %9370 = vmatmul.mubr.msk.bf16.vlgmr.msra.gmra.mrb[96].mxu0 %vm6947_vm1, %v12397_v36  ;;  %9371 = vmatmul.mubr.msk.bf16.vlgmr.msra.gmra.mrb[96].mxu1 %vm6947_vm1, %v12397_v36  ;;  %v9281_v46 = vcombine.high %v5870_v40, %v5902_v42  ;;  %v9280_v31 = vcombine.low %v5870_v40, %v5902_v42  ;;  %v12855_v42 = vsub.s32 4, %v10779_v33 }
 0x324   :  { %7690 = vmatpush1.bf16.msra.mxu0 %v9262_v47  ;;  %7731 = vmatpush1.bf16.msra.mxu1 %v9264_v48  ;;  %v5933_v47 = vld [vmem:[%s13042_s3 + $0x2d0] sm:$0xff] }
 0x325   :  { %7691 = vmatprep.subr.bf16.mxu0 %v9327_v49  ;;  %7732 = vmatprep.subr.bf16.mxu1 %v9329_v50  ;;  %v5965_v48 = vld [vmem:[%s13042_s3 + $0x3d0] sm:$0xff]  ;;  %v5934_v49 = vld [vmem:[%s13042_s3 + $0x2d8] sm:$0xff] }
 0x326   :  { %7721 = vmatprep.mubr.bf16.mxu0 %v10646_v38  ;;  %7762 = vmatprep.mubr.bf16.mxu1 %v10646_v38  ;;  %v5966_v50 = vld [vmem:[%s13042_s3 + $0x3d8] sm:$0xff]  ;;  %v9343_v32 = vcombine.high %v5933_v47, %v5965_v48  ;;  %v9342_v53 = vcombine.low %v5933_v47, %v5965_v48  ;;  %v12861_v48 = vsub.s32 5, %v10779_v33 }
 0x327   :  { %v9345_v34 = vcombine.high %v5934_v49, %v5966_v50  ;;  %v9344_v54 = vcombine.low %v5934_v49, %v5966_v50  ;;  %v12864_v49 = vsub.s32 7, %v10779_v33 }
 0x328   :  { %7692 = vmatpush1.bf16.msra.mxu0 %v9326_v35  ;;  %7733 = vmatpush1.bf16.msra.mxu1 %v9328_v37  ;;  %v5871_v35 = vld [vmem:[%s13042_s3 + $0xe0] sm:$0xff] }
 0x329   :  { %7771 = vmatprep.subr.bf16.mxu0 %v9267_v39  ;;  %7812 = vmatprep.subr.bf16.mxu1 %v9269_v52  ;;  %v5903_v37 = vld [vmem:[%s13042_s3 + $0x1e0] sm:$0xff]  ;;  %v5872_v39 = vld [vmem:[%s13042_s3 + $0xe8] sm:$0xff] }
 0x32a   :  { %v5904_v52 = vld [vmem:[%s13042_s3 + $0x1e8] sm:$0xff]  ;;  %v9283_v55 = vcombine.high %v5871_v35, %v5903_v37  ;;  %v9282_v61 = vcombine.low %v5871_v35, %v5903_v37  ;;  %v6006_v37 = vrot.slane %v5971_v21, %v12855_v42 }
 0x32b   :  { %9372 = vmatmul.mubr.msk.bf16.vlgmr.msra.gmra.mrb[100].mxu0 %vm6947_vm1, %v12397_v36  ;;  %9373 = vmatmul.mubr.msk.bf16.vlgmr.msra.gmra.mrb[100].mxu1 %vm6947_vm1, %v12397_v36  ;;  %v9285_v56 = vcombine.high %v5872_v39, %v5904_v52  ;;  %v9284_v62 = vcombine.low %v5872_v39, %v5904_v52 }
 0x32c   :  { %7772 = vmatpush1.bf16.msra.mxu0 %v9266_v57  ;;  %7813 = vmatpush1.bf16.msra.mxu1 %v9268_v58  ;;  %v5935_v57 = vld [vmem:[%s13042_s3 + $0x2e0] sm:$0xff] }
 0x32d   :  { %7773 = vmatprep.subr.bf16.mxu0 %v9331_v59  ;;  %7814 = vmatprep.subr.bf16.mxu1 %v9333_v60  ;;  %v5967_v58 = vld [vmem:[%s13042_s3 + $0x3e0] sm:$0xff]  ;;  %v5936_v59 = vld [vmem:[%s13042_s3 + $0x2e8] sm:$0xff] }
 0x32e   :  { %7803 = vmatprep.mubr.bf16.mxu0 %v10646_v38  ;;  %7844 = vmatprep.mubr.bf16.mxu1 %v10646_v38  ;;  %v5968_v60 = vld [vmem:[%s13042_s3 + $0x3e8] sm:$0xff]  ;;  %v9347_v63 = vcombine.high %v5935_v57, %v5967_v58  ;;  %v9346_v5 = vcombine.low %v5935_v57, %v5967_v58 }
 0x32f   :  { %v9349_v0 = vcombine.high %v5936_v59, %v5968_v60  ;;  %v9348_v6 = vcombine.low %v5936_v59, %v5968_v60 }
 0x330   :  { %7774 = vmatpush1.bf16.msra.mxu0 %v9330_v1  ;;  %7815 = vmatpush1.bf16.msra.mxu1 %v9332_v2  ;;  %v5873_v1 = vld [vmem:[%s13042_s3 + $0xf0] sm:$0xff] }
 0x331   :  { %7853 = vmatprep.subr.bf16.mxu0 %v9271_v3  ;;  %7894 = vmatprep.subr.bf16.mxu1 %v9273_v4  ;;  %v5905_v2 = vld [vmem:[%s13042_s3 + $0x1f0] sm:$0xff]  ;;  %v5874_v3 = vld [vmem:[%s13042_s3 + $0xf8] sm:$0xff] }
 0x332   :  { %v5906_v4 = vld [vmem:[%s13042_s3 + $0x1f8] sm:$0xff]  ;;  %v9287_v7 = vcombine.high %v5873_v1, %v5905_v2  ;;  %v9286_v13 = vcombine.low %v5873_v1, %v5905_v2 }
 0x333   :  { %9374 = vmatmul.mubr.msk.bf16.vlgmr.msra.gmra.mrb[104].mxu0 %vm6947_vm1, %v12397_v36  ;;  %9375 = vmatmul.mubr.msk.bf16.vlgmr.msra.gmra.mrb[104].mxu1 %vm6947_vm1, %v12397_v36  ;;  %v9289_v8 = vcombine.high %v5874_v3, %v5906_v4  ;;  %v9288_v14 = vcombine.low %v5874_v3, %v5906_v4 }
 0x334   :  { %7854 = vmatpush1.bf16.msra.mxu0 %v9270_v9  ;;  %7895 = vmatpush1.bf16.msra.mxu1 %v9272_v10  ;;  %v5937_v9 = vld [vmem:[%s13042_s3 + $0x2f0] sm:$0xff] }
 0x335   :  { %7855 = vmatprep.subr.bf16.mxu0 %v9335_v11  ;;  %7896 = vmatprep.subr.bf16.mxu1 %v9337_v12  ;;  %v5969_v10 = vld [vmem:[%s13042_s3 + $0x3f0] sm:$0xff]  ;;  %v5938_v11 = vld [vmem:[%s13042_s3 + $0x2f8] sm:$0xff] }
 0x336   :  { %7885 = vmatprep.mubr.bf16.mxu0 %v10646_v38  ;;  %7926 = vmatprep.mubr.bf16.mxu1 %v10646_v38  ;;  %v5970_v12 = vld [vmem:[%s13042_s3 + $0x3f8] sm:$0xff]  ;;  %v9351_v15 = vcombine.high %v5937_v9, %v5969_v10 }
 0x337   :  { %v9353_v16 = vcombine.high %v5938_v11, %v5970_v12 }
 0x338   :  { %7856 = vmatpush1.bf16.msra.mxu0 %v9334_v17  ;;  %7897 = vmatpush1.bf16.msra.mxu1 %v9336_v18  ;;  %v9350_v17 = vcombine.low %v5937_v9, %v5969_v10  ;;  %v9352_v18 = vcombine.low %v5938_v11, %v5970_v12 }
 0x339   :  { %7935 = vmatprep.subr.bf16.mxu0 %v9275_v19  ;;  %7976 = vmatprep.subr.bf16.mxu1 %v9277_v20  ;;  %v12836_v19 = vsub.s32 0, %v10779_v33  ;;  %v12839_v20 = vsub.s32 2, %v10779_v33 }
 0x33b   :  { %9376 = vmatmul.mubr.msk.bf16.vlgmr.msra.gmra.mrb[108].mxu0 %vm6947_vm1, %v12397_v36  ;;  %9377 = vmatmul.mubr.msk.bf16.vlgmr.msra.gmra.mrb[108].mxu1 %vm6947_vm1, %v12397_v36  ;;  %v5990_v23 = vrot.slane %v5971_v21, %v12836_v19 }
 0x33c   :  { %7936 = vmatpush1.bf16.msra.mxu0 %v9274_v25  ;;  %7977 = vmatpush1.bf16.msra.mxu1 %v9276_v26  ;;  %v6002_v25 = vrot.slane %v5971_v21, %v12848_v22 }
 0x33d   :  { %7937 = vmatprep.subr.bf16.mxu0 %v9339_v27  ;;  %7978 = vmatprep.subr.bf16.mxu1 %v9341_v28 }
 0x33e   :  { %7967 = vmatprep.mubr.bf16.mxu0 %v10646_v38  ;;  %8008 = vmatprep.mubr.bf16.mxu1 %v10646_v38 }
 0x340   :  { %7938 = vmatpush1.bf16.msra.mxu0 %v9338_v43  ;;  %7979 = vmatpush1.bf16.msra.mxu1 %v9340_v44  ;;  %v12858_v43 = vsub.s32 6, %v10779_v33 }
 0x341   :  { %8017 = vmatprep.subr.bf16.mxu0 %v9279_v45  ;;  %8058 = vmatprep.subr.bf16.mxu1 %v9281_v46 }
 0x342   :  { %v6014_v39 = vrot.slane %v5971_v21, %v12858_v43 }
 0x343   :  { %9378 = vmatmul.mubr.msk.bf16.vlgmr.msra.gmra.mrb[112].mxu0 %vm6947_vm1, %v12397_v36  ;;  %9379 = vmatmul.mubr.msk.bf16.vlgmr.msra.gmra.mrb[112].mxu1 %vm6947_vm1, %v12397_v36 }
 0x344   :  { %8018 = vmatpush1.bf16.msra.mxu0 %v9278_v51  ;;  %8059 = vmatpush1.bf16.msra.mxu1 %v9280_v31 }
 0x345   :  { %8019 = vmatprep.subr.bf16.mxu0 %v9343_v32  ;;  %8060 = vmatprep.subr.bf16.mxu1 %v9345_v34 }
 0x346   :  { %8049 = vmatprep.mubr.bf16.mxu0 %v10646_v38  ;;  %8090 = vmatprep.mubr.bf16.mxu1 %v10646_v38 }
 0x348   :  { %8020 = vmatpush1.bf16.msra.mxu0 %v9342_v53  ;;  %8061 = vmatpush1.bf16.msra.mxu1 %v9344_v54  ;;  %v6010_v54 = vrot.slane %v5971_v21, %v12861_v48 }
 0x349   :  { %8099 = vmatprep.subr.bf16.mxu0 %v9283_v55  ;;  %8140 = vmatprep.subr.bf16.mxu1 %v9285_v56 }
 0x34b   :  { %9380 = vmatmul.mubr.msk.bf16.vlgmr.msra.gmra.mrb[116].mxu0 %vm6947_vm1, %v12397_v36  ;;  %9381 = vmatmul.mubr.msk.bf16.vlgmr.msra.gmra.mrb[116].mxu1 %vm6947_vm1, %v12397_v36 }
 0x34c   :  { %8100 = vmatpush1.bf16.msra.mxu0 %v9282_v61  ;;  %8141 = vmatpush1.bf16.msra.mxu1 %v9284_v62 }
 0x34d   :  { %8101 = vmatprep.subr.bf16.mxu0 %v9347_v63  ;;  %8142 = vmatprep.subr.bf16.mxu1 %v9349_v0 }
 0x34e   :  { %8131 = vmatprep.mubr.bf16.mxu0 %v10646_v38  ;;  %8172 = vmatprep.mubr.bf16.mxu1 %v10646_v38 }
 0x350   :  { %8102 = vmatpush1.bf16.msra.mxu0 %v9346_v5  ;;  %8143 = vmatpush1.bf16.msra.mxu1 %v9348_v6 }
 0x351   :  { %8181 = vmatprep.subr.bf16.mxu0 %v9287_v7  ;;  %8222 = vmatprep.subr.bf16.mxu1 %v9289_v8 }
 0x353   :  { %9382 = vmatmul.mubr.msk.bf16.vlgmr.msra.gmra.mrb[120].mxu0 %vm6947_vm1, %v12397_v36  ;;  %9383 = vmatmul.mubr.msk.bf16.vlgmr.msra.gmra.mrb[120].mxu1 %vm6947_vm1, %v12397_v36 }
 0x354   :  { %8182 = vmatpush1.bf16.msra.mxu0 %v9286_v13  ;;  %8223 = vmatpush1.bf16.msra.mxu1 %v9288_v14 }
 0x355   :  { %8183 = vmatprep.subr.bf16.mxu0 %v9351_v15  ;;  %8224 = vmatprep.subr.bf16.mxu1 %v9353_v16 }
 0x356   :  { %8213 = vmatprep.mubr.bf16.mxu0 %v10646_v38  ;;  %8254 = vmatprep.mubr.bf16.mxu1 %v10646_v38  ;;  %v12845_v38 = vsub.s32 1, %v10779_v33  ;;  %v6018_v33 = vrot.slane %v5971_v21, %v12864_v49 }
 0x358   :  { %8184 = vmatpush1.bf16.msra.mxu0 %v9350_v17  ;;  %8225 = vmatpush1.bf16.msra.mxu1 %v9352_v18  ;;  %v5994_v24 = vrot.slane %v5971_v21, %v12845_v38 }
 0x35b   :  { %9384 = vmatmul.mubr.msk.bf16.vlgmr.msra.gmra.mrb[124].mxu0 %vm6947_vm1, %v12397_v36  ;;  %9385 = vmatmul.mubr.msk.bf16.vlgmr.msra.gmra.mrb[124].mxu1 %vm6947_vm1, %v12397_v36  ;;  %v5998_v36 = vrot.slane %v5971_v21, %v12839_v20 }
 0x3b6   :  { %v6985_v26 = vpop.f32.mrb[64].mxu0  ;;  %v7026_v27 = vpop.f32.mrb[64].mxu1 }
 0x3b7   :  { %v6986_v28 = vadd.f32 %v6985_v26, %v5990_v23  ;;  %v7027_v29 = vadd.f32 %v7026_v27, %v5998_v36  ;;  %v6987_v30 = vpop.f32.mrb[65].mxu0  ;;  %v7028_v40 = vpop.f32.mrb[65].mxu1 }
 0x3b8   :  { %v6988_v44 = vadd.f32 %v6987_v30, %v5994_v24  ;;  %v7029_v45 = vadd.f32 %v7028_v40, %v6002_v25  ;;  %v6989_v46 = vpop.f32.mrb[66].mxu0  ;;  %v7030_v47 = vpop.f32.mrb[66].mxu1 }
 0x3b9   :  { %v8263_v50 = vmax.f32 %v6986_v28, 0.0  ;;  %v8265_v51 = vmax.f32 %v7027_v29, 0.0  ;;  %v6990_v31 = vpop.f32.mrb[67].mxu0  ;;  %v7031_v32 = vpop.f32.mrb[67].mxu1 }
 0x3ba   :  { %v8264_v34 = vmax.f32 %v6988_v44, 0.0  ;;  %v8266_v35 = vmax.f32 %v7029_v45, 0.0 }
 0x3bc   :  { %v8391_v52 = vcombine.low %v8263_v50, %v8264_v34  ;;  %v8392_v53 = vcombine.low %v8265_v51, %v8266_v35 }
 0x3bd   :  { %10632 = shalt.err (!%p10629_p4)
}
 0x3be   :  { %s10633_s17 = scalar_lea.hbm %s13044_s5, 32 }
 0x3bf   :  { %p10634_p5 = scmp.ne.s32.totalorder %s13044_s5, %s10633_s17  ;;  %p10637_p6 = scmp.lt.u32.totalorder %s10633_s17, %s13044_s5 }
 0x3c1   :  { %p10639_p7 = pnand %p10637_p6, %p10634_p5 }
 0x3c3   :  { %10642 = shalt.err (!%p10639_p7)
}
 0x3c4   :  { %8704 = dma.vmem_to_hbm [thread:$0]  %s8702_s2, 32, %s13044_s5, [#allocation3]   ;;  %v8399_v55 = vrot.slane %v8391_v52, %v10791_v41  ;;  %v8406_v56 = vrot.slane %v8392_v53, %v10791_v41  ;;  %v7067_v57 = vpop.f32.mrb[68].mxu0  ;;  %v7108_v58 = vpop.f32.mrb[68].mxu1  ;;  %v5972_v4 = vld [vmem:[%s13043_s4 + $0x8] sm:$0xff] }
 0x3c5   :  { %v7068_v59 = vadd.f32 %v7067_v57, %v6006_v37  ;;  %v7109_v60 = vadd.f32 %v7108_v58, %v6014_v39  ;;  %v7069_v61 = vpop.f32.mrb[69].mxu0  ;;  %v7110_v62 = vpop.f32.mrb[69].mxu1  ;;  %v6022_v11 = vrot.slane %v5972_v4, %v12836_v19  ;;  %v6030_v12 = vrot.slane %v5972_v4, %v12839_v20 }
 0x3c6   :  { %v8407_v63 = vcombine.low %v8399_v55, %v8406_v56  ;;  %v7070_v0 = vadd.f32 %v7069_v61, %v6010_v54  ;;  %v7111_v1 = vadd.f32 %v7110_v62, %v6018_v33  ;;  %v7071_v2 = vpop.f32.mrb[70].mxu0  ;;  %v7112_v3 = vpop.f32.mrb[70].mxu1  ;;  %v6026_v15 = vrot.slane %v5972_v4, %v12845_v38 }
 0x3c7   :  { %v8267_v5 = vmax.f32 %v7068_v59, 0.0  ;;  %v8269_v6 = vmax.f32 %v7109_v60, 0.0  ;;  %v7072_v7 = vpop.f32.mrb[71].mxu0  ;;  %v7113_v8 = vpop.f32.mrb[71].mxu1  ;;  %v6034_v16 = vrot.slane %v5972_v4, %v12848_v22  ;;  %v6038_v31 = vrot.slane %v5972_v4, %v12855_v42 }
 0x3c8   :  { %8679 = vst [vmem:[%s13045_s6] sm:$0xff] %v8407_v63  ;;  %v8268_v9 = vmax.f32 %v7070_v0, 0.0  ;;  %v8270_v10 = vmax.f32 %v7111_v1, 0.0  ;;  %v7149_v21 = vpop.f32.mrb[72].mxu0  ;;  %v7190_v23 = vpop.f32.mrb[72].mxu1  ;;  %v6046_v32 = vrot.slane %v5972_v4, %v12858_v43  ;;  %v6042_v37 = vrot.slane %v5972_v4, %v12861_v48  ;;  %v5973_v0 = vld [vmem:[%s13043_s4 + $0x10] sm:$0xff] }
 0x3c9   :  { %v7150_v36 = vadd.f32 %v7149_v21, %v6022_v11  ;;  %v7191_v24 = vadd.f32 %v7190_v23, %v6030_v12  ;;  %v7151_v25 = vpop.f32.mrb[73].mxu0  ;;  %v7192_v26 = vpop.f32.mrb[73].mxu1  ;;  %v6050_v39 = vrot.slane %v5972_v4, %v12864_v49  ;;  %v6054_v7 = vrot.slane %v5973_v0, %v12836_v19 }
 0x3ca   :  { %v8408_v13 = vcombine.low %v8267_v5, %v8268_v9  ;;  %v8409_v14 = vcombine.low %v8269_v6, %v8270_v10  ;;  %v7152_v28 = vadd.f32 %v7151_v25, %v6026_v15  ;;  %v7193_v29 = vadd.f32 %v7192_v26, %v6034_v16  ;;  %v7153_v30 = vpop.f32.mrb[74].mxu0  ;;  %v7194_v40 = vpop.f32.mrb[74].mxu1 }
 0x3cb   :  { %v8271_v44 = vmax.f32 %v7150_v36, 0.0  ;;  %v8273_v45 = vmax.f32 %v7191_v24, 0.0  ;;  %v7154_v46 = vpop.f32.mrb[75].mxu0  ;;  %v7195_v47 = vpop.f32.mrb[75].mxu1  ;;  %v6062_v8 = vrot.slane %v5973_v0, %v12839_v20  ;;  %v6058_v11 = vrot.slane %v5973_v0, %v12845_v38 }
 0x3cc   :  { %v8416_v17 = vrot.slane %v8408_v13, %v10791_v41  ;;  %v8423_v18 = vrot.slane %v8409_v14, %v10791_v41  ;;  %v8272_v50 = vmax.f32 %v7152_v28, 0.0  ;;  %v8274_v51 = vmax.f32 %v7193_v29, 0.0 }
 0x3cd   :  { %v6066_v12 = vrot.slane %v5973_v0, %v12848_v22  ;;  %v6070_v46 = vrot.slane %v5973_v0, %v12855_v42  ;;  %v6078_v47 = vrot.slane %v5973_v0, %v12858_v43 }
 0x3ce   :  { %v8424_v27 = vcombine.low %v8416_v17, %v8423_v18  ;;  %v8425_v34 = vcombine.low %v8271_v44, %v8272_v50  ;;  %v8426_v35 = vcombine.low %v8273_v45, %v8274_v51  ;;  %v7231_v54 = vpop.f32.mrb[76].mxu0  ;;  %v7272_v33 = vpop.f32.mrb[76].mxu1 }
 0x3cf   :  { %v7232_v55 = vadd.f32 %v7231_v54, %v6038_v31  ;;  %v7273_v56 = vadd.f32 %v7272_v33, %v6046_v32  ;;  %v7233_v57 = vpop.f32.mrb[77].mxu0  ;;  %v7274_v58 = vpop.f32.mrb[77].mxu1  ;;  %v6074_v31 = vrot.slane %v5973_v0, %v12861_v48  ;;  %v6082_v32 = vrot.slane %v5973_v0, %v12864_v49 }
 0x3d0   :  { %8680 = vst [vmem:[%s13045_s6 + $0x8] sm:$0xff] %v8424_v27  ;;  %v8433_v52 = vrot.slane %v8425_v34, %v10791_v41  ;;  %v8440_v53 = vrot.slane %v8426_v35, %v10791_v41  ;;  %v7234_v60 = vadd.f32 %v7233_v57, %v6042_v37  ;;  %v7275_v61 = vadd.f32 %v7274_v58, %v6050_v39  ;;  %v7235_v62 = vpop.f32.mrb[78].mxu0  ;;  %v7276_v63 = vpop.f32.mrb[78].mxu1 }
 0x3d1   :  { %v8275_v1 = vmax.f32 %v7232_v55, 0.0  ;;  %v8277_v2 = vmax.f32 %v7273_v56, 0.0  ;;  %v7236_v3 = vpop.f32.mrb[79].mxu0  ;;  %v7277_v4 = vpop.f32.mrb[79].mxu1 }
 0x3d2   :  { %v8441_v59 = vcombine.low %v8433_v52, %v8440_v53  ;;  %v8276_v5 = vmax.f32 %v7234_v60, 0.0  ;;  %v8278_v6 = vmax.f32 %v7275_v61, 0.0  ;;  %v5974_v60 = vld [vmem:[%s13043_s4 + $0x18] sm:$0xff] }
 0x3d3   :  { %v6086_v3 = vrot.slane %v5974_v60, %v12836_v19  ;;  %v6094_v4 = vrot.slane %v5974_v60, %v12839_v20 }
 0x3d4   :  { %8681 = vst [vmem:[%s13045_s6 + $0x10] sm:$0xff] %v8441_v59  ;;  %v8442_v9 = vcombine.low %v8275_v1, %v8276_v5  ;;  %v8443_v10 = vcombine.low %v8277_v2, %v8278_v6 }
 0x3d6   :  { %v8450_v13 = vrot.slane %v8442_v9, %v10791_v41  ;;  %v8457_v14 = vrot.slane %v8443_v10, %v10791_v41  ;;  %v7313_v15 = vpop.f32.mrb[80].mxu0  ;;  %v7354_v16 = vpop.f32.mrb[80].mxu1 }
 0x3d7   :  { %v7314_v17 = vadd.f32 %v7313_v15, %v6054_v7  ;;  %v7355_v18 = vadd.f32 %v7354_v16, %v6062_v8  ;;  %v7315_v21 = vpop.f32.mrb[81].mxu0  ;;  %v7356_v23 = vpop.f32.mrb[81].mxu1  ;;  %v6090_v7 = vrot.slane %v5974_v60, %v12845_v38  ;;  %v6098_v8 = vrot.slane %v5974_v60, %v12848_v22 }
 0x3d8   :  { %v8458_v36 = vcombine.low %v8450_v13, %v8457_v14  ;;  %v7316_v24 = vadd.f32 %v7315_v21, %v6058_v11  ;;  %v7357_v25 = vadd.f32 %v7356_v23, %v6066_v12  ;;  %v7317_v26 = vpop.f32.mrb[82].mxu0  ;;  %v7358_v27 = vpop.f32.mrb[82].mxu1 }
 0x3d9   :  { %v8279_v28 = vmax.f32 %v7314_v17, 0.0  ;;  %v8281_v29 = vmax.f32 %v7355_v18, 0.0  ;;  %v7318_v30 = vpop.f32.mrb[83].mxu0  ;;  %v7359_v40 = vpop.f32.mrb[83].mxu1 }
 0x3da   :  { %8682 = vst [vmem:[%s13045_s6 + $0x18] sm:$0xff] %v8458_v36  ;;  %v8280_v44 = vmax.f32 %v7316_v24, 0.0  ;;  %v8282_v45 = vmax.f32 %v7357_v25, 0.0  ;;  %v6102_v30 = vrot.slane %v5974_v60, %v12855_v42  ;;  %v6110_v40 = vrot.slane %v5974_v60, %v12858_v43 }
 0x3dc   :  { %v8459_v50 = vcombine.low %v8279_v28, %v8280_v44  ;;  %v8460_v51 = vcombine.low %v8281_v29, %v8282_v45 }
 0x3de   :  { %v8467_v34 = vrot.slane %v8459_v50, %v10791_v41  ;;  %v8474_v35 = vrot.slane %v8460_v51, %v10791_v41  ;;  %v7395_v37 = vpop.f32.mrb[84].mxu0  ;;  %v7436_v39 = vpop.f32.mrb[84].mxu1 }
 0x3df   :  { %v7396_v52 = vadd.f32 %v7395_v37, %v6070_v46  ;;  %v7437_v53 = vadd.f32 %v7436_v39, %v6078_v47  ;;  %v7397_v54 = vpop.f32.mrb[85].mxu0  ;;  %v7438_v33 = vpop.f32.mrb[85].mxu1  ;;  %v6106_v46 = vrot.slane %v5974_v60, %v12861_v48  ;;  %v6114_v47 = vrot.slane %v5974_v60, %v12864_v49 }
 0x3e0   :  { %v8475_v55 = vcombine.low %v8467_v34, %v8474_v35  ;;  %v7398_v56 = vadd.f32 %v7397_v54, %v6074_v31  ;;  %v7439_v57 = vadd.f32 %v7438_v33, %v6082_v32  ;;  %v7399_v58 = vpop.f32.mrb[86].mxu0  ;;  %v7440_v59 = vpop.f32.mrb[86].mxu1 }
 0x3e1   :  { %v8283_v61 = vmax.f32 %v7396_v52, 0.0  ;;  %v8285_v62 = vmax.f32 %v7437_v53, 0.0  ;;  %v7400_v63 = vpop.f32.mrb[87].mxu0  ;;  %v7441_v0 = vpop.f32.mrb[87].mxu1 }
 0x3e2   :  { %8683 = vst [vmem:[%s13045_s6 + $0x20] sm:$0xff] %v8475_v55  ;;  %v8284_v1 = vmax.f32 %v7398_v56, 0.0  ;;  %v8286_v2 = vmax.f32 %v7439_v57, 0.0  ;;  %v5975_v56 = vld [vmem:[%s13043_s4 + $0x20] sm:$0xff] }
 0x3e3   :  { %v6118_v63 = vrot.slane %v5975_v56, %v12836_v19  ;;  %v6126_v0 = vrot.slane %v5975_v56, %v12839_v20 }
 0x3e4   :  { %v8476_v5 = vcombine.low %v8283_v61, %v8284_v1  ;;  %v8477_v6 = vcombine.low %v8285_v62, %v8286_v2 }
 0x3e6   :  { %v8484_v9 = vrot.slane %v8476_v5, %v10791_v41  ;;  %v8491_v10 = vrot.slane %v8477_v6, %v10791_v41  ;;  %v7477_v11 = vpop.f32.mrb[88].mxu0  ;;  %v7518_v12 = vpop.f32.mrb[88].mxu1 }
 0x3e7   :  { %v7478_v13 = vadd.f32 %v7477_v11, %v6086_v3  ;;  %v7519_v14 = vadd.f32 %v7518_v12, %v6094_v4  ;;  %v7479_v15 = vpop.f32.mrb[89].mxu0  ;;  %v7520_v16 = vpop.f32.mrb[89].mxu1  ;;  %v6122_v3 = vrot.slane %v5975_v56, %v12845_v38  ;;  %v6130_v4 = vrot.slane %v5975_v56, %v12848_v22 }
 0x3e8   :  { %v8492_v17 = vcombine.low %v8484_v9, %v8491_v10  ;;  %v7480_v18 = vadd.f32 %v7479_v15, %v6090_v7  ;;  %v7521_v21 = vadd.f32 %v7520_v16, %v6098_v8  ;;  %v7481_v23 = vpop.f32.mrb[90].mxu0  ;;  %v7522_v36 = vpop.f32.mrb[90].mxu1 }
 0x3e9   :  { %v8287_v24 = vmax.f32 %v7478_v13, 0.0  ;;  %v8289_v25 = vmax.f32 %v7519_v14, 0.0  ;;  %v7482_v26 = vpop.f32.mrb[91].mxu0  ;;  %v7523_v27 = vpop.f32.mrb[91].mxu1 }
 0x3ea   :  { %8684 = vst [vmem:[%s13045_s6 + $0x28] sm:$0xff] %v8492_v17  ;;  %v8288_v28 = vmax.f32 %v7480_v18, 0.0  ;;  %v8290_v29 = vmax.f32 %v7521_v21, 0.0  ;;  %v6134_v26 = vrot.slane %v5975_v56, %v12855_v42  ;;  %v6142_v27 = vrot.slane %v5975_v56, %v12858_v43 }
 0x3ec   :  { %v8493_v44 = vcombine.low %v8287_v24, %v8288_v28  ;;  %v8494_v45 = vcombine.low %v8289_v25, %v8290_v29 }
 0x3ee   :  { %v8501_v50 = vrot.slane %v8493_v44, %v10791_v41  ;;  %v8508_v51 = vrot.slane %v8494_v45, %v10791_v41  ;;  %v7559_v31 = vpop.f32.mrb[92].mxu0  ;;  %v7600_v32 = vpop.f32.mrb[92].mxu1 }
 0x3ef   :  { %v7560_v34 = vadd.f32 %v7559_v31, %v6102_v30  ;;  %v7601_v35 = vadd.f32 %v7600_v32, %v6110_v40  ;;  %v7561_v37 = vpop.f32.mrb[93].mxu0  ;;  %v7602_v39 = vpop.f32.mrb[93].mxu1  ;;  %v6138_v30 = vrot.slane %v5975_v56, %v12861_v48  ;;  %v6146_v40 = vrot.slane %v5975_v56, %v12864_v49 }
 0x3f0   :  { %v8509_v52 = vcombine.low %v8501_v50, %v8508_v51  ;;  %v7562_v53 = vadd.f32 %v7561_v37, %v6106_v46  ;;  %v7603_v54 = vadd.f32 %v7602_v39, %v6114_v47  ;;  %v7563_v33 = vpop.f32.mrb[94].mxu0  ;;  %v7604_v55 = vpop.f32.mrb[94].mxu1 }
 0x3f1   :  { %v8291_v57 = vmax.f32 %v7560_v34, 0.0  ;;  %v8293_v58 = vmax.f32 %v7601_v35, 0.0  ;;  %v7564_v59 = vpop.f32.mrb[95].mxu0  ;;  %v7605_v60 = vpop.f32.mrb[95].mxu1 }
 0x3f2   :  { %8685 = vst [vmem:[%s13045_s6 + $0x30] sm:$0xff] %v8509_v52  ;;  %v8292_v61 = vmax.f32 %v7562_v53, 0.0  ;;  %v8294_v62 = vmax.f32 %v7603_v54, 0.0  ;;  %v5976_v53 = vld [vmem:[%s13043_s4 + $0x28] sm:$0xff] }
 0x3f3   :  { %v6150_v59 = vrot.slane %v5976_v53, %v12836_v19  ;;  %v6158_v60 = vrot.slane %v5976_v53, %v12839_v20 }
 0x3f4   :  { %v8510_v1 = vcombine.low %v8291_v57, %v8292_v61  ;;  %v8511_v2 = vcombine.low %v8293_v58, %v8294_v62 }
 0x3f6   :  { %v8518_v5 = vrot.slane %v8510_v1, %v10791_v41  ;;  %v8525_v6 = vrot.slane %v8511_v2, %v10791_v41  ;;  %v7641_v7 = vpop.f32.mrb[96].mxu0  ;;  %v7682_v8 = vpop.f32.mrb[96].mxu1 }
 0x3f7   :  { %v7642_v9 = vadd.f32 %v7641_v7, %v6118_v63  ;;  %v7683_v10 = vadd.f32 %v7682_v8, %v6126_v0  ;;  %v7643_v11 = vpop.f32.mrb[97].mxu0  ;;  %v7684_v12 = vpop.f32.mrb[97].mxu1  ;;  %v6154_v63 = vrot.slane %v5976_v53, %v12845_v38  ;;  %v6162_v0 = vrot.slane %v5976_v53, %v12848_v22 }
 0x3f8   :  { %v8526_v13 = vcombine.low %v8518_v5, %v8525_v6  ;;  %v7644_v14 = vadd.f32 %v7643_v11, %v6122_v3  ;;  %v7685_v15 = vadd.f32 %v7684_v12, %v6130_v4  ;;  %v7645_v16 = vpop.f32.mrb[98].mxu0  ;;  %v7686_v17 = vpop.f32.mrb[98].mxu1 }
 0x3f9   :  { %v8295_v18 = vmax.f32 %v7642_v9, 0.0  ;;  %v8297_v21 = vmax.f32 %v7683_v10, 0.0  ;;  %v7646_v23 = vpop.f32.mrb[99].mxu0  ;;  %v7687_v36 = vpop.f32.mrb[99].mxu1 }
 0x3fa   :  { %8686 = vst [vmem:[%s13045_s6 + $0x38] sm:$0xff] %v8526_v13  ;;  %v8296_v24 = vmax.f32 %v7644_v14, 0.0  ;;  %v8298_v25 = vmax.f32 %v7685_v15, 0.0  ;;  %v6166_v23 = vrot.slane %v5976_v53, %v12855_v42  ;;  %v6174_v36 = vrot.slane %v5976_v53, %v12858_v43 }
 0x3fc   :  { %v8527_v28 = vcombine.low %v8295_v18, %v8296_v24  ;;  %v8528_v29 = vcombine.low %v8297_v21, %v8298_v25 }
 0x3fe   :  { %v8535_v44 = vrot.slane %v8527_v28, %v10791_v41  ;;  %v8542_v45 = vrot.slane %v8528_v29, %v10791_v41  ;;  %v7723_v46 = vpop.f32.mrb[100].mxu0  ;;  %v7764_v47 = vpop.f32.mrb[100].mxu1 }
 0x3ff   :  { %v7724_v50 = vadd.f32 %v7723_v46, %v6134_v26  ;;  %v7765_v51 = vadd.f32 %v7764_v47, %v6142_v27  ;;  %v7725_v31 = vpop.f32.mrb[101].mxu0  ;;  %v7766_v32 = vpop.f32.mrb[101].mxu1  ;;  %v6170_v26 = vrot.slane %v5976_v53, %v12861_v48  ;;  %v6178_v27 = vrot.slane %v5976_v53, %v12864_v49 }
 0x400   :  { %v8543_v34 = vcombine.low %v8535_v44, %v8542_v45  ;;  %v7726_v35 = vadd.f32 %v7725_v31, %v6138_v30  ;;  %v7767_v37 = vadd.f32 %v7766_v32, %v6146_v40  ;;  %v7727_v39 = vpop.f32.mrb[102].mxu0  ;;  %v7768_v52 = vpop.f32.mrb[102].mxu1 }
 0x401   :  { %v8299_v54 = vmax.f32 %v7724_v50, 0.0  ;;  %v8301_v33 = vmax.f32 %v7765_v51, 0.0  ;;  %v7728_v55 = vpop.f32.mrb[103].mxu0  ;;  %v7769_v56 = vpop.f32.mrb[103].mxu1 }
 0x402   :  { %8687 = vst [vmem:[%s13045_s6 + $0x40] sm:$0xff] %v8543_v34  ;;  %v8300_v57 = vmax.f32 %v7726_v35, 0.0  ;;  %v8302_v58 = vmax.f32 %v7767_v37, 0.0  ;;  %v5977_v35 = vld [vmem:[%s13043_s4 + $0x30] sm:$0xff] }
 0x403   :  { %v6182_v55 = vrot.slane %v5977_v35, %v12836_v19  ;;  %v6190_v56 = vrot.slane %v5977_v35, %v12839_v20 }
 0x404   :  { %v8544_v61 = vcombine.low %v8299_v54, %v8300_v57  ;;  %v8545_v62 = vcombine.low %v8301_v33, %v8302_v58 }
 0x406   :  { %v8552_v1 = vrot.slane %v8544_v61, %v10791_v41  ;;  %v8559_v2 = vrot.slane %v8545_v62, %v10791_v41  ;;  %v7805_v3 = vpop.f32.mrb[104].mxu0  ;;  %v7846_v4 = vpop.f32.mrb[104].mxu1 }
 0x407   :  { %v7806_v5 = vadd.f32 %v7805_v3, %v6150_v59  ;;  %v7847_v6 = vadd.f32 %v7846_v4, %v6158_v60  ;;  %v7807_v7 = vpop.f32.mrb[105].mxu0  ;;  %v7848_v8 = vpop.f32.mrb[105].mxu1  ;;  %v6186_v59 = vrot.slane %v5977_v35, %v12845_v38  ;;  %v6194_v60 = vrot.slane %v5977_v35, %v12848_v22 }
 0x408   :  { %v8560_v9 = vcombine.low %v8552_v1, %v8559_v2  ;;  %v7808_v10 = vadd.f32 %v7807_v7, %v6154_v63  ;;  %v7849_v11 = vadd.f32 %v7848_v8, %v6162_v0  ;;  %v7809_v12 = vpop.f32.mrb[106].mxu0  ;;  %v7850_v13 = vpop.f32.mrb[106].mxu1 }
 0x409   :  { %v8303_v14 = vmax.f32 %v7806_v5, 0.0  ;;  %v8305_v15 = vmax.f32 %v7847_v6, 0.0  ;;  %v7810_v16 = vpop.f32.mrb[107].mxu0  ;;  %v7851_v17 = vpop.f32.mrb[107].mxu1 }
 0x40a   :  { %8688 = vst [vmem:[%s13045_s6 + $0x48] sm:$0xff] %v8560_v9  ;;  %v8304_v18 = vmax.f32 %v7808_v10, 0.0  ;;  %v8306_v21 = vmax.f32 %v7849_v11, 0.0  ;;  %v6198_v16 = vrot.slane %v5977_v35, %v12855_v42  ;;  %v6206_v17 = vrot.slane %v5977_v35, %v12858_v43 }
 0x40c   :  { %v8561_v24 = vcombine.low %v8303_v14, %v8304_v18  ;;  %v8562_v25 = vcombine.low %v8305_v15, %v8306_v21 }
 0x40e   :  { %v8569_v28 = vrot.slane %v8561_v24, %v10791_v41  ;;  %v8576_v29 = vrot.slane %v8562_v25, %v10791_v41  ;;  %v7887_v30 = vpop.f32.mrb[108].mxu0  ;;  %v7928_v40 = vpop.f32.mrb[108].mxu1 }
 0x40f   :  { %v7888_v44 = vadd.f32 %v7887_v30, %v6166_v23  ;;  %v7929_v45 = vadd.f32 %v7928_v40, %v6174_v36  ;;  %v7889_v46 = vpop.f32.mrb[109].mxu0  ;;  %v7930_v47 = vpop.f32.mrb[109].mxu1  ;;  %v6202_v23 = vrot.slane %v5977_v35, %v12861_v48  ;;  %v6210_v36 = vrot.slane %v5977_v35, %v12864_v49 }
 0x410   :  { %v8577_v50 = vcombine.low %v8569_v28, %v8576_v29  ;;  %v7890_v51 = vadd.f32 %v7889_v46, %v6170_v26  ;;  %v7931_v31 = vadd.f32 %v7930_v47, %v6178_v27  ;;  %v7891_v32 = vpop.f32.mrb[110].mxu0  ;;  %v7932_v34 = vpop.f32.mrb[110].mxu1 }
 0x411   :  { %v8307_v37 = vmax.f32 %v7888_v44, 0.0  ;;  %v8309_v39 = vmax.f32 %v7929_v45, 0.0  ;;  %v7892_v52 = vpop.f32.mrb[111].mxu0  ;;  %v7933_v53 = vpop.f32.mrb[111].mxu1 }
 0x412   :  { %8689 = vst [vmem:[%s13045_s6 + $0x50] sm:$0xff] %v8577_v50  ;;  %v8308_v54 = vmax.f32 %v7890_v51, 0.0  ;;  %v8310_v33 = vmax.f32 %v7931_v31, 0.0  ;;  %v5978_v51 = vld [vmem:[%s13043_s4 + $0x38] sm:$0xff] }
 0x413   :  { %v6214_v52 = vrot.slane %v5978_v51, %v12836_v19  ;;  %v6222_v53 = vrot.slane %v5978_v51, %v12839_v20 }
 0x414   :  { %v8578_v57 = vcombine.low %v8307_v37, %v8308_v54  ;;  %v8579_v58 = vcombine.low %v8309_v39, %v8310_v33 }
 0x416   :  { %v8586_v61 = vrot.slane %v8578_v57, %v10791_v41  ;;  %v8593_v62 = vrot.slane %v8579_v58, %v10791_v41  ;;  %v7969_v63 = vpop.f32.mrb[112].mxu0  ;;  %v8010_v0 = vpop.f32.mrb[112].mxu1 }
 0x417   :  { %v7970_v1 = vadd.f32 %v7969_v63, %v6182_v55  ;;  %v8011_v2 = vadd.f32 %v8010_v0, %v6190_v56  ;;  %v7971_v3 = vpop.f32.mrb[113].mxu0  ;;  %v8012_v4 = vpop.f32.mrb[113].mxu1  ;;  %v6218_v55 = vrot.slane %v5978_v51, %v12845_v38  ;;  %v6226_v56 = vrot.slane %v5978_v51, %v12848_v22 }
 0x418   :  { %v8594_v5 = vcombine.low %v8586_v61, %v8593_v62  ;;  %v7972_v6 = vadd.f32 %v7971_v3, %v6186_v59  ;;  %v8013_v7 = vadd.f32 %v8012_v4, %v6194_v60  ;;  %v7973_v8 = vpop.f32.mrb[114].mxu0  ;;  %v8014_v9 = vpop.f32.mrb[114].mxu1 }
 0x419   :  { %v8311_v10 = vmax.f32 %v7970_v1, 0.0  ;;  %v8313_v11 = vmax.f32 %v8011_v2, 0.0  ;;  %v7974_v12 = vpop.f32.mrb[115].mxu0  ;;  %v8015_v13 = vpop.f32.mrb[115].mxu1  ;;  %v6230_v8 = vrot.slane %v5978_v51, %v12855_v42  ;;  %v6238_v9 = vrot.slane %v5978_v51, %v12858_v43 }
 0x41a   :  { %8690 = vst [vmem:[%s13045_s6 + $0x58] sm:$0xff] %v8594_v5  ;;  %v8312_v14 = vmax.f32 %v7972_v6, 0.0  ;;  %v8314_v15 = vmax.f32 %v8013_v7, 0.0  ;;  %v6234_v12 = vrot.slane %v5978_v51, %v12861_v48  ;;  %v6242_v13 = vrot.slane %v5978_v51, %v12864_v49 }
 0x41c   :  { %v8595_v18 = vcombine.low %v8311_v10, %v8312_v14  ;;  %v8596_v21 = vcombine.low %v8313_v11, %v8314_v15 }
 0x41e   :  { %v8603_v24 = vrot.slane %v8595_v18, %v10791_v41  ;;  %v8610_v25 = vrot.slane %v8596_v21, %v10791_v41  ;;  %v8051_v26 = vpop.f32.mrb[116].mxu0  ;;  %v8092_v27 = vpop.f32.mrb[116].mxu1 }
 0x41f   :  { %v8052_v28 = vadd.f32 %v8051_v26, %v6198_v16  ;;  %v8093_v29 = vadd.f32 %v8092_v27, %v6206_v17  ;;  %v8053_v30 = vpop.f32.mrb[117].mxu0  ;;  %v8094_v40 = vpop.f32.mrb[117].mxu1 }
 0x420   :  { %v8611_v44 = vcombine.low %v8603_v24, %v8610_v25  ;;  %v8054_v45 = vadd.f32 %v8053_v30, %v6202_v23  ;;  %v8095_v46 = vadd.f32 %v8094_v40, %v6210_v36  ;;  %v8055_v47 = vpop.f32.mrb[118].mxu0  ;;  %v8096_v50 = vpop.f32.mrb[118].mxu1 }
 0x421   :  { %v8315_v31 = vmax.f32 %v8052_v28, 0.0  ;;  %v8317_v32 = vmax.f32 %v8093_v29, 0.0  ;;  %v8056_v34 = vpop.f32.mrb[119].mxu0  ;;  %v8097_v35 = vpop.f32.mrb[119].mxu1 }
 0x422   :  { %8691 = vst [vmem:[%s13045_s6 + $0x60] sm:$0xff] %v8611_v44  ;;  %v8316_v37 = vmax.f32 %v8054_v45, 0.0  ;;  %v8318_v39 = vmax.f32 %v8095_v46, 0.0 }
 0x424   :  { %v8612_v54 = vcombine.low %v8315_v31, %v8316_v37  ;;  %v8613_v33 = vcombine.low %v8317_v32, %v8318_v39 }
 0x426   :  { %v8620_v57 = vrot.slane %v8612_v54, %v10791_v41  ;;  %v8627_v58 = vrot.slane %v8613_v33, %v10791_v41  ;;  %v8133_v59 = vpop.f32.mrb[120].mxu0  ;;  %v8174_v60 = vpop.f32.mrb[120].mxu1 }
 0x427   :  { %v8134_v61 = vadd.f32 %v8133_v59, %v6214_v52  ;;  %v8175_v62 = vadd.f32 %v8174_v60, %v6222_v53  ;;  %v8135_v63 = vpop.f32.mrb[121].mxu0  ;;  %v8176_v0 = vpop.f32.mrb[121].mxu1 }
 0x428   :  { %v8628_v1 = vcombine.low %v8620_v57, %v8627_v58  ;;  %v8136_v19 = vadd.f32 %v8135_v63, %v6218_v55  ;;  %v8177_v2 = vadd.f32 %v8176_v0, %v6226_v56  ;;  %v8137_v20 = vpop.f32.mrb[122].mxu0  ;;  %v8178_v3 = vpop.f32.mrb[122].mxu1 }
 0x429   :  { %v8319_v4 = vmax.f32 %v8134_v61, 0.0  ;;  %v8321_v5 = vmax.f32 %v8175_v62, 0.0  ;;  %v8138_v38 = vpop.f32.mrb[123].mxu0  ;;  %v8179_v6 = vpop.f32.mrb[123].mxu1 }
 0x42a   :  { %8692 = vst [vmem:[%s13045_s6 + $0x68] sm:$0xff] %v8628_v1  ;;  %v8320_v22 = vmax.f32 %v8136_v19, 0.0  ;;  %v8322_v7 = vmax.f32 %v8177_v2, 0.0 }
 0x42c   :  { %v8629_v10 = vcombine.low %v8319_v4, %v8320_v22  ;;  %v8630_v11 = vcombine.low %v8321_v5, %v8322_v7 }
 0x42e   :  { %v8637_v14 = vrot.slane %v8629_v10, %v10791_v41  ;;  %v8644_v15 = vrot.slane %v8630_v11, %v10791_v41  ;;  %v8215_v16 = vpop.f32.mrb[124].mxu0  ;;  %v8256_v17 = vpop.f32.mrb[124].mxu1 }
 0x42f   :  { %v8216_v18 = vadd.f32 %v8215_v16, %v6230_v8  ;;  %v8257_v21 = vadd.f32 %v8256_v17, %v6238_v9  ;;  %v8217_v23 = vpop.f32.mrb[125].mxu0  ;;  %v8258_v36 = vpop.f32.mrb[125].mxu1 }
 0x430   :  { %v8645_v24 = vcombine.low %v8637_v14, %v8644_v15  ;;  %v8218_v42 = vadd.f32 %v8217_v23, %v6234_v12  ;;  %v8259_v25 = vadd.f32 %v8258_v36, %v6242_v13  ;;  %v8219_v43 = vpop.f32.mrb[126].mxu0  ;;  %v8260_v26 = vpop.f32.mrb[126].mxu1 }
 0x431   :  { %v8323_v27 = vmax.f32 %v8216_v18, 0.0  ;;  %v8325_v28 = vmax.f32 %v8257_v21, 0.0  ;;  %v8220_v48 = vpop.f32.mrb[127].mxu0  ;;  %v8261_v29 = vpop.f32.mrb[127].mxu1 }
 0x432   :  { %8693 = vst [vmem:[%s13045_s6 + $0x70] sm:$0xff] %v8645_v24  ;;  %v8324_v49 = vmax.f32 %v8218_v42, 0.0  ;;  %v8326_v30 = vmax.f32 %v8259_v25, 0.0 }
 0x434   :  { %v8646_v40 = vcombine.low %v8323_v27, %v8324_v49  ;;  %v8647_v44 = vcombine.low %v8325_v28, %v8326_v30 }
 0x436   :  { %v8654_v45 = vrot.slane %v8646_v40, %v10791_v41  ;;  %v8661_v46 = vrot.slane %v8647_v44, %v10791_v41 }
 0x438   :  { %v8662_v47 = vcombine.low %v8654_v45, %v8661_v46 }
 0x43a   :  { %8694 = vst [vmem:[%s13045_s6 + $0x78] sm:$0xff] %v8662_v47 }
 0x43b   :  { %10643 = dma.done.wait [#allocation3], 32  }
 0x43c   :  { %10644 = vsyncadd [#allocation3], 4294967264 }
 0x43d   :  { %8712 = vsyncpa [#allocation3], 1 }

</bundles_post_ra>
